<compile_context>
chip_gen: v6e
topology: v6e:2x2x1
jax: 0.10.0
libtpu: 0.0.40
codegen_flags: <defaults>
</compile_context>

<pallas_src>
import numpy as np

import jax
import jax.numpy as jnp
from jax import lax
from jax.experimental import pallas as pl
from jax.experimental.pallas import tpu as pltpu


_CONV_LAYERS = ("conv1", "conv2", "conv3", "conv4")
_N_OUT = 12


# ----------------------------------------------------------------------------
# Fused kernel
# ----------------------------------------------------------------------------
def _elu(v):
    # ELU(alpha=1): x if x > 0 else exp(x) - 1   (exp(min(v,0)) is overflow-safe)
    return jnp.where(v > 0, v, jnp.exp(jnp.minimum(v, 0.0)) - 1.0)


def _conv_as_matmuls(a, r_ref, w_ref, b_ref, apply_elu):
    """a: (H, W*Cin) flattened NHWC activation -> (Ho, Wo*Cout)."""
    y = b_ref[...]                                                  # (1, Wo*Cout)
    for di in range(3):
        s = jnp.dot(r_ref[di], a, preferred_element_type=jnp.float32)      # (Ho, W*Cin)
        y = y + jnp.dot(s, w_ref[di], preferred_element_type=jnp.float32)  # (Ho, Wo*Cout)
    return _elu(y) if apply_elu else y


def _mario_fused_kernel(x_ref,
                        r1_ref, w1_ref, b1_ref,
                        r2_ref, w2_ref, b2_ref,
                        r3_ref, w3_ref, b3_ref,
                        r4_ref, w4_ref, b4_ref,
                        fc1w_ref, fc1b_ref, fc2w_ref, fc2b_ref,
                        o_ref):
    a = x_ref[0]                                                    # (42, 42*Cin)
    a = _conv_as_matmuls(a, r1_ref, w1_ref, b1_ref, True)           # (21, 21*32)
    a = _conv_as_matmuls(a, r2_ref, w2_ref, b2_ref, True)           # (11, 11*32)
    a = _conv_as_matmuls(a, r3_ref, w3_ref, b3_ref, True)           # ( 6,  6*32)
    a = _conv_as_matmuls(a, r4_ref, w4_ref, b4_ref, False)          # ( 3,  3*32) no ELU

    # fc1: nn.Flatten is folded into the pre-permuted fc1 weight; sum one dot
    # per conv-output row so no in-kernel reshape is needed.
    rows, blk = a.shape                                             # (3, 96)
    fc1w = fc1w_ref[...]                                            # (288, 100)
    h = fc1b_ref[...]                                               # (1, 100)
    for i in range(rows):
        h = h + jnp.dot(a[i:i + 1, :], fc1w[i * blk:(i + 1) * blk, :],
                        preferred_element_type=jnp.float32)
    h = _elu(h)

    out = jnp.dot(h, fc2w_ref[...], preferred_element_type=jnp.float32) + fc2b_ref[...]
    o_ref[0] = out.astype(o_ref.dtype)


# ----------------------------------------------------------------------------
# Parameters (PyTorch layouts) and one-time lowering to the kernel layout
# ----------------------------------------------------------------------------
def init_params(frames_per_state: int, key):
    """Parameters in PyTorch layouts (Conv2d OIHW, Linear (out, in))."""
    keys = jax.random.split(key, 12)
    scale = 0.05

    def w(k, shape):
        return (scale * jax.random.normal(k, shape)).astype(jnp.float32)

    return {
        "conv1_w": w(keys[0], (32, frames_per_state, 3, 3)),
        "conv1_b": w(keys[1], (32,)),
        "conv2_w": w(keys[2], (32, 32, 3, 3)),
        "conv2_b": w(keys[3], (32,)),
        "conv3_w": w(keys[4], (32, 32, 3, 3)),
        "conv3_b": w(keys[5], (32,)),
        "conv4_w": w(keys[6], (32, 32, 3, 3)),
        "conv4_b": w(keys[7], (32,)),
        "fc1_w": w(keys[8], (100, 288)),   # PyTorch Linear: (out, in)
        "fc1_b": w(keys[9], (100,)),
        "fc2_w": w(keys[10], (12, 100)),
        "fc2_b": w(keys[11], (12,)),
    }


def prepare_params(params, height=42, width=42):
    """One-time lowering of PyTorch-layout params (done outside the jitted path)."""
    p = {}
    H, W = height, width
    for name in _CONV_LAYERS:
        wt = np.asarray(params[name + "_w"], dtype=np.float32)      # (Co, Ci, 3, 3)
        bias = np.asarray(params[name + "_b"], dtype=np.float32)    # (Co,)
        Co, Ci = wt.shape[0], wt.shape[1]
        Ho, Wo = (H - 1) // 2 + 1, (W - 1) // 2 + 1                 # stride 2, pad 1, k 3
        R = np.zeros((3, Ho, H), np.float32)
        BW = np.zeros((3, W * Ci, Wo * Co), np.float32)
        for di in range(3):
            for i in range(Ho):
                h = 2 * i + di - 1
                if 0 <= h < H:
                    R[di, i, h] = 1.0
            for dj in range(3):
                tap = np.ascontiguousarray(wt[:, :, di, dj].T)      # (Ci, Co)
                for j in range(Wo):
                    w_idx = 2 * j + dj - 1
                    if 0 <= w_idx < W:
                        BW[di, w_idx * Ci:(w_idx + 1) * Ci, j * Co:(j + 1) * Co] = tap
        p[name + "_R"] = jnp.asarray(R)
        p[name + "_W"] = jnp.asarray(BW)
        p[name + "_b"] = jnp.asarray(np.tile(bias, Wo)[None, :])    # (1, Wo*Co)
        H, W = Ho, Wo

    co_last = int(np.asarray(params["conv4_w"]).shape[0])           # 32
    fc1_w = np.asarray(params["fc1_w"], dtype=np.float32)           # (100, 288)
    n_fc1 = fc1_w.shape[0]
    # PyTorch flattens (c, h, w); the kernel produces (h, w, c) -> permute cols.
    fc1_eff = (fc1_w.T.reshape(co_last, H, W, n_fc1)
               .transpose(1, 2, 0, 3).reshape(H * W * co_last, n_fc1))
    p["fc1_w"] = jnp.asarray(np.ascontiguousarray(fc1_eff))         # (288, 100)
    p["fc1_b"] = jnp.asarray(np.asarray(params["fc1_b"], np.float32)[None, :])
    fc2_w = np.asarray(params["fc2_w"], dtype=np.float32)           # (12, 100)
    p["fc2_w"] = jnp.asarray(np.ascontiguousarray(fc2_w.T))         # (100, 12)
    p["fc2_b"] = jnp.asarray(np.asarray(params["fc2_b"], np.float32)[None, :])
    return p


# ----------------------------------------------------------------------------
# Forward (single pallas_call)
# ----------------------------------------------------------------------------
def mario_forward(prepped, x):
    """x: (B, frames_per_state, 42, 42) NCHW float32 -> (B, 12)."""
    B, C, H, W = x.shape
    # One-time boundary layout conversion: NCHW -> (B, H, W*C) channels-last rows.
    xl = jnp.transpose(x, (0, 2, 3, 1)).reshape(B, H, W * C)

    def const_spec(a):
        n = a.ndim
        return pl.BlockSpec(a.shape, lambda b, n=n: (0,) * n)

    weight_args = []
    in_specs = [pl.BlockSpec((1, H, W * C), lambda b: (b, 0, 0))]
    for name in _CONV_LAYERS:
        for suffix in ("_R", "_W", "_b"):
            a = prepped[name + suffix]
            weight_args.append(a)
            in_specs.append(const_spec(a))
    for key in ("fc1_w", "fc1_b", "fc2_w", "fc2_b"):
        a = prepped[key]
        weight_args.append(a)
        in_specs.append(const_spec(a))

    out = pl.pallas_call(
        _mario_fused_kernel,
        out_shape=jax.ShapeDtypeStruct((B, 1, _N_OUT), jnp.float32),
        grid=(B,),
        in_specs=in_specs,
        out_specs=pl.BlockSpec((1, 1, _N_OUT), lambda b: (b, 0, 0)),
        compiler_params=pltpu.CompilerParams(
            dimension_semantics=("parallel",),   # shard batch across v7x's 2 TCs
            vmem_limit_bytes=32 << 20,
        ),
    )(xl, *weight_args)
    return out.reshape(B, _N_OUT)


# ----------------------------------------------------------------------------
# Pure-JAX reference (for a correctness check only)
# ----------------------------------------------------------------------------
def mario_reference(params, x):
    def conv(h, w, b):
        y = lax.conv_general_dilated(
            h, w, window_strides=(2, 2), padding=((1, 1), (1, 1)),
            dimension_numbers=("NCHW", "OIHW", "NCHW"),
            precision=lax.Precision.HIGHEST)
        return y + b[None, :, None, None]

    h = jax.nn.elu(conv(x, params["conv1_w"], params["conv1_b"]))
    h = jax.nn.elu(conv(h, params["conv2_w"], params["conv2_b"]))
    h = jax.nn.elu(conv(h, params["conv3_w"], params["conv3_b"]))
    h = conv(h, params["conv4_w"], params["conv4_b"])
    h = h.reshape(h.shape[0], -1)
    h = jax.nn.elu(jnp.dot(h, params["fc1_w"].T, precision=lax.Precision.HIGHEST)
                   + params["fc1_b"])
    return jnp.dot(h, params["fc2_w"].T, precision=lax.Precision.HIGHEST) + params["fc2_b"]


if __name__ == "__main__":
    key = jax.random.PRNGKey(0)
    k_param, k_x = jax.random.split(key)

    frames_per_state = 4
    batch = 2
    # Spatial size must be 42x42 so the flattened conv output is 288 (=32*3*3),
    # matching nn.Linear(288, 100).
    x = jax.random.normal(k_x, (batch, frames_per_state, 42, 42), dtype=jnp.float32)

    params = init_params(frames_per_state, k_param)
    prepped = prepare_params(params)

    fwd = jax.jit(mario_forward)
    out = fwd(prepped, x)
    jax.block_until_ready(out)

    assert out.shape == (batch, 12), out.shape
    assert out.dtype == jnp.float32

    ref = mario_reference(params, x)
    err = float(jnp.max(jnp.abs(out - ref)))
    assert err < 1e-3, f"mismatch vs reference: {err}"
    print("KERNEL_OK")
</pallas_src>

<mosaic_0001>
module attributes {stable_mosaic.version = 11 : i64} {
  func.func @_mario_fused_kernel(%arg0: i32, %arg1: memref<1x42x168xf32, #tpu.memory_space<vmem>>, %arg2: memref<3x21x42xf32, #tpu.memory_space<vmem>>, %arg3: memref<3x168x672xf32, #tpu.memory_space<vmem>>, %arg4: memref<1x672xf32, #tpu.memory_space<vmem>>, %arg5: memref<3x11x21xf32, #tpu.memory_space<vmem>>, %arg6: memref<3x672x352xf32, #tpu.memory_space<vmem>>, %arg7: memref<1x352xf32, #tpu.memory_space<vmem>>, %arg8: memref<3x6x11xf32, #tpu.memory_space<vmem>>, %arg9: memref<3x352x192xf32, #tpu.memory_space<vmem>>, %arg10: memref<1x192xf32, #tpu.memory_space<vmem>>, %arg11: memref<3x3x6xf32, #tpu.memory_space<vmem>>, %arg12: memref<3x192x96xf32, #tpu.memory_space<vmem>>, %arg13: memref<1x96xf32, #tpu.memory_space<vmem>>, %arg14: memref<288x100xf32, #tpu.memory_space<vmem>>, %arg15: memref<1x100xf32, #tpu.memory_space<vmem>>, %arg16: memref<100x12xf32, #tpu.memory_space<vmem>>, %arg17: memref<1x12xf32, #tpu.memory_space<vmem>>, %arg18: memref<1x1x12xf32, #tpu.memory_space<vmem>>) attributes {dimension_semantics = [#tpu.dimension_semantics<parallel>], iteration_bounds = array<i64: 2>, scalar_prefetch = 0 : i64, scratch_operands = 0 : i64, tpu.core_type = #tpu.core_type<tc>, window_params = [{transform_indices = @transform_0, window_bounds = array<i64: 1, 42, 168>}, {pipeline_mode = #tpu.pipeline_mode<synchronous>, transform_indices = @transform_1, window_bounds = array<i64: 3, 21, 42>}, {pipeline_mode = #tpu.pipeline_mode<synchronous>, transform_indices = @transform_2, window_bounds = array<i64: 3, 168, 672>}, {pipeline_mode = #tpu.pipeline_mode<synchronous>, transform_indices = @transform_3, window_bounds = array<i64: 1, 672>}, {pipeline_mode = #tpu.pipeline_mode<synchronous>, transform_indices = @transform_4, window_bounds = array<i64: 3, 11, 21>}, {pipeline_mode = #tpu.pipeline_mode<synchronous>, transform_indices = @transform_5, window_bounds = array<i64: 3, 672, 352>}, {pipeline_mode = #tpu.pipeline_mode<synchronous>, transform_indices = @transform_6, window_bounds = array<i64: 1, 352>}, {pipeline_mode = #tpu.pipeline_mode<synchronous>, transform_indices = @transform_7, window_bounds = array<i64: 3, 6, 11>}, {pipeline_mode = #tpu.pipeline_mode<synchronous>, transform_indices = @transform_8, window_bounds = array<i64: 3, 352, 192>}, {pipeline_mode = #tpu.pipeline_mode<synchronous>, transform_indices = @transform_9, window_bounds = array<i64: 1, 192>}, {pipeline_mode = #tpu.pipeline_mode<synchronous>, transform_indices = @transform_10, window_bounds = array<i64: 3, 3, 6>}, {pipeline_mode = #tpu.pipeline_mode<synchronous>, transform_indices = @transform_11, window_bounds = array<i64: 3, 192, 96>}, {pipeline_mode = #tpu.pipeline_mode<synchronous>, transform_indices = @transform_12, window_bounds = array<i64: 1, 96>}, {pipeline_mode = #tpu.pipeline_mode<synchronous>, transform_indices = @transform_13, window_bounds = array<i64: 288, 100>}, {pipeline_mode = #tpu.pipeline_mode<synchronous>, transform_indices = @transform_14, window_bounds = array<i64: 1, 100>}, {pipeline_mode = #tpu.pipeline_mode<synchronous>, transform_indices = @transform_15, window_bounds = array<i64: 100, 12>}, {pipeline_mode = #tpu.pipeline_mode<synchronous>, transform_indices = @transform_16, window_bounds = array<i64: 1, 12>}, {transform_indices = @transform_17, window_bounds = array<i64: 1, 1, 12>}]} {
    %c0 = arith.constant 0 : index
    %c0_0 = arith.constant 0 : index
    %c0_1 = arith.constant 0 : index
    %0 = vector.load %arg1[%c0, %c0_0, %c0_1] : memref<1x42x168xf32, #tpu.memory_space<vmem>>, vector<1x42x168xf32>
    %1 = vector.shape_cast %0 : vector<1x42x168xf32> to vector<42x168xf32>
    %c0_2 = arith.constant 0 : index
    %c0_3 = arith.constant 0 : index
    %2 = vector.load %arg4[%c0_2, %c0_3] : memref<1x672xf32, #tpu.memory_space<vmem>>, vector<1x672xf32>
    %c0_4 = arith.constant 0 : index
    %c0_5 = arith.constant 0 : index
    %c0_6 = arith.constant 0 : index
    %3 = vector.load %arg2[%c0_4, %c0_5, %c0_6] : memref<3x21x42xf32, #tpu.memory_space<vmem>>, vector<1x21x42xf32>
    %4 = vector.shape_cast %3 : vector<1x21x42xf32> to vector<21x42xf32>
    %cst = arith.constant dense<0.000000e+00> : vector<21x168xf32>
    %5 = tpu.matmul %4, %1, %cst {dimension_numbers = #tpu.dot_dimension_numbers<[1], [0], [0], [1], [0, 0, 1, 1], [], []>} : vector<21x42xf32>, vector<42x168xf32>, vector<21x168xf32> -> vector<21x168xf32>
    %c0_7 = arith.constant 0 : index
    %c0_8 = arith.constant 0 : index
    %c0_9 = arith.constant 0 : index
    %6 = vector.load %arg3[%c0_7, %c0_8, %c0_9] : memref<3x168x672xf32, #tpu.memory_space<vmem>>, vector<1x168x672xf32>
    %7 = vector.shape_cast %6 : vector<1x168x672xf32> to vector<168x672xf32>
    %cst_10 = arith.constant dense<0.000000e+00> : vector<21x672xf32>
    %8 = tpu.matmul %5, %7, %cst_10 {dimension_numbers = #tpu.dot_dimension_numbers<[1], [0], [0], [1], [0, 0, 1, 1], [], []>} : vector<21x168xf32>, vector<168x672xf32>, vector<21x672xf32> -> vector<21x672xf32>
    %9 = vector.broadcast %2 : vector<1x672xf32> to vector<21x672xf32>
    %10 = arith.addf %9, %8 : vector<21x672xf32>
    %c1 = arith.constant 1 : index
    %c0_11 = arith.constant 0 : index
    %c0_12 = arith.constant 0 : index
    %11 = vector.load %arg2[%c1, %c0_11, %c0_12] : memref<3x21x42xf32, #tpu.memory_space<vmem>>, vector<1x21x42xf32>
    %12 = vector.shape_cast %11 : vector<1x21x42xf32> to vector<21x42xf32>
    %cst_13 = arith.constant dense<0.000000e+00> : vector<21x168xf32>
    %13 = tpu.matmul %12, %1, %cst_13 {dimension_numbers = #tpu.dot_dimension_numbers<[1], [0], [0], [1], [0, 0, 1, 1], [], []>} : vector<21x42xf32>, vector<42x168xf32>, vector<21x168xf32> -> vector<21x168xf32>
    %c1_14 = arith.constant 1 : index
    %c0_15 = arith.constant 0 : index
    %c0_16 = arith.constant 0 : index
    %14 = vector.load %arg3[%c1_14, %c0_15, %c0_16] : memref<3x168x672xf32, #tpu.memory_space<vmem>>, vector<1x168x672xf32>
    %15 = vector.shape_cast %14 : vector<1x168x672xf32> to vector<168x672xf32>
    %cst_17 = arith.constant dense<0.000000e+00> : vector<21x672xf32>
    %16 = tpu.matmul %13, %15, %cst_17 {dimension_numbers = #tpu.dot_dimension_numbers<[1], [0], [0], [1], [0, 0, 1, 1], [], []>} : vector<21x168xf32>, vector<168x672xf32>, vector<21x672xf32> -> vector<21x672xf32>
    %17 = arith.addf %10, %16 : vector<21x672xf32>
    %c2 = arith.constant 2 : index
    %c0_18 = arith.constant 0 : index
    %c0_19 = arith.constant 0 : index
    %18 = vector.load %arg2[%c2, %c0_18, %c0_19] : memref<3x21x42xf32, #tpu.memory_space<vmem>>, vector<1x21x42xf32>
    %19 = vector.shape_cast %18 : vector<1x21x42xf32> to vector<21x42xf32>
    %cst_20 = arith.constant dense<0.000000e+00> : vector<21x168xf32>
    %20 = tpu.matmul %19, %1, %cst_20 {dimension_numbers = #tpu.dot_dimension_numbers<[1], [0], [0], [1], [0, 0, 1, 1], [], []>} : vector<21x42xf32>, vector<42x168xf32>, vector<21x168xf32> -> vector<21x168xf32>
    %c2_21 = arith.constant 2 : index
    %c0_22 = arith.constant 0 : index
    %c0_23 = arith.constant 0 : index
    %21 = vector.load %arg3[%c2_21, %c0_22, %c0_23] : memref<3x168x672xf32, #tpu.memory_space<vmem>>, vector<1x168x672xf32>
    %22 = vector.shape_cast %21 : vector<1x168x672xf32> to vector<168x672xf32>
    %cst_24 = arith.constant dense<0.000000e+00> : vector<21x672xf32>
    %23 = tpu.matmul %20, %22, %cst_24 {dimension_numbers = #tpu.dot_dimension_numbers<[1], [0], [0], [1], [0, 0, 1, 1], [], []>} : vector<21x168xf32>, vector<168x672xf32>, vector<21x672xf32> -> vector<21x672xf32>
    %24 = arith.addf %17, %23 : vector<21x672xf32>
    %cst_25 = arith.constant 0.000000e+00 : f32
    %25 = vector.broadcast %cst_25 : f32 to vector<21x672xf32>
    %26 = arith.cmpf ogt, %24, %25 : vector<21x672xf32>
    %cst_26 = arith.constant 0.000000e+00 : f32
    %27 = vector.broadcast %cst_26 : f32 to vector<21x672xf32>
    %28 = arith.minimumf %24, %27 : vector<21x672xf32>
    %29 = math.exp %28 : vector<21x672xf32>
    %cst_27 = arith.constant 1.000000e+00 : f32
    %30 = vector.broadcast %cst_27 : f32 to vector<21x672xf32>
    %31 = arith.subf %29, %30 : vector<21x672xf32>
    %32 = arith.select %26, %24, %31 : vector<21x672xi1>, vector<21x672xf32>
    %c0_28 = arith.constant 0 : index
    %c0_29 = arith.constant 0 : index
    %33 = vector.load %arg7[%c0_28, %c0_29] : memref<1x352xf32, #tpu.memory_space<vmem>>, vector<1x352xf32>
    %c0_30 = arith.constant 0 : index
    %c0_31 = arith.constant 0 : index
    %c0_32 = arith.constant 0 : index
    %34 = vector.load %arg5[%c0_30, %c0_31, %c0_32] : memref<3x11x21xf32, #tpu.memory_space<vmem>>, vector<1x11x21xf32>
    %35 = vector.shape_cast %34 : vector<1x11x21xf32> to vector<11x21xf32>
    %cst_33 = arith.constant dense<0.000000e+00> : vector<11x672xf32>
    %36 = tpu.matmul %35, %32, %cst_33 {dimension_numbers = #tpu.dot_dimension_numbers<[1], [0], [0], [1], [0, 0, 1, 1], [], []>} : vector<11x21xf32>, vector<21x672xf32>, vector<11x672xf32> -> vector<11x672xf32>
    %c0_34 = arith.constant 0 : index
    %c0_35 = arith.constant 0 : index
    %c0_36 = arith.constant 0 : index
    %37 = vector.load %arg6[%c0_34, %c0_35, %c0_36] : memref<3x672x352xf32, #tpu.memory_space<vmem>>, vector<1x672x352xf32>
    %38 = vector.shape_cast %37 : vector<1x672x352xf32> to vector<672x352xf32>
    %cst_37 = arith.constant dense<0.000000e+00> : vector<11x352xf32>
    %39 = tpu.matmul %36, %38, %cst_37 {dimension_numbers = #tpu.dot_dimension_numbers<[1], [0], [0], [1], [0, 0, 1, 1], [], []>} : vector<11x672xf32>, vector<672x352xf32>, vector<11x352xf32> -> vector<11x352xf32>
    %40 = vector.broadcast %33 : vector<1x352xf32> to vector<11x352xf32>
    %41 = arith.addf %40, %39 : vector<11x352xf32>
    %c1_38 = arith.constant 1 : index
    %c0_39 = arith.constant 0 : index
    %c0_40 = arith.constant 0 : index
    %42 = vector.load %arg5[%c1_38, %c0_39, %c0_40] : memref<3x11x21xf32, #tpu.memory_space<vmem>>, vector<1x11x21xf32>
    %43 = vector.shape_cast %42 : vector<1x11x21xf32> to vector<11x21xf32>
    %cst_41 = arith.constant dense<0.000000e+00> : vector<11x672xf32>
    %44 = tpu.matmul %43, %32, %cst_41 {dimension_numbers = #tpu.dot_dimension_numbers<[1], [0], [0], [1], [0, 0, 1, 1], [], []>} : vector<11x21xf32>, vector<21x672xf32>, vector<11x672xf32> -> vector<11x672xf32>
    %c1_42 = arith.constant 1 : index
    %c0_43 = arith.constant 0 : index
    %c0_44 = arith.constant 0 : index
    %45 = vector.load %arg6[%c1_42, %c0_43, %c0_44] : memref<3x672x352xf32, #tpu.memory_space<vmem>>, vector<1x672x352xf32>
    %46 = vector.shape_cast %45 : vector<1x672x352xf32> to vector<672x352xf32>
    %cst_45 = arith.constant dense<0.000000e+00> : vector<11x352xf32>
    %47 = tpu.matmul %44, %46, %cst_45 {dimension_numbers = #tpu.dot_dimension_numbers<[1], [0], [0], [1], [0, 0, 1, 1], [], []>} : vector<11x672xf32>, vector<672x352xf32>, vector<11x352xf32> -> vector<11x352xf32>
    %48 = arith.addf %41, %47 : vector<11x352xf32>
    %c2_46 = arith.constant 2 : index
    %c0_47 = arith.constant 0 : index
    %c0_48 = arith.constant 0 : index
    %49 = vector.load %arg5[%c2_46, %c0_47, %c0_48] : memref<3x11x21xf32, #tpu.memory_space<vmem>>, vector<1x11x21xf32>
    %50 = vector.shape_cast %49 : vector<1x11x21xf32> to vector<11x21xf32>
    %cst_49 = arith.constant dense<0.000000e+00> : vector<11x672xf32>
    %51 = tpu.matmul %50, %32, %cst_49 {dimension_numbers = #tpu.dot_dimension_numbers<[1], [0], [0], [1], [0, 0, 1, 1], [], []>} : vector<11x21xf32>, vector<21x672xf32>, vector<11x672xf32> -> vector<11x672xf32>
    %c2_50 = arith.constant 2 : index
    %c0_51 = arith.constant 0 : index
    %c0_52 = arith.constant 0 : index
    %52 = vector.load %arg6[%c2_50, %c0_51, %c0_52] : memref<3x672x352xf32, #tpu.memory_space<vmem>>, vector<1x672x352xf32>
    %53 = vector.shape_cast %52 : vector<1x672x352xf32> to vector<672x352xf32>
    %cst_53 = arith.constant dense<0.000000e+00> : vector<11x352xf32>
    %54 = tpu.matmul %51, %53, %cst_53 {dimension_numbers = #tpu.dot_dimension_numbers<[1], [0], [0], [1], [0, 0, 1, 1], [], []>} : vector<11x672xf32>, vector<672x352xf32>, vector<11x352xf32> -> vector<11x352xf32>
    %55 = arith.addf %48, %54 : vector<11x352xf32>
    %cst_54 = arith.constant 0.000000e+00 : f32
    %56 = vector.broadcast %cst_54 : f32 to vector<11x352xf32>
    %57 = arith.cmpf ogt, %55, %56 : vector<11x352xf32>
    %cst_55 = arith.constant 0.000000e+00 : f32
    %58 = vector.broadcast %cst_55 : f32 to vector<11x352xf32>
    %59 = arith.minimumf %55, %58 : vector<11x352xf32>
    %60 = math.exp %59 : vector<11x352xf32>
    %cst_56 = arith.constant 1.000000e+00 : f32
    %61 = vector.broadcast %cst_56 : f32 to vector<11x352xf32>
    %62 = arith.subf %60, %61 : vector<11x352xf32>
    %63 = arith.select %57, %55, %62 : vector<11x352xi1>, vector<11x352xf32>
    %c0_57 = arith.constant 0 : index
    %c0_58 = arith.constant 0 : index
    %64 = vector.load %arg10[%c0_57, %c0_58] : memref<1x192xf32, #tpu.memory_space<vmem>>, vector<1x192xf32>
    %c0_59 = arith.constant 0 : index
    %c0_60 = arith.constant 0 : index
    %c0_61 = arith.constant 0 : index
    %65 = vector.load %arg8[%c0_59, %c0_60, %c0_61] : memref<3x6x11xf32, #tpu.memory_space<vmem>>, vector<1x6x11xf32>
    %66 = vector.shape_cast %65 : vector<1x6x11xf32> to vector<6x11xf32>
    %cst_62 = arith.constant dense<0.000000e+00> : vector<6x352xf32>
    %67 = tpu.matmul %66, %63, %cst_62 {dimension_numbers = #tpu.dot_dimension_numbers<[1], [0], [0], [1], [0, 0, 1, 1], [], []>} : vector<6x11xf32>, vector<11x352xf32>, vector<6x352xf32> -> vector<6x352xf32>
    %c0_63 = arith.constant 0 : index
    %c0_64 = arith.constant 0 : index
    %c0_65 = arith.constant 0 : index
    %68 = vector.load %arg9[%c0_63, %c0_64, %c0_65] : memref<3x352x192xf32, #tpu.memory_space<vmem>>, vector<1x352x192xf32>
    %69 = vector.shape_cast %68 : vector<1x352x192xf32> to vector<352x192xf32>
    %cst_66 = arith.constant dense<0.000000e+00> : vector<6x192xf32>
    %70 = tpu.matmul %67, %69, %cst_66 {dimension_numbers = #tpu.dot_dimension_numbers<[1], [0], [0], [1], [0, 0, 1, 1], [], []>} : vector<6x352xf32>, vector<352x192xf32>, vector<6x192xf32> -> vector<6x192xf32>
    %71 = vector.broadcast %64 : vector<1x192xf32> to vector<6x192xf32>
    %72 = arith.addf %71, %70 : vector<6x192xf32>
    %c1_67 = arith.constant 1 : index
    %c0_68 = arith.constant 0 : index
    %c0_69 = arith.constant 0 : index
    %73 = vector.load %arg8[%c1_67, %c0_68, %c0_69] : memref<3x6x11xf32, #tpu.memory_space<vmem>>, vector<1x6x11xf32>
    %74 = vector.shape_cast %73 : vector<1x6x11xf32> to vector<6x11xf32>
    %cst_70 = arith.constant dense<0.000000e+00> : vector<6x352xf32>
    %75 = tpu.matmul %74, %63, %cst_70 {dimension_numbers = #tpu.dot_dimension_numbers<[1], [0], [0], [1], [0, 0, 1, 1], [], []>} : vector<6x11xf32>, vector<11x352xf32>, vector<6x352xf32> -> vector<6x352xf32>
    %c1_71 = arith.constant 1 : index
    %c0_72 = arith.constant 0 : index
    %c0_73 = arith.constant 0 : index
    %76 = vector.load %arg9[%c1_71, %c0_72, %c0_73] : memref<3x352x192xf32, #tpu.memory_space<vmem>>, vector<1x352x192xf32>
    %77 = vector.shape_cast %76 : vector<1x352x192xf32> to vector<352x192xf32>
    %cst_74 = arith.constant dense<0.000000e+00> : vector<6x192xf32>
    %78 = tpu.matmul %75, %77, %cst_74 {dimension_numbers = #tpu.dot_dimension_numbers<[1], [0], [0], [1], [0, 0, 1, 1], [], []>} : vector<6x352xf32>, vector<352x192xf32>, vector<6x192xf32> -> vector<6x192xf32>
    %79 = arith.addf %72, %78 : vector<6x192xf32>
    %c2_75 = arith.constant 2 : index
    %c0_76 = arith.constant 0 : index
    %c0_77 = arith.constant 0 : index
    %80 = vector.load %arg8[%c2_75, %c0_76, %c0_77] : memref<3x6x11xf32, #tpu.memory_space<vmem>>, vector<1x6x11xf32>
    %81 = vector.shape_cast %80 : vector<1x6x11xf32> to vector<6x11xf32>
    %cst_78 = arith.constant dense<0.000000e+00> : vector<6x352xf32>
    %82 = tpu.matmul %81, %63, %cst_78 {dimension_numbers = #tpu.dot_dimension_numbers<[1], [0], [0], [1], [0, 0, 1, 1], [], []>} : vector<6x11xf32>, vector<11x352xf32>, vector<6x352xf32> -> vector<6x352xf32>
    %c2_79 = arith.constant 2 : index
    %c0_80 = arith.constant 0 : index
    %c0_81 = arith.constant 0 : index
    %83 = vector.load %arg9[%c2_79, %c0_80, %c0_81] : memref<3x352x192xf32, #tpu.memory_space<vmem>>, vector<1x352x192xf32>
    %84 = vector.shape_cast %83 : vector<1x352x192xf32> to vector<352x192xf32>
    %cst_82 = arith.constant dense<0.000000e+00> : vector<6x192xf32>
    %85 = tpu.matmul %82, %84, %cst_82 {dimension_numbers = #tpu.dot_dimension_numbers<[1], [0], [0], [1], [0, 0, 1, 1], [], []>} : vector<6x352xf32>, vector<352x192xf32>, vector<6x192xf32> -> vector<6x192xf32>
    %86 = arith.addf %79, %85 : vector<6x192xf32>
    %cst_83 = arith.constant 0.000000e+00 : f32
    %87 = vector.broadcast %cst_83 : f32 to vector<6x192xf32>
    %88 = arith.cmpf ogt, %86, %87 : vector<6x192xf32>
    %cst_84 = arith.constant 0.000000e+00 : f32
    %89 = vector.broadcast %cst_84 : f32 to vector<6x192xf32>
    %90 = arith.minimumf %86, %89 : vector<6x192xf32>
    %91 = math.exp %90 : vector<6x192xf32>
    %cst_85 = arith.constant 1.000000e+00 : f32
    %92 = vector.broadcast %cst_85 : f32 to vector<6x192xf32>
    %93 = arith.subf %91, %92 : vector<6x192xf32>
    %94 = arith.select %88, %86, %93 : vector<6x192xi1>, vector<6x192xf32>
    %c0_86 = arith.constant 0 : index
    %c0_87 = arith.constant 0 : index
    %95 = vector.load %arg13[%c0_86, %c0_87] : memref<1x96xf32, #tpu.memory_space<vmem>>, vector<1x96xf32>
    %c0_88 = arith.constant 0 : index
    %c0_89 = arith.constant 0 : index
    %c0_90 = arith.constant 0 : index
    %96 = vector.load %arg11[%c0_88, %c0_89, %c0_90] : memref<3x3x6xf32, #tpu.memory_space<vmem>>, vector<1x3x6xf32>
    %97 = vector.shape_cast %96 : vector<1x3x6xf32> to vector<3x6xf32>
    %cst_91 = arith.constant dense<0.000000e+00> : vector<3x192xf32>
    %98 = tpu.matmul %97, %94, %cst_91 {dimension_numbers = #tpu.dot_dimension_numbers<[1], [0], [0], [1], [0, 0, 1, 1], [], []>} : vector<3x6xf32>, vector<6x192xf32>, vector<3x192xf32> -> vector<3x192xf32>
    %c0_92 = arith.constant 0 : index
    %c0_93 = arith.constant 0 : index
    %c0_94 = arith.constant 0 : index
    %99 = vector.load %arg12[%c0_92, %c0_93, %c0_94] : memref<3x192x96xf32, #tpu.memory_space<vmem>>, vector<1x192x96xf32>
    %100 = vector.shape_cast %99 : vector<1x192x96xf32> to vector<192x96xf32>
    %cst_95 = arith.constant dense<0.000000e+00> : vector<3x96xf32>
    %101 = tpu.matmul %98, %100, %cst_95 {dimension_numbers = #tpu.dot_dimension_numbers<[1], [0], [0], [1], [0, 0, 1, 1], [], []>} : vector<3x192xf32>, vector<192x96xf32>, vector<3x96xf32> -> vector<3x96xf32>
    %102 = vector.broadcast %95 : vector<1x96xf32> to vector<3x96xf32>
    %103 = arith.addf %102, %101 : vector<3x96xf32>
    %c1_96 = arith.constant 1 : index
    %c0_97 = arith.constant 0 : index
    %c0_98 = arith.constant 0 : index
    %104 = vector.load %arg11[%c1_96, %c0_97, %c0_98] : memref<3x3x6xf32, #tpu.memory_space<vmem>>, vector<1x3x6xf32>
    %105 = vector.shape_cast %104 : vector<1x3x6xf32> to vector<3x6xf32>
    %cst_99 = arith.constant dense<0.000000e+00> : vector<3x192xf32>
    %106 = tpu.matmul %105, %94, %cst_99 {dimension_numbers = #tpu.dot_dimension_numbers<[1], [0], [0], [1], [0, 0, 1, 1], [], []>} : vector<3x6xf32>, vector<6x192xf32>, vector<3x192xf32> -> vector<3x192xf32>
    %c1_100 = arith.constant 1 : index
    %c0_101 = arith.constant 0 : index
    %c0_102 = arith.constant 0 : index
    %107 = vector.load %arg12[%c1_100, %c0_101, %c0_102] : memref<3x192x96xf32, #tpu.memory_space<vmem>>, vector<1x192x96xf32>
    %108 = vector.shape_cast %107 : vector<1x192x96xf32> to vector<192x96xf32>
    %cst_103 = arith.constant dense<0.000000e+00> : vector<3x96xf32>
    %109 = tpu.matmul %106, %108, %cst_103 {dimension_numbers = #tpu.dot_dimension_numbers<[1], [0], [0], [1], [0, 0, 1, 1], [], []>} : vector<3x192xf32>, vector<192x96xf32>, vector<3x96xf32> -> vector<3x96xf32>
    %110 = arith.addf %103, %109 : vector<3x96xf32>
    %c2_104 = arith.constant 2 : index
    %c0_105 = arith.constant 0 : index
    %c0_106 = arith.constant 0 : index
    %111 = vector.load %arg11[%c2_104, %c0_105, %c0_106] : memref<3x3x6xf32, #tpu.memory_space<vmem>>, vector<1x3x6xf32>
    %112 = vector.shape_cast %111 : vector<1x3x6xf32> to vector<3x6xf32>
    %cst_107 = arith.constant dense<0.000000e+00> : vector<3x192xf32>
    %113 = tpu.matmul %112, %94, %cst_107 {dimension_numbers = #tpu.dot_dimension_numbers<[1], [0], [0], [1], [0, 0, 1, 1], [], []>} : vector<3x6xf32>, vector<6x192xf32>, vector<3x192xf32> -> vector<3x192xf32>
    %c2_108 = arith.constant 2 : index
    %c0_109 = arith.constant 0 : index
    %c0_110 = arith.constant 0 : index
    %114 = vector.load %arg12[%c2_108, %c0_109, %c0_110] : memref<3x192x96xf32, #tpu.memory_space<vmem>>, vector<1x192x96xf32>
    %115 = vector.shape_cast %114 : vector<1x192x96xf32> to vector<192x96xf32>
    %cst_111 = arith.constant dense<0.000000e+00> : vector<3x96xf32>
    %116 = tpu.matmul %113, %115, %cst_111 {dimension_numbers = #tpu.dot_dimension_numbers<[1], [0], [0], [1], [0, 0, 1, 1], [], []>} : vector<3x192xf32>, vector<192x96xf32>, vector<3x96xf32> -> vector<3x96xf32>
    %117 = arith.addf %110, %116 : vector<3x96xf32>
    %c0_112 = arith.constant 0 : index
    %c0_113 = arith.constant 0 : index
    %118 = vector.load %arg14[%c0_112, %c0_113] : memref<288x100xf32, #tpu.memory_space<vmem>>, vector<288x100xf32>
    %c0_114 = arith.constant 0 : index
    %c0_115 = arith.constant 0 : index
    %119 = vector.load %arg15[%c0_114, %c0_115] : memref<1x100xf32, #tpu.memory_space<vmem>>, vector<1x100xf32>
    %120 = vector.extract_strided_slice %117 {offsets = [0, 0], sizes = [1, 96], strides = [1, 1]} : vector<3x96xf32> to vector<1x96xf32>
    %121 = vector.extract_strided_slice %118 {offsets = [0, 0], sizes = [96, 100], strides = [1, 1]} : vector<288x100xf32> to vector<96x100xf32>
    %cst_116 = arith.constant dense<0.000000e+00> : vector<1x100xf32>
    %122 = tpu.matmul %120, %121, %cst_116 {dimension_numbers = #tpu.dot_dimension_numbers<[1], [0], [0], [1], [0, 0, 1, 1], [], []>} : vector<1x96xf32>, vector<96x100xf32>, vector<1x100xf32> -> vector<1x100xf32>
    %123 = arith.addf %119, %122 : vector<1x100xf32>
    %124 = vector.extract_strided_slice %117 {offsets = [1, 0], sizes = [1, 96], strides = [1, 1]} : vector<3x96xf32> to vector<1x96xf32>
    %125 = vector.extract_strided_slice %118 {offsets = [96, 0], sizes = [96, 100], strides = [1, 1]} : vector<288x100xf32> to vector<96x100xf32>
    %cst_117 = arith.constant dense<0.000000e+00> : vector<1x100xf32>
    %126 = tpu.matmul %124, %125, %cst_117 {dimension_numbers = #tpu.dot_dimension_numbers<[1], [0], [0], [1], [0, 0, 1, 1], [], []>} : vector<1x96xf32>, vector<96x100xf32>, vector<1x100xf32> -> vector<1x100xf32>
    %127 = arith.addf %123, %126 : vector<1x100xf32>
    %128 = vector.extract_strided_slice %117 {offsets = [2, 0], sizes = [1, 96], strides = [1, 1]} : vector<3x96xf32> to vector<1x96xf32>
    %129 = vector.extract_strided_slice %118 {offsets = [192, 0], sizes = [96, 100], strides = [1, 1]} : vector<288x100xf32> to vector<96x100xf32>
    %cst_118 = arith.constant dense<0.000000e+00> : vector<1x100xf32>
    %130 = tpu.matmul %128, %129, %cst_118 {dimension_numbers = #tpu.dot_dimension_numbers<[1], [0], [0], [1], [0, 0, 1, 1], [], []>} : vector<1x96xf32>, vector<96x100xf32>, vector<1x100xf32> -> vector<1x100xf32>
    %131 = arith.addf %127, %130 : vector<1x100xf32>
    %cst_119 = arith.constant 0.000000e+00 : f32
    %132 = vector.broadcast %cst_119 : f32 to vector<1x100xf32>
    %133 = arith.cmpf ogt, %131, %132 : vector<1x100xf32>
    %cst_120 = arith.constant 0.000000e+00 : f32
    %134 = vector.broadcast %cst_120 : f32 to vector<1x100xf32>
    %135 = arith.minimumf %131, %134 : vector<1x100xf32>
    %136 = math.exp %135 : vector<1x100xf32>
    %cst_121 = arith.constant 1.000000e+00 : f32
    %137 = vector.broadcast %cst_121 : f32 to vector<1x100xf32>
    %138 = arith.subf %136, %137 : vector<1x100xf32>
    %139 = arith.select %133, %131, %138 : vector<1x100xi1>, vector<1x100xf32>
    %c0_122 = arith.constant 0 : index
    %c0_123 = arith.constant 0 : index
    %140 = vector.load %arg16[%c0_122, %c0_123] : memref<100x12xf32, #tpu.memory_space<vmem>>, vector<100x12xf32>
    %cst_124 = arith.constant dense<0.000000e+00> : vector<1x12xf32>
    %141 = tpu.matmul %139, %140, %cst_124 {dimension_numbers = #tpu.dot_dimension_numbers<[1], [0], [0], [1], [0, 0, 1, 1], [], []>} : vector<1x100xf32>, vector<100x12xf32>, vector<1x12xf32> -> vector<1x12xf32>
    %c0_125 = arith.constant 0 : index
    %c0_126 = arith.constant 0 : index
    %142 = vector.load %arg17[%c0_125, %c0_126] : memref<1x12xf32, #tpu.memory_space<vmem>>, vector<1x12xf32>
    %143 = arith.addf %141, %142 : vector<1x12xf32>
    %c0_127 = arith.constant 0 : index
    %c0_128 = arith.constant 0 : index
    %c0_129 = arith.constant 0 : index
    %144 = vector.load %arg18[%c0_127, %c0_128, %c0_129] : memref<1x1x12xf32, #tpu.memory_space<vmem>>, vector<1x1x12xf32>
    %145 = vector.shape_cast %144 : vector<1x1x12xf32> to vector<1x12xf32>
    %146 = vector.shape_cast %143 : vector<1x12xf32> to vector<1x1x12xf32>
    tpu.vector_store %arg18[%c0_127, %c0_128, %c0_129], %146 {strides = array<i32>} : memref<1x1x12xf32, #tpu.memory_space<vmem>>, vector<1x1x12xf32>,
    return
  }
  func.func @transform_0(%arg0: i32) -> (i32, i32, i32) {
    %c0_i32 = arith.constant 0 : i32
    %c0_i32_0 = arith.constant 0 : i32
    %c0_i32_1 = arith.constant 0 : i32
    return %arg0, %c0_i32, %c0_i32_0 : i32, i32, i32
  }
  func.func @transform_1(%arg0: i32) -> (i32, i32, i32) {
    %c0_i32 = arith.constant 0 : i32
    %c0_i32_0 = arith.constant 0 : i32
    %c0_i32_1 = arith.constant 0 : i32
    %c0_i32_2 = arith.constant 0 : i32
    return %c0_i32, %c0_i32_0, %c0_i32_1 : i32, i32, i32
  }
  func.func @transform_2(%arg0: i32) -> (i32, i32, i32) {
    %c0_i32 = arith.constant 0 : i32
    %c0_i32_0 = arith.constant 0 : i32
    %c0_i32_1 = arith.constant 0 : i32
    %c0_i32_2 = arith.constant 0 : i32
    return %c0_i32, %c0_i32_0, %c0_i32_1 : i32, i32, i32
  }
  func.func @transform_3(%arg0: i32) -> (i32, i32) {
    %c0_i32 = arith.constant 0 : i32
    %c0_i32_0 = arith.constant 0 : i32
    %c0_i32_1 = arith.constant 0 : i32
    return %c0_i32, %c0_i32_0 : i32, i32
  }
  func.func @transform_4(%arg0: i32) -> (i32, i32, i32) {
    %c0_i32 = arith.constant 0 : i32
    %c0_i32_0 = arith.constant 0 : i32
    %c0_i32_1 = arith.constant 0 : i32
    %c0_i32_2 = arith.constant 0 : i32
    return %c0_i32, %c0_i32_0, %c0_i32_1 : i32, i32, i32
  }
  func.func @transform_5(%arg0: i32) -> (i32, i32, i32) {
    %c0_i32 = arith.constant 0 : i32
    %c0_i32_0 = arith.constant 0 : i32
    %c0_i32_1 = arith.constant 0 : i32
    %c0_i32_2 = arith.constant 0 : i32
    return %c0_i32, %c0_i32_0, %c0_i32_1 : i32, i32, i32
  }
  func.func @transform_6(%arg0: i32) -> (i32, i32) {
    %c0_i32 = arith.constant 0 : i32
    %c0_i32_0 = arith.constant 0 : i32
    %c0_i32_1 = arith.constant 0 : i32
    return %c0_i32, %c0_i32_0 : i32, i32
  }
  func.func @transform_7(%arg0: i32) -> (i32, i32, i32) {
    %c0_i32 = arith.constant 0 : i32
    %c0_i32_0 = arith.constant 0 : i32
    %c0_i32_1 = arith.constant 0 : i32
    %c0_i32_2 = arith.constant 0 : i32
    return %c0_i32, %c0_i32_0, %c0_i32_1 : i32, i32, i32
  }
  func.func @transform_8(%arg0: i32) -> (i32, i32, i32) {
    %c0_i32 = arith.constant 0 : i32
    %c0_i32_0 = arith.constant 0 : i32
    %c0_i32_1 = arith.constant 0 : i32
    %c0_i32_2 = arith.constant 0 : i32
    return %c0_i32, %c0_i32_0, %c0_i32_1 : i32, i32, i32
  }
  func.func @transform_9(%arg0: i32) -> (i32, i32) {
    %c0_i32 = arith.constant 0 : i32
    %c0_i32_0 = arith.constant 0 : i32
    %c0_i32_1 = arith.constant 0 : i32
    return %c0_i32, %c0_i32_0 : i32, i32
  }
  func.func @transform_10(%arg0: i32) -> (i32, i32, i32) {
    %c0_i32 = arith.constant 0 : i32
    %c0_i32_0 = arith.constant 0 : i32
    %c0_i32_1 = arith.constant 0 : i32
    %c0_i32_2 = arith.constant 0 : i32
    return %c0_i32, %c0_i32_0, %c0_i32_1 : i32, i32, i32
  }
  func.func @transform_11(%arg0: i32) -> (i32, i32, i32) {
    %c0_i32 = arith.constant 0 : i32
    %c0_i32_0 = arith.constant 0 : i32
    %c0_i32_1 = arith.constant 0 : i32
    %c0_i32_2 = arith.constant 0 : i32
    return %c0_i32, %c0_i32_0, %c0_i32_1 : i32, i32, i32
  }
  func.func @transform_12(%arg0: i32) -> (i32, i32) {
    %c0_i32 = arith.constant 0 : i32
    %c0_i32_0 = arith.constant 0 : i32
    %c0_i32_1 = arith.constant 0 : i32
    return %c0_i32, %c0_i32_0 : i32, i32
  }
  func.func @transform_13(%arg0: i32) -> (i32, i32) {
    %c0_i32 = arith.constant 0 : i32
    %c0_i32_0 = arith.constant 0 : i32
    %c0_i32_1 = arith.constant 0 : i32
    return %c0_i32, %c0_i32_0 : i32, i32
  }
  func.func @transform_14(%arg0: i32) -> (i32, i32) {
    %c0_i32 = arith.constant 0 : i32
    %c0_i32_0 = arith.constant 0 : i32
    %c0_i32_1 = arith.constant 0 : i32
    return %c0_i32, %c0_i32_0 : i32, i32
  }
  func.func @transform_15(%arg0: i32) -> (i32, i32) {
    %c0_i32 = arith.constant 0 : i32
    %c0_i32_0 = arith.constant 0 : i32
    %c0_i32_1 = arith.constant 0 : i32
    return %c0_i32, %c0_i32_0 : i32, i32
  }
  func.func @transform_16(%arg0: i32) -> (i32, i32) {
    %c0_i32 = arith.constant 0 : i32
    %c0_i32_0 = arith.constant 0 : i32
    %c0_i32_1 = arith.constant 0 : i32
    return %c0_i32, %c0_i32_0 : i32, i32
  }
  func.func @transform_17(%arg0: i32) -> (i32, i32, i32) {
    %c0_i32 = arith.constant 0 : i32
    %c0_i32_0 = arith.constant 0 : i32
    %c0_i32_1 = arith.constant 0 : i32
    return %arg0, %c0_i32, %c0_i32_0 : i32, i32, i32
  }
}

</mosaic_0001>

<bundles_post_ra>
// kernel: mario_forward.1
= control target key start
LH: loop header
LB: loop body
LE: loop exit
PB: predicated region body
PF: predicated region fallthrough
CT: control target
= control target key end

     0   :  { %s12226_s0 = inlined_call_operand.vmem [shape: f32[2,42,168], index: 0, kind: input, shape index: {}]   ;;  %s12227_s1 = inlined_call_operand.vmem [shape: f32[3,21,42], index: 1, kind: input, shape index: {}]   ;;  %s12228_s2 = inlined_call_operand.vmem [shape: f32[3,168,672], index: 2, kind: input, shape index: {}]   ;;  %s12229_s3 = inlined_call_operand.vmem [shape: f32[1,672], index: 3, kind: input, shape index: {}]   ;;  %s12230_s4 = inlined_call_operand.vmem [shape: f32[3,11,21], index: 4, kind: input, shape index: {}]   ;;  %s12231_s5 = inlined_call_operand.hbm [shape: f32[3,672,352], index: 5, kind: input, shape index: {}]   ;;  %s12232_s6 = inlined_call_operand.vmem [shape: f32[1,352], index: 6, kind: input, shape index: {}]   ;;  %s12233_s7 = inlined_call_operand.vmem [shape: f32[3,6,11], index: 7, kind: input, shape index: {}]   ;;  %s12234_s8 = inlined_call_operand.vmem [shape: f32[3,352,192], index: 8, kind: input, shape index: {}]   ;;  %s12235_s9 = inlined_call_operand.vmem [shape: f32[1,192], index: 9, kind: input, shape index: {}]   ;;  %s12236_s10 = inlined_call_operand.vmem [shape: f32[3,3,6], index: 10, kind: input, shape index: {}]   ;;  %s12237_s11 = inlined_call_operand.vmem [shape: f32[3,192,96], index: 11, kind: input, shape index: {}]   ;;  %s12238_s12 = inlined_call_operand.vmem [shape: f32[1,96], index: 12, kind: input, shape index: {}]   ;;  %s12239_s13 = inlined_call_operand.vmem [shape: f32[288,100], index: 13, kind: input, shape index: {}]   ;;  %s12240_s14 = inlined_call_operand.vmem [shape: f32[1,100], index: 14, kind: input, shape index: {}]   ;;  %s12241_s15 = inlined_call_operand.vmem [shape: f32[100,12], index: 15, kind: input, shape index: {}]   ;;  %s12242_s16 = inlined_call_operand.vmem [shape: f32[1,12], index: 16, kind: input, shape index: {}]   ;;  %s12243_s17 = inlined_call_operand.hbm [shape: f32[2,1,12], index: 17, kind: output, shape index: {}]  }
   0x1   :  { %12250 = sst [smem:[#allocation13_spill]] %s12226_s0 }
   0x2   :  { %12251 = sst [smem:[#allocation14_spill]] %s12227_s1 }
   0x3   :  { %12252 = sst [smem:[#allocation15_spill]] %s12231_s5 }
   0x4   :  { %22 = vsyncpa [#allocation3], 0 }
   0x5   :  { %23 = vsyncpa [#allocation4], 0 }
   0x6   :  { %25 = vsyncpa [#allocation4 + $0x1], 0  ;;  %s8712_s24 = smov 0   ;;  %s8714_s25 = smov 0  }
   0x7   :  { %s8716_s26 = smov 0   ;;  %s8718_s27 = smov 0  }
   0x8 LB: > { %12253 = sst [smem:[#allocation8_spill]] %s8602_s24  ;;  %s8733_s28 = sadd.s32 4294967295, %s8614_s27   ;;  %s8614_s27 = sphi %s8718_s27, %s12267_s27   ;;  %s8610_s26 = sphi %s8716_s26, %s12269_s26   ;;  %s8606_s25 = sphi %s8714_s25, %s12271_s25   ;;  %s8602_s24 = sphi %s8712_s24, %s12270_s24  }
   0x9   : > { %12254 = sst [smem:[#allocation9_spill]] %s8610_s26  ;;  %s7330_s29 = sadd.s32 4294967294, %s8614_s27  }
   0xa   : > { %s8737_s0 = sadd.s32 1, %s8614_s27   ;;  %s400_s30 = sadd.s32 1, %s8610_s26 }
   0xb   : > { %12255 = sst [smem:[#allocation10_spill]] %s8737_s0  ;;  %s397_s18 = ssub.s32 %s8614_s27, %s8737_s0 }
   0xc   : > { %p410_p0 = scmp.ne.s32.totalorder %s8610_s26, %s8606_s25  ;;  %p398_p1 = scmp.eq.s32.totalorder %s397_s18, 0 }
   0xd   : > { %p411_p2 = scmp.eq.s32.totalorder %s8733_s28, 1  ;;  %p416_p3 = scmp.ne.s32.totalorder %s8606_s25, %s8602_s24 }
   0xe   : > { %p417_p4 = scmp.eq.s32.totalorder %s7330_s29, 1  ;;  %p7331_p7 = scmp.ge.s32.totalorder %s8614_s27, 1 }
   0xf   : > { %s8748_s19 = scalar_select %p398_p1, %s8610_s26, %s400_s30  }
  0x10   : > { %p8750_p5 = por %p411_p2, %p410_p0  ;;  %p8754_p6 = por %p417_p4, %p416_p3 }
  0x11   : > { %12256 = sst [smem:[#allocation11_spill]] %s8748_s19  ;;  %p424_p8 = scmp.lt.s32.totalorder %s8614_s27, 3 }
  0x12   : > { %s12258_s20 = scalar_select %p8754_p6, 1, 0 }
  0x13   : > { %p8419_p9 = scmp.eq.s32.totalorder %s8733_s28, 0  ;;  %p8761_p10 = pnand %p7331_p7, %p424_p8 }
  0x14   : > { %12259 = sst [smem:[#allocation12_spill]] %s12258_s20  ;;  %s8616_s22 = smov [#allocation2]  }
  0x15   : > { %s448_s23 = sshll.u32 %s8616_s22, 4  ;;  %p8411_p11 = pneg %p8761_p10  ;;  %s449_s23 = int_to_ptr.vmem [resolvable:$true] %s448_s23 }
  0x16   : > { %s8535_s29 = scalar_lea.vmem %s449_s23, 96768  ;;  %p8543_p3 = scmp.lt.s32.totalorder %s449_s23, %s449_s23 }
  0x17   : > { %p8412_p12 = pnand %p8419_p9, %p8411_p11  ;;  %p8536_p0 = scmp.ne.s32.totalorder %s449_s23, %s8535_s29 }
  0x18   : > { %p8544_p4 = scmp.lt.s32.totalorder %s8535_s29, %s8535_s29 }
  0x19   : > { %p8526_p13 = pneg %p8412_p12 }
  0x1a   : > { %p8545_p6 = por %p8544_p4, %p8543_p3 }
  0x1b   : > { %p8538_p1 = pnand %p8536_p0, %p8526_p13 }
  0x1d   : > { %p8539_p2 = pneg %p8538_p1 }
  0x1f   : > { %p8546_p7 = pnand %p8545_p6, %p8539_p2 }
  0x21   : > { %8549 = shalt.err (!%p8546_p7)
}
  0x22   : > { %s8617_s30 = smov 384   ;;  %s8618_s18 = smov 24  }
  0x23   : > { %s12261_s5 = sld [smem:[#allocation15_spill]] }
  0x25   : > { %505 = sbr.rel (%p8761_p10) target bundleno = 3852 (0xf0c), region = 88 }
  0x29   : > { %8414 = dma.hbm_to_vmem [thread:$0]  (!%p8412_p12), %s12261_s5, 96768, %s449_s23, [#allocation3], %s8617_s30, %s8617_s30, %s8618_s18  }
  0x2a   : > { %8593 = dma.done.wait (%p8419_p9), [#allocation3], 96768  }
  0x2b   : > { %8595 = vsyncadd (%p8419_p9), [#allocation3], 4294870528  ;;  %p556_p8 = scmp.lt.s32.totalorder %s8733_s28, 1  ;;  %v8619_v0 = vmov 0.0   ;;  %vm587_vm0 = vcmask 1041408   ;;  %s12262_s23 = sld [smem:[#allocation13_spill]] }
  0x2c   : > { %658 = vmatprep.mubr.f32.mxu0 %v8619_v0  ;;  %v768_v9 = vld [vmem:[%s12228_s2 + $0x2d8] sm:$0xff]  ;;  %v767_v10 = vld [vmem:[%s12228_s2 + $0x2d0] sm:$0xff]  ;;  %v762_v12 = vld [vmem:[%s12228_s2 + $0x2a8] sm:$0xff]  ;;  %s12263_s30 = sld [smem:[#allocation14_spill]]  ;;  %vm577_vm1 = vcmask 343040   ;;  %vm803_vm2 = vcmask 326656  }
  0x2d   : > { %s557_s22 = scalar_select %p556_p8, %s8733_s28, 1  ;;  %813 = vmatprep.subr.mxu1 %v768_v9  ;;  %v761_v13 = vld [vmem:[%s12228_s2 + $0x2a0] sm:$0xff]  ;;  %v756_v15 = vld [vmem:[%s12228_s2 + $0x278] sm:$0xff]  ;;  %v755_v17 = vld [vmem:[%s12228_s2 + $0x270] sm:$0xff]  ;;  %vm2227_vm3 = vcmask 1044480   ;;  %vm2220_vm10 = vcmask 171008  }
  0x2e   : > { %814 = vmatpush1.msra.mxu1 %v767_v10  ;;  %v750_v19 = vld [vmem:[%s12228_s2 + $0x248] sm:$0xff]  ;;  %v769_v22 = vld [vmem:[%s12228_s2 + $0x2e0] sm:$0xff]  ;;  %v764_v23 = vld [vmem:[%s12228_s2 + $0x2b8] sm:$0xff] }
  0x2f   : > { %s8404_s29 = smul.u32 96, %s557_s22  ;;  %815 = vmatprep.subr.mxu1 %v762_v12  ;;  %v770_v21 = vld [vmem:[%s12228_s2 + $0x2e8] sm:$0xff]  ;;  %v749_v24 = vld [vmem:[%s12228_s2 + $0x240] sm:$0xff]  ;;  %v763_v25 = vld [vmem:[%s12228_s2 + $0x2b0] sm:$0xff] }
  0x30   : > { %816 = vmatpush1.msra.mxu1 %v761_v13  ;;  %v744_v26 = vld [vmem:[%s12228_s2 + $0x218] sm:$0xff]  ;;  %v758_v28 = vld [vmem:[%s12228_s2 + $0x288] sm:$0xff]  ;;  %v757_v29 = vld [vmem:[%s12228_s2 + $0x280] sm:$0xff] }
  0x31   : > { %s8784_s21 = scalar_lea.vmem %s12262_s23, %s8404_s29  ;;  %817 = vmatprep.subr.mxu1 %v756_v15  ;;  %v752_v30 = vld [vmem:[%s12228_s2 + $0x258] sm:$0xff]  ;;  %v743_v31 = vld [vmem:[%s12228_s2 + $0x210] sm:$0xff]  ;;  %v738_v33 = vld [vmem:[%s12228_s2 + $0x1e8] sm:$0xff]  ;;  %s554_s29 = sand.u32 1, %s8606_s25  }
  0x32   : > { %v8787_v1 = vld [vmem:[%s8784_s21 + $0x58] sm:$0x3]  ;;  %v8790_v2 = vld [vmem:[%s8784_s21 + $0x50] sm:$0x3]  ;;  %v8793_v3 = vld [vmem:[%s8784_s21 + $0x48] sm:$0xff]  ;;  %818 = vmatpush1.msra.mxu1 %v755_v17  ;;  %s555_s24 = scalar_lea.vmem [#allocation5], %s554_s29 }
  0x33   : > { %7337 = vmatprep.subr.msk.mxu0 %vm587_vm0, %v8787_v1  ;;  %v8798_v4 = vld [vmem:[%s8784_s21 + $0x40] sm:$0xff]  ;;  %v8803_v5 = vld [vmem:[%s8784_s21 + $0x38] sm:$0xff]  ;;  %v8807_v6 = vld [vmem:[%s8784_s21 + $0x30] sm:$0xff]  ;;  %819 = vmatprep.subr.mxu1 %v750_v19  ;;  %s7263_s20 = sshll.u32 %s555_s24, 4  ;;  %s7251_s18 = scalar_lea.sflag [#allocation4], %s554_s29  ;;  %s7264_s20 = int_to_ptr.vmem [resolvable:$true] %s7263_s20 }
  0x34   : > { %7338 = vmatpush1.msk.msra.mxu0 %vm587_vm0, %v8790_v2  ;;  %v8811_v7 = vld [vmem:[%s8784_s21 + $0x28] sm:$0xff]  ;;  %v8815_v8 = vld [vmem:[%s8784_s21 + $0x20] sm:$0xff]  ;;  %v8825_v11 = vld [vmem:[%s8784_s21 + $0x18] sm:$0xff]  ;;  %820 = vmatpush1.msra.mxu1 %v749_v24  ;;  %s8550_s22 = scalar_lea.vmem %s7264_s20, 16 }
  0x35   : > { %616 = vmatprep.subr.mxu0 %v8793_v3  ;;  %v8835_v14 = vld [vmem:[%s8784_s21 + $0x10] sm:$0xff]  ;;  %v8842_v16 = vld [vmem:[%s8784_s21 + $0x8] sm:$0xff]  ;;  %v8849_v18 = vld [vmem:[%s8784_s21] sm:$0xff]  ;;  %821 = vmatprep.subr.mxu1 %v744_v26  ;;  %p8551_p6 = scmp.ne.s32.totalorder %s7264_s20, %s8550_s22 }
  0x36   : > { %617 = vmatpush1.msra.mxu0 %v8798_v4  ;;  %v574_v20 = vld [vmem:[%s12263_s30] sm:$0xff]  ;;  %v575_v27 = vld [vmem:[%s12263_s30 + $0x8] sm:$0xff]  ;;  %v751_v32 = vld [vmem:[%s12228_s2 + $0x250] sm:$0xff]  ;;  %822 = vmatpush1.msra.mxu1 %v743_v31 }
  0x37   : > { %618 = vmatprep.subr.mxu0 %v8803_v5  ;;  %v576_v34 = vld [vmem:[%s12263_s30 + $0x10] sm:$0x1f]  ;;  %v746_v35 = vld [vmem:[%s12228_s2 + $0x228] sm:$0xff]  ;;  %v745_v36 = vld [vmem:[%s12228_s2 + $0x220] sm:$0xff]  ;;  %823 = vmatprep.subr.mxu1 %v738_v33  ;;  %p8552_p9 = pnand %p8551_p6, %p8750_p5 }
  0x38   : > { %619 = vmatpush1.msra.mxu0 %v8807_v6  ;;  %v737_v37 = vld [vmem:[%s12228_s2 + $0x1e0] sm:$0xff]  ;;  %v740_v38 = vld [vmem:[%s12228_s2 + $0x1f8] sm:$0xff]  ;;  %v739_v40 = vld [vmem:[%s12228_s2 + $0x1f0] sm:$0xff] }
  0x39   : > { %620 = vmatprep.subr.mxu0 %v8811_v7  ;;  %v732_v39 = vld [vmem:[%s12228_s2 + $0x1b8] sm:$0xff]  ;;  %v731_v41 = vld [vmem:[%s12228_s2 + $0x1b0] sm:$0xff]  ;;  %824 = vmatpush1.msra.mxu1 %v737_v37  ;;  %v734_v42 = vld [vmem:[%s12228_s2 + $0x1c8] sm:$0xff]  ;;  %p8553_p10 = pneg %p8552_p9 }
  0x3a   : > { %621 = vmatpush1.msra.mxu0 %v8815_v8  ;;  %v726_v43 = vld [vmem:[%s12228_s2 + $0x188] sm:$0xff]  ;;  %825 = vmatprep.subr.mxu1 %v732_v39  ;;  %v733_v44 = vld [vmem:[%s12228_s2 + $0x1c0] sm:$0xff]  ;;  %v728_v46 = vld [vmem:[%s12228_s2 + $0x198] sm:$0xff] }
  0x3b   : > { %622 = vmatprep.subr.mxu0 %v8825_v11  ;;  %v725_v45 = vld [vmem:[%s12228_s2 + $0x180] sm:$0xff]  ;;  %826 = vmatpush1.msra.mxu1 %v731_v41  ;;  %v720_v47 = vld [vmem:[%s12228_s2 + $0x158] sm:$0xff]  ;;  %v727_v48 = vld [vmem:[%s12228_s2 + $0x190] sm:$0xff] }
  0x3c   : > { %623 = vmatpush1.msra.mxu0 %v8835_v14  ;;  %827 = vmatprep.subr.mxu1 %v726_v43  ;;  %v719_v49 = vld [vmem:[%s12228_s2 + $0x150] sm:$0xff]  ;;  %v722_v50 = vld [vmem:[%s12228_s2 + $0x168] sm:$0xff]  ;;  %v721_v52 = vld [vmem:[%s12228_s2 + $0x160] sm:$0xff] }
  0x3d   : > { %624 = vmatprep.subr.mxu0 %v8842_v16  ;;  %828 = vmatpush1.msra.mxu1 %v725_v45  ;;  %v714_v51 = vld [vmem:[%s12228_s2 + $0x128] sm:$0xff]  ;;  %v713_v53 = vld [vmem:[%s12228_s2 + $0x120] sm:$0xff]  ;;  %v716_v54 = vld [vmem:[%s12228_s2 + $0x138] sm:$0xff] }
  0x3e   : > { %625 = vmatpush1.msra.mxu0 %v8849_v18  ;;  %829 = vmatprep.subr.mxu1 %v720_v47  ;;  %v708_v55 = vld [vmem:[%s12228_s2 + $0xf8] sm:$0xff]  ;;  %v715_v56 = vld [vmem:[%s12228_s2 + $0x130] sm:$0xff]  ;;  %v710_v58 = vld [vmem:[%s12228_s2 + $0x108] sm:$0xff] }
  0x3f   : > { %7339 = vmatmul.mubr.msk.f32.vlgmr.msra.gmra.mxu0 %vm577_vm1, %v574_v20  ;;  %896 = vmatprep.subr.mxu0 %v770_v21  ;;  %v707_v57 = vld [vmem:[%s12228_s2 + $0xf0] sm:$0xff]  ;;  %v702_v59 = vld [vmem:[%s12228_s2 + $0xc8] sm:$0xff]  ;;  %v709_v60 = vld [vmem:[%s12228_s2 + $0x100] sm:$0xff] }
  0x40   : > { %664 = vmatprep.mubr.f32.mxu0 %v8619_v0  ;;  %897 = vmatpush1.msra.mxu0 %v769_v22  ;;  %v701_v61 = vld [vmem:[%s12228_s2 + $0xc0] sm:$0xff]  ;;  %v704_v62 = vld [vmem:[%s12228_s2 + $0xd8] sm:$0xff]  ;;  %v703_v9 = vld [vmem:[%s12228_s2 + $0xd0] sm:$0xff] }
  0x41   : > { %898 = vmatprep.subr.mxu0 %v764_v23  ;;  %830 = vmatpush1.msra.mxu1 %v719_v49  ;;  %v696_v63 = vld [vmem:[%s12228_s2 + $0x98] sm:$0xff]  ;;  %v695_v10 = vld [vmem:[%s12228_s2 + $0x90] sm:$0xff]  ;;  %v698_v12 = vld [vmem:[%s12228_s2 + $0xa8] sm:$0xff] }
  0x42   : > { %899 = vmatpush1.msra.mxu0 %v763_v25  ;;  %831 = vmatprep.subr.mxu1 %v714_v51  ;;  %v690_v13 = vld [vmem:[%s12228_s2 + $0x68] sm:$0xff]  ;;  %v697_v15 = vld [vmem:[%s12228_s2 + $0xa0] sm:$0xff]  ;;  %v692_v19 = vld [vmem:[%s12228_s2 + $0x78] sm:$0xff] }
  0x43   : > { %7340 = vmatmul.mubr.msk.f32.gmra.mxu0 %vm577_vm1, %v575_v27  ;;  %900 = vmatprep.subr.mxu0 %v758_v28  ;;  %v689_v17 = vld [vmem:[%s12228_s2 + $0x60] sm:$0xff]  ;;  %v684_v20 = vld [vmem:[%s12228_s2 + $0x38] sm:$0xff]  ;;  %v691_v21 = vld [vmem:[%s12228_s2 + $0x70] sm:$0xff] }
  0x44   : > { %670 = vmatprep.mubr.f32.mxu0 %v8619_v0  ;;  %901 = vmatpush1.msra.mxu0 %v757_v29  ;;  %v683_v22 = vld [vmem:[%s12228_s2 + $0x30] sm:$0xff]  ;;  %v686_v23 = vld [vmem:[%s12228_s2 + $0x48] sm:$0xff]  ;;  %v685_v25 = vld [vmem:[%s12228_s2 + $0x40] sm:$0xff] }
  0x45   : > { %902 = vmatprep.subr.mxu0 %v752_v30  ;;  %832 = vmatpush1.msra.mxu1 %v713_v53  ;;  %v678_v24 = vld [vmem:[%s12228_s2 + $0x8] sm:$0xff]  ;;  %v677_v26 = vld [vmem:[%s12228_s2] sm:$0xff]  ;;  %v680_v27 = vld [vmem:[%s12228_s2 + $0x18] sm:$0xff] }
  0x46   : > { %903 = vmatpush1.msra.mxu0 %v751_v32  ;;  %833 = vmatprep.subr.mxu1 %v708_v55  ;;  %v798_v28 = vld [vmem:[%s12228_s2 + $0x3c8] sm:$0xff]  ;;  %v679_v29 = vld [vmem:[%s12228_s2 + $0x10] sm:$0xff]  ;;  %v797_v30 = vld [vmem:[%s12228_s2 + $0x3c0] sm:$0xff] }
  0x47   : > { %7341 = vmatmul.mubr.msk.f32.gmra.mxu0 %vm577_vm1, %v576_v34  ;;  %904 = vmatprep.subr.mxu0 %v746_v35  ;;  %v800_v31 = vld [vmem:[%s12228_s2 + $0x3d8] sm:$0xff]  ;;  %v799_v33 = vld [vmem:[%s12228_s2 + $0x3d0] sm:$0xff]  ;;  %v794_v35 = vld [vmem:[%s12228_s2 + $0x3a8] sm:$0xff] }
  0x48   : > { %905 = vmatpush1.msra.mxu0 %v745_v36  ;;  %834 = vmatpush1.msra.mxu1 %v707_v57  ;;  %v792_v32 = vld [vmem:[%s12228_s2 + $0x398] sm:$0xff]  ;;  %v791_v34 = vld [vmem:[%s12228_s2 + $0x390] sm:$0xff]  ;;  %v786_v36 = vld [vmem:[%s12228_s2 + $0x368] sm:$0xff] }
  0x49   : > { %906 = vmatprep.subr.mxu0 %v740_v38  ;;  %835 = vmatprep.subr.mxu1 %v702_v59  ;;  %v793_v37 = vld [vmem:[%s12228_s2 + $0x3a0] sm:$0xff]  ;;  %v788_v39 = vld [vmem:[%s12228_s2 + $0x378] sm:$0xff]  ;;  %v787_v41 = vld [vmem:[%s12228_s2 + $0x370] sm:$0xff] }
  0x4a   : > { %907 = vmatpush1.msra.mxu0 %v739_v40  ;;  %836 = vmatpush1.msra.mxu1 %v701_v61  ;;  %v785_v38 = vld [vmem:[%s12228_s2 + $0x360] sm:$0xff]  ;;  %v780_v40 = vld [vmem:[%s12228_s2 + $0x338] sm:$0xff]  ;;  %v782_v43 = vld [vmem:[%s12228_s2 + $0x348] sm:$0xff] }
  0x4b   : > { %908 = vmatprep.subr.mxu0 %v734_v42  ;;  %837 = vmatprep.subr.mxu1 %v696_v63  ;;  %v779_v42 = vld [vmem:[%s12228_s2 + $0x330] sm:$0xff]  ;;  %v781_v45 = vld [vmem:[%s12228_s2 + $0x340] sm:$0xff]  ;;  %v776_v47 = vld [vmem:[%s12228_s2 + $0x318] sm:$0xff] }
  0x4c   : > { %909 = vmatpush1.msra.mxu0 %v733_v44  ;;  %838 = vmatpush1.msra.mxu1 %v695_v10  ;;  %v774_v44 = vld [vmem:[%s12228_s2 + $0x308] sm:$0xff]  ;;  %v772_v49 = vld [vmem:[%s12228_s2 + $0x2f8] sm:$0xff]  ;;  %v765_v55 = vld [vmem:[%s12228_s2 + $0x2c0] sm:$0xff] }
  0x4d   : > { %910 = vmatprep.subr.mxu0 %v728_v46  ;;  %839 = vmatprep.subr.mxu1 %v690_v13  ;;  %v773_v46 = vld [vmem:[%s12228_s2 + $0x300] sm:$0xff]  ;;  %v766_v53 = vld [vmem:[%s12228_s2 + $0x2c8] sm:$0xff]  ;;  %v748_v61 = vld [vmem:[%s12228_s2 + $0x238] sm:$0xff] }
  0x4e   : > { %911 = vmatpush1.msra.mxu0 %v727_v48  ;;  %840 = vmatpush1.msra.mxu1 %v689_v17  ;;  %v775_v48 = vld [vmem:[%s12228_s2 + $0x310] sm:$0xff]  ;;  %v754_v59 = vld [vmem:[%s12228_s2 + $0x268] sm:$0xff]  ;;  %v7352_v10 = vld [vmem:[%s12263_s30 + $0x20] sm:$0xff] }
  0x4f   : > { %912 = vmatprep.subr.mxu0 %v722_v50  ;;  %841 = vmatprep.subr.mxu1 %v684_v20  ;;  %v7450_v63 = vld [vmem:[%s12228_s2 + $0x6c8] sm:$0xff]  ;;  %v717_v13 = vld [vmem:[%s12228_s2 + $0x140] sm:$0xff]  ;;  %v7444_v17 = vld [vmem:[%s12228_s2 + $0x698] sm:$0xff] }
  0x50   : > { %913 = vmatpush1.msra.mxu0 %v721_v52  ;;  %842 = vmatpush1.msra.mxu1 %v683_v22  ;;  %v771_v52 = vld [vmem:[%s12228_s2 + $0x2f0] sm:$0xff]  ;;  %v706_v22 = vld [vmem:[%s12228_s2 + $0xe8] sm:$0xff] }
  0x51   : > { %914 = vmatprep.subr.mxu0 %v716_v54  ;;  %843 = vmatprep.subr.mxu1 %v678_v24  ;;  %v7443_v20 = vld [vmem:[%s12228_s2 + $0x690] sm:$0xff]  ;;  %v7438_v24 = vld [vmem:[%s12228_s2 + $0x668] sm:$0xff] }
  0x52   : > { %915 = vmatpush1.msra.mxu0 %v715_v56  ;;  %844 = vmatpush1.msra.mxu1 %v677_v26  ;;  %v760_v56 = vld [vmem:[%s12228_s2 + $0x298] sm:$0xff]  ;;  %v7437_v26 = vld [vmem:[%s12228_s2 + $0x660] sm:$0xff] }
  0x53   : > { %916 = vmatprep.subr.mxu0 %v710_v58  ;;  %867 = vmatprep.subr.mxu1 %v798_v28  ;;  %v759_v58 = vld [vmem:[%s12228_s2 + $0x290] sm:$0xff]  ;;  %v7432_v28 = vld [vmem:[%s12228_s2 + $0x638] sm:$0xff] }
  0x54   : > { %917 = vmatpush1.msra.mxu0 %v709_v60  ;;  %868 = vmatpush2.msra.mxu1 %v797_v30  ;;  %v7431_v30 = vld [vmem:[%s12228_s2 + $0x630] sm:$0xff] }
  0x55   : > { %918 = vmatprep.subr.mxu0 %v704_v62  ;;  %869 = vmatprep.subr.mxu1 %v792_v32  ;;  %v730_v62 = vld [vmem:[%s12228_s2 + $0x1a8] sm:$0xff] }
  0x56   : > { %919 = vmatpush1.msra.mxu0 %v703_v9  ;;  %870 = vmatpush2.msra.mxu1 %v791_v34  ;;  %v7449_v9 = vld [vmem:[%s12228_s2 + $0x6c0] sm:$0xff]  ;;  %v7426_v32 = vld [vmem:[%s12228_s2 + $0x608] sm:$0xff] }
  0x57   : > { %920 = vmatprep.subr.mxu0 %v698_v12  ;;  %871 = vmatprep.subr.mxu1 %v786_v36  ;;  %v718_v12 = vld [vmem:[%s12228_s2 + $0x148] sm:$0xff]  ;;  %v7425_v34 = vld [vmem:[%s12228_s2 + $0x600] sm:$0xff]  ;;  %v7420_v36 = vld [vmem:[%s12228_s2 + $0x5d8] sm:$0xff] }
  0x58   : > { %921 = vmatpush1.msra.mxu0 %v697_v15  ;;  %872 = vmatpush2.msra.mxu1 %v785_v38  ;;  %v712_v15 = vld [vmem:[%s12228_s2 + $0x118] sm:$0xff]  ;;  %v7419_v38 = vld [vmem:[%s12228_s2 + $0x5d0] sm:$0xff] }
  0x59   : > { %922 = vmatprep.subr.mxu0 %v692_v19  ;;  %873 = vmatprep.subr.mxu1 %v780_v40  ;;  %v711_v19 = vld [vmem:[%s12228_s2 + $0x110] sm:$0xff]  ;;  %v7414_v40 = vld [vmem:[%s12228_s2 + $0x5a8] sm:$0xff] }
  0x5a   : > { %923 = vmatpush1.msra.mxu0 %v691_v21  ;;  %874 = vmatpush2.msra.mxu1 %v779_v42  ;;  %v7353_v21 = vld [vmem:[%s12263_s30 + $0x28] sm:$0x1f]  ;;  %v7413_v42 = vld [vmem:[%s12228_s2 + $0x5a0] sm:$0xff] }
  0x5b   : > { %924 = vmatprep.subr.mxu0 %v686_v23  ;;  %875 = vmatprep.subr.mxu1 %v774_v44  ;;  %v705_v23 = vld [vmem:[%s12228_s2 + $0xe0] sm:$0xff]  ;;  %v7408_v44 = vld [vmem:[%s12228_s2 + $0x578] sm:$0xff] }
  0x5c   : > { %925 = vmatpush1.msra.mxu0 %v685_v25  ;;  %876 = vmatpush2.msra.mxu1 %v773_v46  ;;  %v700_v25 = vld [vmem:[%s12228_s2 + $0xb8] sm:$0xff]  ;;  %v7407_v46 = vld [vmem:[%s12228_s2 + $0x570] sm:$0xff] }
  0x5d   : > { %926 = vmatprep.subr.mxu0 %v680_v27  ;;  %979 = vmatprep.subr.mxu1 %v772_v49  ;;  %v699_v27 = vld [vmem:[%s12228_s2 + $0xb0] sm:$0xff]  ;;  %v790_v49 = vld [vmem:[%s12228_s2 + $0x388] sm:$0xff] }
  0x5e   : > { %927 = vmatpush1.msra.mxu0 %v679_v29  ;;  %v694_v29 = vld [vmem:[%s12228_s2 + $0x88] sm:$0xff] }
  0x5f   : > { %950 = vmatprep.subr.mxu0 %v800_v31  ;;  %v693_v31 = vld [vmem:[%s12228_s2 + $0x80] sm:$0xff] }
  0x60   : > { %951 = vmatpush2.msra.mxu0 %v799_v33  ;;  %v688_v33 = vld [vmem:[%s12228_s2 + $0x58] sm:$0xff] }
  0x61   : > { %952 = vmatprep.subr.mxu0 %v794_v35  ;;  %v687_v35 = vld [vmem:[%s12228_s2 + $0x50] sm:$0xff] }
  0x62   : > { %953 = vmatpush2.msra.mxu0 %v793_v37  ;;  %v682_v37 = vld [vmem:[%s12228_s2 + $0x28] sm:$0xff] }
  0x63   : > { %954 = vmatprep.subr.mxu0 %v788_v39  ;;  %v681_v39 = vld [vmem:[%s12228_s2 + $0x20] sm:$0xff] }
  0x64   : > { %955 = vmatpush2.msra.mxu0 %v787_v41  ;;  %v802_v41 = vld [vmem:[%s12228_s2 + $0x3e8] sm:$0xff] }
  0x65   : > { %956 = vmatprep.subr.mxu0 %v782_v43  ;;  %v801_v43 = vld [vmem:[%s12228_s2 + $0x3e0] sm:$0xff] }
  0x66   : > { %957 = vmatpush2.msra.mxu0 %v781_v45  ;;  %v796_v45 = vld [vmem:[%s12228_s2 + $0x3b8] sm:$0xff] }
  0x67   : > { %958 = vmatprep.subr.mxu0 %v776_v47  ;;  %v795_v47 = vld [vmem:[%s12228_s2 + $0x3b0] sm:$0xff] }
  0x68   : > { %959 = vmatpush2.msra.mxu0 %v775_v48  ;;  %v7402_v48 = vld [vmem:[%s12228_s2 + $0x548] sm:$0xff] }
  0x69   : > { %7354 = vmatprep.subr.msk.mxu0 %vm587_vm0, %v8787_v1 }
  0xff   : > { %v9107_v50 = vpop.f32.mrf.mxu0 }
 0x101   : > { %v662_v51 = vpop.f32.mrf.mxu0 }
 0x102   : > { %7342 = vmatprep.mubr.msk.f32.mxu1 %vm803_vm2, %v662_v51  ;;  %7345 = vmatprep.mubr.msk.f32.mxu0 %vm803_vm2, %v662_v51 }
 0x103   : > { %v9117_v54 = vpop.f32.mrf.mxu0  ;;  %878 = vmatmul.mubr.f32.vlgmr.msra.gmra.mxu1 %v9107_v50  ;;  %961 = vmatmul.mubr.f32.vlgmr.msra.gmra.mxu0 %v9107_v50 }
 0x104   : > { %980 = vmatpush1.msra.mxu1 %v771_v52  ;;  %7355 = vmatpush1.msk.msra.mxu0 %vm587_vm0, %v8790_v2  ;;  %v789_v52 = vld [vmem:[%s12228_s2 + $0x380] sm:$0xff] }
 0x105   : > { %981 = vmatprep.subr.mxu1 %v766_v53  ;;  %v9129_v57 = vpop.f32.mrf.mxu0  ;;  %1146 = vmatprep.subr.mxu0 %v8793_v3  ;;  %v753_v3 = vld [vmem:[%s12228_s2 + $0x260] sm:$0xff]  ;;  %v7396_v53 = vld [vmem:[%s12228_s2 + $0x518] sm:$0xff] }
 0x106   : > { %982 = vmatpush1.msra.mxu1 %v765_v55  ;;  %7343 = vmatprep.mubr.msk.f32.mxu1 %vm803_vm2, %v9129_v57  ;;  %v784_v55 = vld [vmem:[%s12228_s2 + $0x358] sm:$0xff] }
 0x107   : > { %7346 = vmatprep.mubr.msk.f32.mxu0 %vm803_vm2, %v9129_v57  ;;  %983 = vmatprep.subr.mxu1 %v760_v56  ;;  %v9139_v2 = vpop.f32.mrf.mxu0  ;;  %v7395_v56 = vld [vmem:[%s12228_s2 + $0x510] sm:$0xff] }
 0x108   : > { %1147 = vmatpush1.msra.mxu0 %v8798_v4  ;;  %884 = vmatmul.mubr.f32.gmra.mxu1 %v9117_v54  ;;  %v747_v4 = vld [vmem:[%s12228_s2 + $0x230] sm:$0xff] }
 0x109   : > { %967 = vmatmul.mubr.f32.gmra.mxu0 %v9117_v54  ;;  %984 = vmatpush1.msra.mxu1 %v759_v58  ;;  %v9150_v60 = vpop.f32.mrf.mxu0  ;;  %v783_v58 = vld [vmem:[%s12228_s2 + $0x350] sm:$0xff] }
 0x10a   : > { %1148 = vmatprep.subr.mxu0 %v8803_v5  ;;  %985 = vmatprep.subr.mxu1 %v754_v59  ;;  %v742_v5 = vld [vmem:[%s12228_s2 + $0x208] sm:$0xff] }
 0x10b   : > { %1149 = vmatpush1.msra.mxu0 %v8807_v6  ;;  %986 = vmatpush1.msra.mxu1 %v753_v3  ;;  %v741_v6 = vld [vmem:[%s12228_s2 + $0x200] sm:$0xff]  ;;  %v7390_v59 = vld [vmem:[%s12228_s2 + $0x4e8] sm:$0xff] }
 0x10c   : > { %1150 = vmatprep.subr.mxu0 %v8811_v7  ;;  %7344 = vmatprep.mubr.msk.f32.mxu1 %vm803_vm2, %v9150_v60  ;;  %v736_v7 = vld [vmem:[%s12228_s2 + $0x1d8] sm:$0xff]  ;;  %v778_v3 = vld [vmem:[%s12228_s2 + $0x328] sm:$0xff] }
 0x10d   : > { %7347 = vmatprep.mubr.msk.f32.mxu0 %vm803_vm2, %v9150_v60  ;;  %987 = vmatprep.subr.mxu1 %v748_v61  ;;  %v7389_v61 = vld [vmem:[%s12228_s2 + $0x4e0] sm:$0xff] }
 0x10e   : > { %1151 = vmatpush1.msra.mxu0 %v8815_v8  ;;  %890 = vmatmul.mubr.f32.gmra.mxu1 %v9139_v2  ;;  %v735_v8 = vld [vmem:[%s12228_s2 + $0x1d0] sm:$0xff] }
 0x10f   : > { %973 = vmatmul.mubr.f32.gmra.mxu0 %v9139_v2  ;;  %988 = vmatpush1.msra.mxu1 %v747_v4  ;;  %v777_v4 = vld [vmem:[%s12228_s2 + $0x320] sm:$0xff] }
 0x110   : > { %1152 = vmatprep.subr.mxu0 %v8825_v11  ;;  %989 = vmatprep.subr.mxu1 %v742_v5  ;;  %v7351_v11 = vld [vmem:[%s12263_s30 + $0x18] sm:$0xff] }
 0x111   : > { %7348 = vmatprep.mubr.msk.f32.mxu1 %vm803_vm2, %v662_v51  ;;  %1153 = vmatpush1.msra.mxu0 %v8835_v14  ;;  %v729_v14 = vld [vmem:[%s12228_s2 + $0x1a0] sm:$0xff]  ;;  %v7384_v5 = vld [vmem:[%s12228_s2 + $0x4b8] sm:$0xff] }
 0x112   : > { %990 = vmatpush1.msra.mxu1 %v741_v6  ;;  %1154 = vmatprep.subr.mxu0 %v8842_v16  ;;  %v724_v16 = vld [vmem:[%s12228_s2 + $0x178] sm:$0xff]  ;;  %v7401_v51 = vld [vmem:[%s12228_s2 + $0x540] sm:$0xff] }
 0x113   : > { %991 = vmatprep.subr.mxu1 %v736_v7  ;;  %1155 = vmatpush1.msra.mxu0 %v8849_v18  ;;  %v723_v18 = vld [vmem:[%s12228_s2 + $0x170] sm:$0xff]  ;;  %v7452_v6 = vld [vmem:[%s12228_s2 + $0x6d8] sm:$0xff] }
 0x114   : > { %1188 = vmatprep.mubr.f32.mxu0 %v8619_v0  ;;  %992 = vmatpush1.msra.mxu1 %v735_v8  ;;  %v7451_v7 = vld [vmem:[%s12228_s2 + $0x6d0] sm:$0xff]  ;;  %v7446_v8 = vld [vmem:[%s12228_s2 + $0x6a8] sm:$0xff] }
 0x115   : > { %7356 = vmatmul.mubr.msk.f32.vlgmr.msra.gmra.mxu0 %vm577_vm1, %v7351_v11  ;;  %993 = vmatprep.subr.mxu1 %v730_v62  ;;  %v7383_v11 = vld [vmem:[%s12228_s2 + $0x4b0] sm:$0xff]  ;;  %v7445_v62 = vld [vmem:[%s12228_s2 + $0x6a0] sm:$0xff] }
 0x116   : > { %994 = vmatpush1.msra.mxu1 %v729_v14  ;;  %1194 = vmatprep.mubr.f32.mxu0 %v8619_v0  ;;  %v7378_v14 = vld [vmem:[%s12228_s2 + $0x488] sm:$0xff] }
 0x117   : > { %995 = vmatprep.subr.mxu1 %v724_v16  ;;  %1343 = vmatprep.subr.mxu0 %v7450_v63  ;;  %v7440_v16 = vld [vmem:[%s12228_s2 + $0x678] sm:$0xff]  ;;  %v7434_v63 = vld [vmem:[%s12228_s2 + $0x648] sm:$0xff] }
 0x118   : > { %996 = vmatpush1.msra.mxu1 %v723_v18  ;;  %1344 = vmatpush1.msra.mxu0 %v7449_v9  ;;  %v7433_v18 = vld [vmem:[%s12228_s2 + $0x640] sm:$0xff]  ;;  %v7372_v9 = vld [vmem:[%s12228_s2 + $0x458] sm:$0xff] }
 0x119   : > { %7357 = vmatmul.mubr.msk.f32.gmra.mxu0 %vm577_vm1, %v7352_v10  ;;  %997 = vmatprep.subr.mxu1 %v718_v12  ;;  %v7428_v10 = vld [vmem:[%s12228_s2 + $0x618] sm:$0xff]  ;;  %v7422_v12 = vld [vmem:[%s12228_s2 + $0x5e8] sm:$0xff] }
 0x11a   : > { %998 = vmatpush1.msra.mxu1 %v717_v13  ;;  %1200 = vmatprep.mubr.f32.mxu0 %v8619_v0  ;;  %v7416_v13 = vld [vmem:[%s12228_s2 + $0x5b8] sm:$0xff] }
 0x11b   : > { %999 = vmatprep.subr.mxu1 %v712_v15  ;;  %1345 = vmatprep.subr.mxu0 %v7444_v17  ;;  %v7415_v15 = vld [vmem:[%s12228_s2 + $0x5b0] sm:$0xff]  ;;  %v7409_v17 = vld [vmem:[%s12228_s2 + $0x580] sm:$0xff] }
 0x11c   : > { %1000 = vmatpush1.msra.mxu1 %v711_v19  ;;  %1346 = vmatpush1.msra.mxu0 %v7443_v20  ;;  %v7404_v19 = vld [vmem:[%s12228_s2 + $0x558] sm:$0xff]  ;;  %v7403_v20 = vld [vmem:[%s12228_s2 + $0x550] sm:$0xff] }
 0x11d   : > { %7358 = vmatmul.mubr.msk.f32.gmra.mxu0 %vm577_vm1, %v7353_v21  ;;  %1001 = vmatprep.subr.mxu1 %v706_v22  ;;  %v7398_v21 = vld [vmem:[%s12228_s2 + $0x528] sm:$0xff]  ;;  %v7397_v22 = vld [vmem:[%s12228_s2 + $0x520] sm:$0xff] }
 0x11e   : > { %1002 = vmatpush1.msra.mxu1 %v705_v23  ;;  %1347 = vmatprep.subr.mxu0 %v7438_v24  ;;  %v7392_v23 = vld [vmem:[%s12228_s2 + $0x4f8] sm:$0xff]  ;;  %v7391_v24 = vld [vmem:[%s12228_s2 + $0x4f0] sm:$0xff] }
 0x11f   : > { %1003 = vmatprep.subr.mxu1 %v700_v25  ;;  %1348 = vmatpush1.msra.mxu0 %v7437_v26  ;;  %v7386_v25 = vld [vmem:[%s12228_s2 + $0x4c8] sm:$0xff]  ;;  %v7371_v26 = vld [vmem:[%s12228_s2 + $0x450] sm:$0xff] }
 0x120   : > { %1004 = vmatpush1.msra.mxu1 %v699_v27  ;;  %1349 = vmatprep.subr.mxu0 %v7432_v28  ;;  %v7366_v27 = vld [vmem:[%s12228_s2 + $0x428] sm:$0xff]  ;;  %v7385_v28 = vld [vmem:[%s12228_s2 + $0x4c0] sm:$0xff] }
 0x121   : > { %1005 = vmatprep.subr.mxu1 %v694_v29  ;;  %1350 = vmatpush1.msra.mxu0 %v7431_v30  ;;  %v7380_v29 = vld [vmem:[%s12228_s2 + $0x498] sm:$0xff]  ;;  %v7365_v30 = vld [vmem:[%s12228_s2 + $0x420] sm:$0xff] }
 0x122   : > { %1006 = vmatpush1.msra.mxu1 %v693_v31  ;;  %1351 = vmatprep.subr.mxu0 %v7426_v32  ;;  %v7379_v31 = vld [vmem:[%s12228_s2 + $0x490] sm:$0xff]  ;;  %v7360_v32 = vld [vmem:[%s12228_s2 + $0x3f8] sm:$0xff] }
 0x123   : > { %1007 = vmatprep.subr.mxu1 %v688_v33  ;;  %1352 = vmatpush1.msra.mxu0 %v7425_v34  ;;  %v7374_v33 = vld [vmem:[%s12228_s2 + $0x468] sm:$0xff]  ;;  %v7373_v34 = vld [vmem:[%s12228_s2 + $0x460] sm:$0xff] }
 0x124   : > { %1008 = vmatpush1.msra.mxu1 %v687_v35  ;;  %1353 = vmatprep.subr.mxu0 %v7420_v36  ;;  %v7368_v35 = vld [vmem:[%s12228_s2 + $0x438] sm:$0xff]  ;;  %v7359_v36 = vld [vmem:[%s12228_s2 + $0x3f0] sm:$0xff] }
 0x125   : > { %1009 = vmatprep.subr.mxu1 %v682_v37  ;;  %1354 = vmatpush1.msra.mxu0 %v7419_v38  ;;  %v7480_v37 = vld [vmem:[%s12228_s2 + $0x7b8] sm:$0xff]  ;;  %v7367_v38 = vld [vmem:[%s12228_s2 + $0x430] sm:$0xff] }
 0x126   : > { %1010 = vmatpush1.msra.mxu1 %v681_v39  ;;  %1355 = vmatprep.subr.mxu0 %v7414_v40  ;;  %v7362_v39 = vld [vmem:[%s12228_s2 + $0x408] sm:$0xff]  ;;  %v7479_v40 = vld [vmem:[%s12228_s2 + $0x7b0] sm:$0xff] }
 0x127   : > { %1033 = vmatprep.subr.mxu1 %v802_v41  ;;  %1356 = vmatpush1.msra.mxu0 %v7413_v42  ;;  %v7474_v41 = vld [vmem:[%s12228_s2 + $0x788] sm:$0xff]  ;;  %v7361_v42 = vld [vmem:[%s12228_s2 + $0x400] sm:$0xff] }
 0x128   : > { %1034 = vmatpush2.msra.mxu1 %v801_v43  ;;  %1357 = vmatprep.subr.mxu0 %v7408_v44  ;;  %v7482_v43 = vld [vmem:[%s12228_s2 + $0x7c8] sm:$0xff]  ;;  %v7481_v44 = vld [vmem:[%s12228_s2 + $0x7c0] sm:$0xff] }
 0x129   : > { %1035 = vmatprep.subr.mxu1 %v796_v45  ;;  %1358 = vmatpush1.msra.mxu0 %v7407_v46  ;;  %v7473_v45 = vld [vmem:[%s12228_s2 + $0x780] sm:$0xff]  ;;  %v7476_v46 = vld [vmem:[%s12228_s2 + $0x798] sm:$0xff] }
 0x12a   : > { %1036 = vmatpush2.msra.mxu1 %v795_v47  ;;  %1359 = vmatprep.subr.mxu0 %v7402_v48  ;;  %v7468_v47 = vld [vmem:[%s12228_s2 + $0x758] sm:$0xff]  ;;  %v7475_v48 = vld [vmem:[%s12228_s2 + $0x790] sm:$0xff] }
 0x12b   : > { %1037 = vmatprep.subr.mxu1 %v790_v49  ;;  %1360 = vmatpush1.msra.mxu0 %v7401_v51  ;;  %v7467_v49 = vld [vmem:[%s12228_s2 + $0x750] sm:$0xff]  ;;  %v7470_v51 = vld [vmem:[%s12228_s2 + $0x768] sm:$0xff] }
 0x12c   : > { %1038 = vmatpush2.msra.mxu1 %v789_v52  ;;  %1361 = vmatprep.subr.mxu0 %v7396_v53  ;;  %v7462_v52 = vld [vmem:[%s12228_s2 + $0x728] sm:$0xff]  ;;  %v7469_v53 = vld [vmem:[%s12228_s2 + $0x760] sm:$0xff] }
 0x12d   : > { %1039 = vmatprep.subr.mxu1 %v784_v55  ;;  %1362 = vmatpush1.msra.mxu0 %v7395_v56  ;;  %v7461_v55 = vld [vmem:[%s12228_s2 + $0x720] sm:$0xff]  ;;  %v7464_v56 = vld [vmem:[%s12228_s2 + $0x738] sm:$0xff] }
 0x12e   : > { %1040 = vmatpush2.msra.mxu1 %v783_v58  ;;  %1363 = vmatprep.subr.mxu0 %v7390_v59  ;;  %v7456_v58 = vld [vmem:[%s12228_s2 + $0x6f8] sm:$0xff]  ;;  %v7463_v59 = vld [vmem:[%s12228_s2 + $0x730] sm:$0xff] }
 0x12f   : > { %1041 = vmatprep.subr.mxu1 %v778_v3  ;;  %1364 = vmatpush1.msra.mxu0 %v7389_v61  ;;  %v7455_v3 = vld [vmem:[%s12228_s2 + $0x6f0] sm:$0xff]  ;;  %v7458_v61 = vld [vmem:[%s12228_s2 + $0x708] sm:$0xff] }
 0x130   : > { %1042 = vmatpush2.msra.mxu1 %v777_v4  ;;  %1365 = vmatprep.subr.mxu0 %v7384_v5  ;;  %v7457_v4 = vld [vmem:[%s12228_s2 + $0x700] sm:$0xff]  ;;  %v7454_v5 = vld [vmem:[%s12228_s2 + $0x6e8] sm:$0xff] }
 0x131   : > { %1044 = vmatmul.mubr.f32.vlgmr.msra.gmra.mxu1 %v9107_v50  ;;  %1426 = vmatprep.subr.mxu1 %v7452_v6  ;;  %v7439_v50 = vld [vmem:[%s12228_s2 + $0x670] sm:$0xff] }
 0x132   : > { %7349 = vmatprep.mubr.msk.f32.mxu1 %vm803_vm2, %v9129_v57  ;;  %1427 = vmatpush1.msra.mxu1 %v7451_v7  ;;  %v7377_v57 = vld [vmem:[%s12228_s2 + $0x480] sm:$0xff] }
 0x133   : > { %1428 = vmatprep.subr.mxu1 %v7446_v8  ;;  %1366 = vmatpush1.msra.mxu0 %v7383_v11 }
 0x134   : > { %1429 = vmatpush1.msra.mxu1 %v7445_v62  ;;  %1367 = vmatprep.subr.mxu0 %v7378_v14 }
 0x135   : > { %1050 = vmatmul.mubr.f32.gmra.mxu1 %v9117_v54  ;;  %1430 = vmatprep.subr.mxu1 %v7440_v16  ;;  %v7427_v54 = vld [vmem:[%s12228_s2 + $0x610] sm:$0xff] }
 0x136   : > { %7350 = vmatprep.mubr.msk.f32.mxu1 %vm803_vm2, %v9150_v60  ;;  %1431 = vmatpush1.msra.mxu1 %v7439_v50  ;;  %v7421_v60 = vld [vmem:[%s12228_s2 + $0x5e0] sm:$0xff] }
 0x137   : > { %1432 = vmatprep.subr.mxu1 %v7434_v63  ;;  %1368 = vmatpush1.msra.mxu0 %v7377_v57  ;;  %v7448_v63 = vld [vmem:[%s12228_s2 + $0x6b8] sm:$0xff] }
 0x138   : > { %1433 = vmatpush1.msra.mxu1 %v7433_v18  ;;  %1369 = vmatprep.subr.mxu0 %v7372_v9  ;;  %v7447_v18 = vld [vmem:[%s12228_s2 + $0x6b0] sm:$0xff] }
 0x139   : > { %1056 = vmatmul.mubr.f32.gmra.mxu1 %v9139_v2  ;;  %1434 = vmatprep.subr.mxu1 %v7428_v10  ;;  %v7410_v2 = vld [vmem:[%s12228_s2 + $0x588] sm:$0xff]  ;;  %v8513_v9 = vld [vmem:[%s8784_s21 + $0x50] sm:$0x3] }
 0x13a   : > { %1435 = vmatpush1.msra.mxu1 %v7427_v54  ;;  %1370 = vmatpush1.msra.mxu0 %v7371_v26  ;;  %v7442_v10 = vld [vmem:[%s12228_s2 + $0x688] sm:$0xff]  ;;  %v8519_v26 = vld [vmem:[%s8784_s21 + $0x20] sm:$0xff] }
 0x13b   : > { %1436 = vmatprep.subr.mxu1 %v7422_v12  ;;  %1371 = vmatprep.subr.mxu0 %v7366_v27  ;;  %v8514_v12 = vld [vmem:[%s8784_s21 + $0x48] sm:$0xff]  ;;  %v7423_v27 = vld [vmem:[%s12228_s2 + $0x5f0] sm:$0xff] }
 0x13c   : > { %1437 = vmatpush1.msra.mxu1 %v7421_v60  ;;  %1372 = vmatpush1.msra.mxu0 %v7365_v30  ;;  %v7441_v60 = vld [vmem:[%s12228_s2 + $0x680] sm:$0xff]  ;;  %v8521_v30 = vld [vmem:[%s8784_s21 + $0x10] sm:$0xff] }
 0x13d   : > { %1438 = vmatprep.subr.mxu1 %v7416_v13  ;;  %1373 = vmatprep.subr.mxu0 %v7360_v32  ;;  %v8522_v32 = vld [vmem:[%s8784_s21 + $0x8] sm:$0xff] }
 0x13e   : > { %1439 = vmatpush1.msra.mxu1 %v7415_v15  ;;  %1374 = vmatpush1.msra.mxu0 %v7359_v36  ;;  %v7436_v15 = vld [vmem:[%s12228_s2 + $0x658] sm:$0xff]  ;;  %v7411_v36 = vld [vmem:[%s12228_s2 + $0x590] sm:$0xff] }
 0x13f   : > { %1440 = vmatprep.subr.mxu1 %v7410_v2  ;;  %1397 = vmatprep.subr.mxu0 %v7480_v37  ;;  %v8515_v2 = vld [vmem:[%s8784_s21 + $0x40] sm:$0xff]  ;;  %v7406_v37 = vld [vmem:[%s12228_s2 + $0x568] sm:$0xff] }
 0x140   : > { %1441 = vmatpush1.msra.mxu1 %v7409_v17  ;;  %1398 = vmatpush2.msra.mxu0 %v7479_v40  ;;  %v7435_v17 = vld [vmem:[%s12228_s2 + $0x650] sm:$0xff] }
 0x141   : > { %1442 = vmatprep.subr.mxu1 %v7404_v19  ;;  %1399 = vmatprep.subr.mxu0 %v7474_v41  ;;  %v7592_v40 = vld [vmem:[%s12228_s2 + $0xab0] sm:$0xff]  ;;  %v7495_v41 = vld [vmem:[%s12263_s30 + $0x38] sm:$0xff] }
 0x142   : > { %1443 = vmatpush1.msra.mxu1 %v7403_v20  ;;  %1400 = vmatpush2.msra.mxu0 %v7473_v45  ;;  %v8516_v20 = vld [vmem:[%s8784_s21 + $0x38] sm:$0xff]  ;;  %v7587_v45 = vld [vmem:[%s12228_s2 + $0xa88] sm:$0xff] }
 0x143   : > { %1444 = vmatprep.subr.mxu1 %v7398_v21  ;;  %1401 = vmatprep.subr.mxu0 %v7468_v47  ;;  %v7430_v21 = vld [vmem:[%s12228_s2 + $0x628] sm:$0xff]  ;;  %v7586_v47 = vld [vmem:[%s12228_s2 + $0xa80] sm:$0xff] }
 0x144   : > { %1445 = vmatpush1.msra.mxu1 %v7397_v22  ;;  %1402 = vmatpush2.msra.mxu0 %v7467_v49  ;;  %v8517_v22 = vld [vmem:[%s8784_s21 + $0x30] sm:$0xff]  ;;  %v7388_v49 = vld [vmem:[%s12228_s2 + $0x4d8] sm:$0xff] }
 0x145   : > { %1446 = vmatprep.subr.mxu1 %v7392_v23  ;;  %1403 = vmatprep.subr.mxu0 %v7462_v52  ;;  %v8518_v23 = vld [vmem:[%s8784_s21 + $0x28] sm:$0xff]  ;;  %v7581_v52 = vld [vmem:[%s12228_s2 + $0xa58] sm:$0xff] }
 0x146   : > { %1447 = vmatpush1.msra.mxu1 %v7391_v24  ;;  %1404 = vmatpush2.msra.mxu0 %v7461_v55  ;;  %v7429_v24 = vld [vmem:[%s12228_s2 + $0x620] sm:$0xff]  ;;  %v7580_v55 = vld [vmem:[%s12228_s2 + $0xa50] sm:$0xff] }
 0x147   : > { %1448 = vmatprep.subr.mxu1 %v7386_v25  ;;  %1405 = vmatprep.subr.mxu0 %v7456_v58  ;;  %v7424_v25 = vld [vmem:[%s12228_s2 + $0x5f8] sm:$0xff]  ;;  %v7575_v58 = vld [vmem:[%s12228_s2 + $0xa28] sm:$0xff] }
 0x148   : > { %1449 = vmatpush1.msra.mxu1 %v7385_v28  ;;  %1406 = vmatpush2.msra.mxu0 %v7455_v3  ;;  %v8520_v28 = vld [vmem:[%s8784_s21 + $0x18] sm:$0xff]  ;;  %v7574_v3 = vld [vmem:[%s12228_s2 + $0xa20] sm:$0xff] }
 0x149   : > { %1450 = vmatprep.subr.mxu1 %v7380_v29  ;;  %1509 = vmatprep.subr.mxu0 %v7454_v5  ;;  %v7418_v29 = vld [vmem:[%s12228_s2 + $0x5c8] sm:$0xff] }
 0x14a   : > { %1451 = vmatpush1.msra.mxu1 %v7379_v31  ;;  %v7417_v31 = vld [vmem:[%s12228_s2 + $0x5c0] sm:$0xff]  ;;  %v7370_v5 = vld [vmem:[%s12228_s2 + $0x448] sm:$0xff] }
 0x14b   : > { %1452 = vmatprep.subr.mxu1 %v7374_v33  ;;  %v7494_v33 = vld [vmem:[%s12263_s30 + $0x30] sm:$0xff] }
 0x14c   : > { %1453 = vmatpush1.msra.mxu1 %v7373_v34  ;;  %v7412_v34 = vld [vmem:[%s12228_s2 + $0x598] sm:$0xff] }
 0x14d   : > { %1454 = vmatprep.subr.mxu1 %v7368_v35  ;;  %v8523_v35 = vld [vmem:[%s8784_s21] sm:$0xff]  ;;  %s7980_s21 = sshll.u32 %s8733_s28, 4  ;;  %s8621_s28 = smov [#allocation5]  }
 0x14e   : > { %1455 = vmatpush1.msra.mxu1 %v7367_v38  ;;  %v7593_v38 = vld [vmem:[%s12228_s2 + $0xab8] sm:$0xff]  ;;  %s12191_s0 = scalar_lea.hbm %s12243_s17, %s7980_s21  ;;  %s8554_s5 = sshll.u32 %s8621_s28, 4  ;;  %s8555_s5 = int_to_ptr.vmem [resolvable:$false] %s8554_s5 }
 0x14f   : > { %1456 = vmatprep.subr.mxu1 %v7362_v39  ;;  %v7405_v39 = vld [vmem:[%s12228_s2 + $0x560] sm:$0xff]  ;;  %s8556_s26 = scalar_lea.vmem %s8555_s5, 32  ;;  %p8557_p11 = scmp.lt.s32.totalorder %s7264_s20, %s8555_s5 }
 0x150   : > { %1457 = vmatpush1.msra.mxu1 %v7361_v42  ;;  %v7400_v42 = vld [vmem:[%s12228_s2 + $0x538] sm:$0xff]  ;;  %p8558_p12 = scmp.lt.s32.totalorder %s8556_s26, %s8550_s22 }
 0x151   : > { %1480 = vmatprep.subr.mxu1 %v7482_v43  ;;  %v7399_v43 = vld [vmem:[%s12228_s2 + $0x530] sm:$0xff] }
 0x152   : > { %1481 = vmatpush2.msra.mxu1 %v7481_v44  ;;  %v7394_v44 = vld [vmem:[%s12228_s2 + $0x508] sm:$0xff]  ;;  %p8559_p13 = por %p8558_p12, %p8557_p11 }
 0x153   : > { %1482 = vmatprep.subr.mxu1 %v7476_v46  ;;  %v7393_v46 = vld [vmem:[%s12228_s2 + $0x500] sm:$0xff] }
 0x154   : > { %1483 = vmatpush2.msra.mxu1 %v7475_v48  ;;  %v7496_v48 = vld [vmem:[%s12263_s30 + $0x40] sm:$0x1f]  ;;  %p8560_p0 = pnand %p8559_p13, %p8553_p10 }
 0x155   : > { %1484 = vmatprep.subr.mxu1 %v7470_v51  ;;  %v7387_v51 = vld [vmem:[%s12228_s2 + $0x4d0] sm:$0xff] }
 0x156   : > { %1485 = vmatpush2.msra.mxu1 %v7469_v53  ;;  %v7382_v53 = vld [vmem:[%s12228_s2 + $0x4a8] sm:$0xff] }
 0x157   : > { %1486 = vmatprep.subr.mxu1 %v7464_v56  ;;  %v7381_v56 = vld [vmem:[%s12228_s2 + $0x4a0] sm:$0xff] }
 0x158   : > { %1487 = vmatpush2.msra.mxu1 %v7463_v59  ;;  %v7376_v59 = vld [vmem:[%s12228_s2 + $0x478] sm:$0xff] }
 0x159   : > { %1488 = vmatprep.subr.mxu1 %v7458_v61  ;;  %v7375_v61 = vld [vmem:[%s12228_s2 + $0x470] sm:$0xff] }
 0x15a   : > { %1489 = vmatpush2.msra.mxu1 %v7457_v4  ;;  %v7569_v4 = vld [vmem:[%s12228_s2 + $0x9f8] sm:$0xff] }
 0x15b   : > { %7497 = vmatprep.subr.msk.mxu1 %vm587_vm0, %v8787_v1  ;;  %v7453_v1 = vld [vmem:[%s12228_s2 + $0x6e0] sm:$0xff] }
 0x1c3   : > { %v9548_v6 = vpop.f32.mrf.mxu0 }
 0x1c5   : > { %v9550_v7 = vpop.f32.mrf.mxu0 }
 0x1c9   : > { %v9552_v8 = vpop.f32.mrf.mxu0 }
 0x1cb   : > { %v9554_v11 = vpop.f32.mrf.mxu0 }
 0x1cf   : > { %v9556_v62 = vpop.f32.mrf.mxu0 }
 0x1d1   : > { %v9558_v14 = vpop.f32.mrf.mxu0 }
 0x1d5   : > { %v9560_v16 = vpop.f32.mrf.mxu0 }
 0x1d7   : > { %v1192_v50 = vpop.f32.mrf.mxu0 }
 0x1d8   : > { %7485 = vmatprep.mubr.msk.f32.mxu0 %vm803_vm2, %v1192_v50  ;;  %7488 = vmatprep.mubr.msk.f32.mxu1 %vm803_vm2, %v1192_v50 }
 0x1d9   : > { %v9570_v57 = vpop.f32.mrf.mxu0  ;;  %1408 = vmatmul.mubr.f32.vlgmr.msra.gmra.mxu0 %v9560_v16  ;;  %1491 = vmatmul.mubr.f32.vlgmr.msra.gmra.mxu1 %v9560_v16 }
 0x1da   : > { %1510 = vmatpush1.msra.mxu0 %v7453_v1  ;;  %7498 = vmatpush1.msk.msra.mxu1 %vm587_vm0, %v8513_v9  ;;  %v7369_v1 = vld [vmem:[%s12228_s2 + $0x440] sm:$0xff] }
 0x1db   : > { %1511 = vmatprep.subr.mxu0 %v7448_v63  ;;  %v9582_v54 = vpop.f32.mrf.mxu0  ;;  %1645 = vmatprep.subr.mxu1 %v8514_v12  ;;  %v7563_v63 = vld [vmem:[%s12228_s2 + $0x9c8] sm:$0xff]  ;;  %v7562_v9 = vld [vmem:[%s12228_s2 + $0x9c0] sm:$0xff]  ;;  %v7557_v12 = vld [vmem:[%s12228_s2 + $0x998] sm:$0xff] }
 0x1dc   : > { %1512 = vmatpush1.msra.mxu0 %v7447_v18  ;;  %7486 = vmatprep.mubr.msk.f32.mxu0 %vm803_vm2, %v9582_v54  ;;  %v7364_v18 = vld [vmem:[%s12228_s2 + $0x418] sm:$0xff] }
 0x1dd   : > { %7489 = vmatprep.mubr.msk.f32.mxu1 %vm803_vm2, %v9582_v54  ;;  %1513 = vmatprep.subr.mxu0 %v7442_v10  ;;  %v9592_v13 = vpop.f32.mrf.mxu0  ;;  %v7363_v10 = vld [vmem:[%s12228_s2 + $0x410] sm:$0xff] }
 0x1de   : > { %1646 = vmatpush1.msra.mxu1 %v8515_v2  ;;  %1414 = vmatmul.mubr.f32.gmra.mxu0 %v9570_v57  ;;  %v7483_v2 = vld [vmem:[%s12228_s2 + $0x7d0] sm:$0xff] }
 0x1df   : > { %1497 = vmatmul.mubr.f32.gmra.mxu1 %v9570_v57  ;;  %1514 = vmatpush1.msra.mxu0 %v7441_v60  ;;  %v9603_v19 = vpop.f32.mrf.mxu0  ;;  %v7484_v60 = vld [vmem:[%s12228_s2 + $0x7d8] sm:$0xff] }
 0x1e0   : > { %1647 = vmatprep.subr.mxu1 %v8516_v20  ;;  %1515 = vmatprep.subr.mxu0 %v7436_v15  ;;  %v7556_v15 = vld [vmem:[%s12228_s2 + $0x990] sm:$0xff]  ;;  %v7478_v20 = vld [vmem:[%s12228_s2 + $0x7a8] sm:$0xff] }
 0x1e1   : > { %1648 = vmatpush1.msra.mxu1 %v8517_v22  ;;  %1516 = vmatpush1.msra.mxu0 %v7435_v17  ;;  %v7551_v17 = vld [vmem:[%s12228_s2 + $0x968] sm:$0xff]  ;;  %v7477_v22 = vld [vmem:[%s12228_s2 + $0x7a0] sm:$0xff] }
 0x1e2   : > { %1649 = vmatprep.subr.mxu1 %v8518_v23  ;;  %7487 = vmatprep.mubr.msk.f32.mxu0 %vm803_vm2, %v9603_v19  ;;  %v7545_v23 = vld [vmem:[%s12228_s2 + $0x938] sm:$0xff] }
 0x1e3   : > { %7490 = vmatprep.mubr.msk.f32.mxu1 %vm803_vm2, %v9603_v19  ;;  %1517 = vmatprep.subr.mxu0 %v7430_v21  ;;  %v7550_v21 = vld [vmem:[%s12228_s2 + $0x960] sm:$0xff] }
 0x1e4   : > { %1650 = vmatpush1.msra.mxu1 %v8519_v26  ;;  %1420 = vmatmul.mubr.f32.gmra.mxu0 %v9592_v13  ;;  %v7471_v26 = vld [vmem:[%s12228_s2 + $0x770] sm:$0xff] }
 0x1e5   : > { %1503 = vmatmul.mubr.f32.gmra.mxu1 %v9592_v13  ;;  %1518 = vmatpush1.msra.mxu0 %v7429_v24  ;;  %v7472_v24 = vld [vmem:[%s12228_s2 + $0x778] sm:$0xff] }
 0x1e6   : > { %1651 = vmatprep.subr.mxu1 %v8520_v28  ;;  %1519 = vmatprep.subr.mxu0 %v7424_v25  ;;  %v7544_v25 = vld [vmem:[%s12228_s2 + $0x930] sm:$0xff]  ;;  %v7466_v28 = vld [vmem:[%s12228_s2 + $0x748] sm:$0xff] }
 0x1e7   : > { %7491 = vmatprep.mubr.msk.f32.mxu0 %vm803_vm2, %v1192_v50  ;;  %1652 = vmatpush1.msra.mxu1 %v8521_v30  ;;  %v7568_v50 = vld [vmem:[%s12228_s2 + $0x9f0] sm:$0xff]  ;;  %v7465_v30 = vld [vmem:[%s12228_s2 + $0x740] sm:$0xff] }
 0x1e8   : > { %1520 = vmatpush1.msra.mxu0 %v7423_v27  ;;  %1653 = vmatprep.subr.mxu1 %v8522_v32  ;;  %v7539_v27 = vld [vmem:[%s12228_s2 + $0x908] sm:$0xff]  ;;  %v7460_v32 = vld [vmem:[%s12228_s2 + $0x718] sm:$0xff] }
 0x1e9   : > { %1521 = vmatprep.subr.mxu0 %v7418_v29  ;;  %1654 = vmatpush1.msra.mxu1 %v8523_v35  ;;  %v7538_v29 = vld [vmem:[%s12228_s2 + $0x900] sm:$0xff]  ;;  %v7527_v35 = vld [vmem:[%s12228_s2 + $0x8a8] sm:$0xff] }
 0x1ea   : > { %1687 = vmatprep.mubr.f32.mxu1 %v8619_v0  ;;  %1522 = vmatpush1.msra.mxu0 %v7417_v31  ;;  %v7533_v31 = vld [vmem:[%s12228_s2 + $0x8d8] sm:$0xff] }
 0x1eb   : > { %7499 = vmatmul.mubr.msk.f32.vlgmr.msra.gmra.mxu1 %vm577_vm1, %v7494_v33  ;;  %1523 = vmatprep.subr.mxu0 %v7412_v34  ;;  %v7532_v33 = vld [vmem:[%s12228_s2 + $0x8d0] sm:$0xff] }
 0x1ec   : > { %1524 = vmatpush1.msra.mxu0 %v7411_v36  ;;  %1693 = vmatprep.mubr.f32.mxu1 %v8619_v0  ;;  %v7459_v34 = vld [vmem:[%s12228_s2 + $0x710] sm:$0xff]  ;;  %v7595_v36 = vld [vmem:[%s12228_s2 + $0xac8] sm:$0xff] }
 0x1ed   : > { %1525 = vmatprep.subr.mxu0 %v7406_v37  ;;  %1842 = vmatprep.subr.mxu1 %v7593_v38  ;;  %v7594_v37 = vld [vmem:[%s12228_s2 + $0xac0] sm:$0xff]  ;;  %v7589_v38 = vld [vmem:[%s12228_s2 + $0xa98] sm:$0xff] }
 0x1ee   : > { %1526 = vmatpush1.msra.mxu0 %v7405_v39  ;;  %1843 = vmatpush1.msra.mxu1 %v7592_v40  ;;  %v7526_v39 = vld [vmem:[%s12228_s2 + $0x8a0] sm:$0xff]  ;;  %v7588_v40 = vld [vmem:[%s12228_s2 + $0xa90] sm:$0xff] }
 0x1ef   : > { %7500 = vmatmul.mubr.msk.f32.gmra.mxu1 %vm577_vm1, %v7495_v41  ;;  %1527 = vmatprep.subr.mxu0 %v7400_v42  ;;  %v7521_v41 = vld [vmem:[%s12228_s2 + $0x878] sm:$0xff]  ;;  %v7583_v42 = vld [vmem:[%s12228_s2 + $0xa68] sm:$0xff] }
 0x1f0   : > { %1528 = vmatpush1.msra.mxu0 %v7399_v43  ;;  %1699 = vmatprep.mubr.f32.mxu1 %v8619_v0  ;;  %v7577_v43 = vld [vmem:[%s12228_s2 + $0xa38] sm:$0xff] }
 0x1f1   : > { %1529 = vmatprep.subr.mxu0 %v7394_v44  ;;  %1844 = vmatprep.subr.mxu1 %v7587_v45  ;;  %v7576_v44 = vld [vmem:[%s12228_s2 + $0xa30] sm:$0xff]  ;;  %v7515_v45 = vld [vmem:[%s12228_s2 + $0x848] sm:$0xff] }
 0x1f2   : > { %1530 = vmatpush1.msra.mxu0 %v7393_v46  ;;  %1845 = vmatpush1.msra.mxu1 %v7586_v47  ;;  %v7571_v46 = vld [vmem:[%s12228_s2 + $0xa08] sm:$0xff]  ;;  %v7565_v47 = vld [vmem:[%s12228_s2 + $0x9d8] sm:$0xff] }
 0x1f3   : > { %7501 = vmatmul.mubr.msk.f32.gmra.mxu1 %vm577_vm1, %v7496_v48  ;;  %1531 = vmatprep.subr.mxu0 %v7388_v49  ;;  %v7559_v48 = vld [vmem:[%s12228_s2 + $0x9a8] sm:$0xff]  ;;  %v7558_v49 = vld [vmem:[%s12228_s2 + $0x9a0] sm:$0xff] }
 0x1f4   : > { %1532 = vmatpush1.msra.mxu0 %v7387_v51  ;;  %1846 = vmatprep.subr.mxu1 %v7581_v52  ;;  %v7552_v51 = vld [vmem:[%s12228_s2 + $0x970] sm:$0xff]  ;;  %v7547_v52 = vld [vmem:[%s12228_s2 + $0x948] sm:$0xff] }
 0x1f5   : > { %1533 = vmatprep.subr.mxu0 %v7382_v53  ;;  %1847 = vmatpush1.msra.mxu1 %v7580_v55  ;;  %v7546_v53 = vld [vmem:[%s12228_s2 + $0x940] sm:$0xff]  ;;  %v7541_v55 = vld [vmem:[%s12228_s2 + $0x918] sm:$0xff] }
 0x1f6   : > { %1534 = vmatpush1.msra.mxu0 %v7381_v56  ;;  %1848 = vmatprep.subr.mxu1 %v7575_v58  ;;  %v7540_v56 = vld [vmem:[%s12228_s2 + $0x910] sm:$0xff]  ;;  %v7535_v58 = vld [vmem:[%s12228_s2 + $0x8e8] sm:$0xff] }
 0x1f7   : > { %1535 = vmatprep.subr.mxu0 %v7376_v59  ;;  %1849 = vmatpush1.msra.mxu1 %v7574_v3  ;;  %v7534_v59 = vld [vmem:[%s12228_s2 + $0x8e0] sm:$0xff]  ;;  %v7529_v3 = vld [vmem:[%s12228_s2 + $0x8b8] sm:$0xff] }
 0x1f8   : > { %1536 = vmatpush1.msra.mxu0 %v7375_v61  ;;  %1850 = vmatprep.subr.mxu1 %v7569_v4  ;;  %v7514_v61 = vld [vmem:[%s12228_s2 + $0x840] sm:$0xff]  ;;  %v7509_v4 = vld [vmem:[%s12228_s2 + $0x818] sm:$0xff] }
 0x1f9   : > { %1537 = vmatprep.subr.mxu0 %v7370_v5  ;;  %1851 = vmatpush1.msra.mxu1 %v7568_v50  ;;  %v7528_v5 = vld [vmem:[%s12228_s2 + $0x8b0] sm:$0xff]  ;;  %v7523_v50 = vld [vmem:[%s12228_s2 + $0x888] sm:$0xff] }
 0x1fa   : > { %1538 = vmatpush1.msra.mxu0 %v7369_v1  ;;  %1852 = vmatprep.subr.mxu1 %v7563_v63  ;;  %v7508_v1 = vld [vmem:[%s12228_s2 + $0x810] sm:$0xff]  ;;  %v7503_v63 = vld [vmem:[%s12228_s2 + $0x7e8] sm:$0xff] }
 0x1fb   : > { %1539 = vmatprep.subr.mxu0 %v7364_v18  ;;  %1853 = vmatpush1.msra.mxu1 %v7562_v9  ;;  %v7522_v18 = vld [vmem:[%s12228_s2 + $0x880] sm:$0xff]  ;;  %v7517_v9 = vld [vmem:[%s12228_s2 + $0x858] sm:$0xff] }
 0x1fc   : > { %1540 = vmatpush1.msra.mxu0 %v7363_v10  ;;  %1854 = vmatprep.subr.mxu1 %v7557_v12  ;;  %v7516_v10 = vld [vmem:[%s12228_s2 + $0x850] sm:$0xff]  ;;  %v7511_v12 = vld [vmem:[%s12228_s2 + $0x828] sm:$0xff] }
 0x1fd   : > { %1563 = vmatprep.subr.mxu0 %v7484_v60  ;;  %1855 = vmatpush1.msra.mxu1 %v7556_v15  ;;  %v7502_v60 = vld [vmem:[%s12228_s2 + $0x7e0] sm:$0xff]  ;;  %v7623_v15 = vld [vmem:[%s12228_s2 + $0xba8] sm:$0xff] }
 0x1fe   : > { %1564 = vmatpush2.msra.mxu0 %v7483_v2  ;;  %1856 = vmatprep.subr.mxu1 %v7551_v17  ;;  %v7510_v2 = vld [vmem:[%s12228_s2 + $0x820] sm:$0xff]  ;;  %v7505_v17 = vld [vmem:[%s12228_s2 + $0x7f8] sm:$0xff] }
 0x1ff   : > { %1565 = vmatprep.subr.mxu0 %v7478_v20  ;;  %1857 = vmatpush1.msra.mxu1 %v7550_v21  ;;  %v7622_v20 = vld [vmem:[%s12228_s2 + $0xba0] sm:$0xff]  ;;  %v7617_v21 = vld [vmem:[%s12228_s2 + $0xb78] sm:$0xff] }
 0x200   : > { %1566 = vmatpush2.msra.mxu0 %v7477_v22  ;;  %1858 = vmatprep.subr.mxu1 %v7545_v23  ;;  %v7504_v22 = vld [vmem:[%s12228_s2 + $0x7f0] sm:$0xff]  ;;  %v7625_v23 = vld [vmem:[%s12228_s2 + $0xbb8] sm:$0xff] }
 0x201   : > { %1567 = vmatprep.subr.mxu0 %v7472_v24  ;;  %1859 = vmatpush1.msra.mxu1 %v7544_v25  ;;  %v7624_v24 = vld [vmem:[%s12228_s2 + $0xbb0] sm:$0xff] }
 0x202   : > { %1568 = vmatpush2.msra.mxu0 %v7471_v26  ;;  %1860 = vmatprep.subr.mxu1 %v7539_v27  ;;  %v7616_v25 = vld [vmem:[%s12228_s2 + $0xb70] sm:$0xff]  ;;  %v7619_v26 = vld [vmem:[%s12228_s2 + $0xb88] sm:$0xff] }
 0x203   : > { %1569 = vmatprep.subr.mxu0 %v7466_v28  ;;  %1861 = vmatpush1.msra.mxu1 %v7538_v29  ;;  %v7611_v27 = vld [vmem:[%s12228_s2 + $0xb48] sm:$0xff]  ;;  %v7618_v28 = vld [vmem:[%s12228_s2 + $0xb80] sm:$0xff] }
 0x204   : > { %1570 = vmatpush2.msra.mxu0 %v7465_v30  ;;  %1862 = vmatprep.subr.mxu1 %v7533_v31  ;;  %v7610_v29 = vld [vmem:[%s12228_s2 + $0xb40] sm:$0xff]  ;;  %v7613_v30 = vld [vmem:[%s12228_s2 + $0xb58] sm:$0xff] }
 0x205   : > { %1571 = vmatprep.subr.mxu0 %v7460_v32  ;;  %1863 = vmatpush1.msra.mxu1 %v7532_v33  ;;  %v7605_v31 = vld [vmem:[%s12228_s2 + $0xb18] sm:$0xff]  ;;  %v7612_v32 = vld [vmem:[%s12228_s2 + $0xb50] sm:$0xff] }
 0x206   : > { %1572 = vmatpush2.msra.mxu0 %v7459_v34  ;;  %1864 = vmatprep.subr.mxu1 %v7527_v35  ;;  %v7604_v33 = vld [vmem:[%s12228_s2 + $0xb10] sm:$0xff]  ;;  %v7607_v34 = vld [vmem:[%s12228_s2 + $0xb28] sm:$0xff] }
 0x207   : > { %1574 = vmatmul.mubr.f32.vlgmr.msra.gmra.mxu0 %v9560_v16  ;;  %1925 = vmatprep.subr.mxu0 %v7595_v36  ;;  %v7582_v16 = vld [vmem:[%s12228_s2 + $0xa60] sm:$0xff]  ;;  %v7599_v35 = vld [vmem:[%s12228_s2 + $0xae8] sm:$0xff] }
 0x208   : > { %7492 = vmatprep.mubr.msk.f32.mxu0 %vm803_vm2, %v9582_v54  ;;  %1926 = vmatpush1.msra.mxu0 %v7594_v37  ;;  %v7520_v54 = vld [vmem:[%s12228_s2 + $0x870] sm:$0xff]  ;;  %v7606_v36 = vld [vmem:[%s12228_s2 + $0xb20] sm:$0xff] }
 0x209   : > { %1927 = vmatprep.subr.mxu0 %v7589_v38  ;;  %1865 = vmatpush1.msra.mxu1 %v7526_v39  ;;  %v7598_v37 = vld [vmem:[%s12228_s2 + $0xae0] sm:$0xff]  ;;  %v7601_v38 = vld [vmem:[%s12228_s2 + $0xaf8] sm:$0xff]  ;;  %v7600_v39 = vld [vmem:[%s12228_s2 + $0xaf0] sm:$0xff] }
 0x20a   : > { %1928 = vmatpush1.msra.mxu0 %v7588_v40  ;;  %1866 = vmatprep.subr.mxu1 %v7521_v41  ;;  %v7597_v40 = vld [vmem:[%s12228_s2 + $0xad8] sm:$0xff]  ;;  %v9999_v41 = vpop.f32.mrf.mxu1 }
 0x20b   : > { %1580 = vmatmul.mubr.f32.gmra.mxu0 %v9570_v57  ;;  %1929 = vmatprep.subr.mxu0 %v7583_v42  ;;  %v7570_v57 = vld [vmem:[%s12228_s2 + $0xa00] sm:$0xff] }
 0x20c   : > { %7493 = vmatprep.mubr.msk.f32.mxu0 %vm803_vm2, %v9603_v19  ;;  %1930 = vmatpush1.msra.mxu0 %v7582_v16  ;;  %v7564_v19 = vld [vmem:[%s12228_s2 + $0x9d0] sm:$0xff]  ;;  %v10001_v42 = vpop.f32.mrf.mxu1 }
 0x20d   : > { %1931 = vmatprep.subr.mxu0 %v7577_v43  ;;  %1867 = vmatpush1.msra.mxu1 %v7520_v54 }
 0x20e   : > { %1932 = vmatpush1.msra.mxu0 %v7576_v44  ;;  %1868 = vmatprep.subr.mxu1 %v7515_v45  ;;  %v10003_v16 = vpop.f32.mrf.mxu1 }
 0x20f   : > { %1586 = vmatmul.mubr.f32.gmra.mxu0 %v9592_v13  ;;  %1933 = vmatprep.subr.mxu0 %v7571_v46  ;;  %v7553_v13 = vld [vmem:[%s12228_s2 + $0x978] sm:$0xff] }
 0x210   : > { %1934 = vmatpush1.msra.mxu0 %v7570_v57  ;;  %1869 = vmatpush1.msra.mxu1 %v7514_v61  ;;  %v10005_v43 = vpop.f32.mrf.mxu1  ;;  %v1063_v57 = vlaneseq }
 0x211   : > { %1935 = vmatprep.subr.mxu0 %v7565_v47  ;;  %1870 = vmatprep.subr.mxu1 %v7509_v4 }
 0x212   : > { %1936 = vmatpush1.msra.mxu0 %v7564_v19  ;;  %1871 = vmatpush1.msra.mxu1 %v7508_v1  ;;  %v10007_v54 = vpop.f32.mrf.mxu1  ;;  %v10017_v19 = vshrl.u32 %v1063_v57, 7  ;;  %v7536_v57 = vld [vmem:[%s12228_s2 + $0x8f0] sm:$0xff] }
 0x213   : > { %1937 = vmatprep.subr.mxu0 %v7559_v48  ;;  %1872 = vmatprep.subr.mxu1 %v7503_v63 }
 0x214   : > { %1938 = vmatpush1.msra.mxu0 %v7558_v49  ;;  %1873 = vmatpush1.msra.mxu1 %v7502_v60  ;;  %v10009_v44 = vpop.f32.mrf.mxu1  ;;  %v1073_v49 = vsub.s32 2, %v10017_v19 }
 0x215   : > { %1939 = vmatprep.subr.mxu0 %v7553_v13  ;;  %1896 = vmatprep.subr.mxu1 %v7623_v15  ;;  %v10025_v13 = vld [vmem:[%s12229_s3] sm:$0x3f] }
 0x216   : > { %1940 = vmatpush1.msra.mxu0 %v7552_v51  ;;  %1897 = vmatpush2.msra.mxu1 %v7622_v20  ;;  %v10011_v45 = vpop.f32.mrf.mxu1  ;;  %v1077_v51 = vsub.s32 3, %v10017_v19  ;;  %v7590_v20 = vld [vmem:[%s12228_s2 + $0xaa0] sm:$0xff] }
 0x217   : > { %1941 = vmatprep.subr.mxu0 %v7547_v52  ;;  %1898 = vmatprep.subr.mxu1 %v7617_v21  ;;  %v7585_v21 = vld [vmem:[%s12228_s2 + $0xa78] sm:$0xff] }
 0x218   : > { %1942 = vmatpush1.msra.mxu0 %v7546_v53  ;;  %1899 = vmatpush2.msra.mxu1 %v7616_v25  ;;  %v10013_v46 = vpop.f32.mrf.mxu1  ;;  %v1074_v53 = vrot.slane %v10025_v13, %v1073_v49  ;;  %v7579_v25 = vld [vmem:[%s12228_s2 + $0xa48] sm:$0xff] }
 0x219   : > { %1943 = vmatprep.subr.mxu0 %v7541_v55  ;;  %1900 = vmatprep.subr.mxu1 %v7611_v27  ;;  %v1078_v55 = vrot.slane %v10025_v13, %v1077_v51  ;;  %v7531_v51 = vld [vmem:[%s12228_s2 + $0x8c8] sm:$0xff] }
 0x21a   : > { %1944 = vmatpush1.msra.mxu0 %v7540_v56  ;;  %1901 = vmatpush2.msra.mxu1 %v7610_v29  ;;  %v10015_v47 = vpop.f32.mrf.mxu1  ;;  %v7572_v29 = vld [vmem:[%s12228_s2 + $0xa10] sm:$0xff] }
 0x21b   : > { %1945 = vmatprep.subr.mxu0 %v7535_v58  ;;  %1902 = vmatprep.subr.mxu1 %v7605_v31  ;;  %v1095_v58 = vadd.f32 %v1074_v53, %v9548_v6  ;;  %v1102_v63 = vadd.f32 %v1078_v55, %v9554_v11  ;;  %v1107_v6 = vadd.f32 %v1074_v53, %v9556_v62  ;;  %v7596_v11 = vld [vmem:[%s12228_s2 + $0xad0] sm:$0xff]  ;;  %v7591_v62 = vld [vmem:[%s12228_s2 + $0xaa8] sm:$0xff]  ;;  %v7566_v31 = vld [vmem:[%s12228_s2 + $0x9e0] sm:$0xff] }
 0x21c   : > { %1946 = vmatpush1.msra.mxu0 %v7534_v59  ;;  %1903 = vmatpush2.msra.mxu1 %v7604_v33  ;;  %v10019_v48 = vpop.f32.mrf.mxu1  ;;  %v7560_v33 = vld [vmem:[%s12228_s2 + $0x9b0] sm:$0xff] }
 0x21d   : > { %1947 = vmatprep.subr.mxu0 %v7529_v3  ;;  %1904 = vmatprep.subr.mxu1 %v7599_v35  ;;  %v1096_v3 = vadd.f32 %v1078_v55, %v9550_v7  ;;  %v1108_v7 = vadd.f32 %v1078_v55, %v9558_v14  ;;  %v7554_v35 = vld [vmem:[%s12228_s2 + $0x980] sm:$0xff]  ;;  %v7525_v55 = vld [vmem:[%s12228_s2 + $0x898] sm:$0xff] }
 0x21e   : > { %1948 = vmatpush1.msra.mxu0 %v7528_v5  ;;  %1905 = vmatpush2.msra.mxu1 %v7598_v37  ;;  %v10028_v52 = vpop.f32.mrf.mxu1  ;;  %v7548_v37 = vld [vmem:[%s12228_s2 + $0x950] sm:$0xff] }
 0x21f   : > { %1949 = vmatprep.subr.mxu0 %v7523_v50  ;;  %2008 = vmatprep.subr.mxu1 %v7597_v40  ;;  %v1101_v50 = vadd.f32 %v1074_v53, %v9552_v8  ;;  %v7537_v40 = vld [vmem:[%s12228_s2 + $0x8f8] sm:$0xff]  ;;  %v7530_v53 = vld [vmem:[%s12228_s2 + $0x8c0] sm:$0xff] }
 0x220   : > { %1950 = vmatpush1.msra.mxu0 %v7522_v18  ;;  %v10034_v56 = vpop.f32.mrf.mxu1 }
 0x221   : > { %1951 = vmatprep.subr.mxu0 %v7517_v9 }
 0x222   : > { %1952 = vmatpush1.msra.mxu0 %v7516_v10 }
 0x223   : > { %1953 = vmatprep.subr.mxu0 %v7511_v12 }
 0x224   : > { %1954 = vmatpush1.msra.mxu0 %v7510_v2 }
 0x225   : > { %1955 = vmatprep.subr.mxu0 %v7505_v17 }
 0x226   : > { %1956 = vmatpush1.msra.mxu0 %v7504_v22 }
 0x227   : > { %1979 = vmatprep.subr.mxu0 %v7625_v23  ;;  %v7584_v23 = vld [vmem:[%s12228_s2 + $0xa70] sm:$0xff] }
 0x228   : > { %1980 = vmatpush2.msra.mxu0 %v7624_v24 }
 0x229   : > { %1981 = vmatprep.subr.mxu0 %v7619_v26  ;;  %v7578_v26 = vld [vmem:[%s12228_s2 + $0xa40] sm:$0xff] }
 0x22a   : > { %1982 = vmatpush2.msra.mxu0 %v7618_v28  ;;  %v7573_v28 = vld [vmem:[%s12228_s2 + $0xa18] sm:$0xff] }
 0x22b   : > { %1983 = vmatprep.subr.mxu0 %v7613_v30  ;;  %v7567_v30 = vld [vmem:[%s12228_s2 + $0x9e8] sm:$0xff] }
 0x22c   : > { %1984 = vmatpush2.msra.mxu0 %v7612_v32  ;;  %v7561_v32 = vld [vmem:[%s12228_s2 + $0x9b8] sm:$0xff] }
 0x22d   : > { %1985 = vmatprep.subr.mxu0 %v7607_v34  ;;  %v7555_v34 = vld [vmem:[%s12228_s2 + $0x988] sm:$0xff] }
 0x22e   : > { %1986 = vmatpush2.msra.mxu0 %v7606_v36  ;;  %v7549_v36 = vld [vmem:[%s12228_s2 + $0x958] sm:$0xff] }
 0x22f   : > { %1987 = vmatprep.subr.mxu0 %v7601_v38  ;;  %v7543_v38 = vld [vmem:[%s12228_s2 + $0x928] sm:$0xff] }
 0x230   : > { %1988 = vmatpush2.msra.mxu0 %v7600_v39  ;;  %v7542_v39 = vld [vmem:[%s12228_s2 + $0x920] sm:$0xff] }
 0x299   : > { %v1492_v59 = vpop.f32.mrf.mxu1 }
 0x29a   : > { %v10038_v61 = vadd.f32 %v1492_v59, %v1095_v58  ;;  %v7524_v58 = vld [vmem:[%s12228_s2 + $0x890] sm:$0xff]  ;;  %v7519_v59 = vld [vmem:[%s12228_s2 + $0x868] sm:$0xff] }
 0x29b   : > { %v1494_v4 = vpop.f32.mrf.mxu1 }
 0x29c   : > { %v10040_v5 = vadd.f32 %v1494_v4, %v1096_v3  ;;  %v7518_v3 = vld [vmem:[%s12228_s2 + $0x860] sm:$0xff]  ;;  %v7513_v4 = vld [vmem:[%s12228_s2 + $0x838] sm:$0xff] }
 0x29f   : > { %v1498_v1 = vpop.f32.mrf.mxu1 }
 0x2a0   : > { %v10044_v18 = vadd.f32 %v1498_v1, %v1101_v50  ;;  %v7512_v50 = vld [vmem:[%s12228_s2 + $0x830] sm:$0xff]  ;;  %v7507_v1 = vld [vmem:[%s12228_s2 + $0x808] sm:$0xff] }
 0x2a1   : > { %v1500_v9 = vpop.f32.mrf.mxu1 }
 0x2a2   : > { %v10046_v10 = vadd.f32 %v1500_v9, %v1102_v63  ;;  %v7506_v63 = vld [vmem:[%s12228_s2 + $0x800] sm:$0xff]  ;;  %v7627_v9 = vld [vmem:[%s12228_s2 + $0xbc8] sm:$0xff] }
 0x2a5   : > { %v1504_v12 = vpop.f32.mrf.mxu1 }
 0x2a6   : > { %v10050_v60 = vadd.f32 %v1504_v12, %v1107_v6  ;;  %v7626_v6 = vld [vmem:[%s12228_s2 + $0xbc0] sm:$0xff]  ;;  %v7621_v12 = vld [vmem:[%s12228_s2 + $0xb98] sm:$0xff] }
 0x2a7   : > { %v1506_v15 = vpop.f32.mrf.mxu1 }
 0x2a8   : > { %v10052_v2 = vadd.f32 %v1506_v15, %v1108_v7  ;;  %v7620_v7 = vld [vmem:[%s12228_s2 + $0xb90] sm:$0xff]  ;;  %v7615_v15 = vld [vmem:[%s12228_s2 + $0xb68] sm:$0xff] }
 0x2ab   : > { %v10054_v17 = vpop.f32.mrf.mxu1 }
 0x2ad   : > { %v1691_v8 = vpop.f32.mrf.mxu1 }
 0x2ae   : > { %7628 = vmatprep.mubr.msk.f32.mxu1 %vm803_vm2, %v1691_v8  ;;  %7631 = vmatprep.mubr.msk.f32.mxu0 %vm803_vm2, %v1691_v8 }
 0x2af   : > { %v10064_v14 = vpop.f32.mrf.mxu1  ;;  %1907 = vmatmul.mubr.f32.vlgmr.msra.gmra.mxu1 %v10054_v17  ;;  %1990 = vmatmul.mubr.f32.vlgmr.msra.gmra.mxu0 %v10054_v17 }
 0x2b0   : > { %2009 = vmatpush1.msra.mxu1 %v7596_v11  ;;  %v7609_v11 = vld [vmem:[%s12228_s2 + $0xb38] sm:$0xff] }
 0x2b1   : > { %2010 = vmatprep.subr.mxu1 %v7591_v62  ;;  %v10074_v22 = vpop.f32.mrf.mxu1  ;;  %v7608_v62 = vld [vmem:[%s12228_s2 + $0xb30] sm:$0xff] }
 0x2b2   : > { %2011 = vmatpush1.msra.mxu1 %v7590_v20  ;;  %7629 = vmatprep.mubr.msk.f32.mxu1 %vm803_vm2, %v10074_v22  ;;  %v7603_v20 = vld [vmem:[%s12228_s2 + $0xb08] sm:$0xff] }
 0x2b3   : > { %7632 = vmatprep.mubr.msk.f32.mxu0 %vm803_vm2, %v10074_v22  ;;  %2012 = vmatprep.subr.mxu1 %v7585_v21  ;;  %v10083_v24 = vpop.f32.mrf.mxu1  ;;  %v7602_v21 = vld [vmem:[%s12228_s2 + $0xb00] sm:$0xff] }
 0x2b4   : > { %1913 = vmatmul.mubr.f32.gmra.mxu1 %v10064_v14  ;;  %1996 = vmatmul.mubr.f32.gmra.mxu0 %v10064_v14 }
 0x2b5   : > { %2013 = vmatpush1.msra.mxu1 %v7584_v23  ;;  %v10093_v27 = vpop.f32.mrf.mxu1  ;;  %v10212_v23 = vpop.f32.mrf.mxu0 }
 0x2b6   : > { %2014 = vmatprep.subr.mxu1 %v7579_v25  ;;  %7630 = vmatprep.mubr.msk.f32.mxu1 %vm803_vm2, %v10093_v27 }
 0x2b7   : > { %2015 = vmatpush1.msra.mxu1 %v7578_v26  ;;  %7633 = vmatprep.mubr.msk.f32.mxu0 %vm803_vm2, %v10093_v27  ;;  %v10214_v25 = vpop.f32.mrf.mxu0  ;;  %v2619_v26 = vld [vmem:[#allocation2 + $0x470] sm:$0xff] }
 0x2b8   : > { %2016 = vmatprep.subr.mxu1 %v7573_v28  ;;  %1919 = vmatmul.mubr.f32.gmra.mxu1 %v10083_v24  ;;  %v2618_v28 = vld [vmem:[#allocation2 + $0x468] sm:$0xff] }
 0x2b9   : > { %2002 = vmatmul.mubr.f32.gmra.mxu0 %v10083_v24  ;;  %2017 = vmatpush1.msra.mxu1 %v7572_v29  ;;  %v10216_v29 = vpop.f32.mrf.mxu0 }
 0x2ba   : > { %2018 = vmatprep.subr.mxu1 %v7567_v30  ;;  %7634 = vmatprep.mubr.msk.f32.mxu1 %vm803_vm2, %v1691_v8  ;;  %v7614_v8 = vld [vmem:[%s12228_s2 + $0xb60] sm:$0xff]  ;;  %v2612_v30 = vld [vmem:[#allocation2 + $0x438] sm:$0xff] }
 0x2bb   : > { %2019 = vmatpush1.msra.mxu1 %v7566_v31  ;;  %2310 = vmatprep.mubr.f32.mxu0 %v8619_v0  ;;  %v2609_v31 = vld [vmem:[#allocation2 + $0x420] sm:$0xff] }
 0x2bc   : > { %2020 = vmatprep.subr.mxu1 %v7561_v32  ;;  %v2607_v32 = vld [vmem:[#allocation2 + $0x410] sm:$0xff] }
 0x2bd   : > { %2021 = vmatpush1.msra.mxu1 %v7560_v33  ;;  %v2606_v33 = vld [vmem:[#allocation2 + $0x408] sm:$0xff] }
 0x2be   : > { %2022 = vmatprep.subr.mxu1 %v7555_v34 }
 0x2bf   : > { %2023 = vmatpush1.msra.mxu1 %v7554_v35  ;;  %v2604_v35 = vld [vmem:[#allocation2 + $0x3f8] sm:$0xff] }
 0x2c0   : > { %2024 = vmatprep.subr.mxu1 %v7549_v36  ;;  %v2603_v36 = vld [vmem:[#allocation2 + $0x3f0] sm:$0xff] }
 0x2c1   : > { %2025 = vmatpush1.msra.mxu1 %v7548_v37  ;;  %v2601_v37 = vld [vmem:[#allocation2 + $0x3e0] sm:$0xff] }
 0x2c2   : > { %2026 = vmatprep.subr.mxu1 %v7543_v38  ;;  %v2600_v38 = vld [vmem:[#allocation2 + $0x3d8] sm:$0xff] }
 0x2c3   : > { %2027 = vmatpush1.msra.mxu1 %v7542_v39 }
 0x2c4   : > { %2028 = vmatprep.subr.mxu1 %v7537_v40  ;;  %v2598_v40 = vld [vmem:[#allocation2 + $0x3c8] sm:$0xff] }
 0x2c5   : > { %2029 = vmatpush1.msra.mxu1 %v7536_v57  ;;  %v2597_v57 = vld [vmem:[#allocation2 + $0x3c0] sm:$0xff] }
 0x2c6   : > { %2030 = vmatprep.subr.mxu1 %v7531_v51 }
 0x2c7   : > { %2031 = vmatpush1.msra.mxu1 %v7530_v53  ;;  %v2595_v53 = vld [vmem:[#allocation2 + $0x3b0] sm:$0xff] }
 0x2c8   : > { %2032 = vmatprep.subr.mxu1 %v7525_v55  ;;  %v2594_v55 = vld [vmem:[#allocation2 + $0x3a8] sm:$0xff] }
 0x2c9   : > { %2033 = vmatpush1.msra.mxu1 %v7524_v58  ;;  %v2592_v58 = vld [vmem:[#allocation2 + $0x398] sm:$0xff] }
 0x2ca   : > { %2034 = vmatprep.subr.mxu1 %v7519_v59  ;;  %v2591_v59 = vld [vmem:[#allocation2 + $0x390] sm:$0xff] }
 0x2cb   : > { %2035 = vmatpush1.msra.mxu1 %v7518_v3 }
 0x2cc   : > { %2036 = vmatprep.subr.mxu1 %v7513_v4  ;;  %v2589_v4 = vld [vmem:[#allocation2 + $0x380] sm:$0xff] }
 0x2cd   : > { %2037 = vmatpush1.msra.mxu1 %v7512_v50  ;;  %v2588_v50 = vld [vmem:[#allocation2 + $0x378] sm:$0xff] }
 0x2ce   : > { %2038 = vmatprep.subr.mxu1 %v7507_v1  ;;  %v2586_v1 = vld [vmem:[#allocation2 + $0x368] sm:$0xff] }
 0x2cf   : > { %2039 = vmatpush1.msra.mxu1 %v7506_v63  ;;  %v2585_v63 = vld [vmem:[#allocation2 + $0x360] sm:$0xff] }
 0x2d0   : > { %2062 = vmatprep.subr.mxu1 %v7627_v9 }
 0x2d1   : > { %2063 = vmatpush2.msra.mxu1 %v7626_v6  ;;  %v2583_v6 = vld [vmem:[#allocation2 + $0x350] sm:$0xff] }
 0x2d2   : > { %2064 = vmatprep.subr.mxu1 %v7621_v12  ;;  %v2582_v12 = vld [vmem:[#allocation2 + $0x348] sm:$0xff] }
 0x2d3   : > { %2065 = vmatpush2.msra.mxu1 %v7620_v7  ;;  %v2580_v7 = vld [vmem:[#allocation2 + $0x338] sm:$0xff] }
 0x2d4   : > { %2066 = vmatprep.subr.mxu1 %v7615_v15  ;;  %v2579_v15 = vld [vmem:[#allocation2 + $0x330] sm:$0xff] }
 0x2d5   : > { %2067 = vmatpush2.msra.mxu1 %v7614_v8 }
 0x2d6   : > { %2068 = vmatprep.subr.mxu1 %v7609_v11  ;;  %v2577_v11 = vld [vmem:[#allocation2 + $0x320] sm:$0xff] }
 0x2d7   : > { %2069 = vmatpush2.msra.mxu1 %v7608_v62  ;;  %v2576_v62 = vld [vmem:[#allocation2 + $0x318] sm:$0xff] }
 0x2d8   : > { %2070 = vmatprep.subr.mxu1 %v7603_v20  ;;  %v10233_v20 = vsub.s32 1, %v10017_v19 }
 0x2d9   : > { %2071 = vmatpush2.msra.mxu1 %v7602_v21  ;;  %v2574_v21 = vld [vmem:[#allocation2 + $0x308] sm:$0xff] }
 0x2da   : > { %2073 = vmatmul.mubr.f32.vlgmr.msra.gmra.mxu1 %v10054_v17  ;;  %2813 = vmatprep.subr.mxu1 %v2619_v26  ;;  %v2616_v17 = vld [vmem:[#allocation2 + $0x458] sm:$0xff]  ;;  %v2573_v26 = vld [vmem:[#allocation2 + $0x300] sm:$0xff] }
 0x2db   : > { %7635 = vmatprep.mubr.msk.f32.mxu1 %vm803_vm2, %v10074_v22  ;;  %2814 = vmatpush1.msra.mxu1 %v2618_v28  ;;  %v2615_v22 = vld [vmem:[#allocation2 + $0x450] sm:$0xff] }
 0x2dc   : > { %2815 = vmatprep.subr.mxu1 %v2616_v17  ;;  %v2667_v17 = vld [vmem:[#allocation2 + $0x5f0] sm:$0xff] }
 0x2dd   : > { %2816 = vmatpush1.msra.mxu1 %v2615_v22  ;;  %v2666_v22 = vld [vmem:[#allocation2 + $0x5e8] sm:$0xff] }
 0x2de   : > { %2079 = vmatmul.mubr.f32.gmra.mxu1 %v10064_v14  ;;  %v2613_v14 = vld [vmem:[#allocation2 + $0x440] sm:$0xff] }
 0x2df   : > { %7636 = vmatprep.mubr.msk.f32.mxu1 %vm803_vm2, %v10093_v27  ;;  %2817 = vmatprep.subr.mxu1 %v2613_v14  ;;  %v10218_v27 = vpop.f32.mrf.mxu0  ;;  %v1070_v14 = vrot.slane %v10025_v13, %v10233_v20 }
 0x2e0   : > { %2818 = vmatpush1.msra.mxu1 %v2612_v30  ;;  %v2664_v30 = vld [vmem:[#allocation2 + $0x5d8] sm:$0xff] }
 0x2e1   : > { %v10220_v34 = vpop.f32.mrf.mxu0 }
 0x2e2   : > { %2085 = vmatmul.mubr.f32.gmra.mxu1 %v10083_v24  ;;  %v2610_v24 = vld [vmem:[#allocation2 + $0x428] sm:$0xff] }
 0x2e3   : > { %2819 = vmatprep.subr.mxu1 %v2610_v24  ;;  %v10222_v39 = vpop.f32.mrf.mxu0  ;;  %v10240_v24 = vsub.s32 0, %v10017_v19 }
 0x2e4   : > { %2820 = vmatpush1.msra.mxu1 %v2609_v31  ;;  %v2663_v31 = vld [vmem:[#allocation2 + $0x5d0] sm:$0xff] }
 0x2e5   : > { %2821 = vmatprep.subr.mxu1 %v2607_v32  ;;  %v10224_v51 = vpop.f32.mrf.mxu0 }
 0x2e6   : > { %2822 = vmatpush1.msra.mxu1 %v2606_v33  ;;  %v2661_v33 = vld [vmem:[#allocation2 + $0x5c0] sm:$0xff] }
 0x2e7   : > { %2823 = vmatprep.subr.mxu1 %v2604_v35  ;;  %v10226_v3 = vpop.f32.mrf.mxu0  ;;  %v2660_v35 = vld [vmem:[#allocation2 + $0x5b8] sm:$0xff] }
 0x2e8   : > { %2824 = vmatpush1.msra.mxu1 %v2603_v36  ;;  %v1094_v36 = vadd.f32 %v1070_v14, %v10001_v42  ;;  %v2654_v42 = vld [vmem:[#allocation2 + $0x588] sm:$0xff] }
 0x2e9   : > { %2825 = vmatprep.subr.mxu1 %v2601_v37  ;;  %v10228_v9 = vpop.f32.mrf.mxu0 }
 0x2ea   : > { %2826 = vmatpush1.msra.mxu1 %v2600_v38 }
 0x2eb   : > { %2827 = vmatprep.subr.mxu1 %v2598_v40  ;;  %v10230_v8 = vpop.f32.mrf.mxu0  ;;  %v2658_v40 = vld [vmem:[#allocation2 + $0x5a8] sm:$0xff] }
 0x2ec   : > { %2828 = vmatpush1.msra.mxu1 %v2597_v57  ;;  %v1066_v57 = vrot.slane %v10025_v13, %v10240_v24 }
 0x2ed   : > { %2829 = vmatprep.subr.mxu1 %v2595_v53  ;;  %v10235_v28 = vpop.f32.mrf.mxu0  ;;  %v2657_v53 = vld [vmem:[#allocation2 + $0x5a0] sm:$0xff] }
 0x2ee   : > { %2830 = vmatpush1.msra.mxu1 %v2594_v55  ;;  %v1593_v55 = vadd.f32 %v10214_v25, %v1094_v36 }
 0x2ef   : > { %2831 = vmatprep.subr.mxu1 %v2592_v58  ;;  %v10242_v32 = vpop.f32.mrf.mxu0 }
 0x2f0   : > { %2832 = vmatpush1.msra.mxu1 %v2591_v59 }
 0x2f1   : > { %2833 = vmatprep.subr.mxu1 %v2589_v4  ;;  %v2655_v4 = vld [vmem:[#allocation2 + $0x590] sm:$0xff] }
 0x2f2   : > { %2834 = vmatpush1.msra.mxu1 %v2588_v50  ;;  %v1099_v50 = vadd.f32 %v1066_v57, %v10003_v16  ;;  %v2649_v16 = vld [vmem:[#allocation2 + $0x560] sm:$0xff] }
 0x2f3   : > { %2835 = vmatprep.subr.mxu1 %v2586_v1 }
 0x2f4   : > { %2836 = vmatpush1.msra.mxu1 %v2585_v63  ;;  %v2652_v63 = vld [vmem:[#allocation2 + $0x578] sm:$0xff] }
 0x2f5   : > { %2837 = vmatprep.subr.mxu1 %v2583_v6  ;;  %v1093_v6 = vadd.f32 %v1066_v57, %v9999_v41 }
 0x2f6   : > { %2838 = vmatpush1.msra.mxu1 %v2582_v12  ;;  %v1100_v12 = vadd.f32 %v1070_v14, %v10005_v43  ;;  %v2648_v43 = vld [vmem:[#allocation2 + $0x558] sm:$0xff] }
 0x2f7   : > { %2839 = vmatprep.subr.mxu1 %v2580_v7  ;;  %v1598_v7 = vadd.f32 %v10216_v29, %v1099_v50 }
 0x2f8   : > { %2840 = vmatpush1.msra.mxu1 %v2579_v15 }
 0x2f9   : > { %2841 = vmatprep.subr.mxu1 %v2577_v11  ;;  %v2651_v11 = vld [vmem:[#allocation2 + $0x570] sm:$0xff] }
 0x2fa   : > { %2842 = vmatpush1.msra.mxu1 %v2576_v62  ;;  %v1105_v62 = vadd.f32 %v1066_v57, %v10007_v54  ;;  %v1106_v54 = vadd.f32 %v1070_v14, %v10009_v44  ;;  %v2643_v57 = vld [vmem:[#allocation2 + $0x530] sm:$0xff]  ;;  %v2642_v44 = vld [vmem:[#allocation2 + $0x528] sm:$0xff] }
 0x2fb   : > { %2843 = vmatprep.subr.mxu1 %v2574_v21  ;;  %v1592_v21 = vadd.f32 %v10212_v23, %v1093_v6 }
 0x2fc   : > { %2844 = vmatpush1.msra.mxu1 %v2573_v26  ;;  %v1599_v26 = vadd.f32 %v10218_v27, %v1100_v12  ;;  %v1604_v29 = vadd.f32 %v10220_v34, %v1105_v62  ;;  %v2645_v27 = vld [vmem:[#allocation2 + $0x540] sm:$0xff]  ;;  %v1605_v34 = vadd.f32 %v10222_v39, %v1106_v54 }
 0x2fd   : > { %2845 = vmatprep.subr.mxu1 %v2667_v17  ;;  %v2637_v62 = vld [vmem:[#allocation2 + $0x500] sm:$0xff] }
 0x2fe   : > { %2846 = vmatpush2.msra.mxu1 %v2666_v22 }
 0x2ff   : > { %2847 = vmatprep.subr.mxu1 %v2664_v30 }
 0x300   : > { %2848 = vmatpush2.msra.mxu1 %v2663_v31  ;;  %v2646_v31 = vld [vmem:[#allocation2 + $0x548] sm:$0xff] }
 0x301   : > { %2849 = vmatprep.subr.mxu1 %v2661_v33 }
 0x302   : > { %2850 = vmatpush2.msra.mxu1 %v2660_v35 }
 0x303   : > { %2851 = vmatprep.subr.mxu1 %v2658_v40 }
 0x304   : > { %2852 = vmatpush2.msra.mxu1 %v2657_v53 }
 0x305   : > { %2853 = vmatprep.subr.mxu1 %v2655_v4 }
 0x306   : > { %2854 = vmatpush2.msra.mxu1 %v2654_v42 }
 0x307   : > { %2855 = vmatprep.subr.mxu1 %v2652_v63  ;;  %v2640_v63 = vld [vmem:[#allocation2 + $0x518] sm:$0xff] }
 0x308   : > { %2856 = vmatpush2.msra.mxu1 %v2651_v11 }
 0x309   : > { %2857 = vmatprep.subr.mxu1 %v2649_v16 }
 0x30a   : > { %2858 = vmatpush2.msra.mxu1 %v2648_v43 }
 0x30b   : > { %2859 = vmatprep.subr.mxu1 %v2646_v31 }
 0x30c   : > { %2860 = vmatpush2.msra.mxu1 %v2645_v27 }
 0x30d   : > { %2861 = vmatprep.subr.mxu1 %v2643_v57 }
 0x30e   : > { %2862 = vmatpush2.msra.mxu1 %v2642_v44 }
 0x30f   : > { %2863 = vmatprep.subr.mxu1 %v2640_v63 }
 0x36f   : > { %v1908_v37 = vpop.f32.mrf.mxu1  ;;  %v10245_v38 = vpop.f32.mrf.mxu0 }
 0x370   : > { %v10264_v33 = vadd.f32 %v1908_v37, %v1592_v21  ;;  %v10292_v16 = vadd.f32 %v10245_v38, %v10038_v61 }
 0x371   : > { %v1910_v58 = vpop.f32.mrf.mxu1  ;;  %v1993_v59 = vpop.f32.mrf.mxu0 }
 0x372   : > { %v10251_v1 = vadd.f32 %v1910_v58, %v1593_v55  ;;  %v2127_v39 = vmin.f32 %v10264_v33, 0.0  ;;  %v2129_v38 = vmin.f32 %v10292_v16, 0.0  ;;  %vm2109_vm9 = vcmp.gt.f32.partialorder %v10264_v33, 0.0 }
 0x373   : > { %vm2111_vm0 = vcmp.gt.f32.partialorder %v10292_v16, 0.0 }
 0x374   : > { %v1914_v15 = vpop.f32.mrf.mxu1  ;;  %v1997_v25 = vpop.f32.mrf.mxu0  ;;  %v2128_v30 = vmin.f32 %v10251_v1, 0.0  ;;  %v2149_v54 = vmul.f32 1.442695, %v2129_v38  ;;  %vm2110_vm8 = vcmp.gt.f32.partialorder %v10251_v1, 0.0 }
 0x375   : > { %v10259_v17 = vadd.f32 %v1914_v15, %v1598_v7  ;;  %v10282_v6 = vadd.f32 %v1997_v25, %v10044_v18  ;;  %v10288_v15 = vadd.f32 %v1993_v59, %v10040_v5  ;;  %v2145_v5 = vmul.f32 1.442695, %v2127_v39 }
 0x376   : > { %v1916_v22 = vpop.f32.mrf.mxu1  ;;  %v1999_v41 = vpop.f32.mrf.mxu0  ;;  %v2147_v14 = vmul.f32 1.442695, %v2128_v30 }
 0x377   : > { %v10266_v35 = vadd.f32 %v1916_v22, %v1599_v26  ;;  %v2133_v53 = vmin.f32 %v10259_v17, 0.0  ;;  %v10274_v37 = vadd.f32 %v1999_v41, %v10046_v10  ;;  %v2639_v10 = vld [vmem:[#allocation2 + $0x510] sm:$0xff]  ;;  %v2135_v59 = vmin.f32 %v10282_v6, 0.0 }
 0x378   : > { %v1920_v23 = vpop.f32.mrf.mxu1  ;;  %2864 = vmatpush2.msra.mxu1 %v2639_v10  ;;  %8459 = vpow2.f32 %v2147_v14  ;;  %v2130_v41 = vmin.f32 %v10288_v15, 0.0  ;;  %vm2115_vm7 = vcmp.gt.f32.partialorder %v10259_v17, 0.0  ;;  %vm2117_vm14 = vcmp.gt.f32.partialorder %v10282_v6, 0.0 }
 0x379   : > { %v10268_v36 = vadd.f32 %v1920_v23, %v1604_v29  ;;  %v2003_v40 = vpop.f32.mrf.mxu0  ;;  %v2134_v55 = vmin.f32 %v10266_v35, 0.0  ;;  %v2157_v21 = vmul.f32 1.442695, %v2133_v53  ;;  %2865 = vmatprep.subr.mxu1 %v2637_v62  ;;  %v2161_v30 = vmul.f32 1.442695, %v2135_v59 }
 0x37a   : > { %v1922_v58 = vpop.f32.mrf.mxu1  ;;  %v10278_v50 = vadd.f32 %v2003_v40, %v10050_v60  ;;  %v2151_v31 = vmul.f32 1.442695, %v2130_v41  ;;  %vm2116_vm6 = vcmp.gt.f32.partialorder %v10266_v35, 0.0  ;;  %vm2118_vm13 = vcmp.gt.f32.partialorder %v10274_v37, 0.0 }
 0x37b   : > { %v2139_v4 = vmin.f32 %v10268_v36, 0.0  ;;  %v2005_v42 = vpop.f32.mrf.mxu0  ;;  %v2104_v12 = vadd.f32 %v1922_v58, %v1605_v34  ;;  %v2159_v11 = vmul.f32 1.442695, %v2134_v55  ;;  %v1085_v58 = vsub.s32 5, %v10017_v19 }
 0x37c   : > { %v10285_v7 = vadd.f32 %v2005_v42, %v10052_v2  ;;  %v2141_v18 = vmin.f32 %v10278_v50, 0.0  ;;  %v2136_v2 = vmin.f32 %v10274_v37, 0.0  ;;  %vm2121_vm5 = vcmp.gt.f32.partialorder %v10268_v36, 0.0 }
 0x37d   : > { %v2169_v60 = vmul.f32 1.442695, %v2139_v4  ;;  %v2140_v25 = vmin.f32 %v2104_v12, 0.0  ;;  %vm2122_vm4 = vcmp.gt.f32.partialorder %v2104_v12, 0.0  ;;  %vm2123_vm12 = vcmp.gt.f32.partialorder %v10278_v50, 0.0 }
 0x37e   : > { %v2142_v26 = vmin.f32 %v10285_v7, 0.0  ;;  %v2173_v43 = vmul.f32 1.442695, %v2141_v18  ;;  %v2163_v29 = vmul.f32 1.442695, %v2136_v2  ;;  %vm2124_vm11 = vcmp.gt.f32.partialorder %v10285_v7, 0.0 }
 0x37f   : > { %8461 = vpow2.f32 %v2169_v60  ;;  %v2171_v22 = vmul.f32 1.442695, %v2140_v25  ;;  %v1081_v60 = vsub.s32 4, %v10017_v19  ;;  %v10312_v25 = vrot.slane %v10025_v13, %v1085_v58  ;;  %v4650_v19 = vld [vmem:[#allocation2 + $0x1710] sm:$0xff] }
 0x380   : > { %8463 = vpow2.f32 %v2159_v11  ;;  %v2175_v61 = vmul.f32 1.442695, %v2142_v26  ;;  %vm2112_vm15 = vcmp.gt.f32.partialorder %v10288_v15, 0.0 }
 0x381   : > { %8465 = vpow2.f32 %v2157_v21 }
 0x382   : > { %8467 = vpow2.f32 %v2171_v22 }
 0x383   : > { %8469 = vpow2.f32 %v2145_v5 }
 0x384   : > { %8471 = vpow2.f32 %v2175_v61 }
 0x385   : > { %8473 = vpow2.f32 %v2173_v43  ;;  %v8460_v23 = vpop.eup %8459 }
 0x386   : > { %8475 = vpow2.f32 %v2163_v29  ;;  %v7638_v10 = vadd.f32 -1.0, %v8460_v23 }
 0x387   : > { %8477 = vpow2.f32 %v2161_v30 }
 0x388   : > { %8479 = vpow2.f32 %v2151_v31  ;;  %v10328_v22 = vsel %vm2110_vm8, %v10251_v1, %v7638_v10  ;;  %v1098_v1 = vadd.f32 %v10312_v25, %v10013_v46  ;;  %vm2729_vm8 = vcmask 261120  }
 0x389   : > { %8481 = vpow2.f32 %v2149_v54 }
 0x38a   : > { %v1597_v31 = vadd.f32 %v10226_v3, %v1098_v1 }
 0x38c   : > { %v8462_v27 = vpop.eup %8461 }
 0x38d   : > { %v8464_v40 = vpop.eup %8463  ;;  %v7649_v53 = vadd.f32 -1.0, %v8462_v27 }
 0x38e   : > { %v8466_v57 = vpop.eup %8465  ;;  %v7644_v14 = vadd.f32 -1.0, %v8464_v40 }
 0x38f   : > { %v8468_v34 = vpop.eup %8467  ;;  %v7643_v42 = vadd.f32 -1.0, %v8466_v57  ;;  %v10306_v62 = vsel %vm2121_vm5, %v10268_v36, %v7649_v53 }
 0x390   : > { %v8470_v55 = vpop.eup %8469  ;;  %v7650_v44 = vadd.f32 -1.0, %v8468_v34 }
 0x391   : > { %v8472_v4 = vpop.eup %8471  ;;  %v7637_v21 = vadd.f32 -1.0, %v8470_v55  ;;  %v10322_v5 = vsel %vm2115_vm7, %v10259_v17, %v7643_v42  ;;  %v1082_v17 = vrot.slane %v10025_v13, %v1081_v60  ;;  %v1110_v55 = vadd.f32 %v10312_v25, %v10034_v56 }
 0x392   : > { %v8474_v63 = vpop.eup %8473  ;;  %v10302_v39 = vsel %vm2122_vm4, %v2104_v12, %v7650_v44  ;;  %v10318_v12 = vsel %vm2116_vm6, %v10266_v35, %v7644_v14  ;;  %v7652_v36 = vadd.f32 -1.0, %v8472_v4  ;;  %v10333_v35 = vld [vmem:[%s12230_s4] sm:$0xff] }
 0x393   : > { %v8476_v11 = vpop.eup %8475  ;;  %7655 = vmatprep.subr.msk.mxu0 %vm2227_vm3, %v10302_v39  ;;  %v7651_v26 = vadd.f32 -1.0, %v8474_v63  ;;  %v10339_v61 = vsel %vm2109_vm9, %v10264_v33, %v7637_v21  ;;  %v1103_v30 = vadd.f32 %v1082_v17, %v10015_v47  ;;  %v1097_v54 = vadd.f32 %v1082_v17, %v10011_v45 }
 0x394   : > { %v8478_v18 = vpop.eup %8477  ;;  %7656 = vmatpush1.msk.msra.mxu0 %vm2227_vm3, %v10306_v62  ;;  %v7646_v41 = vadd.f32 -1.0, %v8476_v11  ;;  %v10346_v43 = vsel %vm2124_vm11, %v10285_v7, %v7652_v36  ;;  %v10368_v7 = vld [vmem:[%s12230_s4 + $0x8] sm:$0x7]  ;;  %v1104_v45 = vadd.f32 %v10312_v25, %v10019_v48  ;;  %v1109_v57 = vadd.f32 %v1082_v17, %v10028_v52 }
 0x395   : > { %v8480_v2 = vpop.eup %8479  ;;  %2274 = vmatprep.subr.mxu0 %v10318_v12  ;;  %v7645_v38 = vadd.f32 -1.0, %v8478_v18  ;;  %v10349_v13 = vsel %vm2123_vm12, %v10278_v50, %v7651_v26  ;;  %v1596_v40 = vadd.f32 %v10224_v51, %v1097_v54  ;;  %v1609_v14 = vadd.f32 %v10242_v32, %v1110_v55  ;;  %v2511_v55 = vld [vmem:[#allocation2 + $0x110] sm:$0xff] }
 0x396   : > { %v8482_v59 = vpop.eup %8481  ;;  %2275 = vmatpush1.msra.mxu0 %v10322_v5  ;;  %v7640_v29 = vadd.f32 -1.0, %v8480_v2  ;;  %v10362_v50 = vsel %vm2118_vm13, %v10274_v37, %v7646_v41  ;;  %v1602_v37 = vadd.f32 %v10228_v9, %v1103_v30  ;;  %v1603_v48 = vadd.f32 %v10230_v8, %v1104_v45 }
 0x397   : > { %2276 = vmatprep.subr.mxu0 %v10328_v22  ;;  %v7639_v46 = vadd.f32 -1.0, %v8482_v59  ;;  %v10373_v3 = vsel %vm2117_vm14, %v10282_v6, %v7645_v38  ;;  %v1608_v58 = vadd.f32 %v10235_v28, %v1109_v57  ;;  %v2522_v57 = vld [vmem:[#allocation2 + $0x168] sm:$0xff]  ;;  %vm5174_vm13 = vcmask 89088  }
 0x398   : > { %2277 = vmatpush1.msra.mxu0 %v10339_v61  ;;  %v10382_v27 = vsel %vm2112_vm15, %v10288_v15, %v7640_v29  ;;  %vm8620_vm14 = vmmov 0  }
 0x399   : > { %7657 = vmatmul.mubr.msk.f32.vlgmr.msra.gmra.mxu0 %vm2220_vm10, %v10333_v35  ;;  %7659 = vmatprep.subr.msk.mxu0 %vm2227_vm3, %v10346_v43  ;;  %v10391_v6 = vsel %vm2111_vm0, %v10292_v16, %v7639_v46 }
 0x39a   : > { %v2074_v33 = vpop.f32.mrf.mxu1  ;;  %7660 = vmatpush1.msk.msra.mxu0 %vm2227_vm3, %v10349_v13  ;;  %2316 = vmatprep.mubr.f32.mxu0 %v8619_v0 }
 0x39b   : > { %2351 = vmatprep.subr.mxu0 %v10362_v50  ;;  %v2095_v51 = vadd.f32 %v2074_v33, %v1596_v40  ;;  %v2523_v40 = vld [vmem:[#allocation2 + $0x170] sm:$0xff] }
 0x39c   : > { %v2076_v47 = vpop.f32.mrf.mxu1  ;;  %2352 = vmatpush1.msra.mxu0 %v10373_v3 }
 0x39d   : > { %v10378_v23 = vadd.f32 %v2076_v47, %v1597_v31  ;;  %7658 = vmatmul.mubr.msk.f32.gmra.mxu0 %vm2220_vm10, %v10368_v7  ;;  %2353 = vmatprep.subr.mxu0 %v10382_v27  ;;  %v2131_v8 = vmin.f32 %v2095_v51, 0.0  ;;  %vm2113_vm7 = vcmp.gt.f32.partialorder %v2095_v51, 0.0 }
 0x39e   : > { %v2080_v9 = vpop.f32.mrf.mxu1  ;;  %2354 = vmatpush1.msra.mxu0 %v10391_v6  ;;  %2387 = vmatprep.mubr.f32.mxu0 %v8619_v0 }
 0x39f   : > { %v2132_v34 = vmin.f32 %v10378_v23, 0.0  ;;  %v2101_v15 = vadd.f32 %v2080_v9, %v1602_v37  ;;  %v2153_v32 = vmul.f32 1.442695, %v2131_v8  ;;  %vm2114_vm6 = vcmp.gt.f32.partialorder %v10378_v23, 0.0  ;;  %v2496_v8 = vld [vmem:[#allocation2 + $0x98] sm:$0xff] }
 0x3a0   : > { %v2082_v53 = vpop.f32.mrf.mxu1 }
 0x3a1   : > { %v2137_v16 = vmin.f32 %v2101_v15, 0.0  ;;  %v2102_v44 = vadd.f32 %v2082_v53, %v1603_v48  ;;  %7661 = vmatmul.mubr.msk.f32.vlgmr.msra.gmra.mxu0 %vm2220_vm10, %v10333_v35  ;;  %v2155_v4 = vmul.f32 1.442695, %v2132_v34  ;;  %vm2119_vm5 = vcmp.gt.f32.partialorder %v2101_v15, 0.0  ;;  %v2520_v34 = vld [vmem:[#allocation2 + $0x158] sm:$0xff]  ;;  %v2517_v48 = vld [vmem:[#allocation2 + $0x140] sm:$0xff] }
 0x3a2   : > { %v2086_v52 = vpop.f32.mrf.mxu1  ;;  %2393 = vmatprep.mubr.f32.mxu0 %v8619_v0  ;;  %v2514_v53 = vld [vmem:[#allocation2 + $0x128] sm:$0xff] }
 0x3a3   : > { %v2107_v42 = vadd.f32 %v2086_v52, %v1608_v58  ;;  %v2138_v63 = vmin.f32 %v2102_v44, 0.0  ;;  %v2165_v56 = vmul.f32 1.442695, %v2137_v16  ;;  %8483 = vpow2.f32 %v2155_v4  ;;  %v2510_v58 = vld [vmem:[#allocation2 + $0x108] sm:$0xff]  ;;  %v2507_v16 = vld [vmem:[#allocation2 + $0xf0] sm:$0xff]  ;;  %v2504_v52 = vld [vmem:[#allocation2 + $0xd8] sm:$0xff] }
 0x3a4   : > { %v2088_v10 = vpop.f32.mrf.mxu1  ;;  %vm2120_vm4 = vcmp.gt.f32.partialorder %v2102_v44, 0.0  ;;  %v2501_v4 = vld [vmem:[#allocation2 + $0xc0] sm:$0xff] }
 0x3a5   : > { %v2143_v11 = vmin.f32 %v2107_v42, 0.0  ;;  %v2108_v60 = vadd.f32 %v2088_v10, %v1609_v14  ;;  %v2167_v21 = vmul.f32 1.442695, %v2138_v63  ;;  %7662 = vmatmul.mubr.msk.f32.gmra.mxu0 %vm2220_vm10, %v10368_v7  ;;  %vm2125_vm2 = vcmp.gt.f32.partialorder %v2107_v42, 0.0  ;;  %v2502_v14 = vld [vmem:[#allocation2 + $0xc8] sm:$0xff]  ;;  %v2495_v63 = vld [vmem:[#allocation2 + $0x90] sm:$0xff] }
 0x3a6   : > { %2464 = vmatprep.mubr.f32.mxu0 %v8619_v0  ;;  %v2493_v10 = vld [vmem:[#allocation2 + $0x80] sm:$0xff] }
 0x3a7   : > { %v2177_v28 = vmul.f32 1.442695, %v2143_v11  ;;  %v2144_v18 = vmin.f32 %v2108_v60, 0.0  ;;  %8485 = vpow2.f32 %v2167_v21  ;;  %vm2126_vm1 = vcmp.gt.f32.partialorder %v2108_v60, 0.0  ;;  %v2492_v11 = vld [vmem:[#allocation2 + $0x78] sm:$0xff]  ;;  %v2487_v21 = vld [vmem:[#allocation2 + $0x50] sm:$0xff] }
 0x3a9   : > { %8487 = vpow2.f32 %v2177_v28  ;;  %v2179_v25 = vmul.f32 1.442695, %v2144_v18  ;;  %v2486_v28 = vld [vmem:[#allocation2 + $0x48] sm:$0xff]  ;;  %v2484_v18 = vld [vmem:[#allocation2 + $0x38] sm:$0xff] }
 0x3aa   : > { %8489 = vpow2.f32 %v2165_v56  ;;  %v2489_v56 = vld [vmem:[#allocation2 + $0x60] sm:$0xff] }
 0x3ab   : > { %8491 = vpow2.f32 %v2179_v25  ;;  %v2636_v25 = vld [vmem:[#allocation2 + $0x4f8] sm:$0xff] }
 0x3ac   : > { %8493 = vpow2.f32 %v2153_v32  ;;  %v2483_v32 = vld [vmem:[#allocation2 + $0x30] sm:$0xff]  ;;  %2866 = vmatpush2.msra.mxu1 %v2636_v25  ;;  %v2534_v25 = vld [vmem:[#allocation2 + $0x1c8] sm:$0xff] }
 0x3b0   : > { %v8484_v36 = vpop.eup %8483 }
 0x3b1   : > { %v7642_v30 = vadd.f32 -1.0, %v8484_v36  ;;  %v2481_v36 = vld [vmem:[#allocation2 + $0x20] sm:$0xff] }
 0x3b3   : > { %v10424_v45 = vsel %vm2114_vm6, %v10378_v23, %v7642_v30  ;;  %v2516_v23 = vld [vmem:[#allocation2 + $0x138] sm:$0xff]  ;;  %v2570_v30 = vld [vmem:[#allocation2 + $0x2e8] sm:$0xff]  ;;  %vm6354_vm6 = vcmask 48128  }
 0x3b4   : > { %v8486_v2 = vpop.eup %8485 }
 0x3b5   : > { %v7648_v29 = vadd.f32 -1.0, %v8486_v2  ;;  %v2634_v2 = vld [vmem:[#allocation2 + $0x4e8] sm:$0xff] }
 0x3b6   : > { %v8488_v26 = vpop.eup %8487  ;;  %2867 = vmatprep.subr.mxu1 %v2634_v2  ;;  %v2531_v2 = vld [vmem:[#allocation2 + $0x1b0] sm:$0xff] }
 0x3b7   : > { %v8490_v59 = vpop.eup %8489  ;;  %v7653_v17 = vadd.f32 -1.0, %v8488_v26  ;;  %v10416_v47 = vsel %vm2120_vm4, %v2102_v44, %v7648_v29  ;;  %v2505_v44 = vld [vmem:[#allocation2 + $0xe0] sm:$0xff]  ;;  %v2480_v26 = vld [vmem:[#allocation2 + $0x18] sm:$0xff] }
 0x3b8   : > { %v8492_v41 = vpop.eup %8491  ;;  %v7647_v33 = vadd.f32 -1.0, %v8490_v59  ;;  %v2633_v59 = vld [vmem:[#allocation2 + $0x4e0] sm:$0xff]  ;;  %v2628_v29 = vld [vmem:[#allocation2 + $0x4b8] sm:$0xff] }
 0x3b9   : > { %v8494_v38 = vpop.eup %8493  ;;  %v7654_v1 = vadd.f32 -1.0, %v8492_v41  ;;  %v10410_v31 = vsel %vm2125_vm2, %v2107_v42, %v7653_v17  ;;  %v2498_v42 = vld [vmem:[#allocation2 + $0xa8] sm:$0xff]  ;;  %2868 = vmatpush2.msra.mxu1 %v2633_v59  ;;  %v2631_v17 = vld [vmem:[#allocation2 + $0x4d0] sm:$0xff]  ;;  %v2528_v59 = vld [vmem:[#allocation2 + $0x198] sm:$0xff]  ;;  %vm6358_vm2 = vcmask 1045504  }
 0x3ba   : > { %v7641_v54 = vadd.f32 -1.0, %v8494_v38  ;;  %v10419_v37 = vsel %vm2119_vm5, %v2101_v15, %v7647_v33  ;;  %v2519_v15 = vld [vmem:[#allocation2 + $0x150] sm:$0xff]  ;;  %v2478_v41 = vld [vmem:[#allocation2 + $0x8] sm:$0xff]  ;;  %v2477_v38 = vld [vmem:[#allocation2] sm:$0xff]  ;;  %2869 = vmatprep.subr.mxu1 %v2631_v17 }
 0x3bb   : > { %v10408_v46 = vsel %vm2126_vm1, %v2108_v60, %v7654_v1  ;;  %v2490_v60 = vld [vmem:[#allocation2 + $0x68] sm:$0xff]  ;;  %v2571_v33 = vld [vmem:[#allocation2 + $0x2f0] sm:$0xff]  ;;  %v2525_v17 = vld [vmem:[#allocation2 + $0x180] sm:$0xff]  ;;  %vm5417_vm1 = vcmask 785408  }
 0x3bc   : > { %7663 = vmatprep.subr.msk.mxu0 %vm2227_vm3, %v10408_v46  ;;  %v10427_v9 = vsel %vm2113_vm7, %v2095_v51, %v7641_v54  ;;  %v2513_v51 = vld [vmem:[#allocation2 + $0x120] sm:$0xff]  ;;  %v2630_v1 = vld [vmem:[#allocation2 + $0x4c8] sm:$0xff]  ;;  %v2627_v54 = vld [vmem:[#allocation2 + $0x4b0] sm:$0xff]  ;;  %vm6460_vm7 = vcmask 523264  }
 0x3bd   : > { %7664 = vmatpush1.msk.msra.mxu0 %vm2227_vm3, %v10410_v31  ;;  %2870 = vmatpush2.msra.mxu1 %v2630_v1 }
 0x3be   : > { %2428 = vmatprep.subr.mxu0 %v10416_v47  ;;  %2871 = vmatprep.subr.mxu1 %v2628_v29 }
 0x3bf   : > { %2429 = vmatpush1.msra.mxu0 %v10419_v37  ;;  %2872 = vmatpush2.msra.mxu1 %v2627_v54 }
 0x3c0   : > { %2430 = vmatprep.subr.mxu0 %v10424_v45 }
 0x3c1   : > { %2431 = vmatpush1.msra.mxu0 %v10427_v9 }
 0x3c2   : > { %7665 = vmatmul.mubr.msk.f32.vlgmr.msra.gmra.mxu0 %vm2220_vm10, %v10333_v35  ;;  %2736 = vmatprep.subr.mxu0 %v2523_v40  ;;  %v2508_v35 = vld [vmem:[#allocation2 + $0xf8] sm:$0xff] }
 0x3c3   : > { %2470 = vmatprep.mubr.f32.mxu0 %v8619_v0  ;;  %2737 = vmatpush1.msra.mxu0 %v2522_v57  ;;  %v2568_v40 = vld [vmem:[#allocation2 + $0x2d8] sm:$0xff]  ;;  %v2625_v57 = vld [vmem:[#allocation2 + $0x4a0] sm:$0xff] }
 0x3c4   : > { %2738 = vmatprep.subr.mxu0 %v2520_v34  ;;  %v2567_v34 = vld [vmem:[#allocation2 + $0x2d0] sm:$0xff]  ;;  %2873 = vmatprep.subr.mxu1 %v2625_v57  ;;  %v2709_v57 = vld [vmem:[#allocation2 + $0x740] sm:$0xff] }
 0x3c5   : > { %2739 = vmatpush1.msra.mxu0 %v2519_v15  ;;  %v2624_v15 = vld [vmem:[#allocation2 + $0x498] sm:$0xff] }
 0x3c6   : > { %7666 = vmatmul.mubr.msk.f32.gmra.mxu0 %vm2220_vm10, %v10368_v7  ;;  %2740 = vmatprep.subr.mxu0 %v2517_v48  ;;  %v2499_v7 = vld [vmem:[#allocation2 + $0xb0] sm:$0xff]  ;;  %v2622_v48 = vld [vmem:[#allocation2 + $0x488] sm:$0xff] }
 0x3c7   : > { %2741 = vmatpush1.msra.mxu0 %v2516_v23  ;;  %v2565_v23 = vld [vmem:[#allocation2 + $0x2c0] sm:$0xff]  ;;  %2874 = vmatpush2.msra.mxu1 %v2624_v15  ;;  %v2708_v15 = vld [vmem:[#allocation2 + $0x738] sm:$0xff] }
 0x3c8   : > { %2742 = vmatprep.subr.mxu0 %v2514_v53  ;;  %v2564_v53 = vld [vmem:[#allocation2 + $0x2b8] sm:$0xff]  ;;  %2875 = vmatprep.subr.mxu1 %v2622_v48  ;;  %v2706_v48 = vld [vmem:[#allocation2 + $0x728] sm:$0xff] }
 0x3c9   : > { %2743 = vmatpush1.msra.mxu0 %v2513_v51  ;;  %v2621_v51 = vld [vmem:[#allocation2 + $0x480] sm:$0xff] }
 0x3ca   : > { %2744 = vmatprep.subr.mxu0 %v2511_v55  ;;  %v2562_v55 = vld [vmem:[#allocation2 + $0x2a8] sm:$0xff]  ;;  %2876 = vmatpush2.msra.mxu1 %v2621_v51  ;;  %v2703_v51 = vld [vmem:[#allocation2 + $0x710] sm:$0xff] }
 0x3cb   : > { %2745 = vmatpush1.msra.mxu0 %v2510_v58  ;;  %v2572_v58 = vld [vmem:[#allocation2 + $0x2f8] sm:$0xff] }
 0x3cc   : > { %2746 = vmatprep.subr.mxu0 %v2508_v35  ;;  %v2561_v35 = vld [vmem:[#allocation2 + $0x2a0] sm:$0xff]  ;;  %7983 = vmatprep.subr.mxu1 %v2572_v58  ;;  %v2524_v58 = vld [vmem:[#allocation2 + $0x178] sm:$0xff] }
 0x3cd   : > { %2747 = vmatpush1.msra.mxu0 %v2507_v16  ;;  %v2559_v16 = vld [vmem:[#allocation2 + $0x290] sm:$0xff] }
 0x3ce   : > { %2748 = vmatprep.subr.mxu0 %v2505_v44  ;;  %v2558_v44 = vld [vmem:[#allocation2 + $0x288] sm:$0xff] }
 0x3cf   : > { %2749 = vmatpush1.msra.mxu0 %v2504_v52  ;;  %v2556_v52 = vld [vmem:[#allocation2 + $0x278] sm:$0xff] }
 0x3d0   : > { %2750 = vmatprep.subr.mxu0 %v2502_v14  ;;  %v2555_v14 = vld [vmem:[#allocation2 + $0x270] sm:$0xff] }
 0x3d1   : > { %2751 = vmatpush1.msra.mxu0 %v2501_v4  ;;  %v2553_v4 = vld [vmem:[#allocation2 + $0x260] sm:$0xff] }
 0x3d2   : > { %2752 = vmatprep.subr.mxu0 %v2499_v7  ;;  %v2552_v7 = vld [vmem:[#allocation2 + $0x258] sm:$0xff] }
 0x3d3   : > { %2753 = vmatpush1.msra.mxu0 %v2498_v42  ;;  %v2550_v42 = vld [vmem:[#allocation2 + $0x248] sm:$0xff] }
 0x3d4   : > { %2754 = vmatprep.subr.mxu0 %v2496_v8  ;;  %v2549_v8 = vld [vmem:[#allocation2 + $0x240] sm:$0xff] }
 0x3d5   : > { %2755 = vmatpush1.msra.mxu0 %v2495_v63  ;;  %v2547_v63 = vld [vmem:[#allocation2 + $0x230] sm:$0xff] }
 0x3d6   : > { %2756 = vmatprep.subr.mxu0 %v2493_v10  ;;  %v2546_v10 = vld [vmem:[#allocation2 + $0x228] sm:$0xff] }
 0x3d7   : > { %2757 = vmatpush1.msra.mxu0 %v2492_v11  ;;  %v2544_v11 = vld [vmem:[#allocation2 + $0x218] sm:$0xff] }
 0x3d8   : > { %2758 = vmatprep.subr.mxu0 %v2490_v60  ;;  %v2543_v60 = vld [vmem:[#allocation2 + $0x210] sm:$0xff] }
 0x3d9   : > { %2759 = vmatpush1.msra.mxu0 %v2489_v56  ;;  %v2541_v56 = vld [vmem:[#allocation2 + $0x200] sm:$0xff] }
 0x3da   : > { %2760 = vmatprep.subr.mxu0 %v2487_v21  ;;  %v2540_v21 = vld [vmem:[#allocation2 + $0x1f8] sm:$0xff] }
 0x3db   : > { %2761 = vmatpush1.msra.mxu0 %v2486_v28  ;;  %v2538_v28 = vld [vmem:[#allocation2 + $0x1e8] sm:$0xff] }
 0x3dc   : > { %2762 = vmatprep.subr.mxu0 %v2484_v18  ;;  %v2537_v18 = vld [vmem:[#allocation2 + $0x1e0] sm:$0xff] }
 0x3dd   : > { %2763 = vmatpush1.msra.mxu0 %v2483_v32  ;;  %v2535_v32 = vld [vmem:[#allocation2 + $0x1d0] sm:$0xff] }
 0x3de   : > { %2764 = vmatprep.subr.mxu0 %v2481_v36  ;;  %v2532_v36 = vld [vmem:[#allocation2 + $0x1b8] sm:$0xff] }
 0x3df   : > { %2765 = vmatpush1.msra.mxu0 %v2480_v26  ;;  %v2529_v26 = vld [vmem:[#allocation2 + $0x1a0] sm:$0xff] }
 0x3e0   : > { %2766 = vmatprep.subr.mxu0 %v2478_v41  ;;  %v2526_v41 = vld [vmem:[#allocation2 + $0x188] sm:$0xff] }
 0x3e1   : > { %2767 = vmatpush1.msra.mxu0 %v2477_v38  ;;  %v2715_v38 = vld [vmem:[#allocation2 + $0x770] sm:$0xff] }
 0x3e2   : > { %2768 = vmatprep.subr.mxu0 %v2571_v33  ;;  %v2714_v33 = vld [vmem:[#allocation2 + $0x768] sm:$0xff] }
 0x3e3   : > { %2769 = vmatpush2.msra.mxu0 %v2570_v30  ;;  %v2712_v30 = vld [vmem:[#allocation2 + $0x758] sm:$0xff] }
 0x3e4   : > { %2770 = vmatprep.subr.mxu0 %v2568_v40  ;;  %v2711_v40 = vld [vmem:[#allocation2 + $0x750] sm:$0xff] }
 0x3e5   : > { %2771 = vmatpush2.msra.mxu0 %v2567_v34 }
 0x3e6   : > { %2772 = vmatprep.subr.mxu0 %v2565_v23 }
 0x3e7   : > { %2773 = vmatpush2.msra.mxu0 %v2564_v53  ;;  %v2705_v53 = vld [vmem:[#allocation2 + $0x720] sm:$0xff] }
 0x3e8   : > { %2774 = vmatprep.subr.mxu0 %v2562_v55 }
 0x3e9   : > { %2775 = vmatpush2.msra.mxu0 %v2561_v35  ;;  %v2702_v35 = vld [vmem:[#allocation2 + $0x708] sm:$0xff] }
 0x3ea   : > { %2776 = vmatprep.subr.mxu0 %v2559_v16  ;;  %v2569_v16 = vld [vmem:[#allocation2 + $0x2e0] sm:$0xff] }
 0x3eb   : > { %2777 = vmatpush2.msra.mxu0 %v2558_v44  ;;  %v2700_v44 = vld [vmem:[#allocation2 + $0x6f8] sm:$0xff] }
 0x3ec   : > { %2778 = vmatprep.subr.mxu0 %v2556_v52 }
 0x3ed   : > { %2779 = vmatpush2.msra.mxu0 %v2555_v14  ;;  %v2521_v14 = vld [vmem:[#allocation2 + $0x160] sm:$0xff] }
 0x3ee   : > { %2780 = vmatprep.subr.mxu0 %v2553_v4  ;;  %v2699_v4 = vld [vmem:[#allocation2 + $0x6f0] sm:$0xff] }
 0x3ef   : > { %2781 = vmatpush2.msra.mxu0 %v2552_v7  ;;  %v2566_v7 = vld [vmem:[#allocation2 + $0x2c8] sm:$0xff] }
 0x3f0   : > { %2782 = vmatprep.subr.mxu0 %v2550_v42 }
 0x3f1   : > { %2783 = vmatpush2.msra.mxu0 %v2549_v8  ;;  %v2697_v8 = vld [vmem:[#allocation2 + $0x6e0] sm:$0xff] }
 0x3f2   : > { %2784 = vmatprep.subr.mxu0 %v2547_v63  ;;  %v2518_v63 = vld [vmem:[#allocation2 + $0x148] sm:$0xff] }
 0x3f3   : > { %2785 = vmatpush2.msra.mxu0 %v2546_v10  ;;  %v2696_v10 = vld [vmem:[#allocation2 + $0x6d8] sm:$0xff] }
 0x3f4   : > { %2786 = vmatprep.subr.mxu0 %v2544_v11  ;;  %v2563_v11 = vld [vmem:[#allocation2 + $0x2b0] sm:$0xff] }
 0x3f5   : > { %2787 = vmatpush2.msra.mxu0 %v2543_v60  ;;  %v2694_v60 = vld [vmem:[#allocation2 + $0x6c8] sm:$0xff] }
 0x3f6   : > { %2788 = vmatprep.subr.mxu0 %v2541_v56  ;;  %v2515_v56 = vld [vmem:[#allocation2 + $0x130] sm:$0xff] }
 0x3f7   : > { %2789 = vmatpush2.msra.mxu0 %v2540_v21  ;;  %v2693_v21 = vld [vmem:[#allocation2 + $0x6c0] sm:$0xff] }
 0x3f8   : > { %2790 = vmatprep.subr.mxu0 %v2538_v28  ;;  %v2560_v28 = vld [vmem:[#allocation2 + $0x298] sm:$0xff] }
 0x3f9   : > { %2791 = vmatpush2.msra.mxu0 %v2537_v18  ;;  %v2691_v18 = vld [vmem:[#allocation2 + $0x6b0] sm:$0xff] }
 0x3fa   : > { %2792 = vmatprep.subr.mxu0 %v2535_v32  ;;  %v2512_v32 = vld [vmem:[#allocation2 + $0x118] sm:$0xff] }
 0x3fb   : > { %2793 = vmatpush2.msra.mxu0 %v2534_v25  ;;  %v2690_v25 = vld [vmem:[#allocation2 + $0x6a8] sm:$0xff] }
 0x3fc   : > { %2794 = vmatprep.subr.mxu0 %v2532_v36  ;;  %v2557_v36 = vld [vmem:[#allocation2 + $0x280] sm:$0xff] }
 0x3fd   : > { %2795 = vmatpush2.msra.mxu0 %v2531_v2  ;;  %v2688_v2 = vld [vmem:[#allocation2 + $0x698] sm:$0xff] }
 0x3fe   : > { %2796 = vmatprep.subr.mxu0 %v2529_v26  ;;  %v2509_v26 = vld [vmem:[#allocation2 + $0x100] sm:$0xff] }
 0x3ff   : > { %2797 = vmatpush2.msra.mxu0 %v2528_v59  ;;  %v2687_v59 = vld [vmem:[#allocation2 + $0x690] sm:$0xff] }
 0x400   : > { %2798 = vmatprep.subr.mxu0 %v2526_v41  ;;  %v2554_v41 = vld [vmem:[#allocation2 + $0x268] sm:$0xff] }
 0x401   : > { %2799 = vmatpush2.msra.mxu0 %v2525_v17  ;;  %v2685_v17 = vld [vmem:[#allocation2 + $0x680] sm:$0xff] }
 0x402   : > { %2890 = vmatprep.subr.mxu0 %v2715_v38  ;;  %v2506_v38 = vld [vmem:[#allocation2 + $0xe8] sm:$0xff] }
 0x459   : > { %v10435_v1 = vpop.f32.mrf.mxu0 }
 0x45b   : > { %v2314_v29 = vpop.f32.mrf.mxu0 }
 0x45c   : > { %2800 = vmatprep.mubr.f32.mxu0 %v2314_v29 }
 0x45d   : > { %v10437_v54 = vpop.f32.mrf.mxu0  ;;  %2801 = vmatmul.mubr.f32.vlgmr.msra.gmra.mxu0 %v10435_v1 }
 0x45e   : > { %2891 = vmatpush1.msra.mxu0 %v2714_v33  ;;  %v2551_v33 = vld [vmem:[#allocation2 + $0x250] sm:$0xff] }
 0x45f   : > { %v10440_v34 = vpop.f32.mrf.mxu0  ;;  %2892 = vmatprep.subr.mxu0 %v2712_v30  ;;  %v2682_v30 = vld [vmem:[#allocation2 + $0x668] sm:$0xff] }
 0x460   : > { %2806 = vmatprep.mubr.f32.mxu0 %v10440_v34  ;;  %2893 = vmatpush1.msra.mxu0 %v2711_v40  ;;  %v2503_v40 = vld [vmem:[#allocation2 + $0xd0] sm:$0xff] }
 0x461   : > { %v10443_v23 = vpop.f32.mrf.mxu0  ;;  %2807 = vmatmul.mubr.f32.gmra.mxu0 %v10437_v54  ;;  %2894 = vmatprep.subr.mxu0 %v2709_v57  ;;  %v2681_v57 = vld [vmem:[#allocation2 + $0x660] sm:$0xff] }
 0x462   : > { %2895 = vmatpush1.msra.mxu0 %v2708_v15  ;;  %v2548_v15 = vld [vmem:[#allocation2 + $0x238] sm:$0xff] }
 0x463   : > { %v10446_v55 = vpop.f32.mrf.mxu0  ;;  %2896 = vmatprep.subr.mxu0 %v2706_v48  ;;  %v2679_v48 = vld [vmem:[#allocation2 + $0x650] sm:$0xff] }
 0x464   : > { %2877 = vmatprep.mubr.f32.mxu1 %v10446_v55  ;;  %2897 = vmatpush1.msra.mxu0 %v2705_v53  ;;  %v2500_v53 = vld [vmem:[#allocation2 + $0xb8] sm:$0xff] }
 0x465   : > { %v10449_v52 = vpop.f32.mrf.mxu0  ;;  %2878 = vmatmul.mubr.f32.vlgmr.msra.gmra.mxu1 %v10443_v23  ;;  %2898 = vmatprep.subr.mxu0 %v2703_v51  ;;  %v2678_v51 = vld [vmem:[#allocation2 + $0x648] sm:$0xff] }
 0x466   : > { %7984 = vmatpush3.msra.mxu1 %v2524_v58  ;;  %2899 = vmatpush1.msra.mxu0 %v2702_v35  ;;  %v2545_v58 = vld [vmem:[#allocation2 + $0x220] sm:$0xff]  ;;  %v2676_v35 = vld [vmem:[#allocation2 + $0x638] sm:$0xff] }
 0x467   : > { %7985 = vmatprep.subr.mxu1 %v2569_v16  ;;  %v10452_v42 = vpop.f32.mrf.mxu0  ;;  %2900 = vmatprep.subr.mxu0 %v2700_v44  ;;  %v2497_v16 = vld [vmem:[#allocation2 + $0xa0] sm:$0xff]  ;;  %v2675_v44 = vld [vmem:[#allocation2 + $0x630] sm:$0xff] }
 0x468   : > { %7986 = vmatpush3.msra.mxu1 %v2521_v14  ;;  %2883 = vmatprep.mubr.f32.mxu1 %v10452_v42  ;;  %v2542_v14 = vld [vmem:[#allocation2 + $0x208] sm:$0xff] }
 0x469   : > { %2901 = vmatpush1.msra.mxu0 %v2699_v4  ;;  %7987 = vmatprep.subr.mxu1 %v2566_v7  ;;  %v2673_v4 = vld [vmem:[#allocation2 + $0x620] sm:$0xff]  ;;  %v2494_v7 = vld [vmem:[#allocation2 + $0x88] sm:$0xff] }
 0x46a   : > { %2884 = vmatmul.mubr.f32.gmra.mxu1 %v10449_v52  ;;  %2902 = vmatprep.subr.mxu0 %v2697_v8  ;;  %v2672_v8 = vld [vmem:[#allocation2 + $0x618] sm:$0xff] }
 0x46b   : > { %7988 = vmatpush3.msra.mxu1 %v2518_v63  ;;  %2903 = vmatpush1.msra.mxu0 %v2696_v10  ;;  %v2539_v63 = vld [vmem:[#allocation2 + $0x1f0] sm:$0xff]  ;;  %v2670_v10 = vld [vmem:[#allocation2 + $0x608] sm:$0xff] }
 0x46c   : > { %7989 = vmatprep.subr.mxu1 %v2563_v11  ;;  %3031 = vmatprep.mubr.f32.mxu1 %v2314_v29  ;;  %v2684_v29 = vld [vmem:[#allocation2 + $0x678] sm:$0xff]  ;;  %v2491_v11 = vld [vmem:[#allocation2 + $0x70] sm:$0xff] }
 0x46d   : > { %2904 = vmatprep.subr.mxu0 %v2694_v60  ;;  %7990 = vmatpush3.msra.mxu1 %v2515_v56  ;;  %v2669_v60 = vld [vmem:[#allocation2 + $0x600] sm:$0xff]  ;;  %v2536_v56 = vld [vmem:[#allocation2 + $0x1d8] sm:$0xff] }
 0x46e   : > { %2905 = vmatpush1.msra.mxu0 %v2693_v21  ;;  %7991 = vmatprep.subr.mxu1 %v2560_v28  ;;  %v2727_v21 = vld [vmem:[#allocation2 + $0x7d0] sm:$0xff]  ;;  %v2488_v28 = vld [vmem:[#allocation2 + $0x58] sm:$0xff] }
 0x46f   : > { %2906 = vmatprep.subr.mxu0 %v2691_v18  ;;  %7992 = vmatpush3.msra.mxu1 %v2512_v32  ;;  %v2726_v18 = vld [vmem:[#allocation2 + $0x7c8] sm:$0xff]  ;;  %v2533_v32 = vld [vmem:[#allocation2 + $0x1c0] sm:$0xff] }
 0x470   : > { %2907 = vmatpush1.msra.mxu0 %v2690_v25  ;;  %7993 = vmatprep.subr.mxu1 %v2557_v36  ;;  %v2724_v25 = vld [vmem:[#allocation2 + $0x7b8] sm:$0xff]  ;;  %v2485_v36 = vld [vmem:[#allocation2 + $0x40] sm:$0xff] }
 0x471   : > { %2908 = vmatprep.subr.mxu0 %v2688_v2  ;;  %7994 = vmatpush3.msra.mxu1 %v2509_v26  ;;  %v2723_v2 = vld [vmem:[#allocation2 + $0x7b0] sm:$0xff]  ;;  %v2530_v26 = vld [vmem:[#allocation2 + $0x1a8] sm:$0xff] }
 0x472   : > { %2909 = vmatpush1.msra.mxu0 %v2687_v59  ;;  %7995 = vmatprep.subr.mxu1 %v2554_v41  ;;  %v2721_v59 = vld [vmem:[#allocation2 + $0x7a0] sm:$0xff]  ;;  %v2482_v41 = vld [vmem:[#allocation2 + $0x28] sm:$0xff] }
 0x473   : > { %2910 = vmatprep.subr.mxu0 %v2685_v17  ;;  %7996 = vmatpush3.msra.mxu1 %v2506_v38  ;;  %v2720_v38 = vld [vmem:[#allocation2 + $0x798] sm:$0xff] }
 0x474   : > { %2911 = vmatpush1.msra.mxu0 %v2684_v29  ;;  %7997 = vmatprep.subr.mxu1 %v2551_v33  ;;  %v2527_v29 = vld [vmem:[#allocation2 + $0x190] sm:$0xff]  ;;  %v2718_v33 = vld [vmem:[#allocation2 + $0x788] sm:$0xff] }
 0x475   : > { %2912 = vmatprep.subr.mxu0 %v2682_v30  ;;  %7998 = vmatpush3.msra.mxu1 %v2503_v40  ;;  %v2479_v30 = vld [vmem:[#allocation2 + $0x10] sm:$0xff] }
 0x476   : > { %2913 = vmatpush1.msra.mxu0 %v2681_v57  ;;  %7999 = vmatprep.subr.mxu1 %v2548_v15  ;;  %v2717_v57 = vld [vmem:[#allocation2 + $0x780] sm:$0xff]  ;;  %v2668_v15 = vld [vmem:[#allocation2 + $0x5f8] sm:$0xff] }
 0x477   : > { %2914 = vmatprep.subr.mxu0 %v2679_v48  ;;  %8000 = vmatpush3.msra.mxu1 %v2500_v53  ;;  %v2620_v48 = vld [vmem:[#allocation2 + $0x478] sm:$0xff] }
 0x478   : > { %2915 = vmatpush1.msra.mxu0 %v2678_v51  ;;  %8001 = vmatprep.subr.mxu1 %v2545_v58  ;;  %v2665_v51 = vld [vmem:[#allocation2 + $0x5e0] sm:$0xff]  ;;  %v2716_v58 = vld [vmem:[#allocation2 + $0x778] sm:$0xff] }
 0x479   : > { %2916 = vmatprep.subr.mxu0 %v2676_v35  ;;  %8002 = vmatpush3.msra.mxu1 %v2497_v16  ;;  %v2617_v35 = vld [vmem:[#allocation2 + $0x460] sm:$0xff]  ;;  %v2662_v16 = vld [vmem:[#allocation2 + $0x5c8] sm:$0xff] }
 0x47a   : > { %2917 = vmatpush1.msra.mxu0 %v2675_v44  ;;  %8003 = vmatprep.subr.mxu1 %v2542_v14  ;;  %v2713_v44 = vld [vmem:[#allocation2 + $0x760] sm:$0xff]  ;;  %v2614_v14 = vld [vmem:[#allocation2 + $0x448] sm:$0xff] }
 0x47b   : > { %2918 = vmatprep.subr.mxu0 %v2673_v4  ;;  %8004 = vmatpush3.msra.mxu1 %v2494_v7  ;;  %v2710_v4 = vld [vmem:[#allocation2 + $0x748] sm:$0xff]  ;;  %v2611_v7 = vld [vmem:[#allocation2 + $0x430] sm:$0xff] }
 0x47c   : > { %2919 = vmatpush1.msra.mxu0 %v2672_v8  ;;  %8005 = vmatprep.subr.mxu1 %v2539_v63  ;;  %v2656_v8 = vld [vmem:[#allocation2 + $0x598] sm:$0xff]  ;;  %v2707_v63 = vld [vmem:[#allocation2 + $0x730] sm:$0xff] }
 0x47d   : > { %2920 = vmatprep.subr.mxu0 %v2670_v10  ;;  %8006 = vmatpush3.msra.mxu1 %v2491_v11  ;;  %v2653_v10 = vld [vmem:[#allocation2 + $0x580] sm:$0xff]  ;;  %v2704_v11 = vld [vmem:[#allocation2 + $0x718] sm:$0xff] }
 0x47e   : > { %2921 = vmatpush1.msra.mxu0 %v2669_v60  ;;  %8007 = vmatprep.subr.mxu1 %v2536_v56  ;;  %v2605_v60 = vld [vmem:[#allocation2 + $0x400] sm:$0xff] }
 0x47f   : > { %2946 = vmatprep.subr.mxu0 %v2727_v21  ;;  %8008 = vmatpush3.msra.mxu1 %v2488_v28  ;;  %v2701_v56 = vld [vmem:[#allocation2 + $0x700] sm:$0xff]  ;;  %v2602_v21 = vld [vmem:[#allocation2 + $0x3e8] sm:$0xff]  ;;  %v2647_v28 = vld [vmem:[#allocation2 + $0x550] sm:$0xff] }
 0x480   : > { %2947 = vmatpush2.msra.mxu0 %v2726_v18  ;;  %8009 = vmatprep.subr.mxu1 %v2533_v32  ;;  %v2698_v18 = vld [vmem:[#allocation2 + $0x6e8] sm:$0xff]  ;;  %v2599_v32 = vld [vmem:[#allocation2 + $0x3d0] sm:$0xff] }
 0x481   : > { %2948 = vmatprep.subr.mxu0 %v2724_v25  ;;  %8010 = vmatpush3.msra.mxu1 %v2485_v36  ;;  %v2644_v25 = vld [vmem:[#allocation2 + $0x538] sm:$0xff]  ;;  %v2695_v36 = vld [vmem:[#allocation2 + $0x6d0] sm:$0xff] }
 0x482   : > { %v10456_v17 = vpop.f32.mrf.mxu0  ;;  %2949 = vmatpush2.msra.mxu0 %v2723_v2  ;;  %8011 = vmatprep.subr.mxu1 %v2530_v26  ;;  %v2596_v2 = vld [vmem:[#allocation2 + $0x3b8] sm:$0xff]  ;;  %v2641_v26 = vld [vmem:[#allocation2 + $0x520] sm:$0xff] }
 0x483   : > { %2950 = vmatprep.subr.mxu0 %v2721_v59  ;;  %8012 = vmatpush3.msra.mxu1 %v2482_v41  ;;  %v2692_v59 = vld [vmem:[#allocation2 + $0x6b8] sm:$0xff]  ;;  %v2593_v41 = vld [vmem:[#allocation2 + $0x3a0] sm:$0xff] }
 0x484   : > { %v10458_v40 = vpop.f32.mrf.mxu0  ;;  %2951 = vmatpush2.msra.mxu0 %v2720_v38  ;;  %8013 = vmatprep.subr.mxu1 %v2527_v29  ;;  %v2638_v38 = vld [vmem:[#allocation2 + $0x508] sm:$0xff]  ;;  %v2689_v29 = vld [vmem:[#allocation2 + $0x6a0] sm:$0xff] }
 0x485   : > { %2952 = vmatprep.subr.mxu0 %v2718_v33  ;;  %8014 = vmatpush3.msra.mxu1 %v2479_v30  ;;  %v2590_v33 = vld [vmem:[#allocation2 + $0x388] sm:$0xff]  ;;  %v2635_v30 = vld [vmem:[#allocation2 + $0x4f0] sm:$0xff] }
 0x486   : > { %2953 = vmatpush2.msra.mxu0 %v2717_v57  ;;  %3032 = vmatmul.mubr.f32.vlgmr.msra.gmra.mxu1 %v10435_v1  ;;  %v10461_v53 = vpop.f32.mrf.mxu0  ;;  %v2686_v57 = vld [vmem:[#allocation2 + $0x688] sm:$0xff] }
 0x487   : > { %8021 = vmatprep.subr.mxu1 %v2668_v15  ;;  %7667 = vmatprep.mubr.msk.f32.mxu0 %vm2729_vm8, %v10458_v40  ;;  %v2587_v15 = vld [vmem:[#allocation2 + $0x370] sm:$0xff] }
 0x488   : > { %3036 = vmatprep.mubr.f32.mxu1 %v10440_v34  ;;  %8022 = vmatpush3.msra.mxu1 %v2620_v48  ;;  %v10468_v1 = vpop.f32.mrf.mxu0  ;;  %v2659_v34 = vld [vmem:[#allocation2 + $0x5b0] sm:$0xff]  ;;  %v2632_v48 = vld [vmem:[#allocation2 + $0x4d8] sm:$0xff] }
 0x489   : > { %3117 = vmatprep.subr.mxu0 %v8619_v0  ;;  %2955 = vmatmul.mubr.f32.vlgmr.msra.gmra.mxu0 %v10456_v17 }
 0x48a   : > { %8023 = vmatprep.subr.mxu1 %v2665_v51  ;;  %3118 = vmatpush1.msra.mxu0 %v2716_v58  ;;  %v2683_v51 = vld [vmem:[#allocation2 + $0x670] sm:$0xff]  ;;  %v2584_v58 = vld [vmem:[#allocation2 + $0x358] sm:$0xff] }
 0x48b   : > { %8024 = vmatpush3.msra.mxu1 %v2617_v35  ;;  %3119 = vmatprep.subr.mxu0 %v8619_v0  ;;  %v2629_v35 = vld [vmem:[#allocation2 + $0x4c0] sm:$0xff] }
 0x48c   : > { %3037 = vmatmul.mubr.f32.gmra.mxu1 %v10437_v54  ;;  %8025 = vmatprep.subr.mxu1 %v2662_v16  ;;  %v2608_v54 = vld [vmem:[#allocation2 + $0x418] sm:$0xff] }
 0x48d   : > { %3120 = vmatpush1.msra.mxu0 %v2713_v44  ;;  %7668 = vmatprep.mubr.msk.f32.mxu0 %vm2729_vm8, %v10468_v1  ;;  %v2680_v16 = vld [vmem:[#allocation2 + $0x658] sm:$0xff]  ;;  %v2581_v44 = vld [vmem:[#allocation2 + $0x340] sm:$0xff] }
 0x48e   : > { %8026 = vmatpush3.msra.mxu1 %v2614_v14  ;;  %3106 = vmatprep.mubr.f32.mxu1 %v10446_v55  ;;  %v2650_v55 = vld [vmem:[#allocation2 + $0x568] sm:$0xff] }
 0x48f   : > { %3121 = vmatprep.subr.mxu0 %v8619_v0  ;;  %2961 = vmatmul.mubr.f32.gmra.mxu0 %v10461_v53  ;;  %v2626_v14 = vld [vmem:[#allocation2 + $0x4a8] sm:$0xff] }
 0x490   : > { %8027 = vmatprep.subr.mxu1 %v2659_v34  ;;  %3122 = vmatpush1.msra.mxu0 %v2710_v4  ;;  %v2677_v34 = vld [vmem:[#allocation2 + $0x640] sm:$0xff]  ;;  %v2578_v4 = vld [vmem:[#allocation2 + $0x328] sm:$0xff] }
 0x491   : > { %8028 = vmatpush3.msra.mxu1 %v2611_v7  ;;  %3123 = vmatprep.subr.mxu0 %v8619_v0  ;;  %v2623_v7 = vld [vmem:[#allocation2 + $0x490] sm:$0xff] }
 0x492   : > { %8029 = vmatprep.subr.mxu1 %v2656_v8  ;;  %3124 = vmatpush1.msra.mxu0 %v2707_v63  ;;  %v2674_v8 = vld [vmem:[#allocation2 + $0x628] sm:$0xff]  ;;  %v2575_v63 = vld [vmem:[#allocation2 + $0x310] sm:$0xff] }
 0x493   : > { %8030 = vmatpush3.msra.mxu1 %v2608_v54  ;;  %3125 = vmatprep.subr.mxu0 %v8619_v0  ;;  %v2671_v54 = vld [vmem:[#allocation2 + $0x610] sm:$0xff] }
 0x494   : > { %8031 = vmatprep.subr.mxu1 %v2653_v10  ;;  %3126 = vmatpush1.msra.mxu0 %v2704_v11  ;;  %v2728_v10 = vld [vmem:[#allocation2 + $0x7d8] sm:$0xff]  ;;  %v2725_v11 = vld [vmem:[#allocation2 + $0x7c0] sm:$0xff] }
 0x495   : > { %8032 = vmatpush3.msra.mxu1 %v2605_v60  ;;  %3127 = vmatprep.subr.mxu0 %v8619_v0  ;;  %v7671_v60 = vld [vmem:[%s12230_s4 + $0x10] sm:$0xff] }
 0x496   : > { %8033 = vmatprep.subr.mxu1 %v2650_v55  ;;  %3128 = vmatpush1.msra.mxu0 %v2701_v56  ;;  %v3594_v55 = vld [vmem:[#allocation2 + $0xc38] sm:$0xff]  ;;  %v3591_v56 = vld [vmem:[#allocation2 + $0xc20] sm:$0xff] }
 0x497   : > { %8034 = vmatpush3.msra.mxu1 %v2602_v21  ;;  %3129 = vmatprep.subr.mxu0 %v8619_v0  ;;  %v3590_v21 = vld [vmem:[#allocation2 + $0xc18] sm:$0xff] }
 0x498   : > { %8035 = vmatprep.subr.mxu1 %v2647_v28  ;;  %3130 = vmatpush1.msra.mxu0 %v2698_v18  ;;  %v3588_v28 = vld [vmem:[#allocation2 + $0xc08] sm:$0xff] }
 0x499   : > { %8036 = vmatpush3.msra.mxu1 %v2599_v32  ;;  %3131 = vmatprep.subr.mxu0 %v8619_v0  ;;  %v3500_v18 = vld [vmem:[#allocation2 + $0x948] sm:$0xff]  ;;  %v3498_v32 = vld [vmem:[#allocation2 + $0x938] sm:$0xff] }
 0x49a   : > { %8037 = vmatprep.subr.mxu1 %v2644_v25  ;;  %3132 = vmatpush1.msra.mxu0 %v2695_v36  ;;  %v3587_v25 = vld [vmem:[#allocation2 + $0xc00] sm:$0xff]  ;;  %v3497_v36 = vld [vmem:[#allocation2 + $0x930] sm:$0xff] }
 0x49b   : > { %8038 = vmatpush3.msra.mxu1 %v2596_v2  ;;  %3133 = vmatprep.subr.mxu0 %v8619_v0  ;;  %v3585_v2 = vld [vmem:[#allocation2 + $0xbf0] sm:$0xff] }
 0x49c   : > { %8039 = vmatprep.subr.mxu1 %v2641_v26  ;;  %3134 = vmatpush1.msra.mxu0 %v2692_v59  ;;  %v3495_v26 = vld [vmem:[#allocation2 + $0x920] sm:$0xff]  ;;  %v3494_v59 = vld [vmem:[#allocation2 + $0x918] sm:$0xff] }
 0x49d   : > { %8040 = vmatpush3.msra.mxu1 %v2593_v41  ;;  %3135 = vmatprep.subr.mxu0 %v8619_v0  ;;  %v3584_v41 = vld [vmem:[#allocation2 + $0xbe8] sm:$0xff] }
 0x49e   : > { %8041 = vmatprep.subr.mxu1 %v2638_v38  ;;  %3136 = vmatpush1.msra.mxu0 %v2689_v29  ;;  %v3492_v38 = vld [vmem:[#allocation2 + $0x908] sm:$0xff]  ;;  %v3582_v29 = vld [vmem:[#allocation2 + $0xbd8] sm:$0xff] }
 0x49f   : > { %8042 = vmatpush3.msra.mxu1 %v2590_v33  ;;  %3137 = vmatprep.subr.mxu0 %v8619_v0  ;;  %v3491_v33 = vld [vmem:[#allocation2 + $0x900] sm:$0xff] }
 0x4a0   : > { %8043 = vmatprep.subr.mxu1 %v2635_v30  ;;  %3138 = vmatpush1.msra.mxu0 %v2686_v57  ;;  %v3581_v30 = vld [vmem:[#allocation2 + $0xbd0] sm:$0xff] }
 0x4a1   : > { %8044 = vmatpush3.msra.mxu1 %v2587_v15  ;;  %3139 = vmatprep.subr.mxu0 %v8619_v0  ;;  %v3489_v57 = vld [vmem:[#allocation2 + $0x8f0] sm:$0xff]  ;;  %v3579_v15 = vld [vmem:[#allocation2 + $0xbc0] sm:$0xff] }
 0x4a2   : > { %8045 = vmatprep.subr.mxu1 %v2632_v48  ;;  %3140 = vmatpush1.msra.mxu0 %v2683_v51  ;;  %v3488_v48 = vld [vmem:[#allocation2 + $0x8e8] sm:$0xff]  ;;  %v3578_v51 = vld [vmem:[#allocation2 + $0xbb8] sm:$0xff] }
 0x4a3   : > { %8046 = vmatpush3.msra.mxu1 %v2584_v58  ;;  %3141 = vmatprep.subr.mxu0 %v8619_v0  ;;  %v3486_v58 = vld [vmem:[#allocation2 + $0x8d8] sm:$0xff] }
 0x4a4   : > { %8047 = vmatprep.subr.mxu1 %v2629_v35  ;;  %3142 = vmatpush1.msra.mxu0 %v2680_v16  ;;  %v3576_v35 = vld [vmem:[#allocation2 + $0xba8] sm:$0xff]  ;;  %v3485_v16 = vld [vmem:[#allocation2 + $0x8d0] sm:$0xff] }
 0x4a5   : > { %8048 = vmatpush3.msra.mxu1 %v2581_v44  ;;  %3143 = vmatprep.subr.mxu0 %v8619_v0  ;;  %v3575_v44 = vld [vmem:[#allocation2 + $0xba0] sm:$0xff] }
 0x4a6   : > { %8049 = vmatprep.subr.mxu1 %v2626_v14  ;;  %3144 = vmatpush1.msra.mxu0 %v2677_v34  ;;  %v3483_v14 = vld [vmem:[#allocation2 + $0x8c0] sm:$0xff]  ;;  %v3573_v34 = vld [vmem:[#allocation2 + $0xb90] sm:$0xff] }
 0x4a7   : > { %8050 = vmatpush3.msra.mxu1 %v2578_v4  ;;  %3145 = vmatprep.subr.mxu0 %v8619_v0  ;;  %v3482_v4 = vld [vmem:[#allocation2 + $0x8b8] sm:$0xff] }
 0x4a8   : > { %8051 = vmatprep.subr.mxu1 %v2623_v7  ;;  %3146 = vmatpush1.msra.mxu0 %v2674_v8  ;;  %v3572_v7 = vld [vmem:[#allocation2 + $0xb88] sm:$0xff] }
 0x4a9   : > { %8052 = vmatpush3.msra.mxu1 %v2575_v63  ;;  %3147 = vmatprep.subr.mxu0 %v8619_v0  ;;  %v3480_v8 = vld [vmem:[#allocation2 + $0x8a8] sm:$0xff]  ;;  %v3570_v63 = vld [vmem:[#allocation2 + $0xb78] sm:$0xff] }
 0x4aa   : > { %3107 = vmatmul.mubr.f32.vlgmr.msra.gmra.mxu1 %v10443_v23  ;;  %3148 = vmatpush1.msra.mxu0 %v2671_v54  ;;  %v2722_v23 = vld [vmem:[#allocation2 + $0x7a8] sm:$0xff]  ;;  %v3479_v54 = vld [vmem:[#allocation2 + $0x8a0] sm:$0xff] }
 0x4ab   : > { %7673 = vmatprep.subr.msk.mxu1 %vm2227_vm3, %v10302_v39  ;;  %3111 = vmatprep.mubr.f32.mxu1 %v10452_v42  ;;  %v2719_v42 = vld [vmem:[#allocation2 + $0x790] sm:$0xff] }
 0x4ac   : > { %3173 = vmatprep.subr.mxu0 %v8619_v0  ;;  %7674 = vmatpush1.msk.msra.mxu1 %vm2227_vm3, %v10306_v62 }
 0x4ad   : > { %3174 = vmatpush2.msra.mxu0 %v2728_v10  ;;  %3251 = vmatprep.subr.mxu1 %v10318_v12  ;;  %v3477_v10 = vld [vmem:[#allocation2 + $0x890] sm:$0xff] }
 0x4ae   : > { %3175 = vmatprep.subr.mxu0 %v8619_v0  ;;  %3252 = vmatpush1.msra.mxu1 %v10322_v5 }
 0x4af   : > { %3112 = vmatmul.mubr.f32.gmra.mxu1 %v10449_v52  ;;  %3176 = vmatpush2.msra.mxu0 %v2725_v11  ;;  %v7672_v52 = vld [vmem:[%s12230_s4 + $0x18] sm:$0x7]  ;;  %v3476_v11 = vld [vmem:[#allocation2 + $0x888] sm:$0xff] }
 0x4b0   : > { %3253 = vmatprep.subr.mxu1 %v10328_v22  ;;  %3177 = vmatprep.subr.mxu0 %v8619_v0 }
 0x4b1   : > { %3254 = vmatpush1.msra.mxu1 %v10339_v61  ;;  %3178 = vmatpush2.msra.mxu0 %v2722_v23  ;;  %v3569_v23 = vld [vmem:[#allocation2 + $0xb70] sm:$0xff] }
 0x4b2   : > { %7677 = vmatprep.subr.msk.mxu1 %vm2227_vm3, %v10346_v43  ;;  %3179 = vmatprep.subr.mxu0 %v8619_v0 }
 0x4b3   : > { %3287 = vmatprep.mubr.f32.mxu1 %v8619_v0  ;;  %3180 = vmatpush2.msra.mxu0 %v2719_v42  ;;  %v3474_v42 = vld [vmem:[#allocation2 + $0x878] sm:$0xff] }
 0x4b4   : > { %7669 = vmatprep.mubr.msk.f32.mxu0 %vm2729_vm8, %v10458_v40  ;;  %7675 = vmatmul.mubr.msk.f32.vlgmr.msra.gmra.mxu1 %vm2220_vm10, %v7671_v60  ;;  %v3597_v40 = vld [vmem:[#allocation2 + $0xc50] sm:$0xff] }
 0x4b5   : > { %7678 = vmatpush1.msk.msra.mxu1 %vm2227_vm3, %v10349_v13  ;;  %3182 = vmatmul.mubr.f32.vlgmr.msra.gmra.mxu0 %v10456_v17  ;;  %v3596_v17 = vld [vmem:[#allocation2 + $0xc48] sm:$0xff] }
 0x4b6   : > { %3328 = vmatprep.subr.mxu1 %v10362_v50  ;;  %3293 = vmatprep.mubr.f32.mxu1 %v8619_v0 }
 0x4b7   : > { %3329 = vmatpush1.msra.mxu1 %v10373_v3  ;;  %7670 = vmatprep.mubr.msk.f32.mxu0 %vm2729_vm8, %v10468_v1  ;;  %v3593_v1 = vld [vmem:[#allocation2 + $0xc30] sm:$0xff] }
 0x4b8   : > { %3330 = vmatprep.subr.mxu1 %v10382_v27  ;;  %7676 = vmatmul.mubr.msk.f32.gmra.mxu1 %vm2220_vm10, %v7672_v52 }
 0x4b9   : > { %3331 = vmatpush1.msra.mxu1 %v10391_v6  ;;  %3187 = vmatmul.mubr.f32.gmra.mxu0 %v10461_v53  ;;  %v3501_v53 = vld [vmem:[#allocation2 + $0x950] sm:$0xff] }
 0x4ba   : > { %7681 = vmatprep.subr.msk.mxu1 %vm2227_vm3, %v10408_v46  ;;  %3364 = vmatprep.mubr.f32.mxu1 %v8619_v0 }
 0x4bb   : > { %3790 = vmatprep.subr.mxu0 %v3597_v40  ;;  %v3566_v40 = vld [vmem:[#allocation2 + $0xb58] sm:$0xff] }
 0x4bc   : > { %7679 = vmatmul.mubr.msk.f32.vlgmr.msra.gmra.mxu1 %vm2220_vm10, %v7671_v60  ;;  %3791 = vmatpush1.msra.mxu0 %v3596_v17  ;;  %v3471_v17 = vld [vmem:[#allocation2 + $0x860] sm:$0xff] }
 0x4bd   : > { %7682 = vmatpush1.msk.msra.mxu1 %vm2227_vm3, %v10410_v31  ;;  %3370 = vmatprep.mubr.f32.mxu1 %v8619_v0 }
 0x4be   : > { %3405 = vmatprep.subr.mxu1 %v10416_v47  ;;  %3792 = vmatprep.subr.mxu0 %v3594_v55  ;;  %v3564_v55 = vld [vmem:[#allocation2 + $0xb48] sm:$0xff] }
 0x4bf   : > { %3406 = vmatpush1.msra.mxu1 %v10419_v37  ;;  %3793 = vmatpush1.msra.mxu0 %v3593_v1  ;;  %v3563_v1 = vld [vmem:[#allocation2 + $0xb40] sm:$0xff] }
 0x4c0   : > { %3407 = vmatprep.subr.mxu1 %v10424_v45  ;;  %7680 = vmatmul.mubr.msk.f32.gmra.mxu1 %vm2220_vm10, %v7672_v52 }
 0x4c1   : > { %3408 = vmatpush1.msra.mxu1 %v10427_v9  ;;  %3441 = vmatprep.mubr.f32.mxu1 %v8619_v0 }
 0x4c2   : > { %3713 = vmatprep.subr.mxu1 %v3501_v53  ;;  %3794 = vmatprep.subr.mxu0 %v3591_v56  ;;  %v3470_v53 = vld [vmem:[#allocation2 + $0x858] sm:$0xff]  ;;  %v3561_v56 = vld [vmem:[#allocation2 + $0xb30] sm:$0xff] }
 0x4c3   : > { %3795 = vmatpush1.msra.mxu0 %v3590_v21  ;;  %v3468_v21 = vld [vmem:[#allocation2 + $0x848] sm:$0xff] }
 0x4c4   : > { %7683 = vmatmul.mubr.msk.f32.vlgmr.msra.gmra.mxu1 %vm2220_vm10, %v7671_v60  ;;  %3796 = vmatprep.subr.mxu0 %v3588_v28  ;;  %v3567_v60 = vld [vmem:[#allocation2 + $0xb60] sm:$0xff]  ;;  %v3560_v28 = vld [vmem:[#allocation2 + $0xb28] sm:$0xff] }
 0x4c5   : > { %3447 = vmatprep.mubr.f32.mxu1 %v8619_v0  ;;  %3714 = vmatpush1.msra.mxu1 %v3500_v18  ;;  %v3558_v18 = vld [vmem:[#allocation2 + $0xb18] sm:$0xff] }
 0x4c6   : > { %3715 = vmatprep.subr.mxu1 %v3498_v32  ;;  %3797 = vmatpush1.msra.mxu0 %v3587_v25  ;;  %v3467_v32 = vld [vmem:[#allocation2 + $0x840] sm:$0xff]  ;;  %v3557_v25 = vld [vmem:[#allocation2 + $0xb10] sm:$0xff] }
 0x4c7   : > { %3716 = vmatpush1.msra.mxu1 %v3497_v36  ;;  %3798 = vmatprep.subr.mxu0 %v3585_v2  ;;  %v3465_v36 = vld [vmem:[#allocation2 + $0x830] sm:$0xff]  ;;  %v3555_v2 = vld [vmem:[#allocation2 + $0xb00] sm:$0xff] }
 0x4c8   : > { %7684 = vmatmul.mubr.msk.f32.gmra.mxu1 %vm2220_vm10, %v7672_v52  ;;  %3717 = vmatprep.subr.mxu1 %v3495_v26  ;;  %v3473_v52 = vld [vmem:[#allocation2 + $0x870] sm:$0xff]  ;;  %v3464_v26 = vld [vmem:[#allocation2 + $0x828] sm:$0xff] }
 0x4c9   : > { %3718 = vmatpush1.msra.mxu1 %v3494_v59  ;;  %3799 = vmatpush1.msra.mxu0 %v3584_v41  ;;  %v3554_v59 = vld [vmem:[#allocation2 + $0xaf8] sm:$0xff] }
 0x4ca   : > { %3719 = vmatprep.subr.mxu1 %v3492_v38  ;;  %3800 = vmatprep.subr.mxu0 %v3582_v29  ;;  %v3462_v41 = vld [vmem:[#allocation2 + $0x818] sm:$0xff]  ;;  %v3552_v38 = vld [vmem:[#allocation2 + $0xae8] sm:$0xff]  ;;  %v3461_v29 = vld [vmem:[#allocation2 + $0x810] sm:$0xff] }
 0x4cb   : > { %3720 = vmatpush1.msra.mxu1 %v3491_v33  ;;  %3801 = vmatpush1.msra.mxu0 %v3581_v30  ;;  %v3551_v33 = vld [vmem:[#allocation2 + $0xae0] sm:$0xff] }
 0x4cc   : > { %3721 = vmatprep.subr.mxu1 %v3489_v57  ;;  %3802 = vmatprep.subr.mxu0 %v3579_v15  ;;  %v3459_v30 = vld [vmem:[#allocation2 + $0x800] sm:$0xff]  ;;  %v3645_v57 = vld [vmem:[#allocation2 + $0xdd0] sm:$0xff]  ;;  %v3458_v15 = vld [vmem:[#allocation2 + $0x7f8] sm:$0xff] }
 0x4cd   : > { %3722 = vmatpush1.msra.mxu1 %v3488_v48  ;;  %3803 = vmatpush1.msra.mxu0 %v3578_v51  ;;  %v3644_v48 = vld [vmem:[#allocation2 + $0xdc8] sm:$0xff] }
 0x4ce   : > { %3723 = vmatprep.subr.mxu1 %v3486_v58  ;;  %3804 = vmatprep.subr.mxu0 %v3576_v35  ;;  %v3456_v51 = vld [vmem:[#allocation2 + $0x7e8] sm:$0xff]  ;;  %v3642_v58 = vld [vmem:[#allocation2 + $0xdb8] sm:$0xff]  ;;  %v3455_v35 = vld [vmem:[#allocation2 + $0x7e0] sm:$0xff] }
 0x4cf   : > { %3724 = vmatpush1.msra.mxu1 %v3485_v16  ;;  %3805 = vmatpush1.msra.mxu0 %v3575_v44  ;;  %v3641_v16 = vld [vmem:[#allocation2 + $0xdb0] sm:$0xff] }
 0x4d0   : > { %3725 = vmatprep.subr.mxu1 %v3483_v14  ;;  %3806 = vmatprep.subr.mxu0 %v3573_v34  ;;  %v3549_v44 = vld [vmem:[#allocation2 + $0xad0] sm:$0xff]  ;;  %v3639_v14 = vld [vmem:[#allocation2 + $0xda0] sm:$0xff]  ;;  %v3548_v34 = vld [vmem:[#allocation2 + $0xac8] sm:$0xff] }
 0x4d1   : > { %3726 = vmatpush1.msra.mxu1 %v3482_v4  ;;  %3807 = vmatpush1.msra.mxu0 %v3572_v7  ;;  %v3638_v4 = vld [vmem:[#allocation2 + $0xd98] sm:$0xff] }
 0x4d2   : > { %3727 = vmatprep.subr.mxu1 %v3480_v8  ;;  %3808 = vmatprep.subr.mxu0 %v3570_v63  ;;  %v3546_v7 = vld [vmem:[#allocation2 + $0xab8] sm:$0xff]  ;;  %v3636_v8 = vld [vmem:[#allocation2 + $0xd88] sm:$0xff]  ;;  %v3545_v63 = vld [vmem:[#allocation2 + $0xab0] sm:$0xff] }
 0x4d3   : > { %3728 = vmatpush1.msra.mxu1 %v3479_v54  ;;  %3809 = vmatpush1.msra.mxu0 %v3569_v23  ;;  %v3635_v54 = vld [vmem:[#allocation2 + $0xd80] sm:$0xff]  ;;  %v3542_v23 = vld [vmem:[#allocation2 + $0xa98] sm:$0xff] }
 0x4d4   : > { %3729 = vmatprep.subr.mxu1 %v3477_v10  ;;  %3810 = vmatprep.subr.mxu0 %v3567_v60  ;;  %v3543_v10 = vld [vmem:[#allocation2 + $0xaa0] sm:$0xff]  ;;  %v3540_v60 = vld [vmem:[#allocation2 + $0xa88] sm:$0xff] }
 0x4d5   : > { %3730 = vmatpush1.msra.mxu1 %v3476_v11  ;;  %3811 = vmatpush1.msra.mxu0 %v3566_v40  ;;  %v3633_v11 = vld [vmem:[#allocation2 + $0xd70] sm:$0xff]  ;;  %v3539_v40 = vld [vmem:[#allocation2 + $0xa80] sm:$0xff] }
 0x4d6   : > { %3731 = vmatprep.subr.mxu1 %v3474_v42  ;;  %3812 = vmatprep.subr.mxu0 %v3564_v55  ;;  %v3632_v42 = vld [vmem:[#allocation2 + $0xd68] sm:$0xff]  ;;  %v3537_v55 = vld [vmem:[#allocation2 + $0xa70] sm:$0xff] }
 0x4d7   : > { %3732 = vmatpush1.msra.mxu1 %v3473_v52  ;;  %3813 = vmatpush1.msra.mxu0 %v3563_v1  ;;  %v3630_v52 = vld [vmem:[#allocation2 + $0xd58] sm:$0xff]  ;;  %v3627_v1 = vld [vmem:[#allocation2 + $0xd40] sm:$0xff] }
 0x4d8   : > { %3733 = vmatprep.subr.mxu1 %v3471_v17  ;;  %3814 = vmatprep.subr.mxu0 %v3561_v56  ;;  %v3629_v17 = vld [vmem:[#allocation2 + $0xd50] sm:$0xff]  ;;  %v3626_v56 = vld [vmem:[#allocation2 + $0xd38] sm:$0xff] }
 0x4d9   : > { %3734 = vmatpush1.msra.mxu1 %v3470_v53  ;;  %3815 = vmatpush1.msra.mxu0 %v3560_v28  ;;  %v3536_v53 = vld [vmem:[#allocation2 + $0xa68] sm:$0xff] }
 0x4da   : > { %3735 = vmatprep.subr.mxu1 %v3468_v21  ;;  %3816 = vmatprep.subr.mxu0 %v3558_v18  ;;  %v3534_v21 = vld [vmem:[#allocation2 + $0xa58] sm:$0xff]  ;;  %v3624_v28 = vld [vmem:[#allocation2 + $0xd28] sm:$0xff]  ;;  %v3533_v18 = vld [vmem:[#allocation2 + $0xa50] sm:$0xff] }
 0x4db   : > { %3736 = vmatpush1.msra.mxu1 %v3467_v32  ;;  %3817 = vmatpush1.msra.mxu0 %v3557_v25  ;;  %v3531_v32 = vld [vmem:[#allocation2 + $0xa40] sm:$0xff] }
 0x4dc   : > { %3737 = vmatprep.subr.mxu1 %v3465_v36  ;;  %3818 = vmatprep.subr.mxu0 %v3555_v2  ;;  %v3623_v25 = vld [vmem:[#allocation2 + $0xd20] sm:$0xff]  ;;  %v3530_v36 = vld [vmem:[#allocation2 + $0xa38] sm:$0xff]  ;;  %v3621_v2 = vld [vmem:[#allocation2 + $0xd10] sm:$0xff] }
 0x4dd   : > { %3738 = vmatpush1.msra.mxu1 %v3464_v26  ;;  %3819 = vmatpush1.msra.mxu0 %v3554_v59  ;;  %v3528_v26 = vld [vmem:[#allocation2 + $0xa28] sm:$0xff] }
 0x4de   : > { %3739 = vmatprep.subr.mxu1 %v3462_v41  ;;  %3820 = vmatprep.subr.mxu0 %v3552_v38  ;;  %v3620_v59 = vld [vmem:[#allocation2 + $0xd08] sm:$0xff]  ;;  %v3527_v41 = vld [vmem:[#allocation2 + $0xa20] sm:$0xff]  ;;  %v3618_v38 = vld [vmem:[#allocation2 + $0xcf8] sm:$0xff] }
 0x4df   : > { %3740 = vmatpush1.msra.mxu1 %v3461_v29  ;;  %3821 = vmatpush1.msra.mxu0 %v3551_v33  ;;  %v3525_v29 = vld [vmem:[#allocation2 + $0xa10] sm:$0xff]  ;;  %v3524_v33 = vld [vmem:[#allocation2 + $0xa08] sm:$0xff] }
 0x4e0   : > { %3741 = vmatprep.subr.mxu1 %v3459_v30  ;;  %3822 = vmatprep.subr.mxu0 %v3645_v57  ;;  %v3617_v30 = vld [vmem:[#allocation2 + $0xcf0] sm:$0xff]  ;;  %v3522_v57 = vld [vmem:[#allocation2 + $0x9f8] sm:$0xff] }
 0x4e1   : > { %3742 = vmatpush1.msra.mxu1 %v3458_v15  ;;  %3823 = vmatpush2.msra.mxu0 %v3644_v48  ;;  %v3615_v15 = vld [vmem:[#allocation2 + $0xce0] sm:$0xff]  ;;  %v3521_v48 = vld [vmem:[#allocation2 + $0x9f0] sm:$0xff] }
 0x4e2   : > { %3743 = vmatprep.subr.mxu1 %v3456_v51  ;;  %3824 = vmatprep.subr.mxu0 %v3642_v58  ;;  %v3614_v51 = vld [vmem:[#allocation2 + $0xcd8] sm:$0xff]  ;;  %v3519_v58 = vld [vmem:[#allocation2 + $0x9e0] sm:$0xff] }
 0x4e3   : > { %3744 = vmatpush1.msra.mxu1 %v3455_v35  ;;  %3825 = vmatpush2.msra.mxu0 %v3641_v16  ;;  %v3612_v35 = vld [vmem:[#allocation2 + $0xcc8] sm:$0xff]  ;;  %v3518_v16 = vld [vmem:[#allocation2 + $0x9d8] sm:$0xff] }
 0x4e4   : > { %3745 = vmatprep.subr.mxu1 %v3549_v44  ;;  %3826 = vmatprep.subr.mxu0 %v3639_v14  ;;  %v3611_v44 = vld [vmem:[#allocation2 + $0xcc0] sm:$0xff]  ;;  %v3516_v14 = vld [vmem:[#allocation2 + $0x9c8] sm:$0xff] }
 0x4e5   : > { %3746 = vmatpush2.msra.mxu1 %v3548_v34  ;;  %3827 = vmatpush2.msra.mxu0 %v3638_v4  ;;  %v3609_v34 = vld [vmem:[#allocation2 + $0xcb0] sm:$0xff]  ;;  %v3515_v4 = vld [vmem:[#allocation2 + $0x9c0] sm:$0xff] }
 0x4e6   : > { %3747 = vmatprep.subr.mxu1 %v3546_v7  ;;  %3828 = vmatprep.subr.mxu0 %v3636_v8  ;;  %v3608_v7 = vld [vmem:[#allocation2 + $0xca8] sm:$0xff]  ;;  %v3513_v8 = vld [vmem:[#allocation2 + $0x9b0] sm:$0xff] }
 0x4e7   : > { %3748 = vmatpush2.msra.mxu1 %v3545_v63  ;;  %3829 = vmatpush2.msra.mxu0 %v3635_v54  ;;  %v3606_v63 = vld [vmem:[#allocation2 + $0xc98] sm:$0xff]  ;;  %v3512_v54 = vld [vmem:[#allocation2 + $0x9a8] sm:$0xff] }
 0x4e8   : > { %3749 = vmatprep.subr.mxu1 %v3543_v10  ;;  %3830 = vmatprep.subr.mxu0 %v3633_v11  ;;  %v3605_v10 = vld [vmem:[#allocation2 + $0xc90] sm:$0xff]  ;;  %v3510_v11 = vld [vmem:[#allocation2 + $0x998] sm:$0xff] }
 0x4e9   : > { %3750 = vmatpush2.msra.mxu1 %v3542_v23  ;;  %3831 = vmatpush2.msra.mxu0 %v3632_v42  ;;  %v3603_v23 = vld [vmem:[#allocation2 + $0xc80] sm:$0xff]  ;;  %v3509_v42 = vld [vmem:[#allocation2 + $0x990] sm:$0xff] }
 0x4ea   : > { %3751 = vmatprep.subr.mxu1 %v3540_v60  ;;  %3832 = vmatprep.subr.mxu0 %v3630_v52  ;;  %v3602_v60 = vld [vmem:[#allocation2 + $0xc78] sm:$0xff]  ;;  %v3507_v52 = vld [vmem:[#allocation2 + $0x980] sm:$0xff] }
 0x4eb   : > { %3752 = vmatpush2.msra.mxu1 %v3539_v40  ;;  %3833 = vmatpush2.msra.mxu0 %v3629_v17  ;;  %v3600_v40 = vld [vmem:[#allocation2 + $0xc68] sm:$0xff]  ;;  %v3506_v17 = vld [vmem:[#allocation2 + $0x978] sm:$0xff] }
 0x4ec   : > { %3753 = vmatprep.subr.mxu1 %v3537_v55  ;;  %3834 = vmatprep.subr.mxu0 %v3627_v1  ;;  %v3599_v55 = vld [vmem:[#allocation2 + $0xc60] sm:$0xff]  ;;  %v3504_v1 = vld [vmem:[#allocation2 + $0x968] sm:$0xff] }
 0x4ed   : > { %3754 = vmatpush2.msra.mxu1 %v3536_v53  ;;  %3835 = vmatpush2.msra.mxu0 %v3626_v56  ;;  %v3550_v53 = vld [vmem:[#allocation2 + $0xad8] sm:$0xff]  ;;  %v3503_v56 = vld [vmem:[#allocation2 + $0x960] sm:$0xff] }
 0x4ee   : > { %3755 = vmatprep.subr.mxu1 %v3534_v21  ;;  %3836 = vmatprep.subr.mxu0 %v3624_v28  ;;  %v3693_v21 = vld [vmem:[#allocation2 + $0xf50] sm:$0xff] }
 0x4ef   : > { %3756 = vmatpush2.msra.mxu1 %v3533_v18  ;;  %3837 = vmatpush2.msra.mxu0 %v3623_v25 }
 0x4f0   : > { %3757 = vmatprep.subr.mxu1 %v3531_v32  ;;  %3838 = vmatprep.subr.mxu0 %v3621_v2 }
 0x4f1   : > { %3758 = vmatpush2.msra.mxu1 %v3530_v36  ;;  %3839 = vmatpush2.msra.mxu0 %v3620_v59 }
 0x4f2   : > { %3759 = vmatprep.subr.mxu1 %v3528_v26  ;;  %3840 = vmatprep.subr.mxu0 %v3618_v38 }
 0x4f3   : > { %3760 = vmatpush2.msra.mxu1 %v3527_v41  ;;  %3841 = vmatpush2.msra.mxu0 %v3617_v30 }
 0x4f4   : > { %3761 = vmatprep.subr.mxu1 %v3525_v29  ;;  %3842 = vmatprep.subr.mxu0 %v3615_v15 }
 0x4f5   : > { %3762 = vmatpush2.msra.mxu1 %v3524_v33  ;;  %3843 = vmatpush2.msra.mxu0 %v3614_v51 }
 0x4f6   : > { %3763 = vmatprep.subr.mxu1 %v3522_v57  ;;  %3844 = vmatprep.subr.mxu0 %v3612_v35 }
 0x4f7   : > { %3764 = vmatpush2.msra.mxu1 %v3521_v48  ;;  %3845 = vmatpush2.msra.mxu0 %v3611_v44 }
 0x4f8   : > { %3765 = vmatprep.subr.mxu1 %v3519_v58  ;;  %3846 = vmatprep.subr.mxu0 %v3609_v34 }
 0x4f9   : > { %3766 = vmatpush2.msra.mxu1 %v3518_v16  ;;  %3847 = vmatpush2.msra.mxu0 %v3608_v7 }
 0x4fa   : > { %3767 = vmatprep.subr.mxu1 %v3516_v14  ;;  %3848 = vmatprep.subr.mxu0 %v3606_v63 }
 0x4fb   : > { %3768 = vmatpush2.msra.mxu1 %v3515_v4  ;;  %3849 = vmatpush2.msra.mxu0 %v3605_v10 }
 0x4fc   : > { %3769 = vmatprep.subr.mxu1 %v3513_v8  ;;  %3850 = vmatprep.subr.mxu0 %v3603_v23 }
 0x4fd   : > { %3770 = vmatpush2.msra.mxu1 %v3512_v54  ;;  %3851 = vmatpush2.msra.mxu0 %v3602_v60 }
 0x4fe   : > { %3771 = vmatprep.subr.mxu1 %v3510_v11  ;;  %3852 = vmatprep.subr.mxu0 %v3600_v40 }
 0x4ff   : > { %3772 = vmatpush2.msra.mxu1 %v3509_v42  ;;  %3853 = vmatpush2.msra.mxu0 %v3599_v55 }
 0x500   : > { %3773 = vmatprep.subr.mxu1 %v3507_v52  ;;  %8059 = vmatprep.subr.mxu0 %v3550_v53  ;;  %v3692_v53 = vld [vmem:[#allocation2 + $0xf48] sm:$0xff] }
 0x501   : > { %3774 = vmatpush2.msra.mxu1 %v3506_v17 }
 0x502   : > { %3775 = vmatprep.subr.mxu1 %v3504_v1 }
 0x503   : > { %3776 = vmatpush2.msra.mxu1 %v3503_v56 }
 0x504   : > { %3867 = vmatprep.subr.mxu1 %v3693_v21  ;;  %v3690_v21 = vld [vmem:[#allocation2 + $0xf38] sm:$0xff] }
 0x51d   : > { %v2802_v28 = vpop.f32.mrf.mxu0 }
 0x51f   : > { %v2804_v18 = vpop.f32.mrf.mxu0 }
 0x521   : > { %v2808_v2 = vpop.f32.mrf.mxu0 }
 0x523   : > { %v2810_v38 = vpop.f32.mrf.mxu0 }
 0x525   : > { %v2879_v32 = vpop.f32.mrf.mxu1 }
 0x526   : > { %v2880_v25 = vadd.f32 %v2879_v32, %v2802_v28 }
 0x527   : > { %v2881_v36 = vpop.f32.mrf.mxu1 }
 0x528   : > { %v2882_v26 = vadd.f32 %v2881_v36, %v2804_v18  ;;  %v3689_v18 = vld [vmem:[#allocation2 + $0xf30] sm:$0xff] }
 0x52a   : > { %v2885_v59 = vpop.f32.mrf.mxu1 }
 0x52b   : > { %v2886_v41 = vadd.f32 %v2885_v59, %v2808_v2  ;;  %v3684_v59 = vld [vmem:[#allocation2 + $0xf08] sm:$0xff] }
 0x52c   : > { %v2887_v29 = vpop.f32.mrf.mxu1 }
 0x52d   : > { %v2888_v33 = vadd.f32 %v2887_v29, %v2810_v38  ;;  %v3683_v29 = vld [vmem:[#allocation2 + $0xf00] sm:$0xff] }
 0x546   : > { %v8015_v30 = vpop.f32.mrf.mxu1 }
 0x548   : > { %v8016_v57 = vpop.f32.mrf.mxu1 }
 0x549   : > { %v2956_v15 = vpop.f32.mrf.mxu0  ;;  %v8017_v48 = vadd.f32 %v8016_v57, %v8015_v30  ;;  %v3680_v57 = vld [vmem:[#allocation2 + $0xee8] sm:$0xff] }
 0x54a   : > { %v10545_v51 = vadd.f32 %v2956_v15, %v2880_v25  ;;  %v3687_v25 = vld [vmem:[#allocation2 + $0xf20] sm:$0xff]  ;;  %v3502_v15 = vld [vmem:[#allocation2 + $0x958] sm:$0xff] }
 0x54b   : > { %v2958_v58 = vpop.f32.mrf.mxu0 }
 0x54c   : > { %v10547_v35 = vadd.f32 %v2958_v58, %v2882_v26  ;;  %v8018_v16 = vpop.f32.mrf.mxu1  ;;  %v3686_v26 = vld [vmem:[#allocation2 + $0xf18] sm:$0xff]  ;;  %v3547_v58 = vld [vmem:[#allocation2 + $0xac0] sm:$0xff] }
 0x54e   : > { %v8019_v44 = vpop.f32.mrf.mxu1 }
 0x54f   : > { %v2962_v14 = vpop.f32.mrf.mxu0  ;;  %v8020_v34 = vadd.f32 %v8019_v44, %v8018_v16  ;;  %v3677_v44 = vld [vmem:[#allocation2 + $0xed0] sm:$0xff] }
 0x550   : > { %v10549_v4 = vadd.f32 %v2962_v14, %v2886_v41  ;;  %v3499_v14 = vld [vmem:[#allocation2 + $0x940] sm:$0xff] }
 0x551   : > { %v2964_v7 = vpop.f32.mrf.mxu0 }
 0x552   : > { %v10551_v8 = vadd.f32 %v2964_v7, %v2888_v33  ;;  %v3681_v33 = vld [vmem:[#allocation2 + $0xef0] sm:$0xff] }
 0x56a   : > { %v8053_v63 = vpop.f32.mrf.mxu1 }
 0x56c   : > { %v8054_v54 = vpop.f32.mrf.mxu1 }
 0x56d   : > { %v8055_v10 = vadd.f32 %v8054_v54, %v8053_v63  ;;  %v3544_v63 = vld [vmem:[#allocation2 + $0xaa8] sm:$0xff]  ;;  %v3674_v54 = vld [vmem:[#allocation2 + $0xeb8] sm:$0xff] }
 0x56f   : > { %v8056_v11 = vpop.f32.mrf.mxu1  ;;  %v3109_v23 = vadd.f32 %v8055_v10, %v8017_v48  ;;  %v3678_v48 = vld [vmem:[#allocation2 + $0xed8] sm:$0xff]  ;;  %v3496_v10 = vld [vmem:[#allocation2 + $0x928] sm:$0xff] }
 0x571   : > { %v8057_v42 = vpop.f32.mrf.mxu1 }
 0x572   : > { %v8058_v60 = vadd.f32 %v8057_v42, %v8056_v11  ;;  %v3672_v11 = vld [vmem:[#allocation2 + $0xea8] sm:$0xff]  ;;  %v3671_v42 = vld [vmem:[#allocation2 + $0xea0] sm:$0xff] }
 0x574   : > { %v10553_v52 = vpop.f32.mrf.mxu1  ;;  %v3114_v40 = vadd.f32 %v8058_v60, %v8020_v34  ;;  %v3675_v34 = vld [vmem:[#allocation2 + $0xec0] sm:$0xff]  ;;  %v3493_v60 = vld [vmem:[#allocation2 + $0x910] sm:$0xff] }
 0x575   : > { %v3183_v17 = vpop.f32.mrf.mxu0 }
 0x576   : > { %v10555_v55 = vadd.f32 %v3183_v17, %v3109_v23  ;;  %v10557_v1 = vpop.f32.mrf.mxu1  ;;  %v3541_v23 = vld [vmem:[#allocation2 + $0xa90] sm:$0xff]  ;;  %v3538_v17 = vld [vmem:[#allocation2 + $0xa78] sm:$0xff] }
 0x577   : > { %v3185_v56 = vpop.f32.mrf.mxu0  ;;  %3777 = vmatprep.mubr.f32.mxu1 %v10557_v1 }
 0x578   : > { %v10560_v28 = vpop.f32.mrf.mxu1  ;;  %3778 = vmatmul.mubr.f32.vlgmr.msra.gmra.mxu1 %v10553_v52  ;;  %v3490_v56 = vld [vmem:[#allocation2 + $0x8f8] sm:$0xff] }
 0x579   : > { %3868 = vmatpush1.msra.mxu1 %v3692_v53  ;;  %v3188_v32 = vpop.f32.mrf.mxu0  ;;  %v3668_v53 = vld [vmem:[#allocation2 + $0xe88] sm:$0xff] }
 0x57a   : > { %v10563_v36 = vadd.f32 %v3188_v32, %v3114_v40  ;;  %3869 = vmatprep.subr.mxu1 %v3690_v21  ;;  %v10565_v2 = vpop.f32.mrf.mxu1  ;;  %v3669_v40 = vld [vmem:[#allocation2 + $0xe90] sm:$0xff]  ;;  %v3666_v21 = vld [vmem:[#allocation2 + $0xe78] sm:$0xff] }
 0x57b   : > { %3870 = vmatpush1.msra.mxu1 %v3689_v18  ;;  %3783 = vmatprep.mubr.f32.mxu1 %v10565_v2  ;;  %v3190_v41 = vpop.f32.mrf.mxu0  ;;  %v3535_v18 = vld [vmem:[#allocation2 + $0xa60] sm:$0xff]  ;;  %v3665_v32 = vld [vmem:[#allocation2 + $0xe70] sm:$0xff] }
 0x57c   : > { %3871 = vmatprep.subr.mxu1 %v3687_v25  ;;  %v10568_v38 = vpop.f32.mrf.mxu1  ;;  %3784 = vmatmul.mubr.f32.gmra.mxu1 %v10560_v28  ;;  %v3487_v25 = vld [vmem:[#allocation2 + $0x8e0] sm:$0xff]  ;;  %v3662_v41 = vld [vmem:[#allocation2 + $0xe58] sm:$0xff] }
 0x57d   : > { %3872 = vmatpush1.msra.mxu1 %v3686_v26  ;;  %v3663_v26 = vld [vmem:[#allocation2 + $0xe60] sm:$0xff] }
 0x57e   : > { %3873 = vmatprep.subr.mxu1 %v3684_v59  ;;  %v10571_v30 = vpop.f32.mrf.mxu1  ;;  %v3532_v59 = vld [vmem:[#allocation2 + $0xa48] sm:$0xff] }
 0x57f   : > { %3874 = vmatpush1.msra.mxu1 %v3683_v29  ;;  %3854 = vmatprep.mubr.f32.mxu0 %v10571_v30  ;;  %v3484_v29 = vld [vmem:[#allocation2 + $0x8c8] sm:$0xff] }
 0x580   : > { %3875 = vmatprep.subr.mxu1 %v3681_v33  ;;  %v10574_v16 = vpop.f32.mrf.mxu1  ;;  %3855 = vmatmul.mubr.f32.vlgmr.msra.gmra.mxu0 %v10568_v38  ;;  %v3660_v33 = vld [vmem:[#allocation2 + $0xe48] sm:$0xff] }
 0x581   : > { %3876 = vmatpush1.msra.mxu1 %v3680_v57  ;;  %8060 = vmatpush3.msra.mxu0 %v3502_v15  ;;  %v3659_v57 = vld [vmem:[#allocation2 + $0xe40] sm:$0xff]  ;;  %v3481_v15 = vld [vmem:[#allocation2 + $0x8b0] sm:$0xff] }
 0x582   : > { %3877 = vmatprep.subr.mxu1 %v3678_v48  ;;  %8061 = vmatprep.subr.mxu0 %v3547_v58  ;;  %v10577_v7 = vpop.f32.mrf.mxu1  ;;  %v3657_v48 = vld [vmem:[#allocation2 + $0xe30] sm:$0xff]  ;;  %v3526_v58 = vld [vmem:[#allocation2 + $0xa18] sm:$0xff] }
 0x583   : > { %3878 = vmatpush1.msra.mxu1 %v3677_v44  ;;  %8062 = vmatpush3.msra.mxu0 %v3499_v14  ;;  %v3656_v44 = vld [vmem:[#allocation2 + $0xe28] sm:$0xff]  ;;  %v3478_v14 = vld [vmem:[#allocation2 + $0x898] sm:$0xff] }
 0x584   : > { %3860 = vmatprep.mubr.f32.mxu0 %v10577_v7  ;;  %3879 = vmatprep.subr.mxu1 %v3675_v34  ;;  %v3654_v34 = vld [vmem:[#allocation2 + $0xe18] sm:$0xff] }
 0x585   : > { %8063 = vmatprep.subr.mxu0 %v3544_v63  ;;  %3861 = vmatmul.mubr.f32.gmra.mxu0 %v10574_v16  ;;  %v3523_v63 = vld [vmem:[#allocation2 + $0xa00] sm:$0xff] }
 0x586   : > { %3880 = vmatpush1.msra.mxu1 %v3674_v54  ;;  %8064 = vmatpush3.msra.mxu0 %v3496_v10  ;;  %v3653_v54 = vld [vmem:[#allocation2 + $0xe10] sm:$0xff]  ;;  %v3475_v10 = vld [vmem:[#allocation2 + $0x880] sm:$0xff] }
 0x587   : > { %3881 = vmatprep.subr.mxu1 %v3672_v11  ;;  %8065 = vmatprep.subr.mxu0 %v3541_v23  ;;  %v3651_v11 = vld [vmem:[#allocation2 + $0xe00] sm:$0xff]  ;;  %v3520_v23 = vld [vmem:[#allocation2 + $0x9e8] sm:$0xff] }
 0x588   : > { %4008 = vmatprep.mubr.f32.mxu0 %v10557_v1  ;;  %3882 = vmatpush1.msra.mxu1 %v3671_v42  ;;  %v3529_v1 = vld [vmem:[#allocation2 + $0xa30] sm:$0xff]  ;;  %v3650_v42 = vld [vmem:[#allocation2 + $0xdf8] sm:$0xff] }
 0x589   : > { %8066 = vmatpush3.msra.mxu0 %v3493_v60  ;;  %3883 = vmatprep.subr.mxu1 %v3669_v40  ;;  %v3472_v60 = vld [vmem:[#allocation2 + $0x868] sm:$0xff] }
 0x58a   : > { %8067 = vmatprep.subr.mxu0 %v3538_v17  ;;  %3884 = vmatpush1.msra.mxu1 %v3668_v53  ;;  %v3648_v40 = vld [vmem:[#allocation2 + $0xde8] sm:$0xff]  ;;  %v3517_v17 = vld [vmem:[#allocation2 + $0x9d0] sm:$0xff]  ;;  %v3647_v53 = vld [vmem:[#allocation2 + $0xde0] sm:$0xff] }
 0x58b   : > { %8068 = vmatpush3.msra.mxu0 %v3490_v56  ;;  %3885 = vmatprep.subr.mxu1 %v3666_v21  ;;  %v3469_v56 = vld [vmem:[#allocation2 + $0x850] sm:$0xff] }
 0x58c   : > { %8069 = vmatprep.subr.mxu0 %v3535_v18  ;;  %3886 = vmatpush1.msra.mxu1 %v3665_v32  ;;  %v3705_v21 = vld [vmem:[#allocation2 + $0xfb0] sm:$0xff]  ;;  %v3514_v18 = vld [vmem:[#allocation2 + $0x9b8] sm:$0xff]  ;;  %v3704_v32 = vld [vmem:[#allocation2 + $0xfa8] sm:$0xff] }
 0x58d   : > { %8070 = vmatpush3.msra.mxu0 %v3487_v25  ;;  %3887 = vmatprep.subr.mxu1 %v3663_v26  ;;  %v10582_v25 = vpop.f32.mrf.mxu1  ;;  %v3466_v26 = vld [vmem:[#allocation2 + $0x838] sm:$0xff] }
 0x58e   : > { %8071 = vmatprep.subr.mxu0 %v3532_v59  ;;  %3888 = vmatpush1.msra.mxu1 %v3662_v41  ;;  %v3702_v59 = vld [vmem:[#allocation2 + $0xf98] sm:$0xff]  ;;  %v3511_v41 = vld [vmem:[#allocation2 + $0x9a0] sm:$0xff] }
 0x58f   : > { %8072 = vmatpush3.msra.mxu0 %v3484_v29  ;;  %3889 = vmatprep.subr.mxu1 %v3660_v33  ;;  %v3701_v29 = vld [vmem:[#allocation2 + $0xf90] sm:$0xff]  ;;  %v3463_v33 = vld [vmem:[#allocation2 + $0x820] sm:$0xff] }
 0x590   : > { %8073 = vmatprep.subr.mxu0 %v3529_v1  ;;  %3890 = vmatpush1.msra.mxu1 %v3659_v57  ;;  %v3699_v1 = vld [vmem:[#allocation2 + $0xf80] sm:$0xff]  ;;  %v3508_v57 = vld [vmem:[#allocation2 + $0x988] sm:$0xff] }
 0x591   : > { %8074 = vmatpush3.msra.mxu0 %v3481_v15  ;;  %3891 = vmatprep.subr.mxu1 %v3657_v48  ;;  %v3698_v15 = vld [vmem:[#allocation2 + $0xf78] sm:$0xff]  ;;  %v10584_v48 = vpop.f32.mrf.mxu1 }
 0x592   : > { %8075 = vmatprep.subr.mxu0 %v3526_v58  ;;  %3892 = vmatpush1.msra.mxu1 %v3656_v44  ;;  %v3460_v58 = vld [vmem:[#allocation2 + $0x808] sm:$0xff] }
 0x593   : > { %8076 = vmatpush3.msra.mxu0 %v3478_v14  ;;  %3893 = vmatprep.subr.mxu1 %v3654_v34  ;;  %v3696_v44 = vld [vmem:[#allocation2 + $0xf68] sm:$0xff]  ;;  %v3505_v14 = vld [vmem:[#allocation2 + $0x970] sm:$0xff]  ;;  %v3695_v34 = vld [vmem:[#allocation2 + $0xf60] sm:$0xff] }
 0x594   : > { %8077 = vmatprep.subr.mxu0 %v3523_v63  ;;  %3894 = vmatpush1.msra.mxu1 %v3653_v54  ;;  %v3457_v63 = vld [vmem:[#allocation2 + $0x7f0] sm:$0xff]  ;;  %v10586_v54 = vpop.f32.mrf.mxu1 }
 0x595   : > { %8078 = vmatpush3.msra.mxu0 %v3475_v10  ;;  %3895 = vmatprep.subr.mxu1 %v3651_v11  ;;  %v3646_v10 = vld [vmem:[#allocation2 + $0xdd8] sm:$0xff] }
 0x596   : > { %8079 = vmatprep.subr.mxu0 %v3520_v23  ;;  %3896 = vmatpush1.msra.mxu1 %v3650_v42  ;;  %v3598_v11 = vld [vmem:[#allocation2 + $0xc58] sm:$0xff]  ;;  %v3643_v42 = vld [vmem:[#allocation2 + $0xdc0] sm:$0xff] }
 0x597   : > { %8080 = vmatpush3.msra.mxu0 %v3472_v60  ;;  %3897 = vmatprep.subr.mxu1 %v3648_v40  ;;  %v3694_v23 = vld [vmem:[#allocation2 + $0xf58] sm:$0xff]  ;;  %v10593_v60 = vpop.f32.mrf.mxu1  ;;  %v3595_v40 = vld [vmem:[#allocation2 + $0xc40] sm:$0xff] }
 0x598   : > { %8081 = vmatprep.subr.mxu0 %v3517_v17  ;;  %3898 = vmatpush1.msra.mxu1 %v3647_v53  ;;  %v3691_v17 = vld [vmem:[#allocation2 + $0xf40] sm:$0xff]  ;;  %v3592_v53 = vld [vmem:[#allocation2 + $0xc28] sm:$0xff] }
 0x599   : > { %8082 = vmatpush3.msra.mxu0 %v3469_v56  ;;  %3923 = vmatprep.subr.mxu1 %v3705_v21  ;;  %v3688_v56 = vld [vmem:[#allocation2 + $0xf28] sm:$0xff]  ;;  %v3589_v21 = vld [vmem:[#allocation2 + $0xc10] sm:$0xff] }
 0x59a   : > { %8083 = vmatprep.subr.mxu0 %v3514_v18  ;;  %3924 = vmatpush2.msra.mxu1 %v3704_v32  ;;  %v3685_v18 = vld [vmem:[#allocation2 + $0xf10] sm:$0xff]  ;;  %v3634_v32 = vld [vmem:[#allocation2 + $0xd78] sm:$0xff] }
 0x59b   : > { %8084 = vmatpush3.msra.mxu0 %v3466_v26  ;;  %3925 = vmatprep.subr.mxu1 %v3702_v59  ;;  %v3586_v26 = vld [vmem:[#allocation2 + $0xbf8] sm:$0xff] }
 0x59c   : > { %8085 = vmatprep.subr.mxu0 %v3511_v41  ;;  %3926 = vmatpush2.msra.mxu1 %v3701_v29  ;;  %v3682_v59 = vld [vmem:[#allocation2 + $0xef8] sm:$0xff]  ;;  %v3631_v41 = vld [vmem:[#allocation2 + $0xd60] sm:$0xff] }
 0x59d   : > { %8086 = vmatpush3.msra.mxu0 %v3463_v33  ;;  %3927 = vmatprep.subr.mxu1 %v3699_v1  ;;  %v3679_v29 = vld [vmem:[#allocation2 + $0xee0] sm:$0xff]  ;;  %v3628_v33 = vld [vmem:[#allocation2 + $0xd48] sm:$0xff] }
 0x59e   : > { %8087 = vmatprep.subr.mxu0 %v3508_v57  ;;  %3928 = vmatpush2.msra.mxu1 %v3698_v15  ;;  %v3676_v1 = vld [vmem:[#allocation2 + $0xec8] sm:$0xff]  ;;  %v3625_v57 = vld [vmem:[#allocation2 + $0xd30] sm:$0xff] }
 0x59f   : > { %8088 = vmatpush3.msra.mxu0 %v3460_v58  ;;  %3929 = vmatprep.subr.mxu1 %v3696_v44  ;;  %v3577_v15 = vld [vmem:[#allocation2 + $0xbb0] sm:$0xff]  ;;  %v3622_v44 = vld [vmem:[#allocation2 + $0xd18] sm:$0xff] }
 0x5a0   : > { %8089 = vmatprep.subr.mxu0 %v3505_v14  ;;  %3930 = vmatpush2.msra.mxu1 %v3695_v34  ;;  %v3673_v58 = vld [vmem:[#allocation2 + $0xeb0] sm:$0xff]  ;;  %v3574_v14 = vld [vmem:[#allocation2 + $0xb98] sm:$0xff] }
 0x5a1   : > { %7685 = vmatprep.mubr.msk.f32.mxu1 %vm2729_vm8, %v10584_v48  ;;  %8090 = vmatpush3.msra.mxu0 %v3457_v63  ;;  %v3670_v34 = vld [vmem:[#allocation2 + $0xe98] sm:$0xff]  ;;  %v3619_v63 = vld [vmem:[#allocation2 + $0xd00] sm:$0xff] }
 0x5a2   : > { %3932 = vmatmul.mubr.f32.vlgmr.msra.gmra.mxu1 %v10582_v25  ;;  %4009 = vmatmul.mubr.f32.vlgmr.msra.gmra.mxu0 %v10553_v52  ;;  %v3640_v52 = vld [vmem:[#allocation2 + $0xda8] sm:$0xff] }
 0x5a3   : > { %8097 = vmatprep.subr.mxu0 %v3646_v10  ;;  %4094 = vmatprep.subr.mxu1 %v8619_v0  ;;  %v3571_v10 = vld [vmem:[#allocation2 + $0xb80] sm:$0xff] }
 0x5a4   : > { %4013 = vmatprep.mubr.f32.mxu0 %v10565_v2  ;;  %8098 = vmatpush3.msra.mxu0 %v3598_v11  ;;  %v3637_v2 = vld [vmem:[#allocation2 + $0xd90] sm:$0xff]  ;;  %v3667_v11 = vld [vmem:[#allocation2 + $0xe80] sm:$0xff] }
 0x5a5   : > { %4095 = vmatpush1.msra.mxu1 %v3694_v23  ;;  %8099 = vmatprep.subr.mxu0 %v3643_v42  ;;  %v3616_v23 = vld [vmem:[#allocation2 + $0xce8] sm:$0xff] }
 0x5a6   : > { %4096 = vmatprep.subr.mxu1 %v8619_v0  ;;  %7686 = vmatprep.mubr.msk.f32.mxu1 %vm2729_vm8, %v10593_v60  ;;  %v3568_v42 = vld [vmem:[#allocation2 + $0xb68] sm:$0xff] }
 0x5a7   : > { %8100 = vmatpush3.msra.mxu0 %v3595_v40  ;;  %4097 = vmatpush1.msra.mxu1 %v3691_v17  ;;  %v3664_v40 = vld [vmem:[#allocation2 + $0xe68] sm:$0xff]  ;;  %v3613_v17 = vld [vmem:[#allocation2 + $0xcd0] sm:$0xff] }
 0x5a8   : > { %3938 = vmatmul.mubr.f32.gmra.mxu1 %v10586_v54  ;;  %4014 = vmatmul.mubr.f32.gmra.mxu0 %v10560_v28  ;;  %v3583_v28 = vld [vmem:[#allocation2 + $0xbe0] sm:$0xff] }
 0x5a9   : > { %8101 = vmatprep.subr.mxu0 %v3640_v52  ;;  %4098 = vmatprep.subr.mxu1 %v8619_v0  ;;  %v3565_v52 = vld [vmem:[#allocation2 + $0xb50] sm:$0xff] }
 0x5aa   : > { %8102 = vmatpush3.msra.mxu0 %v3592_v53  ;;  %4083 = vmatprep.mubr.f32.mxu0 %v10571_v30  ;;  %v3580_v30 = vld [vmem:[#allocation2 + $0xbc8] sm:$0xff]  ;;  %v3661_v53 = vld [vmem:[#allocation2 + $0xe50] sm:$0xff] }
 0x5ab   : > { %4099 = vmatpush1.msra.mxu1 %v3688_v56  ;;  %8103 = vmatprep.subr.mxu0 %v3637_v2  ;;  %v3610_v56 = vld [vmem:[#allocation2 + $0xcb8] sm:$0xff] }
 0x5ac   : > { %4100 = vmatprep.subr.mxu1 %v8619_v0  ;;  %8104 = vmatpush3.msra.mxu0 %v3589_v21  ;;  %v3562_v2 = vld [vmem:[#allocation2 + $0xb38] sm:$0xff] }
 0x5ad   : > { %4101 = vmatpush1.msra.mxu1 %v3685_v18  ;;  %8105 = vmatprep.subr.mxu0 %v3634_v32  ;;  %v3658_v21 = vld [vmem:[#allocation2 + $0xe38] sm:$0xff]  ;;  %v3607_v18 = vld [vmem:[#allocation2 + $0xca0] sm:$0xff] }
 0x5ae   : > { %4102 = vmatprep.subr.mxu1 %v8619_v0  ;;  %8106 = vmatpush3.msra.mxu0 %v3586_v26  ;;  %v3559_v32 = vld [vmem:[#allocation2 + $0xb20] sm:$0xff] }
 0x5af   : > { %4103 = vmatpush1.msra.mxu1 %v3682_v59  ;;  %8107 = vmatprep.subr.mxu0 %v3631_v41  ;;  %v3655_v26 = vld [vmem:[#allocation2 + $0xe20] sm:$0xff]  ;;  %v3604_v59 = vld [vmem:[#allocation2 + $0xc88] sm:$0xff] }
 0x5b0   : > { %4104 = vmatprep.subr.mxu1 %v8619_v0  ;;  %8108 = vmatpush3.msra.mxu0 %v3583_v28  ;;  %v3556_v41 = vld [vmem:[#allocation2 + $0xb08] sm:$0xff] }
 0x5b1   : > { %4105 = vmatpush1.msra.mxu1 %v3679_v29  ;;  %8109 = vmatprep.subr.mxu0 %v3628_v33  ;;  %v3652_v28 = vld [vmem:[#allocation2 + $0xe08] sm:$0xff]  ;;  %v3601_v29 = vld [vmem:[#allocation2 + $0xc70] sm:$0xff] }
 0x5b2   : > { %4106 = vmatprep.subr.mxu1 %v8619_v0  ;;  %8110 = vmatpush3.msra.mxu0 %v3580_v30  ;;  %v3553_v33 = vld [vmem:[#allocation2 + $0xaf0] sm:$0xff] }
 0x5b3   : > { %4107 = vmatpush1.msra.mxu1 %v3676_v1  ;;  %8111 = vmatprep.subr.mxu0 %v3625_v57  ;;  %v3649_v30 = vld [vmem:[#allocation2 + $0xdf0] sm:$0xff]  ;;  %v3706_v1 = vld [vmem:[#allocation2 + $0xfb8] sm:$0xff]  ;;  %v3703_v57 = vld [vmem:[#allocation2 + $0xfa0] sm:$0xff] }
 0x5b4   : > { %4108 = vmatprep.subr.mxu1 %v8619_v0  ;;  %8112 = vmatpush3.msra.mxu0 %v3577_v15  ;;  %v4545_v15 = vld [vmem:[#allocation2 + $0x13c8] sm:$0xff] }
 0x5b5   : > { %4109 = vmatpush1.msra.mxu1 %v3673_v58  ;;  %8113 = vmatprep.subr.mxu0 %v3622_v44  ;;  %v4444_v58 = vld [vmem:[#allocation2 + $0x10a0] sm:$0xff]  ;;  %v4543_v44 = vld [vmem:[#allocation2 + $0x13b8] sm:$0xff] }
 0x5b6   : > { %4110 = vmatprep.subr.mxu1 %v8619_v0  ;;  %8114 = vmatpush3.msra.mxu0 %v3574_v14  ;;  %v4443_v14 = vld [vmem:[#allocation2 + $0x1098] sm:$0xff] }
 0x5b7   : > { %4111 = vmatpush1.msra.mxu1 %v3670_v34  ;;  %8115 = vmatprep.subr.mxu0 %v3619_v63  ;;  %v4542_v34 = vld [vmem:[#allocation2 + $0x13b0] sm:$0xff]  ;;  %v4441_v63 = vld [vmem:[#allocation2 + $0x1088] sm:$0xff] }
 0x5b8   : > { %4112 = vmatprep.subr.mxu1 %v8619_v0  ;;  %8116 = vmatpush3.msra.mxu0 %v3571_v10  ;;  %v4540_v10 = vld [vmem:[#allocation2 + $0x13a0] sm:$0xff] }
 0x5b9   : > { %4113 = vmatpush1.msra.mxu1 %v3667_v11  ;;  %8117 = vmatprep.subr.mxu0 %v3616_v23  ;;  %v4440_v11 = vld [vmem:[#allocation2 + $0x1080] sm:$0xff]  ;;  %v4539_v23 = vld [vmem:[#allocation2 + $0x1398] sm:$0xff] }
 0x5ba   : > { %4114 = vmatprep.subr.mxu1 %v8619_v0  ;;  %8118 = vmatpush3.msra.mxu0 %v3568_v42  ;;  %v4438_v42 = vld [vmem:[#allocation2 + $0x1070] sm:$0xff] }
 0x5bb   : > { %4115 = vmatpush1.msra.mxu1 %v3664_v40  ;;  %8119 = vmatprep.subr.mxu0 %v3613_v17  ;;  %v4537_v40 = vld [vmem:[#allocation2 + $0x1388] sm:$0xff] }
 0x5bc   : > { %4116 = vmatprep.subr.mxu1 %v8619_v0  ;;  %8120 = vmatpush3.msra.mxu0 %v3565_v52  ;;  %v4437_v17 = vld [vmem:[#allocation2 + $0x1068] sm:$0xff]  ;;  %v4536_v52 = vld [vmem:[#allocation2 + $0x1380] sm:$0xff] }
 0x5bd   : > { %4117 = vmatpush1.msra.mxu1 %v3661_v53  ;;  %8121 = vmatprep.subr.mxu0 %v3610_v56  ;;  %v4435_v53 = vld [vmem:[#allocation2 + $0x1058] sm:$0xff]  ;;  %v4534_v56 = vld [vmem:[#allocation2 + $0x1370] sm:$0xff] }
 0x5be   : > { %4118 = vmatprep.subr.mxu1 %v8619_v0  ;;  %8122 = vmatpush3.msra.mxu0 %v3562_v2  ;;  %v4434_v2 = vld [vmem:[#allocation2 + $0x1050] sm:$0xff] }
 0x5bf   : > { %4119 = vmatpush1.msra.mxu1 %v3658_v21  ;;  %8123 = vmatprep.subr.mxu0 %v3607_v18  ;;  %v4533_v21 = vld [vmem:[#allocation2 + $0x1368] sm:$0xff]  ;;  %v4432_v18 = vld [vmem:[#allocation2 + $0x1040] sm:$0xff] }
 0x5c0   : > { %4120 = vmatprep.subr.mxu1 %v8619_v0  ;;  %8124 = vmatpush3.msra.mxu0 %v3559_v32  ;;  %v4531_v32 = vld [vmem:[#allocation2 + $0x1358] sm:$0xff] }
 0x5c1   : > { %4121 = vmatpush1.msra.mxu1 %v3655_v26  ;;  %8125 = vmatprep.subr.mxu0 %v3604_v59  ;;  %v4431_v26 = vld [vmem:[#allocation2 + $0x1038] sm:$0xff]  ;;  %v4530_v59 = vld [vmem:[#allocation2 + $0x1350] sm:$0xff] }
 0x5c2   : > { %4122 = vmatprep.subr.mxu1 %v8619_v0  ;;  %8126 = vmatpush3.msra.mxu0 %v3556_v41  ;;  %v4429_v41 = vld [vmem:[#allocation2 + $0x1028] sm:$0xff] }
 0x5c3   : > { %4123 = vmatpush1.msra.mxu1 %v3652_v28  ;;  %8127 = vmatprep.subr.mxu0 %v3601_v29  ;;  %v4528_v28 = vld [vmem:[#allocation2 + $0x1340] sm:$0xff] }
 0x5c4   : > { %4124 = vmatprep.subr.mxu1 %v8619_v0  ;;  %8128 = vmatpush3.msra.mxu0 %v3553_v33  ;;  %v4428_v29 = vld [vmem:[#allocation2 + $0x1020] sm:$0xff]  ;;  %v4527_v33 = vld [vmem:[#allocation2 + $0x1338] sm:$0xff] }
 0x5c5   : > { %4125 = vmatpush1.msra.mxu1 %v3649_v30  ;;  %4084 = vmatmul.mubr.f32.vlgmr.msra.gmra.mxu0 %v10568_v38  ;;  %v3700_v38 = vld [vmem:[#allocation2 + $0xf88] sm:$0xff]  ;;  %v4426_v30 = vld [vmem:[#allocation2 + $0x1010] sm:$0xff] }
 0x5c6   : > { %4150 = vmatprep.subr.mxu1 %v8619_v0  ;;  %7691 = vmatprep.subr.msk.mxu0 %vm2227_vm3, %v10302_v39  ;;  %v3697_v39 = vld [vmem:[#allocation2 + $0xf70] sm:$0xff] }
 0x5c7   : > { %4088 = vmatprep.mubr.f32.mxu0 %v10577_v7  ;;  %4151 = vmatpush2.msra.mxu1 %v3706_v1  ;;  %v4449_v7 = vld [vmem:[#allocation2 + $0x10c8] sm:$0xff] }
 0x5c8   : > { %7692 = vmatpush1.msk.msra.mxu0 %vm2227_vm3, %v10306_v62  ;;  %4152 = vmatprep.subr.mxu1 %v8619_v0  ;;  %v7689_v62 = vld [vmem:[%s12230_s4 + $0x20] sm:$0xff]  ;;  %v4525_v1 = vld [vmem:[#allocation2 + $0x1328] sm:$0xff] }
 0x5c9   : > { %7687 = vmatprep.mubr.msk.f32.mxu1 %vm2729_vm8, %v10584_v48  ;;  %4212 = vmatprep.subr.mxu0 %v10318_v12  ;;  %v7690_v12 = vld [vmem:[%s12230_s4 + $0x28] sm:$0x7]  ;;  %v4447_v48 = vld [vmem:[#allocation2 + $0x10b8] sm:$0xff] }
 0x5ca   : > { %4153 = vmatpush2.msra.mxu1 %v3703_v57  ;;  %4213 = vmatpush1.msra.mxu0 %v10322_v5  ;;  %v4462_v5 = vld [vmem:[#allocation2 + $0x1130] sm:$0xff]  ;;  %v4425_v57 = vld [vmem:[#allocation2 + $0x1008] sm:$0xff] }
 0x5cb   : > { %4089 = vmatmul.mubr.f32.gmra.mxu0 %v10574_v16  ;;  %4154 = vmatprep.subr.mxu1 %v8619_v0  ;;  %v4549_v16 = vld [vmem:[#allocation2 + $0x13e8] sm:$0xff] }
 0x5cc   : > { %4214 = vmatprep.subr.mxu0 %v10328_v22  ;;  %4155 = vmatpush2.msra.mxu1 %v3700_v38  ;;  %v4461_v22 = vld [vmem:[#allocation2 + $0x1128] sm:$0xff]  ;;  %v4524_v38 = vld [vmem:[#allocation2 + $0x1320] sm:$0xff] }
 0x5cd   : > { %4215 = vmatpush1.msra.mxu0 %v10339_v61  ;;  %4156 = vmatprep.subr.mxu1 %v8619_v0  ;;  %v4459_v61 = vld [vmem:[#allocation2 + $0x1118] sm:$0xff] }
 0x5ce   : > { %7695 = vmatprep.subr.msk.mxu0 %vm2227_vm3, %v10346_v43  ;;  %4157 = vmatpush2.msra.mxu1 %v3697_v39  ;;  %v4558_v43 = vld [vmem:[#allocation2 + $0x1430] sm:$0xff]  ;;  %v4423_v39 = vld [vmem:[#allocation2 + $0xff8] sm:$0xff] }
 0x5cf   : > { %4248 = vmatprep.mubr.f32.mxu0 %v8619_v0  ;;  %4159 = vmatmul.mubr.f32.vlgmr.msra.gmra.mxu1 %v10582_v25  ;;  %v4548_v25 = vld [vmem:[#allocation2 + $0x13e0] sm:$0xff] }
 0x5d0   : > { %7693 = vmatmul.mubr.msk.f32.vlgmr.msra.gmra.mxu0 %vm2220_vm10, %v7689_v62  ;;  %7699 = vmatprep.subr.msk.mxu1 %vm2227_vm3, %v10408_v46  ;;  %v4554_v46 = vld [vmem:[#allocation2 + $0x1410] sm:$0xff] }
 0x5d1   : > { %7696 = vmatpush1.msk.msra.mxu0 %vm2227_vm3, %v10349_v13  ;;  %7700 = vmatpush1.msk.msra.mxu1 %vm2227_vm3, %v10410_v31  ;;  %v4557_v13 = vld [vmem:[#allocation2 + $0x1428] sm:$0xff]  ;;  %vm5178_vm3 = vcmask 1042432  }
 0x5d2   : > { %4289 = vmatprep.subr.mxu0 %v10362_v50  ;;  %4366 = vmatprep.subr.mxu1 %v10416_v47  ;;  %v4458_v50 = vld [vmem:[#allocation2 + $0x1110] sm:$0xff]  ;;  %v4453_v31 = vld [vmem:[#allocation2 + $0x10e8] sm:$0xff]  ;;  %v4552_v47 = vld [vmem:[#allocation2 + $0x1400] sm:$0xff] }
 0x5d3   : > { %4290 = vmatpush1.msra.mxu0 %v10373_v3  ;;  %7688 = vmatprep.mubr.msk.f32.mxu1 %vm2729_vm8, %v10593_v60  ;;  %v4456_v3 = vld [vmem:[#allocation2 + $0x1100] sm:$0xff]  ;;  %v4446_v60 = vld [vmem:[#allocation2 + $0x10b0] sm:$0xff] }
 0x5d4   : > { %4254 = vmatprep.mubr.f32.mxu0 %v8619_v0  ;;  %4291 = vmatprep.subr.mxu0 %v10382_v27  ;;  %v4555_v27 = vld [vmem:[#allocation2 + $0x1418] sm:$0xff] }
 0x5d5   : > { %4367 = vmatpush1.msra.mxu1 %v10419_v37  ;;  %7694 = vmatmul.mubr.msk.f32.gmra.mxu0 %vm2220_vm10, %v7690_v12  ;;  %v4452_v37 = vld [vmem:[#allocation2 + $0x10e0] sm:$0xff] }
 0x5d6   : > { %4164 = vmatmul.mubr.f32.gmra.mxu1 %v10586_v54  ;;  %4292 = vmatpush1.msra.mxu0 %v10391_v6  ;;  %v4455_v6 = vld [vmem:[#allocation2 + $0x10f8] sm:$0xff]  ;;  %v4546_v54 = vld [vmem:[#allocation2 + $0x13d0] sm:$0xff] }
 0x5d7   : > { %4368 = vmatprep.subr.mxu1 %v10424_v45  ;;  %4325 = vmatprep.mubr.f32.mxu0 %v8619_v0  ;;  %v4551_v45 = vld [vmem:[#allocation2 + $0x13f8] sm:$0xff] }
 0x5d8   : > { %4369 = vmatpush1.msra.mxu1 %v10427_v9  ;;  %4402 = vmatprep.mubr.f32.mxu1 %v8619_v0  ;;  %v4450_v9 = vld [vmem:[#allocation2 + $0x10d0] sm:$0xff] }
 0x5d9   : > { %7697 = vmatmul.mubr.msk.f32.vlgmr.msra.gmra.mxu0 %vm2220_vm10, %v7689_v62  ;;  %4674 = vmatprep.subr.mxu0 %v4462_v5  ;;  %v4521_v5 = vld [vmem:[#allocation2 + $0x1308] sm:$0xff] }
 0x5da   : > { %4331 = vmatprep.mubr.f32.mxu0 %v8619_v0  ;;  %7701 = vmatmul.mubr.msk.f32.vlgmr.msra.gmra.mxu1 %vm2220_vm10, %v7689_v62  ;;  %v4522_v62 = vld [vmem:[#allocation2 + $0x1310] sm:$0xff] }
 0x5db   : > { %4408 = vmatprep.mubr.f32.mxu1 %v8619_v0  ;;  %4675 = vmatpush1.msra.mxu0 %v4461_v22  ;;  %v4420_v22 = vld [vmem:[#allocation2 + $0xfe0] sm:$0xff] }
 0x5dc   : > { %4676 = vmatprep.subr.mxu0 %v4459_v61  ;;  %4751 = vmatprep.subr.mxu1 %v4558_v43  ;;  %v4519_v61 = vld [vmem:[#allocation2 + $0x12f8] sm:$0xff] }
 0x5dd   : > { %7698 = vmatmul.mubr.msk.f32.gmra.mxu0 %vm2220_vm10, %v7690_v12  ;;  %4752 = vmatpush1.msra.mxu1 %v4557_v13  ;;  %v4419_v43 = vld [vmem:[#allocation2 + $0xfd8] sm:$0xff]  ;;  %v4518_v13 = vld [vmem:[#allocation2 + $0x12f0] sm:$0xff] }
 0x5de   : > { %7702 = vmatmul.mubr.msk.f32.gmra.mxu1 %vm2220_vm10, %v7690_v12  ;;  %4677 = vmatpush1.msra.mxu0 %v4458_v50  ;;  %v4422_v12 = vld [vmem:[#allocation2 + $0xff0] sm:$0xff]  ;;  %v4417_v50 = vld [vmem:[#allocation2 + $0xfc8] sm:$0xff] }
 0x5df   : > { %4678 = vmatprep.subr.mxu0 %v4456_v3  ;;  %4753 = vmatprep.subr.mxu1 %v4555_v27  ;;  %v4516_v3 = vld [vmem:[#allocation2 + $0x12e0] sm:$0xff] }
 0x5e0   : > { %4679 = vmatpush1.msra.mxu0 %v4455_v6  ;;  %4754 = vmatpush1.msra.mxu1 %v4554_v46  ;;  %v4416_v27 = vld [vmem:[#allocation2 + $0xfc0] sm:$0xff]  ;;  %v4515_v6 = vld [vmem:[#allocation2 + $0x12d8] sm:$0xff]  ;;  %v4510_v46 = vld [vmem:[#allocation2 + $0x12b0] sm:$0xff] }
 0x5e1   : > { %4680 = vmatprep.subr.mxu0 %v4453_v31  ;;  %4755 = vmatprep.subr.mxu1 %v4552_v47  ;;  %v4513_v31 = vld [vmem:[#allocation2 + $0x12c8] sm:$0xff] }
 0x5e2   : > { %4681 = vmatpush1.msra.mxu0 %v4452_v37  ;;  %4756 = vmatpush1.msra.mxu1 %v4551_v45  ;;  %v4509_v47 = vld [vmem:[#allocation2 + $0x12a8] sm:$0xff]  ;;  %v4512_v37 = vld [vmem:[#allocation2 + $0x12c0] sm:$0xff]  ;;  %v4507_v45 = vld [vmem:[#allocation2 + $0x1298] sm:$0xff] }
 0x5e3   : > { %4682 = vmatprep.subr.mxu0 %v4450_v9  ;;  %4757 = vmatprep.subr.mxu1 %v4549_v16  ;;  %v4606_v9 = vld [vmem:[#allocation2 + $0x15b0] sm:$0xff] }
 0x5e4   : > { %4683 = vmatpush1.msra.mxu0 %v4449_v7  ;;  %4758 = vmatpush1.msra.mxu1 %v4548_v25  ;;  %v4506_v16 = vld [vmem:[#allocation2 + $0x1290] sm:$0xff]  ;;  %v4605_v7 = vld [vmem:[#allocation2 + $0x15a8] sm:$0xff]  ;;  %v4504_v25 = vld [vmem:[#allocation2 + $0x1280] sm:$0xff] }
 0x5e5   : > { %4684 = vmatprep.subr.mxu0 %v4447_v48  ;;  %4759 = vmatprep.subr.mxu1 %v4546_v54  ;;  %v4603_v48 = vld [vmem:[#allocation2 + $0x1598] sm:$0xff] }
 0x5e6   : > { %4685 = vmatpush1.msra.mxu0 %v4446_v60  ;;  %4760 = vmatpush1.msra.mxu1 %v4545_v15  ;;  %v4503_v54 = vld [vmem:[#allocation2 + $0x1278] sm:$0xff]  ;;  %v4602_v60 = vld [vmem:[#allocation2 + $0x1590] sm:$0xff]  ;;  %v4501_v15 = vld [vmem:[#allocation2 + $0x1268] sm:$0xff] }
 0x5e7   : > { %4686 = vmatprep.subr.mxu0 %v4444_v58  ;;  %4761 = vmatprep.subr.mxu1 %v4543_v44  ;;  %v4600_v58 = vld [vmem:[#allocation2 + $0x1580] sm:$0xff] }
 0x5e8   : > { %4687 = vmatpush1.msra.mxu0 %v4443_v14  ;;  %4762 = vmatpush1.msra.mxu1 %v4542_v34  ;;  %v4500_v44 = vld [vmem:[#allocation2 + $0x1260] sm:$0xff]  ;;  %v4599_v14 = vld [vmem:[#allocation2 + $0x1578] sm:$0xff]  ;;  %v4498_v34 = vld [vmem:[#allocation2 + $0x1250] sm:$0xff] }
 0x5e9   : > { %4688 = vmatprep.subr.mxu0 %v4441_v63  ;;  %4763 = vmatprep.subr.mxu1 %v4540_v10  ;;  %v4597_v63 = vld [vmem:[#allocation2 + $0x1568] sm:$0xff] }
 0x5ea   : > { %4689 = vmatpush1.msra.mxu0 %v4440_v11  ;;  %4764 = vmatpush1.msra.mxu1 %v4539_v23  ;;  %v4497_v10 = vld [vmem:[#allocation2 + $0x1248] sm:$0xff]  ;;  %v4596_v11 = vld [vmem:[#allocation2 + $0x1560] sm:$0xff]  ;;  %v4495_v23 = vld [vmem:[#allocation2 + $0x1238] sm:$0xff] }
 0x5eb   : > { %4690 = vmatprep.subr.mxu0 %v4438_v42  ;;  %4765 = vmatprep.subr.mxu1 %v4537_v40  ;;  %v4594_v42 = vld [vmem:[#allocation2 + $0x1550] sm:$0xff] }
 0x5ec   : > { %4691 = vmatpush1.msra.mxu0 %v4437_v17  ;;  %4766 = vmatpush1.msra.mxu1 %v4536_v52  ;;  %v4494_v40 = vld [vmem:[#allocation2 + $0x1230] sm:$0xff]  ;;  %v4593_v17 = vld [vmem:[#allocation2 + $0x1548] sm:$0xff]  ;;  %v4492_v52 = vld [vmem:[#allocation2 + $0x1220] sm:$0xff] }
 0x5ed   : > { %4692 = vmatprep.subr.mxu0 %v4435_v53  ;;  %4767 = vmatprep.subr.mxu1 %v4534_v56  ;;  %v4591_v53 = vld [vmem:[#allocation2 + $0x1538] sm:$0xff] }
 0x5ee   : > { %4693 = vmatpush1.msra.mxu0 %v4434_v2  ;;  %4768 = vmatpush1.msra.mxu1 %v4533_v21  ;;  %v4491_v56 = vld [vmem:[#allocation2 + $0x1218] sm:$0xff]  ;;  %v4590_v2 = vld [vmem:[#allocation2 + $0x1530] sm:$0xff]  ;;  %v4489_v21 = vld [vmem:[#allocation2 + $0x1208] sm:$0xff] }
 0x5ef   : > { %4694 = vmatprep.subr.mxu0 %v4432_v18  ;;  %4769 = vmatprep.subr.mxu1 %v4531_v32  ;;  %v4588_v18 = vld [vmem:[#allocation2 + $0x1520] sm:$0xff] }
 0x5f0   : > { %4695 = vmatpush1.msra.mxu0 %v4431_v26  ;;  %4770 = vmatpush1.msra.mxu1 %v4530_v59  ;;  %v4488_v32 = vld [vmem:[#allocation2 + $0x1200] sm:$0xff]  ;;  %v4587_v26 = vld [vmem:[#allocation2 + $0x1518] sm:$0xff]  ;;  %v4486_v59 = vld [vmem:[#allocation2 + $0x11f0] sm:$0xff] }
 0x5f1   : > { %4696 = vmatprep.subr.mxu0 %v4429_v41  ;;  %4771 = vmatprep.subr.mxu1 %v4528_v28  ;;  %v4585_v41 = vld [vmem:[#allocation2 + $0x1508] sm:$0xff] }
 0x5f2   : > { %4697 = vmatpush1.msra.mxu0 %v4428_v29  ;;  %4772 = vmatpush1.msra.mxu1 %v4527_v33  ;;  %v4485_v28 = vld [vmem:[#allocation2 + $0x11e8] sm:$0xff]  ;;  %v4584_v29 = vld [vmem:[#allocation2 + $0x1500] sm:$0xff]  ;;  %v4483_v33 = vld [vmem:[#allocation2 + $0x11d8] sm:$0xff] }
 0x5f3   : > { %4698 = vmatprep.subr.mxu0 %v4426_v30  ;;  %4773 = vmatprep.subr.mxu1 %v4525_v1  ;;  %v4582_v30 = vld [vmem:[#allocation2 + $0x14f0] sm:$0xff] }
 0x5f4   : > { %4699 = vmatpush1.msra.mxu0 %v4425_v57  ;;  %4774 = vmatpush1.msra.mxu1 %v4524_v38  ;;  %v4482_v1 = vld [vmem:[#allocation2 + $0x11d0] sm:$0xff]  ;;  %v4581_v57 = vld [vmem:[#allocation2 + $0x14e8] sm:$0xff]  ;;  %v4480_v38 = vld [vmem:[#allocation2 + $0x11c0] sm:$0xff] }
 0x5f5   : > { %4700 = vmatprep.subr.mxu0 %v4423_v39  ;;  %4775 = vmatprep.subr.mxu1 %v4522_v62  ;;  %v4579_v39 = vld [vmem:[#allocation2 + $0x14d8] sm:$0xff] }
 0x5f6   : > { %4701 = vmatpush1.msra.mxu0 %v4422_v12  ;;  %4776 = vmatpush1.msra.mxu1 %v4521_v5  ;;  %v4479_v62 = vld [vmem:[#allocation2 + $0x11b8] sm:$0xff]  ;;  %v4477_v12 = vld [vmem:[#allocation2 + $0x11a8] sm:$0xff]  ;;  %v4578_v5 = vld [vmem:[#allocation2 + $0x14d0] sm:$0xff] }
 0x5f7   : > { %4702 = vmatprep.subr.mxu0 %v4420_v22  ;;  %4777 = vmatprep.subr.mxu1 %v4519_v61  ;;  %v4476_v22 = vld [vmem:[#allocation2 + $0x11a0] sm:$0xff] }
 0x5f8   : > { %4703 = vmatpush1.msra.mxu0 %v4419_v43  ;;  %4778 = vmatpush1.msra.mxu1 %v4518_v13  ;;  %v4576_v61 = vld [vmem:[#allocation2 + $0x14c0] sm:$0xff]  ;;  %v4474_v43 = vld [vmem:[#allocation2 + $0x1190] sm:$0xff]  ;;  %v4473_v13 = vld [vmem:[#allocation2 + $0x1188] sm:$0xff] }
 0x5f9   : > { %4704 = vmatprep.subr.mxu0 %v4417_v50  ;;  %4779 = vmatprep.subr.mxu1 %v4516_v3  ;;  %v4471_v50 = vld [vmem:[#allocation2 + $0x1178] sm:$0xff] }
 0x5fa   : > { %4705 = vmatpush1.msra.mxu0 %v4416_v27  ;;  %4780 = vmatpush1.msra.mxu1 %v4515_v6  ;;  %v4575_v3 = vld [vmem:[#allocation2 + $0x14b8] sm:$0xff]  ;;  %v4470_v27 = vld [vmem:[#allocation2 + $0x1170] sm:$0xff]  ;;  %v4573_v6 = vld [vmem:[#allocation2 + $0x14a8] sm:$0xff] }
 0x5fb   : > { %4706 = vmatprep.subr.mxu0 %v4510_v46  ;;  %4781 = vmatprep.subr.mxu1 %v4513_v31  ;;  %v4572_v46 = vld [vmem:[#allocation2 + $0x14a0] sm:$0xff] }
 0x5fc   : > { %4707 = vmatpush2.msra.mxu0 %v4509_v47  ;;  %4782 = vmatpush1.msra.mxu1 %v4512_v37  ;;  %v4468_v31 = vld [vmem:[#allocation2 + $0x1160] sm:$0xff]  ;;  %v4570_v47 = vld [vmem:[#allocation2 + $0x1490] sm:$0xff]  ;;  %v4467_v37 = vld [vmem:[#allocation2 + $0x1158] sm:$0xff] }
 0x5fd   : > { %4708 = vmatprep.subr.mxu0 %v4507_v45  ;;  %4783 = vmatprep.subr.mxu1 %v4606_v9  ;;  %v4465_v45 = vld [vmem:[#allocation2 + $0x1148] sm:$0xff] }
 0x5fe   : > { %4709 = vmatpush2.msra.mxu0 %v4506_v16  ;;  %4784 = vmatpush2.msra.mxu1 %v4605_v7  ;;  %v4569_v9 = vld [vmem:[#allocation2 + $0x1488] sm:$0xff]  ;;  %v4464_v16 = vld [vmem:[#allocation2 + $0x1140] sm:$0xff]  ;;  %v4567_v7 = vld [vmem:[#allocation2 + $0x1478] sm:$0xff] }
 0x5ff   : > { %4710 = vmatprep.subr.mxu0 %v4504_v25  ;;  %4785 = vmatprep.subr.mxu1 %v4603_v48  ;;  %v4654_v25 = vld [vmem:[#allocation2 + $0x1730] sm:$0xff] }
 0x600   : > { %4711 = vmatpush2.msra.mxu0 %v4503_v54  ;;  %4786 = vmatpush2.msra.mxu1 %v4602_v60  ;;  %v4566_v48 = vld [vmem:[#allocation2 + $0x1470] sm:$0xff]  ;;  %v4564_v54 = vld [vmem:[#allocation2 + $0x1460] sm:$0xff]  ;;  %v4563_v60 = vld [vmem:[#allocation2 + $0x1458] sm:$0xff] }
 0x601   : > { %4712 = vmatprep.subr.mxu0 %v4501_v15  ;;  %4787 = vmatprep.subr.mxu1 %v4600_v58  ;;  %v4561_v15 = vld [vmem:[#allocation2 + $0x1448] sm:$0xff]  ;;  %v4560_v58 = vld [vmem:[#allocation2 + $0x1440] sm:$0xff] }
 0x602   : > { %4713 = vmatpush2.msra.mxu0 %v4500_v44  ;;  %4788 = vmatpush2.msra.mxu1 %v4599_v14  ;;  %v4511_v44 = vld [vmem:[#allocation2 + $0x12b8] sm:$0xff] }
 0x603   : > { %4714 = vmatprep.subr.mxu0 %v4498_v34  ;;  %4789 = vmatprep.subr.mxu1 %v4597_v63 }
 0x604   : > { %4715 = vmatpush2.msra.mxu0 %v4497_v10  ;;  %4790 = vmatpush2.msra.mxu1 %v4596_v11 }
 0x605   : > { %4716 = vmatprep.subr.mxu0 %v4495_v23  ;;  %4791 = vmatprep.subr.mxu1 %v4594_v42 }
 0x606   : > { %4717 = vmatpush2.msra.mxu0 %v4494_v40  ;;  %4792 = vmatpush2.msra.mxu1 %v4593_v17 }
 0x607   : > { %4718 = vmatprep.subr.mxu0 %v4492_v52  ;;  %4793 = vmatprep.subr.mxu1 %v4591_v53 }
 0x608   : > { %4719 = vmatpush2.msra.mxu0 %v4491_v56  ;;  %4794 = vmatpush2.msra.mxu1 %v4590_v2  ;;  %v2217_v2 = vld [vmem:[%s12232_s6] sm:$0x7] }
 0x609   : > { %4720 = vmatprep.subr.mxu0 %v4489_v21  ;;  %4795 = vmatprep.subr.mxu1 %v4588_v18  ;;  %v3196_v21 = vrot.slane %v2217_v2, %v10240_v24  ;;  %v3200_v18 = vrot.slane %v2217_v2, %v10233_v20 }
 0x60a   : > { %4721 = vmatpush2.msra.mxu0 %v4488_v32  ;;  %4796 = vmatpush2.msra.mxu1 %v4587_v26 }
 0x60b   : > { %4722 = vmatprep.subr.mxu0 %v4486_v59  ;;  %4797 = vmatprep.subr.mxu1 %v4585_v41  ;;  %v3208_v59 = vadd.f32 %v3196_v21, %v10545_v51  ;;  %v3212_v51 = vadd.f32 %v3200_v18, %v10551_v8 }
 0x60c   : > { %4723 = vmatpush2.msra.mxu0 %v4485_v28  ;;  %4798 = vmatpush2.msra.mxu1 %v4584_v29 }
 0x60d   : > { %4724 = vmatprep.subr.mxu0 %v4483_v33  ;;  %4799 = vmatprep.subr.mxu1 %v4582_v30  ;;  %v3209_v33 = vadd.f32 %v3200_v18, %v10547_v35 }
 0x60e   : > { %4725 = vmatpush2.msra.mxu0 %v4482_v1  ;;  %4800 = vmatpush2.msra.mxu1 %v4581_v57 }
 0x60f   : > { %4726 = vmatprep.subr.mxu0 %v4480_v38  ;;  %4801 = vmatprep.subr.mxu1 %v4579_v39 }
 0x610   : > { %4727 = vmatpush2.msra.mxu0 %v4479_v62  ;;  %4802 = vmatpush2.msra.mxu1 %v4578_v5 }
 0x611   : > { %4728 = vmatprep.subr.mxu0 %v4477_v12  ;;  %4803 = vmatprep.subr.mxu1 %v4576_v61  ;;  %v3211_v12 = vadd.f32 %v3196_v21, %v10549_v4  ;;  %v4638_v21 = vld [vmem:[#allocation2 + $0x16b0] sm:$0xff] }
 0x612   : > { %4729 = vmatpush2.msra.mxu0 %v4476_v22  ;;  %4804 = vmatpush2.msra.mxu1 %v4575_v3 }
 0x613   : > { %4730 = vmatprep.subr.mxu0 %v4474_v43  ;;  %4805 = vmatprep.subr.mxu1 %v4573_v6 }
 0x614   : > { %4731 = vmatpush2.msra.mxu0 %v4473_v13  ;;  %4806 = vmatpush2.msra.mxu1 %v4572_v46 }
 0x615   : > { %4732 = vmatprep.subr.mxu0 %v4471_v50  ;;  %4807 = vmatprep.subr.mxu1 %v4570_v47  ;;  %v3204_v47 = vrot.slane %v2217_v2, %v1073_v49  ;;  %v4508_v2 = vld [vmem:[#allocation2 + $0x12a0] sm:$0xff] }
 0x616   : > { %4733 = vmatpush2.msra.mxu0 %v4470_v27  ;;  %4808 = vmatpush2.msra.mxu1 %v4569_v9 }
 0x617   : > { %4734 = vmatprep.subr.mxu0 %v4468_v31  ;;  %4809 = vmatprep.subr.mxu1 %v4567_v7  ;;  %v3210_v9 = vadd.f32 %v3204_v47, %v10555_v55  ;;  %v4648_v55 = vld [vmem:[#allocation2 + $0x1700] sm:$0xff] }
 0x618   : > { %4735 = vmatpush2.msra.mxu0 %v4467_v37  ;;  %4810 = vmatpush2.msra.mxu1 %v4566_v48 }
 0x619   : > { %4736 = vmatprep.subr.mxu0 %v4465_v45  ;;  %4811 = vmatprep.subr.mxu1 %v4564_v54 }
 0x61a   : > { %4737 = vmatpush2.msra.mxu0 %v4464_v16  ;;  %4812 = vmatpush2.msra.mxu1 %v4563_v60  ;;  %v4653_v60 = vld [vmem:[#allocation2 + $0x1728] sm:$0xff] }
 0x61b   : > { %4828 = vmatprep.subr.mxu0 %v4654_v25  ;;  %4813 = vmatprep.subr.mxu1 %v4561_v15  ;;  %v4651_v15 = vld [vmem:[#allocation2 + $0x1718] sm:$0xff] }
 0x61c   : > { %4814 = vmatpush2.msra.mxu1 %v4560_v58 }
 0x61d   : > { %8135 = vmatprep.subr.mxu1 %v4511_v44  ;;  %v4647_v44 = vld [vmem:[#allocation2 + $0x16f8] sm:$0xff] }
 0x638   : > { %v3779_v14 = vpop.f32.mrf.mxu1 }
 0x63a   : > { %v3781_v34 = vpop.f32.mrf.mxu1 }
 0x63c   : > { %v3785_v23 = vpop.f32.mrf.mxu1 }
 0x63e   : > { %v3787_v52 = vpop.f32.mrf.mxu1 }
 0x640   : > { %v3856_v63 = vpop.f32.mrf.mxu0 }
 0x641   : > { %v3857_v10 = vadd.f32 %v3856_v63, %v3779_v14  ;;  %v3213_v14 = vadd.f32 %v3204_v47, %v10563_v36  ;;  %v4641_v36 = vld [vmem:[#allocation2 + $0x16c8] sm:$0xff]  ;;  %v4490_v47 = vld [vmem:[#allocation2 + $0x1210] sm:$0xff] }
 0x642   : > { %v3858_v11 = vpop.f32.mrf.mxu0 }
 0x643   : > { %v3859_v42 = vadd.f32 %v3858_v11, %v3781_v34  ;;  %v4644_v11 = vld [vmem:[#allocation2 + $0x16e0] sm:$0xff] }
 0x645   : > { %v3862_v40 = vpop.f32.mrf.mxu0 }
 0x646   : > { %v3863_v17 = vadd.f32 %v3862_v40, %v3785_v23 }
 0x647   : > { %v3864_v53 = vpop.f32.mrf.mxu0 }
 0x648   : > { %v3865_v56 = vadd.f32 %v3864_v53, %v3787_v52  ;;  %v4463_v53 = vld [vmem:[#allocation2 + $0x1138] sm:$0xff] }
 0x662   : > { %v3933_v32 = vpop.f32.mrf.mxu1  ;;  %v8091_v26 = vpop.f32.mrf.mxu0 }
 0x663   : > { %v3934_v41 = vadd.f32 %v3933_v32, %v3857_v10  ;;  %v4645_v10 = vld [vmem:[#allocation2 + $0x16e8] sm:$0xff]  ;;  %v4460_v32 = vld [vmem:[#allocation2 + $0x1120] sm:$0xff] }
 0x664   : > { %v3935_v28 = vpop.f32.mrf.mxu1  ;;  %v8092_v29 = vpop.f32.mrf.mxu0 }
 0x665   : > { %v10678_v30 = vadd.f32 %v3934_v41, %v3208_v59  ;;  %v3936_v1 = vadd.f32 %v3935_v28, %v3859_v42  ;;  %v8093_v57 = vadd.f32 %v8092_v29, %v8091_v26  ;;  %v4636_v26 = vld [vmem:[#allocation2 + $0x16a0] sm:$0xff]  ;;  %v4505_v59 = vld [vmem:[#allocation2 + $0x1288] sm:$0xff]  ;;  %v4635_v28 = vld [vmem:[#allocation2 + $0x1698] sm:$0xff] }
 0x666   : > { %v4457_v29 = vld [vmem:[#allocation2 + $0x1108] sm:$0xff] }
 0x667   : > { %v10680_v38 = vadd.f32 %v3936_v1, %v3209_v33  ;;  %v4633_v33 = vld [vmem:[#allocation2 + $0x1688] sm:$0xff]  ;;  %v4502_v1 = vld [vmem:[#allocation2 + $0x1270] sm:$0xff] }
 0x668   : > { %v3939_v39 = vpop.f32.mrf.mxu1  ;;  %v8094_v62 = vpop.f32.mrf.mxu0 }
 0x669   : > { %v3940_v5 = vadd.f32 %v3939_v39, %v3863_v17  ;;  %v4642_v17 = vld [vmem:[#allocation2 + $0x16d0] sm:$0xff] }
 0x66a   : > { %v3941_v22 = vpop.f32.mrf.mxu1  ;;  %v8095_v61 = vpop.f32.mrf.mxu0  ;;  %v4454_v39 = vld [vmem:[#allocation2 + $0x10f0] sm:$0xff] }
 0x66b   : > { %v10684_v43 = vadd.f32 %v3940_v5, %v3211_v12  ;;  %v3942_v13 = vadd.f32 %v3941_v22, %v3865_v56  ;;  %v8096_v50 = vadd.f32 %v8095_v61, %v8094_v62  ;;  %v4639_v56 = vld [vmem:[#allocation2 + $0x16b8] sm:$0xff]  ;;  %v4630_v62 = vld [vmem:[#allocation2 + $0x1670] sm:$0xff]  ;;  %v4629_v5 = vld [vmem:[#allocation2 + $0x1668] sm:$0xff] }
 0x66c   : > { %v4499_v12 = vld [vmem:[#allocation2 + $0x1258] sm:$0xff] }
 0x66d   : > { %v10686_v35 = vadd.f32 %v3942_v13, %v3212_v51  ;;  %v4451_v22 = vld [vmem:[#allocation2 + $0x10d8] sm:$0xff]  ;;  %v4496_v51 = vld [vmem:[#allocation2 + $0x1240] sm:$0xff]  ;;  %v4626_v13 = vld [vmem:[#allocation2 + $0x1650] sm:$0xff] }
 0x66e   : > { %v4627_v61 = vld [vmem:[#allocation2 + $0x1658] sm:$0xff] }
 0x685   : > { %v8129_v3 = vpop.f32.mrf.mxu0 }
 0x687   : > { %v8130_v27 = vpop.f32.mrf.mxu0 }
 0x688   : > { %v8131_v6 = vadd.f32 %v8130_v27, %v8129_v3  ;;  %v4624_v3 = vld [vmem:[#allocation2 + $0x1640] sm:$0xff]  ;;  %v4493_v27 = vld [vmem:[#allocation2 + $0x1228] sm:$0xff] }
 0x68a   : > { %v4086_v46 = vadd.f32 %v8131_v6, %v8093_v57  ;;  %v4632_v57 = vld [vmem:[#allocation2 + $0x1680] sm:$0xff]  ;;  %v4623_v6 = vld [vmem:[#allocation2 + $0x1638] sm:$0xff] }
 0x68b   : > { %v8132_v31 = vpop.f32.mrf.mxu0 }
 0x68d   : > { %v8133_v4 = vpop.f32.mrf.mxu0 }
 0x68e   : > { %v8134_v37 = vadd.f32 %v8133_v4, %v8132_v31  ;;  %v4621_v31 = vld [vmem:[#allocation2 + $0x1628] sm:$0xff]  ;;  %v4620_v4 = vld [vmem:[#allocation2 + $0x1620] sm:$0xff] }
 0x68f   : > { %v4160_v45 = vpop.f32.mrf.mxu1 }
 0x690   : > { %v4161_v8 = vadd.f32 %v4160_v45, %v4086_v46  ;;  %v10691_v16 = vpop.f32.mrf.mxu0  ;;  %v4091_v7 = vadd.f32 %v8134_v37, %v8096_v50  ;;  %v4448_v50 = vld [vmem:[#allocation2 + $0x10c0] sm:$0xff]  ;;  %v4445_v46 = vld [vmem:[#allocation2 + $0x10a8] sm:$0xff]  ;;  %v4442_v37 = vld [vmem:[#allocation2 + $0x1090] sm:$0xff] }
 0x691   : > { %v4162_v25 = vpop.f32.mrf.mxu1  ;;  %v4618_v45 = vld [vmem:[#allocation2 + $0x1610] sm:$0xff] }
 0x692   : > { %v10693_v48 = vadd.f32 %v4161_v8, %v3210_v9  ;;  %v10695_v54 = vpop.f32.mrf.mxu0  ;;  %v4487_v9 = vld [vmem:[#allocation2 + $0x11f8] sm:$0xff]  ;;  %v4617_v8 = vld [vmem:[#allocation2 + $0x1608] sm:$0xff] }
 0x693   : > { %4738 = vmatprep.mubr.f32.mxu0 %v10695_v54  ;;  %v4615_v25 = vld [vmem:[#allocation2 + $0x15f8] sm:$0xff] }
 0x694   : > { %4739 = vmatmul.mubr.f32.vlgmr.msra.gmra.mxu0 %v10691_v16 }
 0x695   : > { %v10699_v49 = vpop.f32.mrf.mxu0  ;;  %4829 = vmatpush1.msra.mxu0 %v4653_v60  ;;  %v4614_v60 = vld [vmem:[#allocation2 + $0x15f0] sm:$0xff] }
 0x696   : > { %v4165_v58 = vpop.f32.mrf.mxu1  ;;  %4830 = vmatprep.subr.mxu0 %v4651_v15  ;;  %v4436_v15 = vld [vmem:[#allocation2 + $0x1060] sm:$0xff] }
 0x697   : > { %v4166_v34 = vadd.f32 %v4165_v58, %v4091_v7  ;;  %v10702_v63 = vpop.f32.mrf.mxu0  ;;  %4831 = vmatpush1.msra.mxu0 %v4650_v19  ;;  %v4439_v7 = vld [vmem:[#allocation2 + $0x1078] sm:$0xff]  ;;  %v4612_v19 = vld [vmem:[#allocation2 + $0x15e0] sm:$0xff] }
 0x698   : > { %4832 = vmatprep.subr.mxu0 %v4648_v55  ;;  %4744 = vmatprep.mubr.f32.mxu0 %v10702_v63  ;;  %v4167_v23 = vpop.f32.mrf.mxu1  ;;  %v4481_v55 = vld [vmem:[#allocation2 + $0x11c8] sm:$0xff]  ;;  %v4611_v58 = vld [vmem:[#allocation2 + $0x15d8] sm:$0xff] }
 0x699   : > { %v10705_v42 = vadd.f32 %v4166_v34, %v3213_v14  ;;  %v10707_v40 = vpop.f32.mrf.mxu0  ;;  %4833 = vmatpush1.msra.mxu0 %v4647_v44  ;;  %v4433_v44 = vld [vmem:[#allocation2 + $0x1048] sm:$0xff]  ;;  %v4478_v34 = vld [vmem:[#allocation2 + $0x11b0] sm:$0xff] }
 0x69a   : > { %4745 = vmatmul.mubr.f32.gmra.mxu0 %v10699_v49  ;;  %4834 = vmatprep.subr.mxu0 %v4645_v10  ;;  %v4609_v14 = vld [vmem:[#allocation2 + $0x15c8] sm:$0xff]  ;;  %v4608_v10 = vld [vmem:[#allocation2 + $0x15c0] sm:$0xff]  ;;  %v4666_v23 = vld [vmem:[#allocation2 + $0x1790] sm:$0xff] }
 0x69b   : > { %v10710_v52 = vpop.f32.mrf.mxu0  ;;  %4835 = vmatpush1.msra.mxu0 %v4644_v11  ;;  %v4430_v11 = vld [vmem:[#allocation2 + $0x1030] sm:$0xff] }
 0x69c   : > { %4815 = vmatprep.mubr.f32.mxu1 %v10710_v52  ;;  %4836 = vmatprep.subr.mxu0 %v4642_v17  ;;  %v4475_v17 = vld [vmem:[#allocation2 + $0x1198] sm:$0xff] }
 0x69d   : > { %v10713_v18 = vpop.f32.mrf.mxu0  ;;  %4816 = vmatmul.mubr.f32.vlgmr.msra.gmra.mxu1 %v10707_v40  ;;  %4837 = vmatpush1.msra.mxu0 %v4641_v36  ;;  %v4665_v36 = vld [vmem:[#allocation2 + $0x1788] sm:$0xff] }
 0x69e   : > { %8136 = vmatpush3.msra.mxu1 %v4463_v53  ;;  %4838 = vmatprep.subr.mxu0 %v4639_v56  ;;  %v4427_v53 = vld [vmem:[#allocation2 + $0x1018] sm:$0xff]  ;;  %v10721_v56 = vpop.f32.mrf.mxu1 }
 0x69f   : > { %8137 = vmatprep.subr.mxu1 %v4508_v2  ;;  %v10716_v41 = vpop.f32.mrf.mxu0  ;;  %4839 = vmatpush1.msra.mxu0 %v4638_v21  ;;  %v4663_v2 = vld [vmem:[#allocation2 + $0x1778] sm:$0xff]  ;;  %v4472_v21 = vld [vmem:[#allocation2 + $0x1180] sm:$0xff] }
 0x6a0   : > { %8138 = vmatpush3.msra.mxu1 %v4460_v32  ;;  %4821 = vmatprep.mubr.f32.mxu1 %v10716_v41  ;;  %v4662_v32 = vld [vmem:[#allocation2 + $0x1770] sm:$0xff] }
 0x6a1   : > { %4840 = vmatprep.subr.mxu0 %v4636_v26  ;;  %8139 = vmatprep.subr.mxu1 %v4505_v59  ;;  %v4424_v26 = vld [vmem:[#allocation2 + $0x1000] sm:$0xff] }
 0x6a2   : > { %4822 = vmatmul.mubr.f32.gmra.mxu1 %v10713_v18  ;;  %4841 = vmatpush1.msra.mxu0 %v4635_v28  ;;  %v4660_v59 = vld [vmem:[#allocation2 + $0x1760] sm:$0xff]  ;;  %v4469_v28 = vld [vmem:[#allocation2 + $0x1168] sm:$0xff] }
 0x6a3   : > { %8140 = vmatpush3.msra.mxu1 %v4457_v29  ;;  %4842 = vmatprep.subr.mxu0 %v4633_v33  ;;  %v4659_v29 = vld [vmem:[#allocation2 + $0x1758] sm:$0xff]  ;;  %v4421_v33 = vld [vmem:[#allocation2 + $0xfe8] sm:$0xff] }
 0x6a4   : > { %8141 = vmatprep.subr.mxu1 %v4502_v1  ;;  %4969 = vmatprep.mubr.f32.mxu1 %v10695_v54  ;;  %v4484_v54 = vld [vmem:[#allocation2 + $0x11e0] sm:$0xff]  ;;  %v4406_v1 = vpop.f32.mrf.mxu1 }
 0x6a5   : > { %4843 = vmatpush1.msra.mxu0 %v4632_v57  ;;  %8142 = vmatpush3.msra.mxu1 %v4454_v39  ;;  %v4657_v57 = vld [vmem:[#allocation2 + $0x1748] sm:$0xff]  ;;  %v4466_v39 = vld [vmem:[#allocation2 + $0x1150] sm:$0xff] }
 0x6a6   : > { %4844 = vmatprep.subr.mxu0 %v4630_v62  ;;  %8143 = vmatprep.subr.mxu1 %v4499_v12  ;;  %v4656_v62 = vld [vmem:[#allocation2 + $0x1740] sm:$0xff]  ;;  %v4418_v12 = vld [vmem:[#allocation2 + $0xfd0] sm:$0xff] }
 0x6a7   : > { %4845 = vmatpush1.msra.mxu0 %v4629_v5  ;;  %8144 = vmatpush3.msra.mxu1 %v4451_v22  ;;  %v10723_v5 = vpop.f32.mrf.mxu1  ;;  %v4607_v22 = vld [vmem:[#allocation2 + $0x15b8] sm:$0xff] }
 0x6a8   : > { %4846 = vmatprep.subr.mxu0 %v4627_v61  ;;  %8145 = vmatprep.subr.mxu1 %v4496_v51  ;;  %v4559_v61 = vld [vmem:[#allocation2 + $0x1438] sm:$0xff] }
 0x6a9   : > { %4847 = vmatpush1.msra.mxu0 %v4626_v13  ;;  %8146 = vmatpush3.msra.mxu1 %v4448_v50  ;;  %v4655_v51 = vld [vmem:[#allocation2 + $0x1738] sm:$0xff]  ;;  %v4604_v13 = vld [vmem:[#allocation2 + $0x15a0] sm:$0xff]  ;;  %v10730_v50 = vpop.f32.mrf.mxu1 }
 0x6aa   : > { %4848 = vmatprep.subr.mxu0 %v4624_v3  ;;  %8147 = vmatprep.subr.mxu1 %v4493_v27  ;;  %v4556_v3 = vld [vmem:[#allocation2 + $0x1420] sm:$0xff] }
 0x6ab   : > { %4849 = vmatpush1.msra.mxu0 %v4623_v6  ;;  %8148 = vmatpush3.msra.mxu1 %v4445_v46  ;;  %v4652_v27 = vld [vmem:[#allocation2 + $0x1720] sm:$0xff]  ;;  %v4601_v6 = vld [vmem:[#allocation2 + $0x1588] sm:$0xff] }
 0x6ac   : > { %4850 = vmatprep.subr.mxu0 %v4621_v31  ;;  %8149 = vmatprep.subr.mxu1 %v4490_v47  ;;  %v4649_v46 = vld [vmem:[#allocation2 + $0x1708] sm:$0xff]  ;;  %v4550_v31 = vld [vmem:[#allocation2 + $0x13f0] sm:$0xff] }
 0x6ad   : > { %4851 = vmatpush1.msra.mxu0 %v4620_v4  ;;  %8150 = vmatpush3.msra.mxu1 %v4442_v37  ;;  %v4646_v47 = vld [vmem:[#allocation2 + $0x16f0] sm:$0xff]  ;;  %v4595_v4 = vld [vmem:[#allocation2 + $0x1558] sm:$0xff] }
 0x6ae   : > { %4852 = vmatprep.subr.mxu0 %v4618_v45  ;;  %8151 = vmatprep.subr.mxu1 %v4487_v9  ;;  %v4547_v37 = vld [vmem:[#allocation2 + $0x13d8] sm:$0xff]  ;;  %v4592_v45 = vld [vmem:[#allocation2 + $0x1540] sm:$0xff] }
 0x6af   : > { %4853 = vmatpush1.msra.mxu0 %v4617_v8  ;;  %8152 = vmatpush3.msra.mxu1 %v4439_v7  ;;  %v4544_v9 = vld [vmem:[#allocation2 + $0x13c0] sm:$0xff]  ;;  %v4541_v7 = vld [vmem:[#allocation2 + $0x13a8] sm:$0xff] }
 0x6b0   : > { %4854 = vmatprep.subr.mxu0 %v4615_v25  ;;  %8153 = vmatprep.subr.mxu1 %v4484_v54  ;;  %v4640_v8 = vld [vmem:[#allocation2 + $0x16c0] sm:$0xff]  ;;  %v4637_v25 = vld [vmem:[#allocation2 + $0x16a8] sm:$0xff]  ;;  %v4586_v54 = vld [vmem:[#allocation2 + $0x1510] sm:$0xff] }
 0x6b1   : > { %4855 = vmatpush1.msra.mxu0 %v4614_v60  ;;  %8154 = vmatpush3.msra.mxu1 %v4436_v15  ;;  %v4538_v60 = vld [vmem:[#allocation2 + $0x1390] sm:$0xff] }
 0x6b2   : > { %4856 = vmatprep.subr.mxu0 %v4612_v19  ;;  %8155 = vmatprep.subr.mxu1 %v4481_v55  ;;  %v4634_v15 = vld [vmem:[#allocation2 + $0x1690] sm:$0xff]  ;;  %v4583_v19 = vld [vmem:[#allocation2 + $0x14f8] sm:$0xff] }
 0x6b3   : > { %4857 = vmatpush1.msra.mxu0 %v4611_v58  ;;  %8156 = vmatpush3.msra.mxu1 %v4433_v44  ;;  %v4535_v55 = vld [vmem:[#allocation2 + $0x1378] sm:$0xff]  ;;  %v4580_v44 = vld [vmem:[#allocation2 + $0x14e0] sm:$0xff] }
 0x6b4   : > { %4858 = vmatprep.subr.mxu0 %v4609_v14  ;;  %8157 = vmatprep.subr.mxu1 %v4478_v34  ;;  %v4631_v58 = vld [vmem:[#allocation2 + $0x1678] sm:$0xff]  ;;  %v4532_v14 = vld [vmem:[#allocation2 + $0x1360] sm:$0xff] }
 0x6b5   : > { %4859 = vmatpush1.msra.mxu0 %v4608_v10  ;;  %8158 = vmatpush3.msra.mxu1 %v4430_v11  ;;  %v4628_v34 = vld [vmem:[#allocation2 + $0x1660] sm:$0xff]  ;;  %v4577_v10 = vld [vmem:[#allocation2 + $0x14c8] sm:$0xff] }
 0x6b6   : > { %4884 = vmatprep.subr.mxu0 %v4666_v23  ;;  %8159 = vmatprep.subr.mxu1 %v4475_v17  ;;  %v4529_v11 = vld [vmem:[#allocation2 + $0x1348] sm:$0xff]  ;;  %v4574_v17 = vld [vmem:[#allocation2 + $0x14b0] sm:$0xff] }
 0x6b7   : > { %4885 = vmatpush2.msra.mxu0 %v4665_v36  ;;  %8160 = vmatpush3.msra.mxu1 %v4427_v53  ;;  %v4625_v23 = vld [vmem:[#allocation2 + $0x1648] sm:$0xff]  ;;  %v4526_v36 = vld [vmem:[#allocation2 + $0x1330] sm:$0xff] }
 0x6b8   : > { %4886 = vmatprep.subr.mxu0 %v4663_v2  ;;  %8161 = vmatprep.subr.mxu1 %v4472_v21  ;;  %v4622_v53 = vld [vmem:[#allocation2 + $0x1630] sm:$0xff]  ;;  %v4571_v2 = vld [vmem:[#allocation2 + $0x1498] sm:$0xff] }
 0x6b9   : > { %4887 = vmatpush2.msra.mxu0 %v4662_v32  ;;  %8162 = vmatpush3.msra.mxu1 %v4424_v26  ;;  %v4523_v21 = vld [vmem:[#allocation2 + $0x1318] sm:$0xff]  ;;  %v4568_v26 = vld [vmem:[#allocation2 + $0x1480] sm:$0xff] }
 0x6ba   : > { %4888 = vmatprep.subr.mxu0 %v4660_v59  ;;  %8163 = vmatprep.subr.mxu1 %v4469_v28  ;;  %v4619_v32 = vld [vmem:[#allocation2 + $0x1618] sm:$0xff]  ;;  %v4520_v59 = vld [vmem:[#allocation2 + $0x1300] sm:$0xff] }
 0x6bb   : > { %4889 = vmatpush2.msra.mxu0 %v4659_v29  ;;  %8164 = vmatpush3.msra.mxu1 %v4421_v33  ;;  %v4616_v28 = vld [vmem:[#allocation2 + $0x1600] sm:$0xff]  ;;  %v4565_v29 = vld [vmem:[#allocation2 + $0x1468] sm:$0xff] }
 0x6bc   : > { %4890 = vmatprep.subr.mxu0 %v4657_v57  ;;  %8165 = vmatprep.subr.mxu1 %v4466_v39  ;;  %v4517_v33 = vld [vmem:[#allocation2 + $0x12e8] sm:$0xff]  ;;  %v4562_v57 = vld [vmem:[#allocation2 + $0x1450] sm:$0xff] }
 0x6bd   : > { %4891 = vmatpush2.msra.mxu0 %v4656_v62  ;;  %7703 = vmatprep.mubr.msk.f32.mxu0 %vm2729_vm8, %v4406_v1  ;;  %v4514_v39 = vld [vmem:[#allocation2 + $0x12d0] sm:$0xff] }
 0x6be   : > { %8166 = vmatpush3.msra.mxu1 %v4418_v12  ;;  %4893 = vmatmul.mubr.f32.vlgmr.msra.gmra.mxu0 %v10721_v56  ;;  %v4610_v62 = vld [vmem:[#allocation2 + $0x15d0] sm:$0xff]  ;;  %v4667_v12 = vld [vmem:[#allocation2 + $0x1798] sm:$0xff] }
 0x6bf   : > { %4970 = vmatmul.mubr.f32.vlgmr.msra.gmra.mxu1 %v10691_v16  ;;  %8173 = vmatprep.subr.mxu1 %v4607_v22  ;;  %v4553_v16 = vld [vmem:[#allocation2 + $0x1408] sm:$0xff]  ;;  %v4664_v22 = vld [vmem:[#allocation2 + $0x1780] sm:$0xff] }
 0x6c0   : > { %5055 = vmatprep.subr.mxu0 %v8619_v0  ;;  %4974 = vmatprep.mubr.f32.mxu1 %v10702_v63  ;;  %v4598_v63 = vld [vmem:[#allocation2 + $0x1570] sm:$0xff] }
 0x6c1   : > { %8174 = vmatpush3.msra.mxu1 %v4559_v61  ;;  %5056 = vmatpush1.msra.mxu0 %v4655_v51  ;;  %v4661_v61 = vld [vmem:[#allocation2 + $0x1768] sm:$0xff]  ;;  %v4658_v51 = vld [vmem:[#allocation2 + $0x1750] sm:$0xff] }
 0x6c2   : > { %8175 = vmatprep.subr.mxu1 %v4604_v13  ;;  %5057 = vmatprep.subr.mxu0 %v8619_v0  ;;  %v5411_v13 = vld [vmem:[%s12234_s8 + $0x290] sm:$0xff] }
 0x6c3   : > { %7704 = vmatprep.mubr.msk.f32.mxu0 %vm2729_vm8, %v10730_v50  ;;  %8176 = vmatpush3.msra.mxu1 %v4556_v3  ;;  %v5409_v3 = vld [vmem:[%s12234_s8 + $0x280] sm:$0xff] }
 0x6c4   : > { %5058 = vmatpush1.msra.mxu0 %v4652_v27  ;;  %4975 = vmatmul.mubr.f32.gmra.mxu1 %v10699_v49  ;;  %v4643_v49 = vld [vmem:[#allocation2 + $0x16d8] sm:$0xff] }
 0x6c5   : > { %4899 = vmatmul.mubr.f32.gmra.mxu0 %v10723_v5  ;;  %8177 = vmatprep.subr.mxu1 %v4601_v6  ;;  %v5408_v27 = vld [vmem:[%s12234_s8 + $0x278] sm:$0xff]  ;;  %v5407_v6 = vld [vmem:[%s12234_s8 + $0x270] sm:$0xff] }
 0x6c6   : > { %5059 = vmatprep.subr.mxu0 %v8619_v0  ;;  %8178 = vmatpush3.msra.mxu1 %v4553_v16  ;;  %v5406_v16 = vld [vmem:[%s12234_s8 + $0x268] sm:$0xff] }
 0x6c7   : > { %5044 = vmatprep.mubr.f32.mxu1 %v10710_v52  ;;  %5060 = vmatpush1.msra.mxu0 %v4649_v46  ;;  %v4589_v52 = vld [vmem:[#allocation2 + $0x1528] sm:$0xff]  ;;  %v5405_v46 = vld [vmem:[%s12234_s8 + $0x260] sm:$0xff] }
 0x6c8   : > { %7705 = vmatprep.mubr.msk.f32.mxu0 %vm2729_vm8, %v4406_v1  ;;  %8179 = vmatprep.subr.mxu1 %v4598_v63  ;;  %v4613_v1 = vld [vmem:[#allocation2 + $0x15e8] sm:$0xff]  ;;  %v5404_v63 = vld [vmem:[%s12234_s8 + $0x258] sm:$0xff] }
 0x6c9   : > { %5061 = vmatprep.subr.mxu0 %v8619_v0  ;;  %8180 = vmatpush3.msra.mxu1 %v4550_v31  ;;  %v5403_v31 = vld [vmem:[%s12234_s8 + $0x250] sm:$0xff] }
 0x6ca   : > { %5062 = vmatpush1.msra.mxu0 %v4646_v47  ;;  %8181 = vmatprep.subr.mxu1 %v4595_v4  ;;  %v5402_v47 = vld [vmem:[%s12234_s8 + $0x248] sm:$0xff]  ;;  %v5401_v4 = vld [vmem:[%s12234_s8 + $0x240] sm:$0xff] }
 0x6cb   : > { %5063 = vmatprep.subr.mxu0 %v8619_v0  ;;  %8182 = vmatpush3.msra.mxu1 %v4547_v37  ;;  %v5400_v37 = vld [vmem:[%s12234_s8 + $0x238] sm:$0xff] }
 0x6cc   : > { %5064 = vmatpush1.msra.mxu0 %v4643_v49  ;;  %8183 = vmatprep.subr.mxu1 %v4592_v45  ;;  %v5399_v49 = vld [vmem:[%s12234_s8 + $0x230] sm:$0xff]  ;;  %v5398_v45 = vld [vmem:[%s12234_s8 + $0x228] sm:$0xff] }
 0x6cd   : > { %5065 = vmatprep.subr.mxu0 %v8619_v0  ;;  %8184 = vmatpush3.msra.mxu1 %v4544_v9  ;;  %v5397_v9 = vld [vmem:[%s12234_s8 + $0x220] sm:$0xff] }
 0x6ce   : > { %5066 = vmatpush1.msra.mxu0 %v4640_v8  ;;  %8185 = vmatprep.subr.mxu1 %v4589_v52  ;;  %v5396_v8 = vld [vmem:[%s12234_s8 + $0x218] sm:$0xff]  ;;  %v5395_v52 = vld [vmem:[%s12234_s8 + $0x210] sm:$0xff] }
 0x6cf   : > { %5067 = vmatprep.subr.mxu0 %v8619_v0  ;;  %8186 = vmatpush3.msra.mxu1 %v4541_v7  ;;  %v5394_v7 = vld [vmem:[%s12234_s8 + $0x208] sm:$0xff] }
 0x6d0   : > { %5068 = vmatpush1.msra.mxu0 %v4637_v25  ;;  %8187 = vmatprep.subr.mxu1 %v4586_v54  ;;  %v5393_v25 = vld [vmem:[%s12234_s8 + $0x200] sm:$0xff] }
 0x6d1   : > { %5069 = vmatprep.subr.mxu0 %v8619_v0  ;;  %8188 = vmatpush3.msra.mxu1 %v4538_v60 }
 0x6d2   : > { %5070 = vmatpush1.msra.mxu0 %v4634_v15  ;;  %8189 = vmatprep.subr.mxu1 %v4583_v19 }
 0x6d3   : > { %5071 = vmatprep.subr.mxu0 %v8619_v0  ;;  %8190 = vmatpush3.msra.mxu1 %v4535_v55 }
 0x6d4   : > { %5072 = vmatpush1.msra.mxu0 %v4631_v58  ;;  %8191 = vmatprep.subr.mxu1 %v4580_v44 }
 0x6d5   : > { %5073 = vmatprep.subr.mxu0 %v8619_v0  ;;  %8192 = vmatpush3.msra.mxu1 %v4532_v14 }
 0x6d6   : > { %5074 = vmatpush1.msra.mxu0 %v4628_v34  ;;  %8193 = vmatprep.subr.mxu1 %v4577_v10 }
 0x6d7   : > { %5075 = vmatprep.subr.mxu0 %v8619_v0  ;;  %8194 = vmatpush3.msra.mxu1 %v4529_v11 }
 0x6d8   : > { %5076 = vmatpush1.msra.mxu0 %v4625_v23  ;;  %8195 = vmatprep.subr.mxu1 %v4574_v17 }
 0x6d9   : > { %5077 = vmatprep.subr.mxu0 %v8619_v0  ;;  %8196 = vmatpush3.msra.mxu1 %v4526_v36 }
 0x6da   : > { %5078 = vmatpush1.msra.mxu0 %v4622_v53  ;;  %8197 = vmatprep.subr.mxu1 %v4571_v2 }
 0x6db   : > { %5079 = vmatprep.subr.mxu0 %v8619_v0  ;;  %8198 = vmatpush3.msra.mxu1 %v4523_v21 }
 0x6dc   : > { %5080 = vmatpush1.msra.mxu0 %v4619_v32  ;;  %8199 = vmatprep.subr.mxu1 %v4568_v26 }
 0x6dd   : > { %5081 = vmatprep.subr.mxu0 %v8619_v0  ;;  %8200 = vmatpush3.msra.mxu1 %v4520_v59 }
 0x6de   : > { %5082 = vmatpush1.msra.mxu0 %v4616_v28  ;;  %8201 = vmatprep.subr.mxu1 %v4565_v29 }
 0x6df   : > { %5083 = vmatprep.subr.mxu0 %v8619_v0  ;;  %8202 = vmatpush3.msra.mxu1 %v4517_v33 }
 0x6e0   : > { %5084 = vmatpush1.msra.mxu0 %v4613_v1  ;;  %8203 = vmatprep.subr.mxu1 %v4562_v57 }
 0x6e1   : > { %5085 = vmatprep.subr.mxu0 %v8619_v0  ;;  %8204 = vmatpush3.msra.mxu1 %v4514_v39 }
 0x6e2   : > { %5086 = vmatpush1.msra.mxu0 %v4610_v62  ;;  %5045 = vmatmul.mubr.f32.vlgmr.msra.gmra.mxu1 %v10707_v40  ;;  %v5416_v40 = vld [vmem:[%s12234_s8 + $0x2b8] sm:$0xff] }
 0x6e3   : > { %5111 = vmatprep.subr.mxu0 %v8619_v0  ;;  %5049 = vmatprep.mubr.f32.mxu1 %v10716_v41  ;;  %v5414_v41 = vld [vmem:[%s12234_s8 + $0x2a8] sm:$0xff] }
 0x6e4   : > { %5112 = vmatpush2.msra.mxu0 %v4667_v12 }
 0x6e5   : > { %5113 = vmatprep.subr.mxu0 %v8619_v0 }
 0x6e6   : > { %5114 = vmatpush2.msra.mxu0 %v4664_v22  ;;  %5050 = vmatmul.mubr.f32.gmra.mxu1 %v10713_v18  ;;  %v5415_v18 = vld [vmem:[%s12234_s8 + $0x2b0] sm:$0xff] }
 0x6e7   : > { %5115 = vmatprep.subr.mxu0 %v8619_v0  ;;  %5252 = vmatprep.mubr.f32.mxu1 %v8619_v0 }
 0x6e8   : > { %5116 = vmatpush2.msra.mxu0 %v4661_v61 }
 0x6e9   : > { %5117 = vmatprep.subr.mxu0 %v8619_v0 }
 0x6ea   : > { %5118 = vmatpush2.msra.mxu0 %v4658_v51 }
 0x6eb   : > { %5120 = vmatmul.mubr.f32.vlgmr.msra.gmra.mxu0 %v10721_v56  ;;  %5500 = vmatprep.subr.mxu0 %v5416_v40  ;;  %v5413_v56 = vld [vmem:[%s12234_s8 + $0x2a0] sm:$0xff] }
 0x6ec   : > { %7706 = vmatprep.mubr.msk.f32.mxu0 %vm2729_vm8, %v10730_v50  ;;  %5501 = vmatpush1.msra.mxu0 %v5415_v18  ;;  %v5410_v50 = vld [vmem:[%s12234_s8 + $0x288] sm:$0xff]  ;;  %vm7174_vm8 = vcmask 1043456  }
 0x6ed   : > { %5502 = vmatprep.subr.mxu0 %v5414_v41 }
 0x6ee   : > { %5503 = vmatpush1.msra.mxu0 %v5413_v56 }
 0x6ef   : > { %5125 = vmatmul.mubr.f32.gmra.mxu0 %v10723_v5  ;;  %v5412_v5 = vld [vmem:[%s12234_s8 + $0x298] sm:$0xff] }
 0x6f0   : > { %5556 = vmatprep.mubr.f32.mxu0 %v8619_v0  ;;  %5504 = vmatprep.subr.mxu0 %v5412_v5 }
 0x6f1   : > { %5505 = vmatpush1.msra.mxu0 %v5411_v13 }
 0x6f2   : > { %5506 = vmatprep.subr.mxu0 %v5410_v50 }
 0x6f3   : > { %5507 = vmatpush1.msra.mxu0 %v5409_v3 }
 0x6f4   : > { %5508 = vmatprep.subr.mxu0 %v5408_v27 }
 0x6f5   : > { %5509 = vmatpush1.msra.mxu0 %v5407_v6 }
 0x6f6   : > { %5510 = vmatprep.subr.mxu0 %v5406_v16 }
 0x6f7   : > { %5511 = vmatpush1.msra.mxu0 %v5405_v46 }
 0x6f8   : > { %5512 = vmatprep.subr.mxu0 %v5404_v63 }
 0x6f9   : > { %5513 = vmatpush1.msra.mxu0 %v5403_v31  ;;  %v5173_v31 = vld [vmem:[%s12233_s7] sm:$0x3f] }
 0x6fa   : > { %5514 = vmatprep.subr.mxu0 %v5402_v47 }
 0x6fb   : > { %5515 = vmatpush1.msra.mxu0 %v5401_v4 }
 0x6fc   : > { %5516 = vmatprep.subr.mxu0 %v5400_v37 }
 0x6fd   : > { %5517 = vmatpush1.msra.mxu0 %v5399_v49 }
 0x6fe   : > { %5518 = vmatprep.subr.mxu0 %v5398_v45 }
 0x6ff   : > { %5519 = vmatpush1.msra.mxu0 %v5397_v9 }
 0x700   : > { %5520 = vmatprep.subr.mxu0 %v5396_v8 }
 0x701   : > { %5521 = vmatpush1.msra.mxu0 %v5395_v52 }
 0x702   : > { %5522 = vmatprep.subr.mxu0 %v5394_v7 }
 0x703   : > { %5523 = vmatpush1.msra.mxu0 %v5393_v25 }
 0x754   : > { %v4740_v54 = vpop.f32.mrf.mxu0 }
 0x756   : > { %v4742_v60 = vpop.f32.mrf.mxu0 }
 0x75a   : > { %v4746_v19 = vpop.f32.mrf.mxu0 }
 0x75c   : > { %v4748_v58 = vpop.f32.mrf.mxu0 }
 0x75d   : > { %v4817_v15 = vpop.f32.mrf.mxu1 }
 0x75e   : > { %v4818_v44 = vadd.f32 %v4817_v15, %v4740_v54 }
 0x75f   : > { %v4819_v55 = vpop.f32.mrf.mxu1 }
 0x760   : > { %v4820_v34 = vadd.f32 %v4819_v55, %v4742_v60 }
 0x762   : > { %v4823_v10 = vpop.f32.mrf.mxu1 }
 0x763   : > { %v4824_v21 = vadd.f32 %v4823_v10, %v4746_v19 }
 0x764   : > { %v4825_v36 = vpop.f32.mrf.mxu1 }
 0x765   : > { %v4826_v59 = vadd.f32 %v4825_v36, %v4748_v58 }
 0x77e   : > { %v4894_v14 = vpop.f32.mrf.mxu0 }
 0x77f   : > { %v4895_v11 = vadd.f32 %v4894_v14, %v4818_v44 }
 0x780   : > { %v4896_v23 = vpop.f32.mrf.mxu0 }
 0x781   : > { %v4897_v17 = vadd.f32 %v4896_v23, %v4820_v34  ;;  %v5130_v53 = vadd.f32 %v4895_v11, %v10678_v30 }
 0x783   : > { %v5131_v2 = vadd.f32 %v4897_v17, %v10680_v38  ;;  %v5142_v29 = vmin.f32 %v5130_v53, 0.0  ;;  %v8167_v38 = vpop.f32.mrf.mxu1  ;;  %vm5136_vm12 = vcmp.gt.f32.partialorder %v5130_v53, 0.0 }
 0x785   : > { %v5143_v32 = vmin.f32 %v5131_v2, 0.0  ;;  %v4900_v26 = vpop.f32.mrf.mxu0  ;;  %v5148_v22 = vmul.f32 1.442695, %v5142_v29  ;;  %v8168_v40 = vpop.f32.mrf.mxu1  ;;  %vm5137_vm11 = vcmp.gt.f32.partialorder %v5131_v2, 0.0  ;;  %v5355_v29 = vld [vmem:[%s12234_s8 + $0xd0] sm:$0xff] }
 0x786   : > { %v4901_v28 = vadd.f32 %v4900_v26, %v4824_v21  ;;  %v8169_v45 = vadd.f32 %v8168_v40, %v8167_v38  ;;  %v5358_v26 = vld [vmem:[%s12234_s8 + $0xe8] sm:$0xff]  ;;  %v5344_v38 = vld [vmem:[%s12234_s8 + $0x78] sm:$0xff]  ;;  %v5343_v40 = vld [vmem:[%s12234_s8 + $0x70] sm:$0xff] }
 0x787   : > { %v4902_v33 = vpop.f32.mrf.mxu0  ;;  %v5150_v39 = vmul.f32 1.442695, %v5143_v32  ;;  %v8170_v5 = vpop.f32.mrf.mxu1  ;;  %v5359_v32 = vld [vmem:[%s12234_s8 + $0xf0] sm:$0xff] }
 0x788   : > { %v5133_v1 = vadd.f32 %v4901_v28, %v10684_v43  ;;  %v4903_v57 = vadd.f32 %v4902_v33, %v4826_v59  ;;  %v5357_v59 = vld [vmem:[%s12234_s8 + $0xe0] sm:$0xff]  ;;  %v5356_v28 = vld [vmem:[%s12234_s8 + $0xd8] sm:$0xff]  ;;  %v5354_v33 = vld [vmem:[%s12234_s8 + $0xc8] sm:$0xff] }
 0x789   : > { %8495 = vpow2.f32 %v5150_v39  ;;  %v8171_v27 = vpop.f32.mrf.mxu1  ;;  %v5351_v39 = vld [vmem:[%s12234_s8 + $0xb0] sm:$0xff] }
 0x78a   : > { %v5145_v62 = vmin.f32 %v5133_v1, 0.0  ;;  %v5134_v12 = vadd.f32 %v4903_v57, %v10686_v35  ;;  %vm5139_vm10 = vcmp.gt.f32.partialorder %v5133_v1, 0.0  ;;  %v8172_v25 = vadd.f32 %v8171_v27, %v8170_v5  ;;  %v5352_v57 = vld [vmem:[%s12234_s8 + $0xb8] sm:$0xff]  ;;  %v5339_v5 = vld [vmem:[%s12234_s8 + $0x50] sm:$0xff]  ;;  %v5333_v27 = vld [vmem:[%s12234_s8 + $0x20] sm:$0xff] }
 0x78c   : > { %v5154_v61 = vmul.f32 1.442695, %v5145_v62  ;;  %v5146_v51 = vmin.f32 %v5134_v12, 0.0  ;;  %vm5140_vm9 = vcmp.gt.f32.partialorder %v5134_v12, 0.0  ;;  %v5350_v62 = vld [vmem:[%s12234_s8 + $0xa8] sm:$0xff] }
 0x78e   : > { %8497 = vpow2.f32 %v5154_v61  ;;  %v5156_v30 = vmul.f32 1.442695, %v5146_v51  ;;  %v5347_v61 = vld [vmem:[%s12234_s8 + $0x90] sm:$0xff]  ;;  %v5346_v51 = vld [vmem:[%s12234_s8 + $0x88] sm:$0xff] }
 0x78f   : > { %8499 = vpow2.f32 %v5148_v22  ;;  %v5348_v22 = vld [vmem:[%s12234_s8 + $0x98] sm:$0xff] }
 0x790   : > { %8501 = vpow2.f32 %v5156_v30  ;;  %v5345_v30 = vld [vmem:[%s12234_s8 + $0x80] sm:$0xff] }
 0x796   : > { %v8496_v18 = vpop.eup %8495 }
 0x797   : > { %v7708_v3 = vadd.f32 -1.0, %v8496_v18  ;;  %v5342_v18 = vld [vmem:[%s12234_s8 + $0x68] sm:$0xff] }
 0x799   : > { %v10852_v63 = vsel %vm5137_vm11, %v5131_v2, %v7708_v3  ;;  %v5335_v3 = vld [vmem:[%s12234_s8 + $0x30] sm:$0xff] }
 0x79b   : > { %v8498_v41 = vpop.eup %8497 }
 0x79c   : > { %v8500_v56 = vpop.eup %8499  ;;  %v7710_v13 = vadd.f32 -1.0, %v8498_v41  ;;  %v5341_v41 = vld [vmem:[%s12234_s8 + $0x60] sm:$0xff] }
 0x79d   : > { %v8502_v43 = vpop.eup %8501  ;;  %v7707_v35 = vadd.f32 -1.0, %v8500_v56  ;;  %v5340_v56 = vld [vmem:[%s12234_s8 + $0x58] sm:$0xff] }
 0x79e   : > { %v7711_v50 = vadd.f32 -1.0, %v8502_v43  ;;  %v10848_v16 = vsel %vm5139_vm10, %v5133_v1, %v7710_v13  ;;  %v5353_v1 = vld [vmem:[%s12234_s8 + $0xc0] sm:$0xff]  ;;  %v5338_v43 = vld [vmem:[%s12234_s8 + $0x48] sm:$0xff]  ;;  %vm7248_vm10 = vcmask 90112  }
 0x79f   : > { %v10858_v47 = vsel %vm5136_vm12, %v5130_v53, %v7707_v35  ;;  %v5337_v13 = vld [vmem:[%s12234_s8 + $0x40] sm:$0xff]  ;;  %v5334_v35 = vld [vmem:[%s12234_s8 + $0x28] sm:$0xff] }
 0x7a0   : > { %v10842_v6 = vsel %vm5140_vm9, %v5134_v12, %v7711_v50  ;;  %v5349_v12 = vld [vmem:[%s12234_s8 + $0xa0] sm:$0xff]  ;;  %v5336_v50 = vld [vmem:[%s12234_s8 + $0x38] sm:$0xff] }
 0x7a1   : > { %7713 = vmatprep.subr.msk.mxu1 %vm5178_vm3, %v10842_v6  ;;  %7720 = vmatprep.subr.msk.mxu0 %vm5178_vm3, %v10842_v6 }
 0x7a2   : > { %v8205_v46 = vpop.f32.mrf.mxu1  ;;  %7714 = vmatpush1.msk.msra.mxu1 %vm5178_vm3, %v10848_v16 }
 0x7a3   : > { %5218 = vmatprep.subr.mxu1 %v10852_v63 }
 0x7a4   : > { %v8206_v4 = vpop.f32.mrf.mxu1  ;;  %5219 = vmatpush1.msra.mxu1 %v10858_v47 }
 0x7a5   : > { %7715 = vmatmul.mubr.msk.f32.vlgmr.msra.gmra.mxu1 %vm5174_vm13, %v5173_v31  ;;  %8273 = vmatprep.subr.mxu1 %v8619_v0  ;;  %v8207_v37 = vadd.f32 %v8206_v4, %v8205_v46  ;;  %v5332_v46 = vld [vmem:[%s12234_s8 + $0x18] sm:$0xff]  ;;  %v5330_v4 = vld [vmem:[%s12234_s8 + $0x8] sm:$0xff] }
 0x7a6   : > { %v8208_v49 = vpop.f32.mrf.mxu1  ;;  %8277 = vmatprep.mubr.msk.f32.mxu1 %vm8620_vm14, %v8619_v0 }
 0x7a7   : > { %v5047_v52 = vadd.f32 %v8207_v37, %v8169_v45  ;;  %v5329_v37 = vld [vmem:[%s12234_s8] sm:$0xff]  ;;  %v5391_v45 = vld [vmem:[%s12234_s8 + $0x1f0] sm:$0xff] }
 0x7a8   : > { %v8209_v9 = vpop.f32.mrf.mxu1 }
 0x7a9   : > { %v8210_v8 = vadd.f32 %v8209_v9, %v8208_v49  ;;  %v5392_v49 = vld [vmem:[%s12234_s8 + $0x1f8] sm:$0xff]  ;;  %v5390_v9 = vld [vmem:[%s12234_s8 + $0x1e8] sm:$0xff] }
 0x7ab   : > { %v5121_v7 = vpop.f32.mrf.mxu0  ;;  %v5052_v19 = vadd.f32 %v8210_v8, %v8172_v25  ;;  %v5389_v8 = vld [vmem:[%s12234_s8 + $0x1e0] sm:$0xff]  ;;  %v5386_v25 = vld [vmem:[%s12234_s8 + $0x1c8] sm:$0xff] }
 0x7ac   : > { %v5122_v54 = vadd.f32 %v5121_v7, %v5047_v52  ;;  %v5388_v52 = vld [vmem:[%s12234_s8 + $0x1d8] sm:$0xff]  ;;  %v5387_v7 = vld [vmem:[%s12234_s8 + $0x1d0] sm:$0xff] }
 0x7ad   : > { %v5123_v60 = vpop.f32.mrf.mxu0 }
 0x7ae   : > { %v5132_v15 = vadd.f32 %v5122_v54, %v10693_v48  ;;  %v5360_v48 = vld [vmem:[%s12234_s8 + $0xf8] sm:$0xff]  ;;  %v5385_v54 = vld [vmem:[%s12234_s8 + $0x1c0] sm:$0xff] }
 0x7af   : > { %v5126_v55 = vpop.f32.mrf.mxu0  ;;  %v5384_v60 = vld [vmem:[%s12234_s8 + $0x1b8] sm:$0xff] }
 0x7b0   : > { %v5144_v58 = vmin.f32 %v5132_v15, 0.0  ;;  %v5127_v44 = vadd.f32 %v5126_v55, %v5052_v19  ;;  %vm5138_vm0 = vcmp.gt.f32.partialorder %v5132_v15, 0.0  ;;  %v5382_v19 = vld [vmem:[%s12234_s8 + $0x1a8] sm:$0xff]  ;;  %v5381_v55 = vld [vmem:[%s12234_s8 + $0x1a0] sm:$0xff] }
 0x7b1   : > { %v5128_v14 = vpop.f32.mrf.mxu0 }
 0x7b2   : > { %v5152_v34 = vmul.f32 1.442695, %v5144_v58  ;;  %v5135_v10 = vadd.f32 %v5127_v44, %v10705_v42  ;;  %v5380_v58 = vld [vmem:[%s12234_s8 + $0x198] sm:$0xff]  ;;  %v5379_v44 = vld [vmem:[%s12234_s8 + $0x190] sm:$0xff]  ;;  %v5378_v14 = vld [vmem:[%s12234_s8 + $0x188] sm:$0xff] }
 0x7b4   : > { %v5147_v11 = vmin.f32 %v5135_v10, 0.0  ;;  %8503 = vpow2.f32 %v5152_v34  ;;  %vm5141_vm15 = vcmp.gt.f32.partialorder %v5135_v10, 0.0  ;;  %v5377_v34 = vld [vmem:[%s12234_s8 + $0x180] sm:$0xff] }
 0x7b6   : > { %v5158_v23 = vmul.f32 1.442695, %v5147_v11  ;;  %v5375_v11 = vld [vmem:[%s12234_s8 + $0x170] sm:$0xff] }
 0x7b8   : > { %8505 = vpow2.f32 %v5158_v23  ;;  %v5374_v23 = vld [vmem:[%s12234_s8 + $0x168] sm:$0xff] }
 0x7c1   : > { %v8504_v17 = vpop.eup %8503 }
 0x7c2   : > { %v7709_v2 = vadd.f32 -1.0, %v8504_v17  ;;  %v5373_v17 = vld [vmem:[%s12234_s8 + $0x160] sm:$0xff] }
 0x7c4   : > { %v10875_v42 = vsel %vm5138_vm0, %v5132_v15, %v7709_v2  ;;  %v5383_v15 = vld [vmem:[%s12234_s8 + $0x1b0] sm:$0xff]  ;;  %v5370_v2 = vld [vmem:[%s12234_s8 + $0x148] sm:$0xff] }
 0x7c5   : > { %v8506_v36 = vpop.eup %8505 }
 0x7c6   : > { %v7712_v53 = vadd.f32 -1.0, %v8506_v36  ;;  %v5372_v36 = vld [vmem:[%s12234_s8 + $0x158] sm:$0xff] }
 0x7c8   : > { %v10867_v21 = vsel %vm5141_vm15, %v5135_v10, %v7712_v53  ;;  %v5376_v10 = vld [vmem:[%s12234_s8 + $0x178] sm:$0xff]  ;;  %v5371_v53 = vld [vmem:[%s12234_s8 + $0x150] sm:$0xff] }
 0x7c9   : > { %8274 = vmatpush3.msk.msra.mxu1 %vm5178_vm3, %v10867_v21 }
 0x7ca   : > { %8275 = vmatprep.subr.mxu1 %v8619_v0 }
 0x7cb   : > { %8276 = vmatpush3.msra.mxu1 %v10875_v42 }
 0x7cc   : > { %8278 = vmatmul.mubr.msk.f32.vlgmr.msra.gmra.mxu1 %vm5174_vm13, %v5173_v31  ;;  %5421 = vmatprep.subr.mxu1 %v5360_v48  ;;  %v5331_v31 = vld [vmem:[%s12234_s8 + $0x10] sm:$0xff]  ;;  %v5369_v48 = vld [vmem:[%s12234_s8 + $0x140] sm:$0xff] }
 0x7cd   : > { %5422 = vmatpush1.msra.mxu1 %v5359_v32  ;;  %v5368_v32 = vld [vmem:[%s12234_s8 + $0x138] sm:$0xff] }
 0x7ce   : > { %5423 = vmatprep.subr.mxu1 %v5358_v26  ;;  %v5367_v26 = vld [vmem:[%s12234_s8 + $0x130] sm:$0xff] }
 0x7cf   : > { %5424 = vmatpush1.msra.mxu1 %v5357_v59  ;;  %v5366_v59 = vld [vmem:[%s12234_s8 + $0x128] sm:$0xff] }
 0x7d0   : > { %5425 = vmatprep.subr.mxu1 %v5356_v28  ;;  %v5365_v28 = vld [vmem:[%s12234_s8 + $0x120] sm:$0xff] }
 0x7d1   : > { %5426 = vmatpush1.msra.mxu1 %v5355_v29  ;;  %v5364_v29 = vld [vmem:[%s12234_s8 + $0x118] sm:$0xff] }
 0x7d2   : > { %5427 = vmatprep.subr.mxu1 %v5354_v33  ;;  %v5363_v33 = vld [vmem:[%s12234_s8 + $0x110] sm:$0xff] }
 0x7d3   : > { %5428 = vmatpush1.msra.mxu1 %v5353_v1  ;;  %v5362_v1 = vld [vmem:[%s12234_s8 + $0x108] sm:$0xff] }
 0x7d4   : > { %5429 = vmatprep.subr.mxu1 %v5352_v57  ;;  %v5361_v57 = vld [vmem:[%s12234_s8 + $0x100] sm:$0xff] }
 0x7d5   : > { %5430 = vmatpush1.msra.mxu1 %v5351_v39  ;;  %v7812_v39 = vld [vmem:[%s12234_s8 + $0x578] sm:$0xff] }
 0x7d6   : > { %5431 = vmatprep.subr.mxu1 %v5350_v62 }
 0x7d7   : > { %5432 = vmatpush1.msra.mxu1 %v5349_v12 }
 0x7d8   : > { %5433 = vmatprep.subr.mxu1 %v5348_v22  ;;  %v7811_v22 = vld [vmem:[%s12234_s8 + $0x570] sm:$0xff] }
 0x7d9   : > { %5434 = vmatpush1.msra.mxu1 %v5347_v61  ;;  %v7810_v61 = vld [vmem:[%s12234_s8 + $0x568] sm:$0xff] }
 0x7da   : > { %5435 = vmatprep.subr.mxu1 %v5346_v51  ;;  %v7809_v51 = vld [vmem:[%s12234_s8 + $0x560] sm:$0xff] }
 0x7db   : > { %5436 = vmatpush1.msra.mxu1 %v5345_v30  ;;  %v7808_v30 = vld [vmem:[%s12234_s8 + $0x558] sm:$0xff] }
 0x7dc   : > { %5437 = vmatprep.subr.mxu1 %v5344_v38  ;;  %v7807_v38 = vld [vmem:[%s12234_s8 + $0x550] sm:$0xff] }
 0x7dd   : > { %5438 = vmatpush1.msra.mxu1 %v5343_v40  ;;  %v7806_v40 = vld [vmem:[%s12234_s8 + $0x548] sm:$0xff] }
 0x7de   : > { %5439 = vmatprep.subr.mxu1 %v5342_v18  ;;  %v7805_v18 = vld [vmem:[%s12234_s8 + $0x540] sm:$0xff] }
 0x7df   : > { %5440 = vmatpush1.msra.mxu1 %v5341_v41  ;;  %v7804_v41 = vld [vmem:[%s12234_s8 + $0x538] sm:$0xff] }
 0x7e0   : > { %5441 = vmatprep.subr.mxu1 %v5340_v56  ;;  %v7803_v56 = vld [vmem:[%s12234_s8 + $0x530] sm:$0xff] }
 0x7e1   : > { %5442 = vmatpush1.msra.mxu1 %v5339_v5  ;;  %v7802_v5 = vld [vmem:[%s12234_s8 + $0x528] sm:$0xff] }
 0x7e2   : > { %5443 = vmatprep.subr.mxu1 %v5338_v43  ;;  %v7801_v43 = vld [vmem:[%s12234_s8 + $0x520] sm:$0xff] }
 0x7e3   : > { %5444 = vmatpush1.msra.mxu1 %v5337_v13  ;;  %v7800_v13 = vld [vmem:[%s12234_s8 + $0x518] sm:$0xff] }
 0x7e4   : > { %5445 = vmatprep.subr.mxu1 %v5336_v50  ;;  %v7799_v50 = vld [vmem:[%s12234_s8 + $0x510] sm:$0xff] }
 0x7e5   : > { %5446 = vmatpush1.msra.mxu1 %v5335_v3  ;;  %v7798_v3 = vld [vmem:[%s12234_s8 + $0x508] sm:$0xff] }
 0x7e6   : > { %5447 = vmatprep.subr.mxu1 %v5334_v35  ;;  %v7797_v35 = vld [vmem:[%s12234_s8 + $0x500] sm:$0xff] }
 0x7e7   : > { %5448 = vmatpush1.msra.mxu1 %v5333_v27  ;;  %v7796_v27 = vld [vmem:[%s12234_s8 + $0x4f8] sm:$0xff] }
 0x7e8   : > { %5449 = vmatprep.subr.mxu1 %v5332_v46  ;;  %v7795_v46 = vld [vmem:[%s12234_s8 + $0x4f0] sm:$0xff] }
 0x7e9   : > { %5450 = vmatpush1.msra.mxu1 %v5331_v31  ;;  %v7794_v31 = vld [vmem:[%s12234_s8 + $0x4e8] sm:$0xff] }
 0x7ea   : > { %5451 = vmatprep.subr.mxu1 %v5330_v4  ;;  %v7793_v4 = vld [vmem:[%s12234_s8 + $0x4e0] sm:$0xff] }
 0x7eb   : > { %5452 = vmatpush1.msra.mxu1 %v5329_v37  ;;  %v7792_v37 = vld [vmem:[%s12234_s8 + $0x4d8] sm:$0xff] }
 0x7ec   : > { %5453 = vmatprep.subr.mxu1 %v5392_v49  ;;  %v7791_v49 = vld [vmem:[%s12234_s8 + $0x4d0] sm:$0xff] }
 0x7ed   : > { %5454 = vmatpush2.msra.mxu1 %v5391_v45  ;;  %v7790_v45 = vld [vmem:[%s12234_s8 + $0x4c8] sm:$0xff] }
 0x7ee   : > { %5455 = vmatprep.subr.mxu1 %v5390_v9  ;;  %v7789_v9 = vld [vmem:[%s12234_s8 + $0x4c0] sm:$0xff] }
 0x7ef   : > { %5456 = vmatpush2.msra.mxu1 %v5389_v8 }
 0x7f0   : > { %5457 = vmatprep.subr.mxu1 %v5388_v52 }
 0x7f1   : > { %5458 = vmatpush2.msra.mxu1 %v5387_v7  ;;  %v7719_v7 = vld [vmem:[%s12233_s7 + $0x8] sm:$0x3f] }
 0x7f2   : > { %5459 = vmatprep.subr.mxu1 %v5386_v25  ;;  %v7755_v25 = vld [vmem:[%s12234_s8 + $0x3b0] sm:$0xff] }
 0x7f3   : > { %5460 = vmatpush2.msra.mxu1 %v5385_v54  ;;  %v7754_v54 = vld [vmem:[%s12234_s8 + $0x3a8] sm:$0xff] }
 0x7f4   : > { %5461 = vmatprep.subr.mxu1 %v5384_v60  ;;  %v7753_v60 = vld [vmem:[%s12234_s8 + $0x3a0] sm:$0xff] }
 0x7f5   : > { %5462 = vmatpush2.msra.mxu1 %v5383_v15  ;;  %v7752_v15 = vld [vmem:[%s12234_s8 + $0x398] sm:$0xff] }
 0x7f6   : > { %5463 = vmatprep.subr.mxu1 %v5382_v19  ;;  %v7751_v19 = vld [vmem:[%s12234_s8 + $0x390] sm:$0xff] }
 0x7f7   : > { %5464 = vmatpush2.msra.mxu1 %v5381_v55  ;;  %v7750_v55 = vld [vmem:[%s12234_s8 + $0x388] sm:$0xff] }
 0x7f8   : > { %5465 = vmatprep.subr.mxu1 %v5380_v58  ;;  %v7749_v58 = vld [vmem:[%s12234_s8 + $0x380] sm:$0xff] }
 0x7f9   : > { %5466 = vmatpush2.msra.mxu1 %v5379_v44  ;;  %v7748_v44 = vld [vmem:[%s12234_s8 + $0x378] sm:$0xff] }
 0x7fa   : > { %5467 = vmatprep.subr.mxu1 %v5378_v14  ;;  %v7747_v14 = vld [vmem:[%s12234_s8 + $0x370] sm:$0xff] }
 0x7fb   : > { %5468 = vmatpush2.msra.mxu1 %v5377_v34  ;;  %v7746_v34 = vld [vmem:[%s12234_s8 + $0x368] sm:$0xff] }
 0x7fc   : > { %5469 = vmatprep.subr.mxu1 %v5376_v10  ;;  %v7745_v10 = vld [vmem:[%s12234_s8 + $0x360] sm:$0xff] }
 0x7fd   : > { %5470 = vmatpush2.msra.mxu1 %v5375_v11  ;;  %v7744_v11 = vld [vmem:[%s12234_s8 + $0x358] sm:$0xff] }
 0x7fe   : > { %5471 = vmatprep.subr.mxu1 %v5374_v23  ;;  %v7743_v23 = vld [vmem:[%s12234_s8 + $0x350] sm:$0xff] }
 0x7ff   : > { %5472 = vmatpush2.msra.mxu1 %v5373_v17  ;;  %v7742_v17 = vld [vmem:[%s12234_s8 + $0x348] sm:$0xff] }
 0x800   : > { %5473 = vmatprep.subr.mxu1 %v5372_v36  ;;  %v7741_v36 = vld [vmem:[%s12234_s8 + $0x340] sm:$0xff] }
 0x801   : > { %5474 = vmatpush2.msra.mxu1 %v5371_v53  ;;  %v7740_v53 = vld [vmem:[%s12234_s8 + $0x338] sm:$0xff] }
 0x802   : > { %5475 = vmatprep.subr.mxu1 %v5370_v2  ;;  %v7739_v2 = vld [vmem:[%s12234_s8 + $0x330] sm:$0xff] }
 0x803   : > { %5476 = vmatpush2.msra.mxu1 %v5369_v48  ;;  %v7738_v48 = vld [vmem:[%s12234_s8 + $0x328] sm:$0xff] }
 0x804   : > { %5477 = vmatprep.subr.mxu1 %v5368_v32  ;;  %v7737_v32 = vld [vmem:[%s12234_s8 + $0x320] sm:$0xff] }
 0x805   : > { %5478 = vmatpush2.msra.mxu1 %v5367_v26  ;;  %v7736_v26 = vld [vmem:[%s12234_s8 + $0x318] sm:$0xff] }
 0x806   : > { %5479 = vmatprep.subr.mxu1 %v5366_v59  ;;  %v7735_v59 = vld [vmem:[%s12234_s8 + $0x310] sm:$0xff] }
 0x807   : > { %5480 = vmatpush2.msra.mxu1 %v5365_v28  ;;  %v7734_v28 = vld [vmem:[%s12234_s8 + $0x308] sm:$0xff] }
 0x808   : > { %5481 = vmatprep.subr.mxu1 %v5364_v29  ;;  %v7733_v29 = vld [vmem:[%s12234_s8 + $0x300] sm:$0xff] }
 0x809   : > { %5482 = vmatpush2.msra.mxu1 %v5363_v33  ;;  %v7732_v33 = vld [vmem:[%s12234_s8 + $0x2f8] sm:$0xff] }
 0x80a   : > { %5483 = vmatprep.subr.mxu1 %v5362_v1  ;;  %v7731_v1 = vld [vmem:[%s12234_s8 + $0x2f0] sm:$0xff] }
 0x80b   : > { %5484 = vmatpush2.msra.mxu1 %v5361_v57  ;;  %v7730_v57 = vld [vmem:[%s12234_s8 + $0x2e8] sm:$0xff] }
 0x80c   : > { %5893 = vmatprep.subr.mxu1 %v7812_v39  ;;  %v7729_v39 = vld [vmem:[%s12234_s8 + $0x2e0] sm:$0xff] }
 0x865   : > { %v5254_v62 = vpop.f32.mrf.mxu1 }
 0x867   : > { %v5256_v12 = vpop.f32.mrf.mxu1 }
 0x868   : > { %5485 = vmatprep.mubr.f32.mxu1 %v5256_v12  ;;  %v7727_v12 = vld [vmem:[%s12234_s8 + $0x2d0] sm:$0xff] }
 0x869   : > { %5486 = vmatmul.mubr.f32.vlgmr.msra.gmra.mxu1 %v5254_v62  ;;  %v7728_v62 = vld [vmem:[%s12234_s8 + $0x2d8] sm:$0xff] }
 0x86a   : > { %5894 = vmatpush1.msra.mxu1 %v7811_v22  ;;  %5949 = vmatprep.mubr.f32.mxu1 %v8619_v0  ;;  %v7726_v22 = vld [vmem:[%s12234_s8 + $0x2c8] sm:$0xff] }
 0x86b   : > { %5895 = vmatprep.subr.mxu1 %v7810_v61  ;;  %v7725_v61 = vld [vmem:[%s12234_s8 + $0x2c0] sm:$0xff] }
 0x86c   : > { %5896 = vmatpush1.msra.mxu1 %v7809_v51  ;;  %v7788_v51 = vld [vmem:[%s12234_s8 + $0x4b8] sm:$0xff] }
 0x86d   : > { %5897 = vmatprep.subr.mxu1 %v7808_v30  ;;  %v7787_v30 = vld [vmem:[%s12234_s8 + $0x4b0] sm:$0xff] }
 0x86e   : > { %5898 = vmatpush1.msra.mxu1 %v7807_v38  ;;  %v7786_v38 = vld [vmem:[%s12234_s8 + $0x4a8] sm:$0xff] }
 0x86f   : > { %5899 = vmatprep.subr.mxu1 %v7806_v40  ;;  %v7785_v40 = vld [vmem:[%s12234_s8 + $0x4a0] sm:$0xff] }
 0x870   : > { %5900 = vmatpush1.msra.mxu1 %v7805_v18  ;;  %v7784_v18 = vld [vmem:[%s12234_s8 + $0x498] sm:$0xff] }
 0x871   : > { %5901 = vmatprep.subr.mxu1 %v7804_v41  ;;  %v7783_v41 = vld [vmem:[%s12234_s8 + $0x490] sm:$0xff] }
 0x872   : > { %5902 = vmatpush1.msra.mxu1 %v7803_v56  ;;  %v7782_v56 = vld [vmem:[%s12234_s8 + $0x488] sm:$0xff] }
 0x873   : > { %5903 = vmatprep.subr.mxu1 %v7802_v5  ;;  %v7781_v5 = vld [vmem:[%s12234_s8 + $0x480] sm:$0xff] }
 0x874   : > { %5904 = vmatpush1.msra.mxu1 %v7801_v43  ;;  %v7780_v43 = vld [vmem:[%s12234_s8 + $0x478] sm:$0xff] }
 0x875   : > { %5905 = vmatprep.subr.mxu1 %v7800_v13  ;;  %v7779_v13 = vld [vmem:[%s12234_s8 + $0x470] sm:$0xff] }
 0x876   : > { %5906 = vmatpush1.msra.mxu1 %v7799_v50  ;;  %v7778_v50 = vld [vmem:[%s12234_s8 + $0x468] sm:$0xff] }
 0x877   : > { %5907 = vmatprep.subr.mxu1 %v7798_v3  ;;  %v7777_v3 = vld [vmem:[%s12234_s8 + $0x460] sm:$0xff] }
 0x878   : > { %5908 = vmatpush1.msra.mxu1 %v7797_v35  ;;  %v7776_v35 = vld [vmem:[%s12234_s8 + $0x458] sm:$0xff] }
 0x879   : > { %5909 = vmatprep.subr.mxu1 %v7796_v27  ;;  %v7775_v27 = vld [vmem:[%s12234_s8 + $0x450] sm:$0xff] }
 0x87a   : > { %5910 = vmatpush1.msra.mxu1 %v7795_v46  ;;  %v7774_v46 = vld [vmem:[%s12234_s8 + $0x448] sm:$0xff] }
 0x87b   : > { %5911 = vmatprep.subr.mxu1 %v7794_v31  ;;  %v7773_v31 = vld [vmem:[%s12234_s8 + $0x440] sm:$0xff] }
 0x87c   : > { %5912 = vmatpush1.msra.mxu1 %v7793_v4  ;;  %v7772_v4 = vld [vmem:[%s12234_s8 + $0x438] sm:$0xff] }
 0x87d   : > { %5913 = vmatprep.subr.mxu1 %v7792_v37  ;;  %v7771_v37 = vld [vmem:[%s12234_s8 + $0x430] sm:$0xff] }
 0x87e   : > { %5914 = vmatpush1.msra.mxu1 %v7791_v49  ;;  %v7770_v49 = vld [vmem:[%s12234_s8 + $0x428] sm:$0xff] }
 0x87f   : > { %5915 = vmatprep.subr.mxu1 %v7790_v45  ;;  %v7769_v45 = vld [vmem:[%s12234_s8 + $0x420] sm:$0xff] }
 0x880   : > { %5916 = vmatpush1.msra.mxu1 %v7789_v9  ;;  %v7768_v9 = vld [vmem:[%s12234_s8 + $0x418] sm:$0xff] }
 0x881   : > { %7815 = vmatprep.subr.msk.mxu1 %vm5178_vm3, %v10842_v6  ;;  %v7756_v6 = vld [vmem:[%s12234_s8 + $0x3b8] sm:$0xff] }
 0x88c   : > { %v5325_v8 = vpop.f32.mrf.mxu1 }
 0x88d   : > { %7718 = vmatmul.mubr.msk.f32.vlgmr.msra.gmra.mxu0 %vm5417_vm1, %v5325_v8  ;;  %v7767_v8 = vld [vmem:[%s12234_s8 + $0x410] sm:$0xff] }
 0x88e   : > { %7721 = vmatpush1.msk.msra.mxu0 %vm5178_vm3, %v10848_v16  ;;  %v8279_v52 = vpop.f32.mrf.mxu1  ;;  %5645 = vmatprep.mubr.f32.mxu0 %v8619_v0 }
 0x88f   : > { %5611 = vmatprep.subr.mxu0 %v10852_v63  ;;  %v7766_v52 = vld [vmem:[%s12234_s8 + $0x408] sm:$0xff] }
 0x890   : > { %5612 = vmatpush1.msra.mxu0 %v10858_v47 }
 0x891   : > { %8280 = vmatprep.subr.mxu0 %v8619_v0  ;;  %7722 = vmatmul.mubr.msk.f32.vlgmr.msra.gmra.mxu0 %vm5174_vm13, %v7719_v7 }
 0x892   : > { %8281 = vmatpush3.msk.msra.mxu0 %vm5178_vm3, %v10867_v21  ;;  %8284 = vmatprep.mubr.msk.f32.mxu0 %vm8620_vm14, %v8619_v0 }
 0x893   : > { %8282 = vmatprep.subr.mxu0 %v8619_v0 }
 0x894   : > { %8283 = vmatpush3.msra.mxu0 %v10875_v42 }
 0x895   : > { %8285 = vmatmul.mubr.msk.f32.vlgmr.msra.gmra.mxu0 %vm5174_vm13, %v7719_v7  ;;  %5814 = vmatprep.subr.mxu0 %v7756_v6  ;;  %v7765_v7 = vld [vmem:[%s12234_s8 + $0x400] sm:$0xff]  ;;  %v7764_v6 = vld [vmem:[%s12234_s8 + $0x3f8] sm:$0xff] }
 0x896   : > { %5815 = vmatpush1.msra.mxu0 %v7755_v25  ;;  %v7763_v25 = vld [vmem:[%s12234_s8 + $0x3f0] sm:$0xff] }
 0x897   : > { %5816 = vmatprep.subr.mxu0 %v7754_v54  ;;  %v7762_v54 = vld [vmem:[%s12234_s8 + $0x3e8] sm:$0xff] }
 0x898   : > { %5817 = vmatpush1.msra.mxu0 %v7753_v60  ;;  %v7761_v60 = vld [vmem:[%s12234_s8 + $0x3e0] sm:$0xff] }
 0x899   : > { %5818 = vmatprep.subr.mxu0 %v7752_v15  ;;  %v7760_v15 = vld [vmem:[%s12234_s8 + $0x3d8] sm:$0xff] }
 0x89a   : > { %5819 = vmatpush1.msra.mxu0 %v7751_v19  ;;  %v7759_v19 = vld [vmem:[%s12234_s8 + $0x3d0] sm:$0xff] }
 0x89b   : > { %5820 = vmatprep.subr.mxu0 %v7750_v55  ;;  %v7758_v55 = vld [vmem:[%s12234_s8 + $0x3c8] sm:$0xff] }
 0x89c   : > { %5821 = vmatpush1.msra.mxu0 %v7749_v58  ;;  %v7757_v58 = vld [vmem:[%s12234_s8 + $0x3c0] sm:$0xff] }
 0x89d   : > { %5822 = vmatprep.subr.mxu0 %v7748_v44  ;;  %v7907_v44 = vld [vmem:[%s12234_s8 + $0x838] sm:$0xff] }
 0x89e   : > { %5823 = vmatpush1.msra.mxu0 %v7747_v14 }
 0x89f   : > { %5824 = vmatprep.subr.mxu0 %v7746_v34 }
 0x8a0   : > { %5825 = vmatpush1.msra.mxu0 %v7745_v10 }
 0x8a1   : > { %5826 = vmatprep.subr.mxu0 %v7744_v11 }
 0x8a2   : > { %5827 = vmatpush1.msra.mxu0 %v7743_v23 }
 0x8a3   : > { %5828 = vmatprep.subr.mxu0 %v7742_v17 }
 0x8a4   : > { %5829 = vmatpush1.msra.mxu0 %v7741_v36  ;;  %v7906_v36 = vld [vmem:[%s12234_s8 + $0x830] sm:$0xff] }
 0x8a5   : > { %5830 = vmatprep.subr.mxu0 %v7740_v53 }
 0x8a6   : > { %5831 = vmatpush1.msra.mxu0 %v7739_v2  ;;  %v7905_v2 = vld [vmem:[%s12234_s8 + $0x828] sm:$0xff] }
 0x8a7   : > { %5832 = vmatprep.subr.mxu0 %v7738_v48  ;;  %v7904_v48 = vld [vmem:[%s12234_s8 + $0x820] sm:$0xff] }
 0x8a8   : > { %5833 = vmatpush1.msra.mxu0 %v7737_v32 }
 0x8a9   : > { %5834 = vmatprep.subr.mxu0 %v7736_v26  ;;  %v7814_v26 = vld [vmem:[%s12233_s7 + $0x10] sm:$0x3f] }
 0x8aa   : > { %5835 = vmatpush1.msra.mxu0 %v7735_v59  ;;  %v7903_v59 = vld [vmem:[%s12234_s8 + $0x818] sm:$0xff] }
 0x8ab   : > { %5836 = vmatprep.subr.mxu0 %v7734_v28  ;;  %v7901_v28 = vld [vmem:[%s12234_s8 + $0x808] sm:$0xff] }
 0x8ac   : > { %5837 = vmatpush1.msra.mxu0 %v7733_v29  ;;  %v7900_v29 = vld [vmem:[%s12234_s8 + $0x800] sm:$0xff] }
 0x8ad   : > { %5838 = vmatprep.subr.mxu0 %v7732_v33  ;;  %v7848_v33 = vld [vmem:[%s12234_s8 + $0x660] sm:$0xff] }
 0x8ae   : > { %5839 = vmatpush1.msra.mxu0 %v7731_v1  ;;  %v7847_v1 = vld [vmem:[%s12234_s8 + $0x658] sm:$0xff] }
 0x8af   : > { %5840 = vmatprep.subr.mxu0 %v7730_v57  ;;  %v7898_v57 = vld [vmem:[%s12234_s8 + $0x7f0] sm:$0xff] }
 0x8b0   : > { %5841 = vmatpush1.msra.mxu0 %v7729_v39  ;;  %v7846_v39 = vld [vmem:[%s12234_s8 + $0x650] sm:$0xff] }
 0x8b1   : > { %5842 = vmatprep.subr.mxu0 %v7728_v62  ;;  %v7897_v62 = vld [vmem:[%s12234_s8 + $0x7e8] sm:$0xff] }
 0x8b2   : > { %5843 = vmatpush1.msra.mxu0 %v7727_v12  ;;  %v7845_v12 = vld [vmem:[%s12234_s8 + $0x648] sm:$0xff] }
 0x8b3   : > { %5844 = vmatprep.subr.mxu0 %v7726_v22  ;;  %v7896_v22 = vld [vmem:[%s12234_s8 + $0x7e0] sm:$0xff] }
 0x8b4   : > { %5845 = vmatpush1.msra.mxu0 %v7725_v61  ;;  %v7844_v61 = vld [vmem:[%s12234_s8 + $0x640] sm:$0xff] }
 0x8b5   : > { %5846 = vmatprep.subr.mxu0 %v7788_v51  ;;  %v7895_v51 = vld [vmem:[%s12234_s8 + $0x7d8] sm:$0xff] }
 0x8b6   : > { %5847 = vmatpush2.msra.mxu0 %v7787_v30  ;;  %v7843_v30 = vld [vmem:[%s12234_s8 + $0x638] sm:$0xff] }
 0x8b7   : > { %5848 = vmatprep.subr.mxu0 %v7786_v38  ;;  %v7894_v38 = vld [vmem:[%s12234_s8 + $0x7d0] sm:$0xff] }
 0x8b8   : > { %5849 = vmatpush2.msra.mxu0 %v7785_v40  ;;  %v7842_v40 = vld [vmem:[%s12234_s8 + $0x630] sm:$0xff] }
 0x8b9   : > { %5850 = vmatprep.subr.mxu0 %v7784_v18  ;;  %v7841_v18 = vld [vmem:[%s12234_s8 + $0x628] sm:$0xff] }
 0x8ba   : > { %5851 = vmatpush2.msra.mxu0 %v7783_v41  ;;  %v7840_v41 = vld [vmem:[%s12234_s8 + $0x620] sm:$0xff] }
 0x8bb   : > { %5852 = vmatprep.subr.mxu0 %v7782_v56  ;;  %v7839_v56 = vld [vmem:[%s12234_s8 + $0x618] sm:$0xff] }
 0x8bc   : > { %5853 = vmatpush2.msra.mxu0 %v7781_v5  ;;  %v7838_v5 = vld [vmem:[%s12234_s8 + $0x610] sm:$0xff] }
 0x8bd   : > { %5854 = vmatprep.subr.mxu0 %v7780_v43  ;;  %v7837_v43 = vld [vmem:[%s12234_s8 + $0x608] sm:$0xff] }
 0x8be   : > { %5855 = vmatpush2.msra.mxu0 %v7779_v13  ;;  %v7836_v13 = vld [vmem:[%s12234_s8 + $0x600] sm:$0xff] }
 0x8bf   : > { %5856 = vmatprep.subr.mxu0 %v7778_v50  ;;  %v7835_v50 = vld [vmem:[%s12234_s8 + $0x5f8] sm:$0xff] }
 0x8c0   : > { %5857 = vmatpush2.msra.mxu0 %v7777_v3  ;;  %v7834_v3 = vld [vmem:[%s12234_s8 + $0x5f0] sm:$0xff] }
 0x8c1   : > { %5858 = vmatprep.subr.mxu0 %v7776_v35  ;;  %v7833_v35 = vld [vmem:[%s12234_s8 + $0x5e8] sm:$0xff] }
 0x8c2   : > { %5859 = vmatpush2.msra.mxu0 %v7775_v27  ;;  %v7832_v27 = vld [vmem:[%s12234_s8 + $0x5e0] sm:$0xff] }
 0x8c3   : > { %5860 = vmatprep.subr.mxu0 %v7774_v46  ;;  %v7831_v46 = vld [vmem:[%s12234_s8 + $0x5d8] sm:$0xff] }
 0x8c4   : > { %5861 = vmatpush2.msra.mxu0 %v7773_v31  ;;  %v7830_v31 = vld [vmem:[%s12234_s8 + $0x5d0] sm:$0xff] }
 0x8c5   : > { %5862 = vmatprep.subr.mxu0 %v7772_v4  ;;  %v7829_v4 = vld [vmem:[%s12234_s8 + $0x5c8] sm:$0xff] }
 0x8c6   : > { %5863 = vmatpush2.msra.mxu0 %v7771_v37  ;;  %v7828_v37 = vld [vmem:[%s12234_s8 + $0x5c0] sm:$0xff] }
 0x8c7   : > { %5864 = vmatprep.subr.mxu0 %v7770_v49  ;;  %v7827_v49 = vld [vmem:[%s12234_s8 + $0x5b8] sm:$0xff] }
 0x8c8   : > { %5865 = vmatpush2.msra.mxu0 %v7769_v45  ;;  %v7826_v45 = vld [vmem:[%s12234_s8 + $0x5b0] sm:$0xff] }
 0x8c9   : > { %5866 = vmatprep.subr.mxu0 %v7768_v9  ;;  %v7825_v9 = vld [vmem:[%s12234_s8 + $0x5a8] sm:$0xff] }
 0x8ca   : > { %5867 = vmatpush2.msra.mxu0 %v7767_v8  ;;  %v7824_v8 = vld [vmem:[%s12234_s8 + $0x5a0] sm:$0xff] }
 0x8cb   : > { %5868 = vmatprep.subr.mxu0 %v7766_v52  ;;  %v7823_v52 = vld [vmem:[%s12234_s8 + $0x598] sm:$0xff] }
 0x8cc   : > { %5869 = vmatpush2.msra.mxu0 %v7765_v7  ;;  %v7822_v7 = vld [vmem:[%s12234_s8 + $0x590] sm:$0xff] }
 0x8cd   : > { %5870 = vmatprep.subr.mxu0 %v7764_v6  ;;  %v7821_v6 = vld [vmem:[%s12234_s8 + $0x588] sm:$0xff] }
 0x8ce   : > { %5871 = vmatpush2.msra.mxu0 %v7763_v25  ;;  %v7820_v25 = vld [vmem:[%s12234_s8 + $0x580] sm:$0xff] }
 0x8cf   : > { %5872 = vmatprep.subr.mxu0 %v7762_v54  ;;  %v7883_v54 = vld [vmem:[%s12234_s8 + $0x778] sm:$0xff] }
 0x8d0   : > { %5873 = vmatpush2.msra.mxu0 %v7761_v60  ;;  %v7882_v60 = vld [vmem:[%s12234_s8 + $0x770] sm:$0xff] }
 0x8d1   : > { %5874 = vmatprep.subr.mxu0 %v7760_v15  ;;  %v7881_v15 = vld [vmem:[%s12234_s8 + $0x768] sm:$0xff] }
 0x8d2   : > { %5875 = vmatpush2.msra.mxu0 %v7759_v19  ;;  %v7880_v19 = vld [vmem:[%s12234_s8 + $0x760] sm:$0xff] }
 0x8d3   : > { %5876 = vmatprep.subr.mxu0 %v7758_v55  ;;  %v7879_v55 = vld [vmem:[%s12234_s8 + $0x758] sm:$0xff] }
 0x8d4   : > { %5877 = vmatpush2.msra.mxu0 %v7757_v58  ;;  %v7878_v58 = vld [vmem:[%s12234_s8 + $0x750] sm:$0xff] }
 0x8d5   : > { %6275 = vmatprep.subr.mxu0 %v7907_v44  ;;  %v7877_v44 = vld [vmem:[%s12234_s8 + $0x748] sm:$0xff] }
 0x929   : > { %v5487_v14 = vpop.f32.mrf.mxu1 }
 0x94d   : > { %v5558_v34 = vpop.f32.mrf.mxu0 }
 0x94e   : > { %v11356_v10 = vadd.f32 %v5558_v34, %v5487_v14  ;;  %v7876_v14 = vld [vmem:[%s12234_s8 + $0x740] sm:$0xff]  ;;  %v7875_v34 = vld [vmem:[%s12234_s8 + $0x738] sm:$0xff] }
 0x94f   : > { %v11358_v11 = vpop.f32.mrf.mxu0 }
 0x951   : > { %v5647_v23 = vpop.f32.mrf.mxu0 }
 0x953   : > { %v5649_v17 = vpop.f32.mrf.mxu0 }
 0x954   : > { %5878 = vmatprep.mubr.f32.mxu0 %v5649_v17  ;;  %v7873_v17 = vld [vmem:[%s12234_s8 + $0x728] sm:$0xff] }
 0x955   : > { %v5718_v53 = vpop.f32.mrf.mxu0  ;;  %5879 = vmatmul.mubr.f32.vlgmr.msra.gmra.mxu0 %v5647_v23  ;;  %v7874_v23 = vld [vmem:[%s12234_s8 + $0x730] sm:$0xff] }
 0x956   : > { %7813 = vmatmul.mubr.msk.f32.vlgmr.msra.gmra.mxu1 %vm5417_vm1, %v5718_v53  ;;  %6276 = vmatpush1.msra.mxu0 %v7906_v36  ;;  %v7872_v36 = vld [vmem:[%s12234_s8 + $0x720] sm:$0xff]  ;;  %v7871_v53 = vld [vmem:[%s12234_s8 + $0x718] sm:$0xff] }
 0x957   : > { %7816 = vmatpush1.msk.msra.mxu1 %vm5178_vm3, %v10848_v16  ;;  %v8286_v32 = vpop.f32.mrf.mxu0  ;;  %6027 = vmatprep.mubr.f32.mxu1 %v8619_v0  ;;  %v7902_v16 = vld [vmem:[%s12234_s8 + $0x810] sm:$0xff] }
 0x958   : > { %5993 = vmatprep.subr.mxu1 %v10852_v63  ;;  %6277 = vmatprep.subr.mxu0 %v7905_v2  ;;  %v7851_v63 = vld [vmem:[%s12234_s8 + $0x678] sm:$0xff]  ;;  %v7870_v2 = vld [vmem:[%s12234_s8 + $0x710] sm:$0xff]  ;;  %v7868_v32 = vld [vmem:[%s12234_s8 + $0x700] sm:$0xff] }
 0x959   : > { %5994 = vmatpush1.msra.mxu1 %v10858_v47  ;;  %6278 = vmatpush1.msra.mxu0 %v7904_v48  ;;  %v7850_v47 = vld [vmem:[%s12234_s8 + $0x670] sm:$0xff]  ;;  %v7869_v48 = vld [vmem:[%s12234_s8 + $0x708] sm:$0xff] }
 0x95a   : > { %8287 = vmatprep.subr.mxu1 %v8619_v0  ;;  %7817 = vmatmul.mubr.msk.f32.vlgmr.msra.gmra.mxu1 %vm5174_vm13, %v7814_v26 }
 0x95b   : > { %8288 = vmatpush3.msk.msra.mxu1 %vm5178_vm3, %v10867_v21  ;;  %8291 = vmatprep.mubr.msk.f32.mxu1 %vm8620_vm14, %v8619_v0  ;;  %v7849_v21 = vld [vmem:[%s12234_s8 + $0x668] sm:$0xff]  ;;  %vm7170_vm3 = vcmask 818176  }
 0x95c   : > { %8289 = vmatprep.subr.mxu1 %v8619_v0  ;;  %6279 = vmatprep.subr.mxu0 %v7903_v59  ;;  %v7866_v59 = vld [vmem:[%s12234_s8 + $0x6f0] sm:$0xff] }
 0x95d   : > { %8290 = vmatpush3.msra.mxu1 %v10875_v42  ;;  %6280 = vmatpush1.msra.mxu0 %v7902_v16  ;;  %v7899_v42 = vld [vmem:[%s12234_s8 + $0x7f8] sm:$0xff]  ;;  %v7865_v16 = vld [vmem:[%s12234_s8 + $0x6e8] sm:$0xff] }
 0x95e   : > { %8292 = vmatmul.mubr.msk.f32.vlgmr.msra.gmra.mxu1 %vm5174_vm13, %v7814_v26  ;;  %6196 = vmatprep.subr.mxu1 %v7851_v63  ;;  %v7867_v26 = vld [vmem:[%s12234_s8 + $0x6f8] sm:$0xff]  ;;  %v7864_v63 = vld [vmem:[%s12234_s8 + $0x6e0] sm:$0xff] }
 0x95f   : > { %6197 = vmatpush1.msra.mxu1 %v7850_v47  ;;  %6281 = vmatprep.subr.mxu0 %v7901_v28  ;;  %v7863_v47 = vld [vmem:[%s12234_s8 + $0x6d8] sm:$0xff]  ;;  %v7862_v28 = vld [vmem:[%s12234_s8 + $0x6d0] sm:$0xff] }
 0x960   : > { %6198 = vmatprep.subr.mxu1 %v7849_v21  ;;  %6282 = vmatpush1.msra.mxu0 %v7900_v29  ;;  %v7861_v21 = vld [vmem:[%s12234_s8 + $0x6c8] sm:$0xff]  ;;  %v7860_v29 = vld [vmem:[%s12234_s8 + $0x6c0] sm:$0xff] }
 0x961   : > { %6199 = vmatpush1.msra.mxu1 %v7848_v33  ;;  %6283 = vmatprep.subr.mxu0 %v7899_v42  ;;  %v7893_v33 = vld [vmem:[%s12234_s8 + $0x7c8] sm:$0xff]  ;;  %v7859_v42 = vld [vmem:[%s12234_s8 + $0x6b8] sm:$0xff] }
 0x962   : > { %6200 = vmatprep.subr.mxu1 %v7847_v1  ;;  %6284 = vmatpush1.msra.mxu0 %v7898_v57  ;;  %v7892_v1 = vld [vmem:[%s12234_s8 + $0x7c0] sm:$0xff]  ;;  %v7858_v57 = vld [vmem:[%s12234_s8 + $0x6b0] sm:$0xff] }
 0x963   : > { %6201 = vmatpush1.msra.mxu1 %v7846_v39  ;;  %6285 = vmatprep.subr.mxu0 %v7897_v62  ;;  %v7891_v39 = vld [vmem:[%s12234_s8 + $0x7b8] sm:$0xff]  ;;  %v7857_v62 = vld [vmem:[%s12234_s8 + $0x6a8] sm:$0xff] }
 0x964   : > { %6202 = vmatprep.subr.mxu1 %v7845_v12  ;;  %6286 = vmatpush1.msra.mxu0 %v7896_v22  ;;  %v7890_v12 = vld [vmem:[%s12234_s8 + $0x7b0] sm:$0xff]  ;;  %v7856_v22 = vld [vmem:[%s12234_s8 + $0x6a0] sm:$0xff] }
 0x965   : > { %6203 = vmatpush1.msra.mxu1 %v7844_v61  ;;  %6287 = vmatprep.subr.mxu0 %v7895_v51  ;;  %v7889_v61 = vld [vmem:[%s12234_s8 + $0x7a8] sm:$0xff]  ;;  %v7855_v51 = vld [vmem:[%s12234_s8 + $0x698] sm:$0xff] }
 0x966   : > { %6204 = vmatprep.subr.mxu1 %v7843_v30  ;;  %6288 = vmatpush1.msra.mxu0 %v7894_v38  ;;  %v7888_v30 = vld [vmem:[%s12234_s8 + $0x7a0] sm:$0xff]  ;;  %v7854_v38 = vld [vmem:[%s12234_s8 + $0x690] sm:$0xff] }
 0x967   : > { %6205 = vmatpush1.msra.mxu1 %v7842_v40  ;;  %6331 = vmatprep.mubr.f32.mxu0 %v8619_v0  ;;  %v7887_v40 = vld [vmem:[%s12234_s8 + $0x798] sm:$0xff] }
 0x968   : > { %6206 = vmatprep.subr.mxu1 %v7841_v18  ;;  %6289 = vmatprep.subr.mxu0 %v7893_v33  ;;  %v7853_v18 = vld [vmem:[%s12234_s8 + $0x688] sm:$0xff] }
 0x969   : > { %6207 = vmatpush1.msra.mxu1 %v7840_v41  ;;  %6290 = vmatpush1.msra.mxu0 %v7892_v1  ;;  %v7886_v41 = vld [vmem:[%s12234_s8 + $0x790] sm:$0xff]  ;;  %v7933_v33 = vld [vmem:[%s12237_s11 + $0x128] sm:$0xff]  ;;  %v7932_v1 = vld [vmem:[%s12237_s11 + $0x120] sm:$0xff] }
 0x96a   : > { %6208 = vmatprep.subr.mxu1 %v7839_v56  ;;  %6291 = vmatprep.subr.mxu0 %v7891_v39  ;;  %v7852_v56 = vld [vmem:[%s12234_s8 + $0x680] sm:$0xff]  ;;  %v7931_v39 = vld [vmem:[%s12237_s11 + $0x118] sm:$0xff] }
 0x96b   : > { %6209 = vmatpush1.msra.mxu1 %v7838_v5  ;;  %6292 = vmatpush1.msra.mxu0 %v7890_v12  ;;  %v7885_v5 = vld [vmem:[%s12234_s8 + $0x788] sm:$0xff]  ;;  %v7930_v12 = vld [vmem:[%s12237_s11 + $0x110] sm:$0xff] }
 0x96c   : > { %6210 = vmatprep.subr.mxu1 %v7837_v43  ;;  %6293 = vmatprep.subr.mxu0 %v7889_v61  ;;  %v7884_v43 = vld [vmem:[%s12234_s8 + $0x780] sm:$0xff]  ;;  %v7929_v61 = vld [vmem:[%s12237_s11 + $0x108] sm:$0xff] }
 0x96d   : > { %6211 = vmatpush1.msra.mxu1 %v7836_v13  ;;  %6294 = vmatpush1.msra.mxu0 %v7888_v30  ;;  %v5172_v13 = vld [vmem:[%s12235_s9] sm:$0x3] }
 0x96e   : > { %6212 = vmatprep.subr.mxu1 %v7835_v50  ;;  %6295 = vmatprep.subr.mxu0 %v7887_v40  ;;  %v5567_v50 = vrot.slane %v5172_v13, %v10240_v24  ;;  %v7928_v30 = vld [vmem:[%s12237_s11 + $0x100] sm:$0xff]  ;;  %v7927_v40 = vld [vmem:[%s12237_s11 + $0xf8] sm:$0xff] }
 0x96f   : > { %6213 = vmatpush1.msra.mxu1 %v7834_v3  ;;  %6296 = vmatpush1.msra.mxu0 %v7886_v41  ;;  %v5489_v3 = vpop.f32.mrf.mxu1  ;;  %v7926_v41 = vld [vmem:[%s12237_s11 + $0xf0] sm:$0xff] }
 0x970   : > { %6214 = vmatprep.subr.mxu1 %v7833_v35  ;;  %6297 = vmatprep.subr.mxu0 %v7885_v5  ;;  %v5561_v35 = vadd.f32 %v11358_v11, %v5489_v3  ;;  %v7925_v5 = vld [vmem:[%s12237_s11 + $0xe8] sm:$0xff]  ;;  %v7923_v3 = vld [vmem:[%s12237_s11 + $0xd8] sm:$0xff] }
 0x971   : > { %6215 = vmatpush1.msra.mxu1 %v7832_v27  ;;  %6298 = vmatpush1.msra.mxu0 %v7884_v43  ;;  %v5571_v27 = vrot.slane %v5172_v13, %v10233_v20  ;;  %v6439_v43 = vld [vmem:[%s12237_s11 + $0x18] sm:$0xff]  ;;  %v7924_v13 = vld [vmem:[%s12237_s11 + $0xe0] sm:$0xff] }
 0x972   : > { %6216 = vmatprep.subr.mxu1 %v7831_v46 }
 0x973   : > { %6217 = vmatpush1.msra.mxu1 %v7830_v31 }
 0x974   : > { %6218 = vmatprep.subr.mxu1 %v7829_v4  ;;  %v5574_v4 = vadd.f32 %v5567_v50, %v11356_v10  ;;  %v6438_v50 = vld [vmem:[%s12237_s11 + $0x10] sm:$0xff] }
 0x975   : > { %6219 = vmatpush1.msra.mxu1 %v7828_v37 }
 0x976   : > { %6220 = vmatprep.subr.mxu1 %v7827_v49 }
 0x977   : > { %6221 = vmatpush1.msra.mxu1 %v7826_v45 }
 0x978   : > { %6222 = vmatprep.subr.mxu1 %v7825_v9  ;;  %v5575_v9 = vadd.f32 %v5571_v27, %v5561_v35  ;;  %v6437_v35 = vld [vmem:[%s12237_s11 + $0x8] sm:$0xff]  ;;  %v7922_v27 = vld [vmem:[%s12237_s11 + $0xd0] sm:$0xff] }
 0x979   : > { %6223 = vmatpush1.msra.mxu1 %v7824_v8 }
 0x97a   : > { %6224 = vmatprep.subr.mxu1 %v7823_v52 }
 0x97b   : > { %6225 = vmatpush1.msra.mxu1 %v7822_v7 }
 0x97c   : > { %6226 = vmatprep.subr.mxu1 %v7821_v6 }
 0x97d   : > { %6227 = vmatpush1.msra.mxu1 %v7820_v25 }
 0x97e   : > { %6228 = vmatprep.subr.mxu1 %v7883_v54 }
 0x97f   : > { %6229 = vmatpush2.msra.mxu1 %v7882_v60 }
 0x980   : > { %6230 = vmatprep.subr.mxu1 %v7881_v15 }
 0x981   : > { %6231 = vmatpush2.msra.mxu1 %v7880_v19 }
 0x982   : > { %6232 = vmatprep.subr.mxu1 %v7879_v55 }
 0x983   : > { %6233 = vmatpush2.msra.mxu1 %v7878_v58 }
 0x984   : > { %6234 = vmatprep.subr.mxu1 %v7877_v44 }
 0x985   : > { %6235 = vmatpush2.msra.mxu1 %v7876_v14 }
 0x986   : > { %6236 = vmatprep.subr.mxu1 %v7875_v34 }
 0x987   : > { %6237 = vmatpush2.msra.mxu1 %v7874_v23 }
 0x988   : > { %6238 = vmatprep.subr.mxu1 %v7873_v17 }
 0x989   : > { %6239 = vmatpush2.msra.mxu1 %v7872_v36 }
 0x98a   : > { %6240 = vmatprep.subr.mxu1 %v7871_v53 }
 0x98b   : > { %6241 = vmatpush2.msra.mxu1 %v7870_v2 }
 0x98c   : > { %6242 = vmatprep.subr.mxu1 %v7869_v48 }
 0x98d   : > { %6243 = vmatpush2.msra.mxu1 %v7868_v32  ;;  %v6353_v32 = vld [vmem:[%s12236_s10] sm:$0x7] }
 0x98e   : > { %6244 = vmatprep.subr.mxu1 %v7867_v26 }
 0x98f   : > { %6245 = vmatpush2.msra.mxu1 %v7866_v59  ;;  %v6451_v59 = vld [vmem:[%s12237_s11 + $0x78] sm:$0xff] }
 0x990   : > { %6246 = vmatprep.subr.mxu1 %v7865_v16  ;;  %v7916_v16 = vld [vmem:[%s12236_s10 + $0x4] sm:$0x7] }
 0x991   : > { %6247 = vmatpush2.msra.mxu1 %v7864_v63  ;;  %v6450_v63 = vld [vmem:[%s12237_s11 + $0x70] sm:$0xff] }
 0x992   : > { %6248 = vmatprep.subr.mxu1 %v7863_v47  ;;  %v7935_v47 = vld [vmem:[%s12237_s11 + $0x138] sm:$0xff] }
 0x993   : > { %6249 = vmatpush2.msra.mxu1 %v7862_v28  ;;  %v6449_v28 = vld [vmem:[%s12237_s11 + $0x68] sm:$0xff] }
 0x994   : > { %6250 = vmatprep.subr.mxu1 %v7861_v21  ;;  %v7934_v21 = vld [vmem:[%s12237_s11 + $0x130] sm:$0xff] }
 0x995   : > { %6251 = vmatpush2.msra.mxu1 %v7860_v29  ;;  %v6448_v29 = vld [vmem:[%s12237_s11 + $0x60] sm:$0xff] }
 0x996   : > { %6252 = vmatprep.subr.mxu1 %v7859_v42  ;;  %v6447_v42 = vld [vmem:[%s12237_s11 + $0x58] sm:$0xff] }
 0x997   : > { %6253 = vmatpush2.msra.mxu1 %v7858_v57  ;;  %v6446_v57 = vld [vmem:[%s12237_s11 + $0x50] sm:$0xff] }
 0x998   : > { %6254 = vmatprep.subr.mxu1 %v7857_v62  ;;  %v6445_v62 = vld [vmem:[%s12237_s11 + $0x48] sm:$0xff] }
 0x999   : > { %6255 = vmatpush2.msra.mxu1 %v7856_v22  ;;  %v6444_v22 = vld [vmem:[%s12237_s11 + $0x40] sm:$0xff] }
 0x99a   : > { %6256 = vmatprep.subr.mxu1 %v7855_v51  ;;  %v6443_v51 = vld [vmem:[%s12237_s11 + $0x38] sm:$0xff] }
 0x99b   : > { %6257 = vmatpush2.msra.mxu1 %v7854_v38  ;;  %v6442_v38 = vld [vmem:[%s12237_s11 + $0x30] sm:$0xff] }
 0x99c   : > { %6258 = vmatprep.subr.mxu1 %v7853_v18  ;;  %v6441_v18 = vld [vmem:[%s12237_s11 + $0x28] sm:$0xff] }
 0x99d   : > { %6259 = vmatpush2.msra.mxu1 %v7852_v56  ;;  %v6440_v56 = vld [vmem:[%s12237_s11 + $0x20] sm:$0xff] }
 0xa15   : > { %v5880_v46 = vpop.f32.mrf.mxu0 }
 0xa16   : > { %v5951_v31 = vpop.f32.mrf.mxu1 }
 0xa17   : > { %v5952_v37 = vadd.f32 %v5951_v31, %v5880_v46  ;;  %v5882_v49 = vpop.f32.mrf.mxu0  ;;  %v6436_v46 = vld [vmem:[%s12237_s11] sm:$0xff]  ;;  %v7921_v31 = vld [vmem:[%s12237_s11 + $0xc8] sm:$0xff] }
 0xa18   : > { %v5953_v45 = vpop.f32.mrf.mxu1 }
 0xa19   : > { %v5956_v8 = vadd.f32 %v5952_v37, %v5574_v4  ;;  %v5954_v52 = vadd.f32 %v5953_v45, %v5882_v49  ;;  %v6459_v4 = vld [vmem:[%s12237_s11 + $0xb8] sm:$0xff]  ;;  %v7920_v37 = vld [vmem:[%s12237_s11 + $0xc0] sm:$0xff]  ;;  %v6458_v49 = vld [vmem:[%s12237_s11 + $0xb0] sm:$0xff] }
 0xa1a   : > { %v6029_v7 = vpop.f32.mrf.mxu1  ;;  %v7943_v45 = vld [vmem:[%s12237_s11 + $0x178] sm:$0xff] }
 0xa1b   : > { %v5957_v6 = vadd.f32 %v5954_v52, %v5575_v9  ;;  %v6457_v9 = vld [vmem:[%s12237_s11 + $0xa8] sm:$0xff]  ;;  %v6456_v52 = vld [vmem:[%s12237_s11 + $0xa0] sm:$0xff] }
 0xa1c   : > { %v6031_v25 = vpop.f32.mrf.mxu1 }
 0xa1d   : > { %6260 = vmatprep.mubr.f32.mxu1 %v6031_v25  ;;  %v6454_v25 = vld [vmem:[%s12237_s11 + $0x90] sm:$0xff] }
 0xa1e   : > { %v6100_v24 = vpop.f32.mrf.mxu1  ;;  %6261 = vmatmul.mubr.f32.vlgmr.msra.gmra.mxu1 %v6029_v7  ;;  %v7941_v7 = vld [vmem:[%s12237_s11 + $0x168] sm:$0xff] }
 0xa1f   : > { %7908 = vmatmul.mubr.msk.f32.vlgmr.msra.gmra.mxu0 %vm5417_vm1, %v6100_v24  ;;  %6610 = vmatprep.mubr.f32.mxu1 %v8619_v0  ;;  %v6453_v24 = vld [vmem:[%s12237_s11 + $0x88] sm:$0xff] }
 0xa20   : > { %v8293_v20 = vpop.f32.mrf.mxu1  ;;  %6429 = vmatprep.mubr.f32.mxu0 %v8619_v0 }
 0xa21   : > { %v6452_v20 = vld [vmem:[%s12237_s11 + $0x80] sm:$0xff] }
 0xade   : > { %v6262_v10 = vpop.f32.mrf.mxu1 }
 0xadf   : > { %v6333_v11 = vpop.f32.mrf.mxu0 }
 0xae0   : > { %v6334_v54 = vadd.f32 %v6333_v11, %v6262_v10  ;;  %v6264_v60 = vpop.f32.mrf.mxu1  ;;  %v7940_v10 = vld [vmem:[%s12237_s11 + $0x160] sm:$0xff]  ;;  %v7939_v11 = vld [vmem:[%s12237_s11 + $0x158] sm:$0xff] }
 0xae1   : > { %v6335_v15 = vpop.f32.mrf.mxu0 }
 0xae2   : > { %v6338_v19 = vadd.f32 %v6334_v54, %v5956_v8  ;;  %v6336_v55 = vadd.f32 %v6335_v15, %v6264_v60  ;;  %v7942_v8 = vld [vmem:[%s12237_s11 + $0x170] sm:$0xff]  ;;  %v7937_v60 = vld [vmem:[%s12237_s11 + $0x148] sm:$0xff]  ;;  %v7936_v15 = vld [vmem:[%s12237_s11 + $0x140] sm:$0xff] }
 0xae3   : > { %v7938_v54 = vld [vmem:[%s12237_s11 + $0x150] sm:$0xff] }
 0xae4   : > { %v6342_v58 = vmin.f32 %v6338_v19, 0.0  ;;  %v6339_v44 = vadd.f32 %v6336_v55, %v5957_v6  ;;  %vm6340_vm5 = vcmp.gt.f32.partialorder %v6338_v19, 0.0  ;;  %v6455_v6 = vld [vmem:[%s12237_s11 + $0x98] sm:$0xff] }
 0xae6   : > { %v6344_v14 = vmul.f32 1.442695, %v6342_v58  ;;  %v6343_v34 = vmin.f32 %v6339_v44, 0.0  ;;  %vm6341_vm4 = vcmp.gt.f32.partialorder %v6339_v44, 0.0 }
 0xae8   : > { %8507 = vpow2.f32 %v6344_v14  ;;  %v6346_v23 = vmul.f32 1.442695, %v6343_v34  ;;  %v7945_v14 = vld [vmem:[%s12236_s10 + $0x8] sm:$0x7]  ;;  %v7964_v34 = vld [vmem:[%s12237_s11 + $0x1f8] sm:$0xff] }
 0xaea   : > { %8509 = vpow2.f32 %v6346_v23  ;;  %v7963_v23 = vld [vmem:[%s12237_s11 + $0x1f0] sm:$0xff] }
 0xaf5   : > { %v8508_v17 = vpop.eup %8507 }
 0xaf6   : > { %v7909_v53 = vadd.f32 -1.0, %v8508_v17  ;;  %v7962_v17 = vld [vmem:[%s12237_s11 + $0x1e8] sm:$0xff] }
 0xaf7   : > { %v8510_v36 = vpop.eup %8509 }
 0xaf8   : > { %v7910_v2 = vadd.f32 -1.0, %v8510_v36  ;;  %v11659_v26 = vsel %vm6340_vm5, %v6338_v19, %v7909_v53  ;;  %v7961_v36 = vld [vmem:[%s12237_s11 + $0x1e0] sm:$0xff]  ;;  %v7960_v53 = vld [vmem:[%s12237_s11 + $0x1d8] sm:$0xff] }
 0xafa   : > { %v11650_v48 = vsel %vm6341_vm4, %v6339_v44, %v7910_v2  ;;  %v7959_v2 = vld [vmem:[%s12237_s11 + $0x1d0] sm:$0xff] }
 0xafb   : > { %7911 = vmatprep.subr.msk.mxu0 %vm6358_vm2, %v11650_v48  ;;  %7917 = vmatprep.subr.msk.mxu1 %vm6358_vm2, %v11650_v48 }
 0xafc   : > { %7912 = vmatpush1.msk.msra.mxu0 %vm6358_vm2, %v11659_v26  ;;  %7918 = vmatpush1.msk.msra.mxu1 %vm6358_vm2, %v11659_v26 }
 0xafd   : > { %7913 = vmatmul.mubr.msk.f32.vlgmr.msra.gmra.mxu0 %vm6354_vm6, %v6353_v32  ;;  %6464 = vmatprep.subr.mxu0 %v8619_v0  ;;  %v7957_v32 = vld [vmem:[%s12237_s11 + $0x1c0] sm:$0xff] }
 0xafe   : > { %6465 = vmatpush1.msra.mxu0 %v6451_v59  ;;  %7919 = vmatmul.mubr.msk.f32.vlgmr.msra.gmra.mxu1 %vm6354_vm6, %v7916_v16  ;;  %v7955_v59 = vld [vmem:[%s12237_s11 + $0x1b0] sm:$0xff]  ;;  %v7954_v16 = vld [vmem:[%s12237_s11 + $0x1a8] sm:$0xff] }
 0xaff   : > { %6466 = vmatprep.subr.mxu0 %v8619_v0  ;;  %6645 = vmatprep.subr.mxu1 %v8619_v0 }
 0xb00   : > { %6467 = vmatpush1.msra.mxu0 %v6450_v63  ;;  %6646 = vmatpush1.msra.mxu1 %v7935_v47  ;;  %v7953_v63 = vld [vmem:[%s12237_s11 + $0x1a0] sm:$0xff]  ;;  %v7952_v47 = vld [vmem:[%s12237_s11 + $0x198] sm:$0xff] }
 0xb01   : > { %6468 = vmatprep.subr.mxu0 %v8619_v0  ;;  %6647 = vmatprep.subr.mxu1 %v8619_v0 }
 0xb02   : > { %6469 = vmatpush1.msra.mxu0 %v6449_v28  ;;  %6648 = vmatpush1.msra.mxu1 %v7934_v21  ;;  %v7951_v28 = vld [vmem:[%s12237_s11 + $0x190] sm:$0xff]  ;;  %v7950_v21 = vld [vmem:[%s12237_s11 + $0x188] sm:$0xff] }
 0xb03   : > { %6470 = vmatprep.subr.mxu0 %v8619_v0  ;;  %6649 = vmatprep.subr.mxu1 %v8619_v0 }
 0xb04   : > { %6471 = vmatpush1.msra.mxu0 %v6448_v29  ;;  %6650 = vmatpush1.msra.mxu1 %v7933_v33  ;;  %v7949_v29 = vld [vmem:[%s12237_s11 + $0x180] sm:$0xff]  ;;  %v7972_v33 = vld [vmem:[%s12237_s11 + $0x238] sm:$0xff] }
 0xb05   : > { %6472 = vmatprep.subr.mxu0 %v8619_v0  ;;  %6651 = vmatprep.subr.mxu1 %v8619_v0 }
 0xb06   : > { %6473 = vmatpush1.msra.mxu0 %v6447_v42  ;;  %6652 = vmatpush1.msra.mxu1 %v7932_v1  ;;  %v7971_v42 = vld [vmem:[%s12237_s11 + $0x230] sm:$0xff]  ;;  %v7970_v1 = vld [vmem:[%s12237_s11 + $0x228] sm:$0xff] }
 0xb07   : > { %6474 = vmatprep.subr.mxu0 %v8619_v0  ;;  %6653 = vmatprep.subr.mxu1 %v8619_v0 }
 0xb08   : > { %6475 = vmatpush1.msra.mxu0 %v6446_v57  ;;  %6654 = vmatpush1.msra.mxu1 %v7931_v39  ;;  %v7969_v57 = vld [vmem:[%s12237_s11 + $0x220] sm:$0xff]  ;;  %v7968_v39 = vld [vmem:[%s12237_s11 + $0x218] sm:$0xff] }
 0xb09   : > { %6476 = vmatprep.subr.mxu0 %v8619_v0  ;;  %6655 = vmatprep.subr.mxu1 %v8619_v0 }
 0xb0a   : > { %6477 = vmatpush1.msra.mxu0 %v6445_v62  ;;  %6656 = vmatpush1.msra.mxu1 %v7930_v12  ;;  %v7967_v62 = vld [vmem:[%s12237_s11 + $0x210] sm:$0xff]  ;;  %v7966_v12 = vld [vmem:[%s12237_s11 + $0x208] sm:$0xff] }
 0xb0b   : > { %6478 = vmatprep.subr.mxu0 %v8619_v0  ;;  %6657 = vmatprep.subr.mxu1 %v8619_v0 }
 0xb0c   : > { %6479 = vmatpush1.msra.mxu0 %v6444_v22  ;;  %6658 = vmatpush1.msra.mxu1 %v7929_v61  ;;  %v7965_v22 = vld [vmem:[%s12237_s11 + $0x200] sm:$0xff]  ;;  %v6902_v61 = vld [vmem:[%s12239_s13 + $0x58] sm:$0xff] }
 0xb0d   : > { %6480 = vmatprep.subr.mxu0 %v8619_v0  ;;  %6659 = vmatprep.subr.mxu1 %v8619_v0 }
 0xb0e   : > { %6481 = vmatpush1.msra.mxu0 %v6443_v51  ;;  %6660 = vmatpush1.msra.mxu1 %v7928_v30  ;;  %v6901_v51 = vld [vmem:[%s12239_s13 + $0x50] sm:$0xff]  ;;  %v6900_v30 = vld [vmem:[%s12239_s13 + $0x48] sm:$0xff] }
 0xb0f   : > { %6482 = vmatprep.subr.mxu0 %v8619_v0  ;;  %6661 = vmatprep.subr.mxu1 %v8619_v0 }
 0xb10   : > { %6483 = vmatpush1.msra.mxu0 %v6442_v38  ;;  %6662 = vmatpush1.msra.mxu1 %v7927_v40  ;;  %v6899_v38 = vld [vmem:[%s12239_s13 + $0x40] sm:$0xff]  ;;  %v6898_v40 = vld [vmem:[%s12239_s13 + $0x38] sm:$0xff] }
 0xb11   : > { %6484 = vmatprep.subr.mxu0 %v8619_v0  ;;  %6663 = vmatprep.subr.mxu1 %v8619_v0 }
 0xb12   : > { %6485 = vmatpush1.msra.mxu0 %v6441_v18  ;;  %6664 = vmatpush1.msra.mxu1 %v7926_v41  ;;  %v6897_v18 = vld [vmem:[%s12239_s13 + $0x30] sm:$0xff]  ;;  %v6896_v41 = vld [vmem:[%s12239_s13 + $0x28] sm:$0xff] }
 0xb13   : > { %6486 = vmatprep.subr.mxu0 %v8619_v0  ;;  %6665 = vmatprep.subr.mxu1 %v8619_v0 }
 0xb14   : > { %6487 = vmatpush1.msra.mxu0 %v6440_v56  ;;  %6666 = vmatpush1.msra.mxu1 %v7925_v5  ;;  %v6895_v56 = vld [vmem:[%s12239_s13 + $0x20] sm:$0xff]  ;;  %v6894_v5 = vld [vmem:[%s12239_s13 + $0x18] sm:$0xff] }
 0xb15   : > { %6488 = vmatprep.subr.mxu0 %v8619_v0  ;;  %6667 = vmatprep.subr.mxu1 %v8619_v0 }
 0xb16   : > { %6489 = vmatpush1.msra.mxu0 %v6439_v43  ;;  %6668 = vmatpush1.msra.mxu1 %v7924_v13  ;;  %v6893_v43 = vld [vmem:[%s12239_s13 + $0x10] sm:$0xff]  ;;  %v6892_v13 = vld [vmem:[%s12239_s13 + $0x8] sm:$0xff] }
 0xb17   : > { %6490 = vmatprep.subr.mxu0 %v8619_v0  ;;  %6669 = vmatprep.subr.mxu1 %v8619_v0 }
 0xb18   : > { %6491 = vmatpush1.msra.mxu0 %v6438_v50  ;;  %6670 = vmatpush1.msra.mxu1 %v7923_v3  ;;  %v7915_v50 = vld [vmem:[%s12238_s12] ss:$0 sm:$0xff] }
 0xb19   : > { %6492 = vmatprep.subr.mxu0 %v8619_v0  ;;  %6671 = vmatprep.subr.mxu1 %v8619_v0 }
 0xb1a   : > { %6493 = vmatpush1.msra.mxu0 %v6437_v35  ;;  %6672 = vmatpush1.msra.mxu1 %v7922_v27 }
 0xb1b   : > { %6494 = vmatprep.subr.mxu0 %v8619_v0  ;;  %6673 = vmatprep.subr.mxu1 %v8619_v0 }
 0xb1c   : > { %6495 = vmatpush1.msra.mxu0 %v6436_v46  ;;  %6674 = vmatpush1.msra.mxu1 %v7921_v31 }
 0xb1d   : > { %6512 = vmatprep.subr.mxu0 %v8619_v0  ;;  %6675 = vmatprep.subr.mxu1 %v8619_v0 }
 0xb1e   : > { %6513 = vmatpush2.msra.mxu0 %v6459_v4  ;;  %6676 = vmatpush1.msra.mxu1 %v7920_v37 }
 0xb1f   : > { %6514 = vmatprep.subr.mxu0 %v8619_v0  ;;  %6693 = vmatprep.subr.mxu1 %v8619_v0 }
 0xb20   : > { %6515 = vmatpush2.msra.mxu0 %v6458_v49  ;;  %6694 = vmatpush2.msra.mxu1 %v7943_v45  ;;  %v6914_v45 = vld [vmem:[%s12239_s13 + $0xb8] sm:$0xff] }
 0xb21   : > { %6516 = vmatprep.subr.mxu0 %v8619_v0  ;;  %6695 = vmatprep.subr.mxu1 %v8619_v0 }
 0xb22   : > { %6517 = vmatpush2.msra.mxu0 %v6457_v9  ;;  %6696 = vmatpush2.msra.mxu1 %v7942_v8  ;;  %v6913_v9 = vld [vmem:[%s12239_s13 + $0xb0] sm:$0xff]  ;;  %v6912_v8 = vld [vmem:[%s12239_s13 + $0xa8] sm:$0xff] }
 0xb23   : > { %6518 = vmatprep.subr.mxu0 %v8619_v0  ;;  %6697 = vmatprep.subr.mxu1 %v8619_v0 }
 0xb24   : > { %6519 = vmatpush2.msra.mxu0 %v6456_v52  ;;  %6698 = vmatpush2.msra.mxu1 %v7941_v7  ;;  %v6911_v52 = vld [vmem:[%s12239_s13 + $0xa0] sm:$0xff]  ;;  %v6910_v7 = vld [vmem:[%s12239_s13 + $0x98] sm:$0xff] }
 0xb25   : > { %6520 = vmatprep.subr.mxu0 %v8619_v0  ;;  %6699 = vmatprep.subr.mxu1 %v8619_v0 }
 0xb26   : > { %6521 = vmatpush2.msra.mxu0 %v6455_v6  ;;  %6700 = vmatpush2.msra.mxu1 %v7940_v10  ;;  %v6909_v6 = vld [vmem:[%s12239_s13 + $0x90] sm:$0xff] }
 0xb27   : > { %6522 = vmatprep.subr.mxu0 %v8619_v0  ;;  %6701 = vmatprep.subr.mxu1 %v8619_v0  ;;  %v6905_v10 = vld [vmem:[%s12239_s13 + $0x70] sm:$0xff] }
 0xb28   : > { %6523 = vmatpush2.msra.mxu0 %v6454_v25  ;;  %6702 = vmatpush2.msra.mxu1 %v7939_v11  ;;  %v6908_v25 = vld [vmem:[%s12239_s13 + $0x88] sm:$0xff]  ;;  %v6891_v11 = vld [vmem:[%s12239_s13] sm:$0xff] }
 0xb29   : > { %6524 = vmatprep.subr.mxu0 %v8619_v0  ;;  %6703 = vmatprep.subr.mxu1 %v8619_v0 }
 0xb2a   : > { %6525 = vmatpush2.msra.mxu0 %v6453_v24  ;;  %6704 = vmatpush2.msra.mxu1 %v7938_v54  ;;  %v6907_v24 = vld [vmem:[%s12239_s13 + $0x80] sm:$0xff]  ;;  %v6904_v54 = vld [vmem:[%s12239_s13 + $0x68] sm:$0xff] }
 0xb2b   : > { %6526 = vmatprep.subr.mxu0 %v8619_v0  ;;  %6705 = vmatprep.subr.mxu1 %v8619_v0 }
 0xb2c   : > { %6527 = vmatpush2.msra.mxu0 %v6452_v20  ;;  %6706 = vmatpush2.msra.mxu1 %v7937_v60  ;;  %v6906_v20 = vld [vmem:[%s12239_s13 + $0x78] sm:$0xff]  ;;  %v6903_v60 = vld [vmem:[%s12239_s13 + $0x60] sm:$0xff] }
 0xb2d   : > { %7946 = vmatprep.subr.msk.mxu0 %vm6358_vm2, %v11650_v48  ;;  %6707 = vmatprep.subr.mxu1 %v8619_v0  ;;  %v7958_v48 = vld [vmem:[%s12237_s11 + $0x1c8] sm:$0xff] }
 0xb2e   : > { %6708 = vmatpush2.msra.mxu1 %v7936_v15 }
 0xb2f   : > { %8294 = vmatprep.subr.mxu1 %v8619_v0 }
 0xbbd   : > { %v6431_v19 = vpop.f32.mrf.mxu0 }
 0xbbe   : > { %v6612_v55 = vpop.f32.mrf.mxu1 }
 0xbbf   : > { %v6433_v58 = vpop.f32.mrf.mxu0 }
 0xbc0   : > { %7914 = vmatprep.mubr.msk.f32.mxu0 %vm6460_vm7, %v6433_v58  ;;  %v6614_v44 = vpop.f32.mrf.mxu1 }
 0xbc1   : > { %6529 = vmatmul.mubr.f32.vlgmr.msra.gmra.mxu0 %v6431_v19  ;;  %7944 = vmatprep.mubr.msk.f32.mxu1 %vm6460_vm7, %v6614_v44 }
 0xbc2   : > { %7947 = vmatpush1.msk.msra.mxu0 %vm6358_vm2, %v11659_v26  ;;  %6785 = vmatprep.mubr.f32.mxu0 %v8619_v0  ;;  %v7956_v26 = vld [vmem:[%s12237_s11 + $0x1b8] sm:$0xff] }
 0xbc3   : > { %6710 = vmatmul.mubr.f32.vlgmr.msra.gmra.mxu1 %v6612_v55  ;;  %6820 = vmatprep.subr.mxu0 %v8619_v0  ;;  %v6926_v55 = vld [vmem:[%s12239_s13 + $0x118] sm:$0xff] }
 0xbc4   : > { %8318 = vmatprep.mubr.msk.f32.mxu1 %vm8620_vm14, %v8619_v0  ;;  %8295 = vmatpush3.msra.mxu1 %v6902_v61 }
 0xbc5   : > { %7948 = vmatmul.mubr.msk.f32.vlgmr.msra.gmra.mxu0 %vm6354_vm6, %v7945_v14  ;;  %8296 = vmatprep.subr.mxu1 %v8619_v0  ;;  %v6925_v14 = vld [vmem:[%s12239_s13 + $0x110] sm:$0xff] }
 0xbc6   : > { %6821 = vmatpush1.msra.mxu0 %v7964_v34  ;;  %8297 = vmatpush3.msra.mxu1 %v6901_v51  ;;  %v6924_v34 = vld [vmem:[%s12239_s13 + $0x108] sm:$0xff] }
 0xbc7   : > { %6822 = vmatprep.subr.mxu0 %v8619_v0  ;;  %8298 = vmatprep.subr.mxu1 %v8619_v0 }
 0xbc8   : > { %6823 = vmatpush1.msra.mxu0 %v7963_v23  ;;  %8299 = vmatpush3.msra.mxu1 %v6900_v30  ;;  %v6923_v23 = vld [vmem:[%s12239_s13 + $0x100] sm:$0xff] }
 0xbc9   : > { %6824 = vmatprep.subr.mxu0 %v8619_v0  ;;  %8300 = vmatprep.subr.mxu1 %v8619_v0 }
 0xbca   : > { %6825 = vmatpush1.msra.mxu0 %v7962_v17  ;;  %8301 = vmatpush3.msra.mxu1 %v6899_v38  ;;  %v6922_v17 = vld [vmem:[%s12239_s13 + $0xf8] sm:$0xff] }
 0xbcb   : > { %6826 = vmatprep.subr.mxu0 %v8619_v0  ;;  %8302 = vmatprep.subr.mxu1 %v8619_v0 }
 0xbcc   : > { %6827 = vmatpush1.msra.mxu0 %v7961_v36  ;;  %8303 = vmatpush3.msra.mxu1 %v6898_v40  ;;  %v6921_v36 = vld [vmem:[%s12239_s13 + $0xf0] sm:$0xff]  ;;  %v6927_v40 = vld [vmem:[%s12240_s14] sm:$0x1] }
 0xbcd   : > { %6828 = vmatprep.subr.mxu0 %v8619_v0  ;;  %8304 = vmatprep.subr.mxu1 %v8619_v0 }
 0xbce   : > { %6829 = vmatpush1.msra.mxu0 %v7960_v53  ;;  %8305 = vmatpush3.msra.mxu1 %v6897_v18  ;;  %v6920_v53 = vld [vmem:[%s12239_s13 + $0xe8] sm:$0xff] }
 0xbcf   : > { %6830 = vmatprep.subr.mxu0 %v8619_v0  ;;  %8306 = vmatprep.subr.mxu1 %v8619_v0 }
 0xbd0   : > { %6831 = vmatpush1.msra.mxu0 %v7959_v2  ;;  %8307 = vmatpush3.msra.mxu1 %v6896_v41  ;;  %v6919_v2 = vld [vmem:[%s12239_s13 + $0xe0] sm:$0xff] }
 0xbd1   : > { %6832 = vmatprep.subr.mxu0 %v8619_v0  ;;  %8308 = vmatprep.subr.mxu1 %v8619_v0 }
 0xbd2   : > { %6833 = vmatpush1.msra.mxu0 %v7958_v48  ;;  %8309 = vmatpush3.msra.mxu1 %v6895_v56  ;;  %v6918_v48 = vld [vmem:[%s12239_s13 + $0xd8] sm:$0xff] }
 0xbd3   : > { %6834 = vmatprep.subr.mxu0 %v8619_v0  ;;  %8310 = vmatprep.subr.mxu1 %v8619_v0 }
 0xbd4   : > { %6835 = vmatpush1.msra.mxu0 %v7957_v32  ;;  %8311 = vmatpush3.msra.mxu1 %v6894_v5  ;;  %v6917_v32 = vld [vmem:[%s12239_s13 + $0xd0] sm:$0xff] }
 0xbd5   : > { %6836 = vmatprep.subr.mxu0 %v8619_v0  ;;  %8312 = vmatprep.subr.mxu1 %v8619_v0 }
 0xbd6   : > { %6837 = vmatpush1.msra.mxu0 %v7956_v26  ;;  %8313 = vmatpush3.msra.mxu1 %v6893_v43  ;;  %v6916_v26 = vld [vmem:[%s12239_s13 + $0xc8] sm:$0xff] }
 0xbd7   : > { %6838 = vmatprep.subr.mxu0 %v8619_v0  ;;  %8314 = vmatprep.subr.mxu1 %v8619_v0 }
 0xbd8   : > { %6839 = vmatpush1.msra.mxu0 %v7955_v59  ;;  %8315 = vmatpush3.msra.mxu1 %v6892_v13  ;;  %v6915_v59 = vld [vmem:[%s12239_s13 + $0xc0] sm:$0xff] }
 0xbd9   : > { %6840 = vmatprep.subr.mxu0 %v8619_v0  ;;  %8316 = vmatprep.subr.mxu1 %v8619_v0 }
 0xbda   : > { %6841 = vmatpush1.msra.mxu0 %v7954_v16  ;;  %8317 = vmatpush3.msra.mxu1 %v6891_v11 }
 0xbdb   : > { %6842 = vmatprep.subr.mxu0 %v8619_v0  ;;  %8348 = vmatprep.subr.mxu1 %v8619_v0 }
 0xbdc   : > { %6843 = vmatpush1.msra.mxu0 %v7953_v63  ;;  %v7168_v63 = vld [vmem:[%s12241_s15 + $0x60] sm:$0xf] }
 0xbdd   : > { %6844 = vmatprep.subr.mxu0 %v8619_v0 }
 0xbde   : > { %6845 = vmatpush1.msra.mxu0 %v7952_v47  ;;  %v7167_v47 = vld [vmem:[%s12241_s15 + $0x58] sm:$0xff] }
 0xbdf   : > { %6846 = vmatprep.subr.mxu0 %v8619_v0 }
 0xbe0   : > { %6847 = vmatpush1.msra.mxu0 %v7951_v28  ;;  %v7166_v28 = vld [vmem:[%s12241_s15 + $0x50] sm:$0xff] }
 0xbe1   : > { %6848 = vmatprep.subr.mxu0 %v8619_v0 }
 0xbe2   : > { %6849 = vmatpush1.msra.mxu0 %v7950_v21  ;;  %v7165_v21 = vld [vmem:[%s12241_s15 + $0x48] sm:$0xff] }
 0xbe3   : > { %6850 = vmatprep.subr.mxu0 %v8619_v0 }
 0xbe4   : > { %6851 = vmatpush1.msra.mxu0 %v7949_v29  ;;  %v7164_v29 = vld [vmem:[%s12241_s15 + $0x40] sm:$0xff] }
 0xbe5   : > { %6868 = vmatprep.subr.mxu0 %v8619_v0 }
 0xbe6   : > { %6869 = vmatpush2.msra.mxu0 %v7972_v33  ;;  %v7163_v33 = vld [vmem:[%s12241_s15 + $0x38] sm:$0xff] }
 0xbe7   : > { %6870 = vmatprep.subr.mxu0 %v8619_v0 }
 0xbe8   : > { %6871 = vmatpush2.msra.mxu0 %v7971_v42  ;;  %v7162_v42 = vld [vmem:[%s12241_s15 + $0x30] sm:$0xff] }
 0xbe9   : > { %6872 = vmatprep.subr.mxu0 %v8619_v0 }
 0xbea   : > { %6873 = vmatpush2.msra.mxu0 %v7970_v1  ;;  %v7161_v1 = vld [vmem:[%s12241_s15 + $0x28] sm:$0xff] }
 0xbeb   : > { %6874 = vmatprep.subr.mxu0 %v8619_v0 }
 0xbec   : > { %6875 = vmatpush2.msra.mxu0 %v7969_v57  ;;  %v7160_v57 = vld [vmem:[%s12241_s15 + $0x20] sm:$0xff] }
 0xbed   : > { %6876 = vmatprep.subr.mxu0 %v8619_v0 }
 0xbee   : > { %6877 = vmatpush2.msra.mxu0 %v7968_v39  ;;  %v7159_v39 = vld [vmem:[%s12241_s15 + $0x18] sm:$0xff] }
 0xbef   : > { %6878 = vmatprep.subr.mxu0 %v8619_v0 }
 0xbf0   : > { %6879 = vmatpush2.msra.mxu0 %v7967_v62  ;;  %v7158_v62 = vld [vmem:[%s12241_s15 + $0x10] sm:$0xff] }
 0xbf1   : > { %6880 = vmatprep.subr.mxu0 %v8619_v0 }
 0xbf2   : > { %6881 = vmatpush2.msra.mxu0 %v7966_v12  ;;  %v7157_v12 = vld [vmem:[%s12241_s15 + $0x8] sm:$0xff] }
 0xbf3   : > { %6882 = vmatprep.subr.mxu0 %v8619_v0 }
 0xbf4   : > { %6883 = vmatpush2.msra.mxu0 %v7965_v22  ;;  %v7156_v22 = vld [vmem:[%s12241_s15] sm:$0xff] }
 0xbf5   : > { %8321 = vmatprep.subr.mxu0 %v8619_v0 }
 0xc81   : > { %v6530_v3 = vpop.f32.mrf.mxu0 }
 0xc82   : > { %v6540_v35 = vadd.f32 %v7915_v50, %v6530_v3 }
 0xc83   : > { %v6532_v27 = vpop.f32.mrf.mxu0  ;;  %v6711_v46 = vpop.f32.mrf.mxu1 }
 0xc84   : > { %v6715_v31 = vadd.f32 %v6711_v46, %v6540_v35  ;;  %v7169_v27 = vld [vmem:[%s12242_s16] sm:$0x1] }
 0xc85   : > { %v6787_v4 = vpop.f32.mrf.mxu0  ;;  %v6713_v37 = vpop.f32.mrf.mxu1 }
 0xc87   : > { %v6789_v49 = vpop.f32.mrf.mxu0 }
 0xc88   : > { %7973 = vmatprep.mubr.msk.f32.mxu0 %vm6460_vm7, %v6789_v49 }
 0xc89   : > { %6885 = vmatmul.mubr.f32.vlgmr.msra.gmra.mxu0 %v6787_v4 }
 0xc8a   : > { %8322 = vmatpush3.msra.mxu0 %v6914_v45  ;;  %8345 = vmatprep.mubr.msk.f32.mxu0 %vm8620_vm14, %v8619_v0 }
 0xc8b   : > { %8323 = vmatprep.subr.mxu0 %v8619_v0 }
 0xc8c   : > { %8324 = vmatpush3.msra.mxu0 %v6913_v9 }
 0xc8d   : > { %8325 = vmatprep.subr.mxu0 %v8619_v0 }
 0xc8e   : > { %8326 = vmatpush3.msra.mxu0 %v6912_v8 }
 0xc8f   : > { %8327 = vmatprep.subr.mxu0 %v8619_v0 }
 0xc90   : > { %8328 = vmatpush3.msra.mxu0 %v6911_v52 }
 0xc91   : > { %8329 = vmatprep.subr.mxu0 %v8619_v0 }
 0xc92   : > { %8330 = vmatpush3.msra.mxu0 %v6910_v7 }
 0xc93   : > { %8331 = vmatprep.subr.mxu0 %v8619_v0 }
 0xc94   : > { %8332 = vmatpush3.msra.mxu0 %v6909_v6 }
 0xc95   : > { %8333 = vmatprep.subr.mxu0 %v8619_v0 }
 0xc96   : > { %8334 = vmatpush3.msra.mxu0 %v6908_v25 }
 0xc97   : > { %8335 = vmatprep.subr.mxu0 %v8619_v0 }
 0xc98   : > { %8336 = vmatpush3.msra.mxu0 %v6907_v24 }
 0xc99   : > { %8337 = vmatprep.subr.mxu0 %v8619_v0 }
 0xc9a   : > { %8338 = vmatpush3.msra.mxu0 %v6906_v20 }
 0xc9b   : > { %8339 = vmatprep.subr.mxu0 %v8619_v0 }
 0xc9c   : > { %8340 = vmatpush3.msra.mxu0 %v6905_v10 }
 0xc9d   : > { %8341 = vmatprep.subr.mxu0 %v8619_v0 }
 0xc9e   : > { %8342 = vmatpush3.msra.mxu0 %v6904_v54 }
 0xc9f   : > { %8343 = vmatprep.subr.mxu0 %v8619_v0 }
 0xca0   : > { %8344 = vmatpush3.msra.mxu0 %v6903_v60 }
 0xca1   : > { %8375 = vmatprep.subr.mxu0 %v8619_v0 }
 0xd49   : > { %v6886_v15 = vpop.f32.mrf.mxu0 }
 0xd4a   : > { %v6890_v19 = vadd.f32 %v6886_v15, %v6715_v31 }
 0xd4b   : > { %v6888_v58 = vpop.f32.mrf.mxu0 }
 0xd4c   : > { %v7002_v44 = vrot.slane %v6890_v19, 1  ;;  %8319 = vmatmul.mubr.msk.f32.vlgmr.msra.gmra.mxu1 %vm5417_vm1, %v6890_v19  ;;  %v7076_v16 = vrot.slane %v6890_v19, 2 }
 0xd4d   : > { %8349 = vmatpush3.msra.mxu1 %v6926_v55  ;;  %8372 = vmatprep.mubr.msk.f32.mxu1 %vm8620_vm14, %v8619_v0 }
 0xd4e   : > { %8350 = vmatprep.subr.mxu1 %v8619_v0  ;;  %8346 = vmatmul.mubr.msk.f32.vlgmr.msra.gmra.mxu0 %vm5417_vm1, %v7002_v44 }
 0xd4f   : > { %8351 = vmatpush3.msra.mxu1 %v6925_v14  ;;  %8401 = vmatprep.mubr.msk.f32.mxu0 %vm8620_vm14, %v8619_v0 }
 0xd50   : > { %8352 = vmatprep.subr.mxu1 %v8619_v0  ;;  %8376 = vmatpush3.msk.msra.mxu0 %vm7174_vm8, %v7168_v63 }
 0xd51   : > { %8353 = vmatpush3.msra.mxu1 %v6924_v34  ;;  %8377 = vmatprep.subr.mxu0 %v8619_v0 }
 0xd52   : > { %8354 = vmatprep.subr.mxu1 %v8619_v0  ;;  %8378 = vmatpush3.msra.mxu0 %v7167_v47 }
 0xd53   : > { %8355 = vmatpush3.msra.mxu1 %v6923_v23  ;;  %8379 = vmatprep.subr.mxu0 %v8619_v0 }
 0xd54   : > { %8356 = vmatprep.subr.mxu1 %v8619_v0  ;;  %8380 = vmatpush3.msra.mxu0 %v7166_v28 }
 0xd55   : > { %8357 = vmatpush3.msra.mxu1 %v6922_v17  ;;  %8381 = vmatprep.subr.mxu0 %v8619_v0 }
 0xd56   : > { %8358 = vmatprep.subr.mxu1 %v8619_v0  ;;  %8382 = vmatpush3.msra.mxu0 %v7165_v21 }
 0xd57   : > { %8359 = vmatpush3.msra.mxu1 %v6921_v36  ;;  %8383 = vmatprep.subr.mxu0 %v8619_v0 }
 0xd58   : > { %8360 = vmatprep.subr.mxu1 %v8619_v0  ;;  %8384 = vmatpush3.msra.mxu0 %v7164_v29 }
 0xd59   : > { %8361 = vmatpush3.msra.mxu1 %v6920_v53  ;;  %8385 = vmatprep.subr.mxu0 %v8619_v0 }
 0xd5a   : > { %8362 = vmatprep.subr.mxu1 %v8619_v0  ;;  %8386 = vmatpush3.msra.mxu0 %v7163_v33 }
 0xd5b   : > { %8363 = vmatpush3.msra.mxu1 %v6919_v2  ;;  %8387 = vmatprep.subr.mxu0 %v8619_v0 }
 0xd5c   : > { %8364 = vmatprep.subr.mxu1 %v8619_v0  ;;  %8388 = vmatpush3.msra.mxu0 %v7162_v42 }
 0xd5d   : > { %8365 = vmatpush3.msra.mxu1 %v6918_v48  ;;  %8389 = vmatprep.subr.mxu0 %v8619_v0 }
 0xd5e   : > { %8366 = vmatprep.subr.mxu1 %v8619_v0  ;;  %8390 = vmatpush3.msra.mxu0 %v7161_v1 }
 0xd5f   : > { %8367 = vmatpush3.msra.mxu1 %v6917_v32  ;;  %8391 = vmatprep.subr.mxu0 %v8619_v0 }
 0xd60   : > { %8368 = vmatprep.subr.mxu1 %v8619_v0  ;;  %8392 = vmatpush3.msra.mxu0 %v7160_v57 }
 0xd61   : > { %8369 = vmatpush3.msra.mxu1 %v6916_v26  ;;  %8393 = vmatprep.subr.mxu0 %v8619_v0 }
 0xd62   : > { %8370 = vmatprep.subr.mxu1 %v8619_v0  ;;  %8394 = vmatpush3.msra.mxu0 %v7159_v39 }
 0xd63   : > { %8371 = vmatpush3.msra.mxu1 %v6915_v59  ;;  %8395 = vmatprep.subr.mxu0 %v8619_v0 }
 0xd64   : > { %8373 = vmatmul.mubr.msk.f32.vlgmr.msra.gmra.mxu1 %vm5417_vm1, %v7076_v16  ;;  %8396 = vmatpush3.msra.mxu0 %v7158_v62 }
 0xd65   : > { %8397 = vmatprep.subr.mxu0 %v8619_v0 }
 0xd66   : > { %8398 = vmatpush3.msra.mxu0 %v7157_v12 }
 0xd67   : > { %8399 = vmatprep.subr.mxu0 %v8619_v0 }
 0xd68   : > { %8400 = vmatpush3.msra.mxu0 %v7156_v22 }
 0xe0c   : > { %v6997_v61 = vpop.f32.mrf.mxu1 }
 0xe0d   : > { %v7001_v18 = vadd.f32 %v6997_v61, %v6927_v40 }
 0xe0e   : > { %v8320_v51 = vpop.f32.mrf.mxu1  ;;  %v7071_v30 = vpop.f32.mrf.mxu0 }
 0xe0f   : > { %v7075_v41 = vadd.f32 %v7071_v30, %v7001_v18 }
 0xe10   : > { %v8347_v38 = vpop.f32.mrf.mxu0 }
 0xe24   : > { %v7145_v56 = vpop.f32.mrf.mxu1 }
 0xe25   : > { %v7149_v5 = vadd.f32 %v7145_v56, %v7075_v41 }
 0xe26   : > { %v8374_v0 = vpop.f32.mrf.mxu1 }
 0xe27   : > { %v7151_v43 = vmin.f32 %v7149_v5, 0.0  ;;  %vm7150_vm9 = vcmp.gt.f32.partialorder %v7149_v5, 0.0 }
 0xe29   : > { %v7152_v13 = vmul.f32 1.442695, %v7151_v43 }
 0xe2b   : > { %8511 = vpow2.f32 %v7152_v13 }
 0xe38   : > { %v8512_v50 = vpop.eup %8511 }
 0xe39   : > { %v7977_v3 = vadd.f32 -1.0, %v8512_v50 }
 0xe3b   : > { %v7155_v35 = vsel %vm7150_vm9, %v7149_v5, %v7977_v3 }
 0xe3c   : > { %8402 = vmatmul.mubr.msk.f32.vlgmr.msra.gmra.mxu0 %vm7170_vm3, %v7155_v35 }
 0xefc   : > { %v7244_v46 = vpop.f32.mrf.mxu0 }
 0xefd   : > { %v7245_v31 = vadd.f32 %v7244_v46, %v7169_v27 }
 0xefe   : > { %v8403_v4 = vpop.f32.mrf.mxu0 }
 0xeff   : > { %7249 = vst.msk [vmem:[%s555_s24] sm:$0x1] %vm7248_vm10, %v7245_v31 }
 0xf00   : > { %8563 = shalt.err (!%p8560_p0)
}
 0xf01   : > { %s8564_s21 = scalar_lea.hbm %s12191_s0, 16  ;;  %s8568_s19 = scalar_lea.hbm %s12243_s17, 32 }
 0xf02   : > { %p8565_p1 = scmp.ne.s32.totalorder %s12191_s0, %s8564_s21  ;;  %p8569_p4 = scmp.lt.s32.totalorder %s12191_s0, %s12243_s17 }
 0xf03   : > { %p8570_p7 = scmp.lt.s32.totalorder %s8568_s19, %s8564_s21 }
 0xf04   : > { %p8566_p2 = pnand %p8565_p1, %p8750_p5 }
 0xf05   : > { %p8571_p8 = por %p8570_p7, %p8569_p4 }
 0xf06   : > { %p8567_p3 = pneg %p8566_p2 }
 0xf08   : > { %p8572_p6 = pnand %p8571_p8, %p8567_p3 }
 0xf0a   : > { %8575 = shalt.err (!%p8572_p6)
}
 0xf0b   : > { %8409 = dma.vmem_to_hbm [thread:$0]  (%p8750_p5), %s7264_s20, 16, %s12191_s0, %s7251_s18  }
 0xf0c PF: > { %s12264_s22 = sld [smem:[#allocation8_spill]]  ;;  %p8421_p9 = scmp.ge.s32.totalorder %s8614_s27, 2 }
 0xf0d   : > { %s12265_s5 = sld [smem:[#allocation12_spill]] }
 0xf12   : > { %s7275_s26 = sand.u32 1, %s12264_s22  }
 0xf13   : > { %p12266_p10 = scmp.ne.s32.totalorder %s12265_s5, 0  ;;  %s7276_s29 = scalar_lea.sflag [#allocation4], %s7275_s26 }
 0xf15   : > { %p8416_p11 = pnand %p8421_p9, %p12266_p10 }
 0xf17   : > { %p8417_p12 = pneg %p8416_p11 }
 0xf19   : > { %8597 = dma.done.wait (%p8417_p12), %s7276_s29, 16  }
 0xf1a   : > { %8599 = vsyncadd (%p8417_p12), %s7276_s29, 4294967280  ;;  %s12267_s27 = sld [smem:[#allocation10_spill]]  ;;  %s12270_s24 = smov %s8606_s25 }
 0xf1b   : > { %s12268_s21 = sld [smem:[#allocation9_spill]] }
 0xf1c   : > { %s12269_s26 = sld [smem:[#allocation11_spill]] }
 0xf20   : > { %p28_p13 = scmp.ge.s32.totalorder %s12267_s27, 4  }
 0xf21   : > { %s12271_s25 = smov %s12268_s21 }
 0xf22   :  { %30 = sbr.rel (!%p28_p13) target bundleno = 8 (0x8), region = 144 }
 0xf27   :  { %7280 = vsyncpa [#allocation3], 1 }
 0xf28   :  { %7282 = vsyncpa [#allocation3 + $0x1], 1 }
 0xf29   :  { %7283 = vsyncpa [#allocation4], 1 }
 0xf2a   :  { %7285 = vsyncpa [#allocation4 + $0x1], 1 }

</bundles_post_ra>
